<compile_context>
chip_gen: v5e
topology: v5e:2x2
jax: 0.10.0
libtpu: 0.0.40
codegen_flags: <defaults>
</compile_context>

<pallas_src>
import functools

import jax
import jax.numpy as jnp
from jax.experimental import pallas as pl
from jax.experimental.pallas import tpu as pltpu


# ----------------------------------------------------------------------------
# The fused Pallas kernel (one grid step == one batch element)
# ----------------------------------------------------------------------------
def _sc_attention_kernel(
    x_ref, perm_ref, jmask_ref,
    wup_ref, bup_ref,
    s1w1_ref, s1b1_ref, s1w2_ref, s1b2_ref, s1w3_ref, s1b3_ref,
    c1w_ref, c1b_ref,
    c2w_ref, c2b_ref,
    s2w1_ref, s2b1_ref, s2w2_ref, s2b2_ref, s2w3_ref, s2b3_ref,
    o_ref,
    xpad_ref,
    *, hin, win, cin, cout, pad):
  f32 = jnp.float32
  bf16 = jnp.bfloat16
  wu = 2 * win                       # upsampled width
  hwup = 4 * hin * win               # upsampled pixel count (lane-dense, %128==0)

  # Zero the halo bands of the padded conv scratch (interior is overwritten
  # before each conv, halos provide the zero padding of the 3x3 convs).
  zpad = jnp.zeros((pad, cin), f32)
  xpad_ref[pl.ds(0, pad), :] = zpad
  xpad_ref[pl.ds(pad + hwup, pad), :] = zpad

  # ---- ConvTranspose2d(Cin, Cin, k=2, s=2): 4 sub-pixel matmuls (bf16 MXU),
  #      sub-pixel interleave folded into exact 0/1 scatter matmuls (f32). ----
  x_bf = x_ref[0].T.astype(bf16)                       # (HWin, Cin) channels-last
  up = jnp.zeros((hwup, cin), f32)
  for g in range(4):                                   # g = 2*kh + kw
    y_g = jnp.dot(x_bf, wup_ref[g], preferred_element_type=f32)     # (HWin, Cin)
    up = up + jnp.dot(perm_ref[g], y_g, preferred_element_type=f32)  # scatter
  up = up + bup_ref[...]

  # ---- scSE block (channel + spatial squeeze&excite), epilogues in f32 ----
  def scse(x, w1_ref, b1_ref, w2_ref, b2_ref, w3_ref, b3_ref):
    # branch1: global avg pool -> squeeze (ReLU) -> excite (sigmoid); f32 path.
    pooled = jnp.mean(x, axis=0, keepdims=True)                          # (1, C)
    h = jnp.maximum(
        jnp.dot(pooled, w2_ref[...], preferred_element_type=f32) + b2_ref[...],
        0.0)                                                             # (1, Cr)
    s1 = jax.nn.sigmoid(
        jnp.dot(h, w3_ref[...], preferred_element_type=f32) + b3_ref[...])  # (1, C)
    # branch2: per-pixel 1x1 conv gate (bf16 matmul, f32 accumulate).
    s2 = jax.nn.sigmoid(
        jnp.dot(x.astype(bf16), w1_ref[...], preferred_element_type=f32)
        + b1_ref[...])                                                   # (HW, C)
    # att1 + att2 = branch1*x + branch2*x = x * (s1 + s2)
    return x * (s1 + s2)

  act = scse(up, s1w1_ref, s1b1_ref, s1w2_ref, s1b2_ref, s1w3_ref, s1b3_ref)

  # ---- 3x3 conv (pad=1) + folded eval-mode BN + ReLU via padded VMEM scratch.
  #      No HBM im2col: 9 shifted window loads + 9 bf16 matmuls, f32 acc. ----
  def conv3x3_bn_relu(x, w_ref, b_ref, cout_):
    xpad_ref[pl.ds(pad, hwup), :] = x                  # interior; halos stay 0
    acc = jnp.zeros((hwup, cout_), f32)
    k = 0
    for oi in (-1, 0, 1):
      for oj in (-1, 0, 1):
        shift = oi * wu + oj
        shifted = xpad_ref[pl.ds(pad + shift, hwup), :]          # (HWup, Cin)
        contrib = jnp.dot(shifted.astype(bf16), w_ref[k],
                          preferred_element_type=f32)            # (HWup, Cout)
        # kill left/right column wrap-around (row wrap falls into the zero halo)
        if oj == -1:
          contrib = contrib * jmask_ref[:, 0:1]
        elif oj == 1:
          contrib = contrib * jmask_ref[:, 1:2]
        acc = acc + contrib
        k += 1
    return jnp.maximum(acc + b_ref[...], 0.0)          # folded BN bias + ReLU

  act = conv3x3_bn_relu(act, c1w_ref, c1b_ref, cin)    # Conv2d(Cin, Cin) + BN1
  act = conv3x3_bn_relu(act, c2w_ref, c2b_ref, cout)   # Conv2d(Cin, Cout) + BN2

  act = scse(act, s2w1_ref, s2b1_ref, s2w2_ref, s2b2_ref, s2w3_ref, s2b3_ref)

  # TODO(synk): Dropout2d(p=0.2) is identity in eval mode; training mode not implemented.

  # Lane-dense NCHW store: (Cout, 4*H*W) with last dim a multiple of 128.
  o_ref[0] = act.T.astype(o_ref.dtype)


# ----------------------------------------------------------------------------
# Host-side helpers: constant index matrices + weight packing (BN folded, bf16)
# ----------------------------------------------------------------------------
def _build_interleave_perm(hin, win):
  """(4, 4*Hin*Win, Hin*Win) 0/1 scatter matrices: up_flat = sum_g P[g] @ y_g."""
  hu, wu = 2 * hin, 2 * win
  p = jnp.arange(hu * wu)
  big_i, big_j = p // wu, p % wu
  g = 2 * (big_i % 2) + (big_j % 2)                 # sub-pixel group of dest pixel
  m = (big_i // 2) * win + (big_j // 2)             # source index within group
  src = jnp.arange(hin * win)
  mats = [((g == gg)[:, None] & (m[:, None] == src[None, :])).astype(jnp.float32)
          for gg in range(4)]
  return jnp.stack(mats, axis=0)


def _build_col_masks(hin, win):
  """(4*Hin*Win, 2) masks: col0 valid for left neighbor, col1 for right."""
  wu = 2 * win
  j = jnp.arange(4 * hin * win) % wu
  return jnp.stack([(j != 0).astype(jnp.float32),
                    (j != wu - 1).astype(jnp.float32)], axis=1)


def pack_params(p, hin, win, eps=1e-5):
  """Convert PyTorch-layout params into kernel-ready (bf16 matmul) tensors."""
  f32, bf16 = jnp.float32, jnp.bfloat16
  cin = p["up_w"].shape[0]

  def pack_scse(sp):
    c, cr = sp["w1"].shape[0], sp["w2"].shape[0]
    return (sp["w1"].T.astype(bf16), sp["b1"].reshape(1, c).astype(f32),
            sp["w2"].T.astype(f32), sp["b2"].reshape(1, cr).astype(f32),
            sp["w3"].T.astype(f32), sp["b3"].reshape(1, c).astype(f32))

  def pack_conv_bn(w, b, gamma, beta, mean, var):
    co = w.shape[0]
    scale = gamma / jnp.sqrt(var + eps)
    taps = [(w[:, :, di, dj] * scale[:, None]).T
            for di in range(3) for dj in range(3)]            # (Cin, Cout) per tap
    wk = jnp.stack(taps, axis=0).astype(bf16)                 # (9, Cin, Cout)
    bk = ((b - mean) * scale + beta).reshape(1, co).astype(f32)
    return wk, bk

  # ConvTranspose2d weight (Cin, Cout, 2, 2): group g = 2*kh+kw, RHS (Cin, Cout).
  wup = jnp.stack([p["up_w"][:, :, kh, kw] for kh in range(2) for kw in range(2)],
                  axis=0).astype(bf16)
  bup = p["up_b"].reshape(1, cin).astype(f32)
  c1w, c1b = pack_conv_bn(p["c1_w"], p["c1_b"], p["bn1_g"], p["bn1_b"],
                          p["bn1_m"], p["bn1_v"])
  c2w, c2b = pack_conv_bn(p["c2_w"], p["c2_b"], p["bn2_g"], p["bn2_b"],
                          p["bn2_m"], p["bn2_v"])
  return dict(perm=_build_interleave_perm(hin, win),
              jmask=_build_col_masks(hin, win),
              wup=wup, bup=bup,
              scse1=pack_scse(p["scse1"]),
              c1w=c1w, c1b=c1b, c2w=c2w, c2b=c2b,
              scse2=pack_scse(p["scse2"]))


# ----------------------------------------------------------------------------
# Forward wrapper: one pallas_call, only free reshapes outside the kernel
# ----------------------------------------------------------------------------
def sc_attention_forward(x_nchw, kp):
  n, cin, hin, win = x_nchw.shape
  cout = kp["c2b"].shape[1]
  cr1 = kp["scse1"][2].shape[1]
  cr2 = kp["scse2"][2].shape[1]
  hwin = hin * win
  hwup = 4 * hwin
  pad = ((2 * win + 1 + 7) // 8) * 8        # halo >= 2*win+1, sublane aligned

  x3 = x_nchw.reshape(n, cin, hwin)         # free reshape (NCHW, spatial flat)

  full2d = lambda shp: pl.BlockSpec(shp, lambda i: (0, 0))
  full3d = lambda shp: pl.BlockSpec(shp, lambda i: (0, 0, 0))

  kernel = functools.partial(_sc_attention_kernel, hin=hin, win=win,
                             cin=cin, cout=cout, pad=pad)
  out = pl.pallas_call(
      kernel,
      out_shape=jax.ShapeDtypeStruct((n, cout, hwup), x_nchw.dtype),
      grid=(n,),
      in_specs=[
          pl.BlockSpec((1, cin, hwin), lambda i: (i, 0, 0)),   # x (per batch)
          full3d((4, hwup, hwin)),                             # interleave scatter
          full2d((hwup, 2)),                                   # conv column masks
          full3d((4, cin, cin)), full2d((1, cin)),             # ConvTranspose
          full2d((cin, cin)), full2d((1, cin)),                # scSE1 w1,b1
          full2d((cin, cr1)), full2d((1, cr1)),                # scSE1 w2,b2
          full2d((cr1, cin)), full2d((1, cin)),                # scSE1 w3,b3
          full3d((9, cin, cin)), full2d((1, cin)),             # conv1+BN1 folded
          full3d((9, cin, cout)), full2d((1, cout)),           # conv2+BN2 folded
          full2d((cout, cout)), full2d((1, cout)),             # scSE2 w1,b1
          full2d((cout, cr2)), full2d((1, cr2)),               # scSE2 w2,b2
          full2d((cr2, cout)), full2d((1, cout)),              # scSE2 w3,b3
      ],
      out_specs=pl.BlockSpec((1, cout, hwup), lambda i: (i, 0, 0)),
      scratch_shapes=[pltpu.VMEM((pad + hwup + pad, cin), jnp.float32)],
      compiler_params=pltpu.CompilerParams(dimension_semantics=("parallel",)),
  )(
      x3, kp["perm"], kp["jmask"], kp["wup"], kp["bup"],
      *kp["scse1"], kp["c1w"], kp["c1b"], kp["c2w"], kp["c2b"], *kp["scse2"],
  )
  return out.reshape(n, cout, 2 * hin, 2 * win)   # free reshape -> NCHW


# ----------------------------------------------------------------------------
# Pure-JAX reference (f32, XLA ops) for a numerical sanity check
# ----------------------------------------------------------------------------
def reference_forward(x, p, eps=1e-5):
  def scse(y, sp):
    pooled = jnp.mean(y, axis=(2, 3), keepdims=True)
    h = jax.nn.relu(jnp.einsum("ncij,dc->ndij", pooled, sp["w2"])
                    + sp["b2"][None, :, None, None])
    s1 = jax.nn.sigmoid(jnp.einsum("ncij,dc->ndij", h, sp["w3"])
                        + sp["b3"][None, :, None, None])
    s2 = jax.nn.sigmoid(jnp.einsum("ncij,dc->ndij", y, sp["w1"])
                        + sp["b1"][None, :, None, None])
    return y * s1 + y * s2

  def conv_bn_relu(y, w, b, g, beta, m, v):
    z = jax.lax.conv_general_dilated(
        y, w, window_strides=(1, 1), padding=((1, 1), (1, 1)),
        dimension_numbers=("NCHW", "OIHW", "NCHW")) + b[None, :, None, None]
    z = (z - m[None, :, None, None]) / jnp.sqrt(v[None, :, None, None] + eps)
    z = z * g[None, :, None, None] + beta[None, :, None, None]
    return jax.nn.relu(z)

  nb, _, h, w = x.shape
  up = jnp.einsum("nchw,cdkl->ndhkwl", x, p["up_w"]).reshape(nb, -1, 2 * h, 2 * w)
  up = up + p["up_b"][None, :, None, None]
  out = scse(up, p["scse1"])
  out = conv_bn_relu(out, p["c1_w"], p["c1_b"], p["bn1_g"], p["bn1_b"],
                     p["bn1_m"], p["bn1_v"])
  out = conv_bn_relu(out, p["c2_w"], p["c2_b"], p["bn2_g"], p["bn2_b"],
                     p["bn2_m"], p["bn2_v"])
  return scse(out, p["scse2"])


# ----------------------------------------------------------------------------
# Deterministic parameter init (PyTorch-layout shapes)
# ----------------------------------------------------------------------------
def _scse_init(keys, c):
  cr = max(c // 16, 1)
  n = lambda k, s: 0.1 * jax.random.normal(k, s, jnp.float32)
  return {"w1": n(keys[0], (c, c)), "b1": n(keys[1], (c,)),
          "w2": n(keys[2], (cr, c)), "b2": n(keys[3], (cr,)),
          "w3": n(keys[4], (c, cr)), "b3": n(keys[5], (c,))}


def init_params(key, cin, cout):
  ks = jax.random.split(key, 26)
  n = lambda k, s: 0.1 * jax.random.normal(k, s, jnp.float32)
  pos = lambda k, s: 0.5 + jax.random.uniform(k, s, jnp.float32)
  return {
      "up_w": n(ks[0], (cin, cin, 2, 2)), "up_b": n(ks[1], (cin,)),
      "scse1": _scse_init(ks[2:8], cin),
      "c1_w": n(ks[8], (cin, cin, 3, 3)), "c1_b": n(ks[9], (cin,)),
      "bn1_g": 1.0 + n(ks[10], (cin,)), "bn1_b": n(ks[11], (cin,)),
      "bn1_m": n(ks[12], (cin,)), "bn1_v": pos(ks[13], (cin,)),
      "c2_w": n(ks[14], (cout, cin, 3, 3)), "c2_b": n(ks[15], (cout,)),
      "bn2_g": 1.0 + n(ks[16], (cout,)), "bn2_b": n(ks[17], (cout,)),
      "bn2_m": n(ks[18], (cout,)), "bn2_v": pos(ks[19], (cout,)),
      "scse2": _scse_init(ks[20:26], cout),
  }


if __name__ == "__main__":
  CIN, COUT = 64, 32          # in_channels // 16 must be >= 1 for the squeeze
  N, H, W = 2, 8, 8           # input spatial; upsampled to 16x16 (256 pixels)

  key = jax.random.PRNGKey(0)
  kx, kp_ = jax.random.split(key)
  x = jax.random.normal(kx, (N, CIN, H, W), dtype=jnp.float32)   # NCHW like PyTorch
  params = init_params(kp_, CIN, COUT)
  packed = pack_params(params, H, W)

  fwd = jax.jit(sc_attention_forward)
  out = fwd(x, packed)
  jax.block_until_ready(out)

  assert out.shape == (N, COUT, 2 * H, 2 * W), out.shape
  assert bool(jnp.all(jnp.isfinite(out)))

  # numerical sanity vs pure-JAX f32 reference (kernel uses bf16 matmul inputs)
  ref = reference_forward(x, params)
  rel = float(jnp.linalg.norm(out - ref) / jnp.linalg.norm(ref))
  assert rel < 5e-2, f"relative error vs reference too large: {rel}"

  print("KERNEL_OK")
</pallas_src>

<mosaic_0001>
module attributes {stable_mosaic.version = 11 : i64} {
  func.func @_sc_attention_kernel(%arg0: i32, %arg1: memref<1x64x64xf32, #tpu.memory_space<vmem>>, %arg2: memref<4x256x64xf32, #tpu.memory_space<vmem>>, %arg3: memref<256x2xf32, #tpu.memory_space<vmem>>, %arg4: memref<4x64x64xbf16, #tpu.memory_space<vmem>>, %arg5: memref<1x64xf32, #tpu.memory_space<vmem>>, %arg6: memref<64x64xbf16, #tpu.memory_space<vmem>>, %arg7: memref<1x64xf32, #tpu.memory_space<vmem>>, %arg8: memref<64x4xf32, #tpu.memory_space<vmem>>, %arg9: memref<1x4xf32, #tpu.memory_space<vmem>>, %arg10: memref<4x64xf32, #tpu.memory_space<vmem>>, %arg11: memref<1x64xf32, #tpu.memory_space<vmem>>, %arg12: memref<9x64x64xbf16, #tpu.memory_space<vmem>>, %arg13: memref<1x64xf32, #tpu.memory_space<vmem>>, %arg14: memref<9x64x32xbf16, #tpu.memory_space<vmem>>, %arg15: memref<1x32xf32, #tpu.memory_space<vmem>>, %arg16: memref<32x32xbf16, #tpu.memory_space<vmem>>, %arg17: memref<1x32xf32, #tpu.memory_space<vmem>>, %arg18: memref<32x2xf32, #tpu.memory_space<vmem>>, %arg19: memref<1x2xf32, #tpu.memory_space<vmem>>, %arg20: memref<2x32xf32, #tpu.memory_space<vmem>>, %arg21: memref<1x32xf32, #tpu.memory_space<vmem>>, %arg22: memref<1x32x256xf32, #tpu.memory_space<vmem>>, %arg23: memref<304x64xf32, #tpu.memory_space<vmem>>) attributes {dimension_semantics = [#tpu.dimension_semantics<parallel>], iteration_bounds = array<i64: 2>, scalar_prefetch = 0 : i64, scratch_operands = 1 : i64, tpu.core_type = #tpu.core_type<tc>, window_params = [{transform_indices = @transform_0, window_bounds = array<i64: 1, 64, 64>}, {pipeline_mode = #tpu.pipeline_mode<synchronous>, transform_indices = @transform_1, window_bounds = array<i64: 4, 256, 64>}, {pipeline_mode = #tpu.pipeline_mode<synchronous>, transform_indices = @transform_2, window_bounds = array<i64: 256, 2>}, {pipeline_mode = #tpu.pipeline_mode<synchronous>, transform_indices = @transform_3, window_bounds = array<i64: 4, 64, 64>}, {pipeline_mode = #tpu.pipeline_mode<synchronous>, transform_indices = @transform_4, window_bounds = array<i64: 1, 64>}, {pipeline_mode = #tpu.pipeline_mode<synchronous>, transform_indices = @transform_5, window_bounds = array<i64: 64, 64>}, {pipeline_mode = #tpu.pipeline_mode<synchronous>, transform_indices = @transform_6, window_bounds = array<i64: 1, 64>}, {pipeline_mode = #tpu.pipeline_mode<synchronous>, transform_indices = @transform_7, window_bounds = array<i64: 64, 4>}, {pipeline_mode = #tpu.pipeline_mode<synchronous>, transform_indices = @transform_8, window_bounds = array<i64: 1, 4>}, {pipeline_mode = #tpu.pipeline_mode<synchronous>, transform_indices = @transform_9, window_bounds = array<i64: 4, 64>}, {pipeline_mode = #tpu.pipeline_mode<synchronous>, transform_indices = @transform_10, window_bounds = array<i64: 1, 64>}, {pipeline_mode = #tpu.pipeline_mode<synchronous>, transform_indices = @transform_11, window_bounds = array<i64: 9, 64, 64>}, {pipeline_mode = #tpu.pipeline_mode<synchronous>, transform_indices = @transform_12, window_bounds = array<i64: 1, 64>}, {pipeline_mode = #tpu.pipeline_mode<synchronous>, transform_indices = @transform_13, window_bounds = array<i64: 9, 64, 32>}, {pipeline_mode = #tpu.pipeline_mode<synchronous>, transform_indices = @transform_14, window_bounds = array<i64: 1, 32>}, {pipeline_mode = #tpu.pipeline_mode<synchronous>, transform_indices = @transform_15, window_bounds = array<i64: 32, 32>}, {pipeline_mode = #tpu.pipeline_mode<synchronous>, transform_indices = @transform_16, window_bounds = array<i64: 1, 32>}, {pipeline_mode = #tpu.pipeline_mode<synchronous>, transform_indices = @transform_17, window_bounds = array<i64: 32, 2>}, {pipeline_mode = #tpu.pipeline_mode<synchronous>, transform_indices = @transform_18, window_bounds = array<i64: 1, 2>}, {pipeline_mode = #tpu.pipeline_mode<synchronous>, transform_indices = @transform_19, window_bounds = array<i64: 2, 32>}, {pipeline_mode = #tpu.pipeline_mode<synchronous>, transform_indices = @transform_20, window_bounds = array<i64: 1, 32>}, {transform_indices = @transform_21, window_bounds = array<i64: 1, 32, 256>}]} {
    %cst = arith.constant 0.000000e+00 : f32
    %0 = vector.broadcast %cst : f32 to vector<24x64xf32>
    %c0 = arith.constant 0 : index
    %c0_0 = arith.constant 0 : index
    %1 = vector.load %arg23[%c0, %c0_0] : memref<304x64xf32, #tpu.memory_space<vmem>>, vector<24x64xf32>
    tpu.vector_store %arg23[%c0, %c0_0], %0 {strides = array<i32>} : memref<304x64xf32, #tpu.memory_space<vmem>>, vector<24x64xf32>,
    %c280 = arith.constant 280 : index
    %c0_1 = arith.constant 0 : index
    %2 = vector.load %arg23[%c280, %c0_1] : memref<304x64xf32, #tpu.memory_space<vmem>>, vector<24x64xf32>
    tpu.vector_store %arg23[%c280, %c0_1], %0 {strides = array<i32>} : memref<304x64xf32, #tpu.memory_space<vmem>>, vector<24x64xf32>,
    %c0_2 = arith.constant 0 : index
    %c0_3 = arith.constant 0 : index
    %c0_4 = arith.constant 0 : index
    %3 = vector.load %arg1[%c0_2, %c0_3, %c0_4] : memref<1x64x64xf32, #tpu.memory_space<vmem>>, vector<1x64x64xf32>
    %4 = vector.shape_cast %3 : vector<1x64x64xf32> to vector<64x64xf32>
    %5 = tpu.transpose %4, [1, 0] : vector<64x64xf32> -> vector<64x64xf32>
    %6 = arith.truncf %5 : vector<64x64xf32> to vector<64x64xbf16>
    %cst_5 = arith.constant 0.000000e+00 : f32
    %7 = vector.broadcast %cst_5 : f32 to vector<256x64xf32>
    %c0_6 = arith.constant 0 : index
    %c0_7 = arith.constant 0 : index
    %c0_8 = arith.constant 0 : index
    %8 = vector.load %arg4[%c0_6, %c0_7, %c0_8] : memref<4x64x64xbf16, #tpu.memory_space<vmem>>, vector<1x64x64xbf16>
    %9 = vector.shape_cast %8 : vector<1x64x64xbf16> to vector<64x64xbf16>
    %cst_9 = arith.constant dense<0.000000e+00> : vector<64x64xf32>
    %10 = tpu.matmul %6, %9, %cst_9 {dimension_numbers = #tpu.dot_dimension_numbers<[1], [0], [0], [1], [0, 0, 1, 1], [], []>} : vector<64x64xbf16>, vector<64x64xbf16>, vector<64x64xf32> -> vector<64x64xf32>
    %c0_10 = arith.constant 0 : index
    %c0_11 = arith.constant 0 : index
    %c0_12 = arith.constant 0 : index
    %11 = vector.load %arg2[%c0_10, %c0_11, %c0_12] : memref<4x256x64xf32, #tpu.memory_space<vmem>>, vector<1x256x64xf32>
    %12 = vector.shape_cast %11 : vector<1x256x64xf32> to vector<256x64xf32>
    %cst_13 = arith.constant dense<0.000000e+00> : vector<256x64xf32>
    %13 = tpu.matmul %12, %10, %cst_13 {dimension_numbers = #tpu.dot_dimension_numbers<[1], [0], [0], [1], [0, 0, 1, 1], [], []>} : vector<256x64xf32>, vector<64x64xf32>, vector<256x64xf32> -> vector<256x64xf32>
    %14 = arith.addf %7, %13 : vector<256x64xf32>
    %c1 = arith.constant 1 : index
    %c0_14 = arith.constant 0 : index
    %c0_15 = arith.constant 0 : index
    %15 = vector.load %arg4[%c1, %c0_14, %c0_15] : memref<4x64x64xbf16, #tpu.memory_space<vmem>>, vector<1x64x64xbf16>
    %16 = vector.shape_cast %15 : vector<1x64x64xbf16> to vector<64x64xbf16>
    %cst_16 = arith.constant dense<0.000000e+00> : vector<64x64xf32>
    %17 = tpu.matmul %6, %16, %cst_16 {dimension_numbers = #tpu.dot_dimension_numbers<[1], [0], [0], [1], [0, 0, 1, 1], [], []>} : vector<64x64xbf16>, vector<64x64xbf16>, vector<64x64xf32> -> vector<64x64xf32>
    %c1_17 = arith.constant 1 : index
    %c0_18 = arith.constant 0 : index
    %c0_19 = arith.constant 0 : index
    %18 = vector.load %arg2[%c1_17, %c0_18, %c0_19] : memref<4x256x64xf32, #tpu.memory_space<vmem>>, vector<1x256x64xf32>
    %19 = vector.shape_cast %18 : vector<1x256x64xf32> to vector<256x64xf32>
    %cst_20 = arith.constant dense<0.000000e+00> : vector<256x64xf32>
    %20 = tpu.matmul %19, %17, %cst_20 {dimension_numbers = #tpu.dot_dimension_numbers<[1], [0], [0], [1], [0, 0, 1, 1], [], []>} : vector<256x64xf32>, vector<64x64xf32>, vector<256x64xf32> -> vector<256x64xf32>
    %21 = arith.addf %14, %20 : vector<256x64xf32>
    %c2 = arith.constant 2 : index
    %c0_21 = arith.constant 0 : index
    %c0_22 = arith.constant 0 : index
    %22 = vector.load %arg4[%c2, %c0_21, %c0_22] : memref<4x64x64xbf16, #tpu.memory_space<vmem>>, vector<1x64x64xbf16>
    %23 = vector.shape_cast %22 : vector<1x64x64xbf16> to vector<64x64xbf16>
    %cst_23 = arith.constant dense<0.000000e+00> : vector<64x64xf32>
    %24 = tpu.matmul %6, %23, %cst_23 {dimension_numbers = #tpu.dot_dimension_numbers<[1], [0], [0], [1], [0, 0, 1, 1], [], []>} : vector<64x64xbf16>, vector<64x64xbf16>, vector<64x64xf32> -> vector<64x64xf32>
    %c2_24 = arith.constant 2 : index
    %c0_25 = arith.constant 0 : index
    %c0_26 = arith.constant 0 : index
    %25 = vector.load %arg2[%c2_24, %c0_25, %c0_26] : memref<4x256x64xf32, #tpu.memory_space<vmem>>, vector<1x256x64xf32>
    %26 = vector.shape_cast %25 : vector<1x256x64xf32> to vector<256x64xf32>
    %cst_27 = arith.constant dense<0.000000e+00> : vector<256x64xf32>
    %27 = tpu.matmul %26, %24, %cst_27 {dimension_numbers = #tpu.dot_dimension_numbers<[1], [0], [0], [1], [0, 0, 1, 1], [], []>} : vector<256x64xf32>, vector<64x64xf32>, vector<256x64xf32> -> vector<256x64xf32>
    %28 = arith.addf %21, %27 : vector<256x64xf32>
    %c3 = arith.constant 3 : index
    %c0_28 = arith.constant 0 : index
    %c0_29 = arith.constant 0 : index
    %29 = vector.load %arg4[%c3, %c0_28, %c0_29] : memref<4x64x64xbf16, #tpu.memory_space<vmem>>, vector<1x64x64xbf16>
    %30 = vector.shape_cast %29 : vector<1x64x64xbf16> to vector<64x64xbf16>
    %cst_30 = arith.constant dense<0.000000e+00> : vector<64x64xf32>
    %31 = tpu.matmul %6, %30, %cst_30 {dimension_numbers = #tpu.dot_dimension_numbers<[1], [0], [0], [1], [0, 0, 1, 1], [], []>} : vector<64x64xbf16>, vector<64x64xbf16>, vector<64x64xf32> -> vector<64x64xf32>
    %c3_31 = arith.constant 3 : index
    %c0_32 = arith.constant 0 : index
    %c0_33 = arith.constant 0 : index
    %32 = vector.load %arg2[%c3_31, %c0_32, %c0_33] : memref<4x256x64xf32, #tpu.memory_space<vmem>>, vector<1x256x64xf32>
    %33 = vector.shape_cast %32 : vector<1x256x64xf32> to vector<256x64xf32>
    %cst_34 = arith.constant dense<0.000000e+00> : vector<256x64xf32>
    %34 = tpu.matmul %33, %31, %cst_34 {dimension_numbers = #tpu.dot_dimension_numbers<[1], [0], [0], [1], [0, 0, 1, 1], [], []>} : vector<256x64xf32>, vector<64x64xf32>, vector<256x64xf32> -> vector<256x64xf32>
    %35 = arith.addf %28, %34 : vector<256x64xf32>
    %c0_35 = arith.constant 0 : index
    %c0_36 = arith.constant 0 : index
    %36 = vector.load %arg5[%c0_35, %c0_36] : memref<1x64xf32, #tpu.memory_space<vmem>>, vector<1x64xf32>
    %37 = vector.broadcast %36 : vector<1x64xf32> to vector<256x64xf32>
    %38 = arith.addf %35, %37 : vector<256x64xf32>
    %cst_37 = arith.constant dense<0.000000e+00> : vector<64xf32>
    %39 = vector.multi_reduction <add>, %38, %cst_37 [0] : vector<256x64xf32> to vector<64xf32>
    %40 = vector.shape_cast %39 : vector<64xf32> to vector<1x64xf32>
    %cst_38 = arith.constant 2.560000e+02 : f32
    %41 = vector.broadcast %cst_38 : f32 to vector<1x64xf32>
    %42 = arith.divf %40, %41 : vector<1x64xf32>
    %c0_39 = arith.constant 0 : index
    %c0_40 = arith.constant 0 : index
    %43 = vector.load %arg8[%c0_39, %c0_40] : memref<64x4xf32, #tpu.memory_space<vmem>>, vector<64x4xf32>
    %cst_41 = arith.constant dense<0.000000e+00> : vector<1x4xf32>
    %44 = tpu.matmul %42, %43, %cst_41 {dimension_numbers = #tpu.dot_dimension_numbers<[1], [0], [0], [1], [0, 0, 1, 1], [], []>} : vector<1x64xf32>, vector<64x4xf32>, vector<1x4xf32> -> vector<1x4xf32>
    %c0_42 = arith.constant 0 : index
    %c0_43 = arith.constant 0 : index
    %45 = vector.load %arg9[%c0_42, %c0_43] : memref<1x4xf32, #tpu.memory_space<vmem>>, vector<1x4xf32>
    %46 = arith.addf %44, %45 : vector<1x4xf32>
    %cst_44 = arith.constant 0.000000e+00 : f32
    %47 = vector.broadcast %cst_44 : f32 to vector<1x4xf32>
    %48 = arith.maximumf %46, %47 : vector<1x4xf32>
    %c0_45 = arith.constant 0 : index
    %c0_46 = arith.constant 0 : index
    %49 = vector.load %arg10[%c0_45, %c0_46] : memref<4x64xf32, #tpu.memory_space<vmem>>, vector<4x64xf32>
    %cst_47 = arith.constant dense<0.000000e+00> : vector<1x64xf32>
    %50 = tpu.matmul %48, %49, %cst_47 {dimension_numbers = #tpu.dot_dimension_numbers<[1], [0], [0], [1], [0, 0, 1, 1], [], []>} : vector<1x4xf32>, vector<4x64xf32>, vector<1x64xf32> -> vector<1x64xf32>
    %c0_48 = arith.constant 0 : index
    %c0_49 = arith.constant 0 : index
    %51 = vector.load %arg11[%c0_48, %c0_49] : memref<1x64xf32, #tpu.memory_space<vmem>>, vector<1x64xf32>
    %52 = arith.addf %50, %51 : vector<1x64xf32>
    %53 = arith.negf %52 : vector<1x64xf32>
    %54 = math.exp %53 : vector<1x64xf32>
    %cst_50 = arith.constant 1.000000e+00 : f32
    %55 = vector.broadcast %cst_50 : f32 to vector<1x64xf32>
    %56 = arith.addf %55, %54 : vector<1x64xf32>
    %57 = arith.divf %55, %56 : vector<1x64xf32>
    %58 = arith.truncf %38 : vector<256x64xf32> to vector<256x64xbf16>
    %c0_51 = arith.constant 0 : index
    %c0_52 = arith.constant 0 : index
    %59 = vector.load %arg6[%c0_51, %c0_52] : memref<64x64xbf16, #tpu.memory_space<vmem>>, vector<64x64xbf16>
    %cst_53 = arith.constant dense<0.000000e+00> : vector<256x64xf32>
    %60 = tpu.matmul %58, %59, %cst_53 {dimension_numbers = #tpu.dot_dimension_numbers<[1], [0], [0], [1], [0, 0, 1, 1], [], []>} : vector<256x64xbf16>, vector<64x64xbf16>, vector<256x64xf32> -> vector<256x64xf32>
    %c0_54 = arith.constant 0 : index
    %c0_55 = arith.constant 0 : index
    %61 = vector.load %arg7[%c0_54, %c0_55] : memref<1x64xf32, #tpu.memory_space<vmem>>, vector<1x64xf32>
    %62 = vector.broadcast %61 : vector<1x64xf32> to vector<256x64xf32>
    %63 = arith.addf %60, %62 : vector<256x64xf32>
    %64 = arith.negf %63 : vector<256x64xf32>
    %65 = math.exp %64 : vector<256x64xf32>
    %cst_56 = arith.constant 1.000000e+00 : f32
    %66 = vector.broadcast %cst_56 : f32 to vector<256x64xf32>
    %67 = arith.addf %66, %65 : vector<256x64xf32>
    %68 = arith.divf %66, %67 : vector<256x64xf32>
    %69 = vector.broadcast %57 : vector<1x64xf32> to vector<256x64xf32>
    %70 = arith.addf %69, %68 : vector<256x64xf32>
    %71 = arith.mulf %38, %70 : vector<256x64xf32>
    %c24 = arith.constant 24 : index
    %c0_57 = arith.constant 0 : index
    %72 = vector.load %arg23[%c24, %c0_57] : memref<304x64xf32, #tpu.memory_space<vmem>>, vector<256x64xf32>
    tpu.vector_store %arg23[%c24, %c0_57], %71 {strides = array<i32>} : memref<304x64xf32, #tpu.memory_space<vmem>>, vector<256x64xf32>,
    %cst_58 = arith.constant 0.000000e+00 : f32
    %73 = vector.broadcast %cst_58 : f32 to vector<256x64xf32>
    %c7 = arith.constant 7 : index
    %c0_59 = arith.constant 0 : index
    %74 = vector.load %arg23[%c7, %c0_59] : memref<304x64xf32, #tpu.memory_space<vmem>>, vector<256x64xf32>
    %75 = arith.truncf %74 : vector<256x64xf32> to vector<256x64xbf16>
    %c0_60 = arith.constant 0 : index
    %c0_61 = arith.constant 0 : index
    %c0_62 = arith.constant 0 : index
    %76 = vector.load %arg12[%c0_60, %c0_61, %c0_62] : memref<9x64x64xbf16, #tpu.memory_space<vmem>>, vector<1x64x64xbf16>
    %77 = vector.shape_cast %76 : vector<1x64x64xbf16> to vector<64x64xbf16>
    %cst_63 = arith.constant dense<0.000000e+00> : vector<256x64xf32>
    %78 = tpu.matmul %75, %77, %cst_63 {dimension_numbers = #tpu.dot_dimension_numbers<[1], [0], [0], [1], [0, 0, 1, 1], [], []>} : vector<256x64xbf16>, vector<64x64xbf16>, vector<256x64xf32> -> vector<256x64xf32>
    %c0_64 = arith.constant 0 : index
    %c0_65 = arith.constant 0 : index
    %79 = vector.load %arg3[%c0_64, %c0_65] : memref<256x2xf32, #tpu.memory_space<vmem>>, vector<256x1xf32>
    %80 = vector.broadcast %79 : vector<256x1xf32> to vector<256x64xf32>
    %81 = arith.mulf %78, %80 : vector<256x64xf32>
    %82 = arith.addf %73, %81 : vector<256x64xf32>
    %c8 = arith.constant 8 : index
    %c0_66 = arith.constant 0 : index
    %83 = vector.load %arg23[%c8, %c0_66] : memref<304x64xf32, #tpu.memory_space<vmem>>, vector<256x64xf32>
    %84 = arith.truncf %83 : vector<256x64xf32> to vector<256x64xbf16>
    %c1_67 = arith.constant 1 : index
    %c0_68 = arith.constant 0 : index
    %c0_69 = arith.constant 0 : index
    %85 = vector.load %arg12[%c1_67, %c0_68, %c0_69] : memref<9x64x64xbf16, #tpu.memory_space<vmem>>, vector<1x64x64xbf16>
    %86 = vector.shape_cast %85 : vector<1x64x64xbf16> to vector<64x64xbf16>
    %cst_70 = arith.constant dense<0.000000e+00> : vector<256x64xf32>
    %87 = tpu.matmul %84, %86, %cst_70 {dimension_numbers = #tpu.dot_dimension_numbers<[1], [0], [0], [1], [0, 0, 1, 1], [], []>} : vector<256x64xbf16>, vector<64x64xbf16>, vector<256x64xf32> -> vector<256x64xf32>
    %88 = arith.addf %82, %87 : vector<256x64xf32>
    %c9 = arith.constant 9 : index
    %c0_71 = arith.constant 0 : index
    %89 = vector.load %arg23[%c9, %c0_71] : memref<304x64xf32, #tpu.memory_space<vmem>>, vector<256x64xf32>
    %90 = arith.truncf %89 : vector<256x64xf32> to vector<256x64xbf16>
    %c2_72 = arith.constant 2 : index
    %c0_73 = arith.constant 0 : index
    %c0_74 = arith.constant 0 : index
    %91 = vector.load %arg12[%c2_72, %c0_73, %c0_74] : memref<9x64x64xbf16, #tpu.memory_space<vmem>>, vector<1x64x64xbf16>
    %92 = vector.shape_cast %91 : vector<1x64x64xbf16> to vector<64x64xbf16>
    %cst_75 = arith.constant dense<0.000000e+00> : vector<256x64xf32>
    %93 = tpu.matmul %90, %92, %cst_75 {dimension_numbers = #tpu.dot_dimension_numbers<[1], [0], [0], [1], [0, 0, 1, 1], [], []>} : vector<256x64xbf16>, vector<64x64xbf16>, vector<256x64xf32> -> vector<256x64xf32>
    %c0_76 = arith.constant 0 : index
    %c1_77 = arith.constant 1 : index
    %94 = vector.load %arg3[%c0_76, %c1_77] : memref<256x2xf32, #tpu.memory_space<vmem>>, vector<256x1xf32>
    %95 = vector.broadcast %94 : vector<256x1xf32> to vector<256x64xf32>
    %96 = arith.mulf %93, %95 : vector<256x64xf32>
    %97 = arith.addf %88, %96 : vector<256x64xf32>
    %c23 = arith.constant 23 : index
    %c0_78 = arith.constant 0 : index
    %98 = vector.load %arg23[%c23, %c0_78] : memref<304x64xf32, #tpu.memory_space<vmem>>, vector<256x64xf32>
    %99 = arith.truncf %98 : vector<256x64xf32> to vector<256x64xbf16>
    %c3_79 = arith.constant 3 : index
    %c0_80 = arith.constant 0 : index
    %c0_81 = arith.constant 0 : index
    %100 = vector.load %arg12[%c3_79, %c0_80, %c0_81] : memref<9x64x64xbf16, #tpu.memory_space<vmem>>, vector<1x64x64xbf16>
    %101 = vector.shape_cast %100 : vector<1x64x64xbf16> to vector<64x64xbf16>
    %cst_82 = arith.constant dense<0.000000e+00> : vector<256x64xf32>
    %102 = tpu.matmul %99, %101, %cst_82 {dimension_numbers = #tpu.dot_dimension_numbers<[1], [0], [0], [1], [0, 0, 1, 1], [], []>} : vector<256x64xbf16>, vector<64x64xbf16>, vector<256x64xf32> -> vector<256x64xf32>
    %c0_83 = arith.constant 0 : index
    %c0_84 = arith.constant 0 : index
    %103 = vector.load %arg3[%c0_83, %c0_84] : memref<256x2xf32, #tpu.memory_space<vmem>>, vector<256x1xf32>
    %104 = vector.broadcast %103 : vector<256x1xf32> to vector<256x64xf32>
    %105 = arith.mulf %102, %104 : vector<256x64xf32>
    %106 = arith.addf %97, %105 : vector<256x64xf32>
    %c24_85 = arith.constant 24 : index
    %c0_86 = arith.constant 0 : index
    %107 = vector.load %arg23[%c24_85, %c0_86] : memref<304x64xf32, #tpu.memory_space<vmem>>, vector<256x64xf32>
    %108 = arith.truncf %107 : vector<256x64xf32> to vector<256x64xbf16>
    %c4 = arith.constant 4 : index
    %c0_87 = arith.constant 0 : index
    %c0_88 = arith.constant 0 : index
    %109 = vector.load %arg12[%c4, %c0_87, %c0_88] : memref<9x64x64xbf16, #tpu.memory_space<vmem>>, vector<1x64x64xbf16>
    %110 = vector.shape_cast %109 : vector<1x64x64xbf16> to vector<64x64xbf16>
    %cst_89 = arith.constant dense<0.000000e+00> : vector<256x64xf32>
    %111 = tpu.matmul %108, %110, %cst_89 {dimension_numbers = #tpu.dot_dimension_numbers<[1], [0], [0], [1], [0, 0, 1, 1], [], []>} : vector<256x64xbf16>, vector<64x64xbf16>, vector<256x64xf32> -> vector<256x64xf32>
    %112 = arith.addf %106, %111 : vector<256x64xf32>
    %c25 = arith.constant 25 : index
    %c0_90 = arith.constant 0 : index
    %113 = vector.load %arg23[%c25, %c0_90] : memref<304x64xf32, #tpu.memory_space<vmem>>, vector<256x64xf32>
    %114 = arith.truncf %113 : vector<256x64xf32> to vector<256x64xbf16>
    %c5 = arith.constant 5 : index
    %c0_91 = arith.constant 0 : index
    %c0_92 = arith.constant 0 : index
    %115 = vector.load %arg12[%c5, %c0_91, %c0_92] : memref<9x64x64xbf16, #tpu.memory_space<vmem>>, vector<1x64x64xbf16>
    %116 = vector.shape_cast %115 : vector<1x64x64xbf16> to vector<64x64xbf16>
    %cst_93 = arith.constant dense<0.000000e+00> : vector<256x64xf32>
    %117 = tpu.matmul %114, %116, %cst_93 {dimension_numbers = #tpu.dot_dimension_numbers<[1], [0], [0], [1], [0, 0, 1, 1], [], []>} : vector<256x64xbf16>, vector<64x64xbf16>, vector<256x64xf32> -> vector<256x64xf32>
    %c0_94 = arith.constant 0 : index
    %c1_95 = arith.constant 1 : index
    %118 = vector.load %arg3[%c0_94, %c1_95] : memref<256x2xf32, #tpu.memory_space<vmem>>, vector<256x1xf32>
    %119 = vector.broadcast %118 : vector<256x1xf32> to vector<256x64xf32>
    %120 = arith.mulf %117, %119 : vector<256x64xf32>
    %121 = arith.addf %112, %120 : vector<256x64xf32>
    %c39 = arith.constant 39 : index
    %c0_96 = arith.constant 0 : index
    %122 = vector.load %arg23[%c39, %c0_96] : memref<304x64xf32, #tpu.memory_space<vmem>>, vector<256x64xf32>
    %123 = arith.truncf %122 : vector<256x64xf32> to vector<256x64xbf16>
    %c6 = arith.constant 6 : index
    %c0_97 = arith.constant 0 : index
    %c0_98 = arith.constant 0 : index
    %124 = vector.load %arg12[%c6, %c0_97, %c0_98] : memref<9x64x64xbf16, #tpu.memory_space<vmem>>, vector<1x64x64xbf16>
    %125 = vector.shape_cast %124 : vector<1x64x64xbf16> to vector<64x64xbf16>
    %cst_99 = arith.constant dense<0.000000e+00> : vector<256x64xf32>
    %126 = tpu.matmul %123, %125, %cst_99 {dimension_numbers = #tpu.dot_dimension_numbers<[1], [0], [0], [1], [0, 0, 1, 1], [], []>} : vector<256x64xbf16>, vector<64x64xbf16>, vector<256x64xf32> -> vector<256x64xf32>
    %c0_100 = arith.constant 0 : index
    %c0_101 = arith.constant 0 : index
    %127 = vector.load %arg3[%c0_100, %c0_101] : memref<256x2xf32, #tpu.memory_space<vmem>>, vector<256x1xf32>
    %128 = vector.broadcast %127 : vector<256x1xf32> to vector<256x64xf32>
    %129 = arith.mulf %126, %128 : vector<256x64xf32>
    %130 = arith.addf %121, %129 : vector<256x64xf32>
    %c40 = arith.constant 40 : index
    %c0_102 = arith.constant 0 : index
    %131 = vector.load %arg23[%c40, %c0_102] : memref<304x64xf32, #tpu.memory_space<vmem>>, vector<256x64xf32>
    %132 = arith.truncf %131 : vector<256x64xf32> to vector<256x64xbf16>
    %c7_103 = arith.constant 7 : index
    %c0_104 = arith.constant 0 : index
    %c0_105 = arith.constant 0 : index
    %133 = vector.load %arg12[%c7_103, %c0_104, %c0_105] : memref<9x64x64xbf16, #tpu.memory_space<vmem>>, vector<1x64x64xbf16>
    %134 = vector.shape_cast %133 : vector<1x64x64xbf16> to vector<64x64xbf16>
    %cst_106 = arith.constant dense<0.000000e+00> : vector<256x64xf32>
    %135 = tpu.matmul %132, %134, %cst_106 {dimension_numbers = #tpu.dot_dimension_numbers<[1], [0], [0], [1], [0, 0, 1, 1], [], []>} : vector<256x64xbf16>, vector<64x64xbf16>, vector<256x64xf32> -> vector<256x64xf32>
    %136 = arith.addf %130, %135 : vector<256x64xf32>
    %c41 = arith.constant 41 : index
    %c0_107 = arith.constant 0 : index
    %137 = vector.load %arg23[%c41, %c0_107] : memref<304x64xf32, #tpu.memory_space<vmem>>, vector<256x64xf32>
    %138 = arith.truncf %137 : vector<256x64xf32> to vector<256x64xbf16>
    %c8_108 = arith.constant 8 : index
    %c0_109 = arith.constant 0 : index
    %c0_110 = arith.constant 0 : index
    %139 = vector.load %arg12[%c8_108, %c0_109, %c0_110] : memref<9x64x64xbf16, #tpu.memory_space<vmem>>, vector<1x64x64xbf16>
    %140 = vector.shape_cast %139 : vector<1x64x64xbf16> to vector<64x64xbf16>
    %cst_111 = arith.constant dense<0.000000e+00> : vector<256x64xf32>
    %141 = tpu.matmul %138, %140, %cst_111 {dimension_numbers = #tpu.dot_dimension_numbers<[1], [0], [0], [1], [0, 0, 1, 1], [], []>} : vector<256x64xbf16>, vector<64x64xbf16>, vector<256x64xf32> -> vector<256x64xf32>
    %c0_112 = arith.constant 0 : index
    %c1_113 = arith.constant 1 : index
    %142 = vector.load %arg3[%c0_112, %c1_113] : memref<256x2xf32, #tpu.memory_space<vmem>>, vector<256x1xf32>
    %143 = vector.broadcast %142 : vector<256x1xf32> to vector<256x64xf32>
    %144 = arith.mulf %141, %143 : vector<256x64xf32>
    %145 = arith.addf %136, %144 : vector<256x64xf32>
    %c0_114 = arith.constant 0 : index
    %c0_115 = arith.constant 0 : index
    %146 = vector.load %arg13[%c0_114, %c0_115] : memref<1x64xf32, #tpu.memory_space<vmem>>, vector<1x64xf32>
    %147 = vector.broadcast %146 : vector<1x64xf32> to vector<256x64xf32>
    %148 = arith.addf %145, %147 : vector<256x64xf32>
    %cst_116 = arith.constant 0.000000e+00 : f32
    %149 = vector.broadcast %cst_116 : f32 to vector<256x64xf32>
    %150 = arith.maximumf %148, %149 : vector<256x64xf32>
    %c24_117 = arith.constant 24 : index
    %c0_118 = arith.constant 0 : index
    %151 = vector.load %arg23[%c24_117, %c0_118] : memref<304x64xf32, #tpu.memory_space<vmem>>, vector<256x64xf32>
    tpu.vector_store %arg23[%c24_117, %c0_118], %150 {strides = array<i32>} : memref<304x64xf32, #tpu.memory_space<vmem>>, vector<256x64xf32>,
    %cst_119 = arith.constant 0.000000e+00 : f32
    %152 = vector.broadcast %cst_119 : f32 to vector<256x32xf32>
    %c7_120 = arith.constant 7 : index
    %c0_121 = arith.constant 0 : index
    %153 = vector.load %arg23[%c7_120, %c0_121] : memref<304x64xf32, #tpu.memory_space<vmem>>, vector<256x64xf32>
    %154 = arith.truncf %153 : vector<256x64xf32> to vector<256x64xbf16>
    %c0_122 = arith.constant 0 : index
    %c0_123 = arith.constant 0 : index
    %c0_124 = arith.constant 0 : index
    %155 = vector.load %arg14[%c0_122, %c0_123, %c0_124] : memref<9x64x32xbf16, #tpu.memory_space<vmem>>, vector<1x64x32xbf16>
    %156 = vector.shape_cast %155 : vector<1x64x32xbf16> to vector<64x32xbf16>
    %cst_125 = arith.constant dense<0.000000e+00> : vector<256x32xf32>
    %157 = tpu.matmul %154, %156, %cst_125 {dimension_numbers = #tpu.dot_dimension_numbers<[1], [0], [0], [1], [0, 0, 1, 1], [], []>} : vector<256x64xbf16>, vector<64x32xbf16>, vector<256x32xf32> -> vector<256x32xf32>
    %c0_126 = arith.constant 0 : index
    %c0_127 = arith.constant 0 : index
    %158 = vector.load %arg3[%c0_126, %c0_127] : memref<256x2xf32, #tpu.memory_space<vmem>>, vector<256x1xf32>
    %159 = vector.broadcast %158 : vector<256x1xf32> to vector<256x32xf32>
    %160 = arith.mulf %157, %159 : vector<256x32xf32>
    %161 = arith.addf %152, %160 : vector<256x32xf32>
    %c8_128 = arith.constant 8 : index
    %c0_129 = arith.constant 0 : index
    %162 = vector.load %arg23[%c8_128, %c0_129] : memref<304x64xf32, #tpu.memory_space<vmem>>, vector<256x64xf32>
    %163 = arith.truncf %162 : vector<256x64xf32> to vector<256x64xbf16>
    %c1_130 = arith.constant 1 : index
    %c0_131 = arith.constant 0 : index
    %c0_132 = arith.constant 0 : index
    %164 = vector.load %arg14[%c1_130, %c0_131, %c0_132] : memref<9x64x32xbf16, #tpu.memory_space<vmem>>, vector<1x64x32xbf16>
    %165 = vector.shape_cast %164 : vector<1x64x32xbf16> to vector<64x32xbf16>
    %cst_133 = arith.constant dense<0.000000e+00> : vector<256x32xf32>
    %166 = tpu.matmul %163, %165, %cst_133 {dimension_numbers = #tpu.dot_dimension_numbers<[1], [0], [0], [1], [0, 0, 1, 1], [], []>} : vector<256x64xbf16>, vector<64x32xbf16>, vector<256x32xf32> -> vector<256x32xf32>
    %167 = arith.addf %161, %166 : vector<256x32xf32>
    %c9_134 = arith.constant 9 : index
    %c0_135 = arith.constant 0 : index
    %168 = vector.load %arg23[%c9_134, %c0_135] : memref<304x64xf32, #tpu.memory_space<vmem>>, vector<256x64xf32>
    %169 = arith.truncf %168 : vector<256x64xf32> to vector<256x64xbf16>
    %c2_136 = arith.constant 2 : index
    %c0_137 = arith.constant 0 : index
    %c0_138 = arith.constant 0 : index
    %170 = vector.load %arg14[%c2_136, %c0_137, %c0_138] : memref<9x64x32xbf16, #tpu.memory_space<vmem>>, vector<1x64x32xbf16>
    %171 = vector.shape_cast %170 : vector<1x64x32xbf16> to vector<64x32xbf16>
    %cst_139 = arith.constant dense<0.000000e+00> : vector<256x32xf32>
    %172 = tpu.matmul %169, %171, %cst_139 {dimension_numbers = #tpu.dot_dimension_numbers<[1], [0], [0], [1], [0, 0, 1, 1], [], []>} : vector<256x64xbf16>, vector<64x32xbf16>, vector<256x32xf32> -> vector<256x32xf32>
    %c0_140 = arith.constant 0 : index
    %c1_141 = arith.constant 1 : index
    %173 = vector.load %arg3[%c0_140, %c1_141] : memref<256x2xf32, #tpu.memory_space<vmem>>, vector<256x1xf32>
    %174 = vector.broadcast %173 : vector<256x1xf32> to vector<256x32xf32>
    %175 = arith.mulf %172, %174 : vector<256x32xf32>
    %176 = arith.addf %167, %175 : vector<256x32xf32>
    %c23_142 = arith.constant 23 : index
    %c0_143 = arith.constant 0 : index
    %177 = vector.load %arg23[%c23_142, %c0_143] : memref<304x64xf32, #tpu.memory_space<vmem>>, vector<256x64xf32>
    %178 = arith.truncf %177 : vector<256x64xf32> to vector<256x64xbf16>
    %c3_144 = arith.constant 3 : index
    %c0_145 = arith.constant 0 : index
    %c0_146 = arith.constant 0 : index
    %179 = vector.load %arg14[%c3_144, %c0_145, %c0_146] : memref<9x64x32xbf16, #tpu.memory_space<vmem>>, vector<1x64x32xbf16>
    %180 = vector.shape_cast %179 : vector<1x64x32xbf16> to vector<64x32xbf16>
    %cst_147 = arith.constant dense<0.000000e+00> : vector<256x32xf32>
    %181 = tpu.matmul %178, %180, %cst_147 {dimension_numbers = #tpu.dot_dimension_numbers<[1], [0], [0], [1], [0, 0, 1, 1], [], []>} : vector<256x64xbf16>, vector<64x32xbf16>, vector<256x32xf32> -> vector<256x32xf32>
    %c0_148 = arith.constant 0 : index
    %c0_149 = arith.constant 0 : index
    %182 = vector.load %arg3[%c0_148, %c0_149] : memref<256x2xf32, #tpu.memory_space<vmem>>, vector<256x1xf32>
    %183 = vector.broadcast %182 : vector<256x1xf32> to vector<256x32xf32>
    %184 = arith.mulf %181, %183 : vector<256x32xf32>
    %185 = arith.addf %176, %184 : vector<256x32xf32>
    %c24_150 = arith.constant 24 : index
    %c0_151 = arith.constant 0 : index
    %186 = vector.load %arg23[%c24_150, %c0_151] : memref<304x64xf32, #tpu.memory_space<vmem>>, vector<256x64xf32>
    %187 = arith.truncf %186 : vector<256x64xf32> to vector<256x64xbf16>
    %c4_152 = arith.constant 4 : index
    %c0_153 = arith.constant 0 : index
    %c0_154 = arith.constant 0 : index
    %188 = vector.load %arg14[%c4_152, %c0_153, %c0_154] : memref<9x64x32xbf16, #tpu.memory_space<vmem>>, vector<1x64x32xbf16>
    %189 = vector.shape_cast %188 : vector<1x64x32xbf16> to vector<64x32xbf16>
    %cst_155 = arith.constant dense<0.000000e+00> : vector<256x32xf32>
    %190 = tpu.matmul %187, %189, %cst_155 {dimension_numbers = #tpu.dot_dimension_numbers<[1], [0], [0], [1], [0, 0, 1, 1], [], []>} : vector<256x64xbf16>, vector<64x32xbf16>, vector<256x32xf32> -> vector<256x32xf32>
    %191 = arith.addf %185, %190 : vector<256x32xf32>
    %c25_156 = arith.constant 25 : index
    %c0_157 = arith.constant 0 : index
    %192 = vector.load %arg23[%c25_156, %c0_157] : memref<304x64xf32, #tpu.memory_space<vmem>>, vector<256x64xf32>
    %193 = arith.truncf %192 : vector<256x64xf32> to vector<256x64xbf16>
    %c5_158 = arith.constant 5 : index
    %c0_159 = arith.constant 0 : index
    %c0_160 = arith.constant 0 : index
    %194 = vector.load %arg14[%c5_158, %c0_159, %c0_160] : memref<9x64x32xbf16, #tpu.memory_space<vmem>>, vector<1x64x32xbf16>
    %195 = vector.shape_cast %194 : vector<1x64x32xbf16> to vector<64x32xbf16>
    %cst_161 = arith.constant dense<0.000000e+00> : vector<256x32xf32>
    %196 = tpu.matmul %193, %195, %cst_161 {dimension_numbers = #tpu.dot_dimension_numbers<[1], [0], [0], [1], [0, 0, 1, 1], [], []>} : vector<256x64xbf16>, vector<64x32xbf16>, vector<256x32xf32> -> vector<256x32xf32>
    %c0_162 = arith.constant 0 : index
    %c1_163 = arith.constant 1 : index
    %197 = vector.load %arg3[%c0_162, %c1_163] : memref<256x2xf32, #tpu.memory_space<vmem>>, vector<256x1xf32>
    %198 = vector.broadcast %197 : vector<256x1xf32> to vector<256x32xf32>
    %199 = arith.mulf %196, %198 : vector<256x32xf32>
    %200 = arith.addf %191, %199 : vector<256x32xf32>
    %c39_164 = arith.constant 39 : index
    %c0_165 = arith.constant 0 : index
    %201 = vector.load %arg23[%c39_164, %c0_165] : memref<304x64xf32, #tpu.memory_space<vmem>>, vector<256x64xf32>
    %202 = arith.truncf %201 : vector<256x64xf32> to vector<256x64xbf16>
    %c6_166 = arith.constant 6 : index
    %c0_167 = arith.constant 0 : index
    %c0_168 = arith.constant 0 : index
    %203 = vector.load %arg14[%c6_166, %c0_167, %c0_168] : memref<9x64x32xbf16, #tpu.memory_space<vmem>>, vector<1x64x32xbf16>
    %204 = vector.shape_cast %203 : vector<1x64x32xbf16> to vector<64x32xbf16>
    %cst_169 = arith.constant dense<0.000000e+00> : vector<256x32xf32>
    %205 = tpu.matmul %202, %204, %cst_169 {dimension_numbers = #tpu.dot_dimension_numbers<[1], [0], [0], [1], [0, 0, 1, 1], [], []>} : vector<256x64xbf16>, vector<64x32xbf16>, vector<256x32xf32> -> vector<256x32xf32>
    %c0_170 = arith.constant 0 : index
    %c0_171 = arith.constant 0 : index
    %206 = vector.load %arg3[%c0_170, %c0_171] : memref<256x2xf32, #tpu.memory_space<vmem>>, vector<256x1xf32>
    %207 = vector.broadcast %206 : vector<256x1xf32> to vector<256x32xf32>
    %208 = arith.mulf %205, %207 : vector<256x32xf32>
    %209 = arith.addf %200, %208 : vector<256x32xf32>
    %c40_172 = arith.constant 40 : index
    %c0_173 = arith.constant 0 : index
    %210 = vector.load %arg23[%c40_172, %c0_173] : memref<304x64xf32, #tpu.memory_space<vmem>>, vector<256x64xf32>
    %211 = arith.truncf %210 : vector<256x64xf32> to vector<256x64xbf16>
    %c7_174 = arith.constant 7 : index
    %c0_175 = arith.constant 0 : index
    %c0_176 = arith.constant 0 : index
    %212 = vector.load %arg14[%c7_174, %c0_175, %c0_176] : memref<9x64x32xbf16, #tpu.memory_space<vmem>>, vector<1x64x32xbf16>
    %213 = vector.shape_cast %212 : vector<1x64x32xbf16> to vector<64x32xbf16>
    %cst_177 = arith.constant dense<0.000000e+00> : vector<256x32xf32>
    %214 = tpu.matmul %211, %213, %cst_177 {dimension_numbers = #tpu.dot_dimension_numbers<[1], [0], [0], [1], [0, 0, 1, 1], [], []>} : vector<256x64xbf16>, vector<64x32xbf16>, vector<256x32xf32> -> vector<256x32xf32>
    %215 = arith.addf %209, %214 : vector<256x32xf32>
    %c41_178 = arith.constant 41 : index
    %c0_179 = arith.constant 0 : index
    %216 = vector.load %arg23[%c41_178, %c0_179] : memref<304x64xf32, #tpu.memory_space<vmem>>, vector<256x64xf32>
    %217 = arith.truncf %216 : vector<256x64xf32> to vector<256x64xbf16>
    %c8_180 = arith.constant 8 : index
    %c0_181 = arith.constant 0 : index
    %c0_182 = arith.constant 0 : index
    %218 = vector.load %arg14[%c8_180, %c0_181, %c0_182] : memref<9x64x32xbf16, #tpu.memory_space<vmem>>, vector<1x64x32xbf16>
    %219 = vector.shape_cast %218 : vector<1x64x32xbf16> to vector<64x32xbf16>
    %cst_183 = arith.constant dense<0.000000e+00> : vector<256x32xf32>
    %220 = tpu.matmul %217, %219, %cst_183 {dimension_numbers = #tpu.dot_dimension_numbers<[1], [0], [0], [1], [0, 0, 1, 1], [], []>} : vector<256x64xbf16>, vector<64x32xbf16>, vector<256x32xf32> -> vector<256x32xf32>
    %c0_184 = arith.constant 0 : index
    %c1_185 = arith.constant 1 : index
    %221 = vector.load %arg3[%c0_184, %c1_185] : memref<256x2xf32, #tpu.memory_space<vmem>>, vector<256x1xf32>
    %222 = vector.broadcast %221 : vector<256x1xf32> to vector<256x32xf32>
    %223 = arith.mulf %220, %222 : vector<256x32xf32>
    %224 = arith.addf %215, %223 : vector<256x32xf32>
    %c0_186 = arith.constant 0 : index
    %c0_187 = arith.constant 0 : index
    %225 = vector.load %arg15[%c0_186, %c0_187] : memref<1x32xf32, #tpu.memory_space<vmem>>, vector<1x32xf32>
    %226 = vector.broadcast %225 : vector<1x32xf32> to vector<256x32xf32>
    %227 = arith.addf %224, %226 : vector<256x32xf32>
    %cst_188 = arith.constant 0.000000e+00 : f32
    %228 = vector.broadcast %cst_188 : f32 to vector<256x32xf32>
    %229 = arith.maximumf %227, %228 : vector<256x32xf32>
    %cst_189 = arith.constant dense<0.000000e+00> : vector<32xf32>
    %230 = vector.multi_reduction <add>, %229, %cst_189 [0] : vector<256x32xf32> to vector<32xf32>
    %231 = vector.shape_cast %230 : vector<32xf32> to vector<1x32xf32>
    %cst_190 = arith.constant 2.560000e+02 : f32
    %232 = vector.broadcast %cst_190 : f32 to vector<1x32xf32>
    %233 = arith.divf %231, %232 : vector<1x32xf32>
    %c0_191 = arith.constant 0 : index
    %c0_192 = arith.constant 0 : index
    %234 = vector.load %arg18[%c0_191, %c0_192] : memref<32x2xf32, #tpu.memory_space<vmem>>, vector<32x2xf32>
    %cst_193 = arith.constant dense<0.000000e+00> : vector<1x2xf32>
    %235 = tpu.matmul %233, %234, %cst_193 {dimension_numbers = #tpu.dot_dimension_numbers<[1], [0], [0], [1], [0, 0, 1, 1], [], []>} : vector<1x32xf32>, vector<32x2xf32>, vector<1x2xf32> -> vector<1x2xf32>
    %c0_194 = arith.constant 0 : index
    %c0_195 = arith.constant 0 : index
    %236 = vector.load %arg19[%c0_194, %c0_195] : memref<1x2xf32, #tpu.memory_space<vmem>>, vector<1x2xf32>
    %237 = arith.addf %235, %236 : vector<1x2xf32>
    %cst_196 = arith.constant 0.000000e+00 : f32
    %238 = vector.broadcast %cst_196 : f32 to vector<1x2xf32>
    %239 = arith.maximumf %237, %238 : vector<1x2xf32>
    %c0_197 = arith.constant 0 : index
    %c0_198 = arith.constant 0 : index
    %240 = vector.load %arg20[%c0_197, %c0_198] : memref<2x32xf32, #tpu.memory_space<vmem>>, vector<2x32xf32>
    %cst_199 = arith.constant dense<0.000000e+00> : vector<1x32xf32>
    %241 = tpu.matmul %239, %240, %cst_199 {dimension_numbers = #tpu.dot_dimension_numbers<[1], [0], [0], [1], [0, 0, 1, 1], [], []>} : vector<1x2xf32>, vector<2x32xf32>, vector<1x32xf32> -> vector<1x32xf32>
    %c0_200 = arith.constant 0 : index
    %c0_201 = arith.constant 0 : index
    %242 = vector.load %arg21[%c0_200, %c0_201] : memref<1x32xf32, #tpu.memory_space<vmem>>, vector<1x32xf32>
    %243 = arith.addf %241, %242 : vector<1x32xf32>
    %244 = arith.negf %243 : vector<1x32xf32>
    %245 = math.exp %244 : vector<1x32xf32>
    %cst_202 = arith.constant 1.000000e+00 : f32
    %246 = vector.broadcast %cst_202 : f32 to vector<1x32xf32>
    %247 = arith.addf %246, %245 : vector<1x32xf32>
    %248 = arith.divf %246, %247 : vector<1x32xf32>
    %249 = arith.truncf %229 : vector<256x32xf32> to vector<256x32xbf16>
    %c0_203 = arith.constant 0 : index
    %c0_204 = arith.constant 0 : index
    %250 = vector.load %arg16[%c0_203, %c0_204] : memref<32x32xbf16, #tpu.memory_space<vmem>>, vector<32x32xbf16>
    %cst_205 = arith.constant dense<0.000000e+00> : vector<256x32xf32>
    %251 = tpu.matmul %249, %250, %cst_205 {dimension_numbers = #tpu.dot_dimension_numbers<[1], [0], [0], [1], [0, 0, 1, 1], [], []>} : vector<256x32xbf16>, vector<32x32xbf16>, vector<256x32xf32> -> vector<256x32xf32>
    %c0_206 = arith.constant 0 : index
    %c0_207 = arith.constant 0 : index
    %252 = vector.load %arg17[%c0_206, %c0_207] : memref<1x32xf32, #tpu.memory_space<vmem>>, vector<1x32xf32>
    %253 = vector.broadcast %252 : vector<1x32xf32> to vector<256x32xf32>
    %254 = arith.addf %251, %253 : vector<256x32xf32>
    %255 = arith.negf %254 : vector<256x32xf32>
    %256 = math.exp %255 : vector<256x32xf32>
    %cst_208 = arith.constant 1.000000e+00 : f32
    %257 = vector.broadcast %cst_208 : f32 to vector<256x32xf32>
    %258 = arith.addf %257, %256 : vector<256x32xf32>
    %259 = arith.divf %257, %258 : vector<256x32xf32>
    %260 = vector.broadcast %248 : vector<1x32xf32> to vector<256x32xf32>
    %261 = arith.addf %260, %259 : vector<256x32xf32>
    %262 = arith.mulf %229, %261 : vector<256x32xf32>
    %263 = tpu.transpose %262, [1, 0] : vector<256x32xf32> -> vector<32x256xf32>
    %c0_209 = arith.constant 0 : index
    %c0_210 = arith.constant 0 : index
    %c0_211 = arith.constant 0 : index
    %264 = vector.load %arg22[%c0_209, %c0_210, %c0_211] : memref<1x32x256xf32, #tpu.memory_space<vmem>>, vector<1x32x256xf32>
    %265 = vector.shape_cast %264 : vector<1x32x256xf32> to vector<32x256xf32>
    %266 = vector.shape_cast %263 : vector<32x256xf32> to vector<1x32x256xf32>
    tpu.vector_store %arg22[%c0_209, %c0_210, %c0_211], %266 {strides = array<i32>} : memref<1x32x256xf32, #tpu.memory_space<vmem>>, vector<1x32x256xf32>,
    return
  }
  func.func @transform_0(%arg0: i32) -> (i32, i32, i32) {
    %c0_i32 = arith.constant 0 : i32
    %c0_i32_0 = arith.constant 0 : i32
    %c0_i32_1 = arith.constant 0 : i32
    return %arg0, %c0_i32, %c0_i32_0 : i32, i32, i32
  }
  func.func @transform_1(%arg0: i32) -> (i32, i32, i32) {
    %c0_i32 = arith.constant 0 : i32
    %c0_i32_0 = arith.constant 0 : i32
    %c0_i32_1 = arith.constant 0 : i32
    %c0_i32_2 = arith.constant 0 : i32
    return %c0_i32, %c0_i32_0, %c0_i32_1 : i32, i32, i32
  }
  func.func @transform_2(%arg0: i32) -> (i32, i32) {
    %c0_i32 = arith.constant 0 : i32
    %c0_i32_0 = arith.constant 0 : i32
    %c0_i32_1 = arith.constant 0 : i32
    return %c0_i32, %c0_i32_0 : i32, i32
  }
  func.func @transform_3(%arg0: i32) -> (i32, i32, i32) {
    %c0_i32 = arith.constant 0 : i32
    %c0_i32_0 = arith.constant 0 : i32
    %c0_i32_1 = arith.constant 0 : i32
    %c0_i32_2 = arith.constant 0 : i32
    return %c0_i32, %c0_i32_0, %c0_i32_1 : i32, i32, i32
  }
  func.func @transform_4(%arg0: i32) -> (i32, i32) {
    %c0_i32 = arith.constant 0 : i32
    %c0_i32_0 = arith.constant 0 : i32
    %c0_i32_1 = arith.constant 0 : i32
    return %c0_i32, %c0_i32_0 : i32, i32
  }
  func.func @transform_5(%arg0: i32) -> (i32, i32) {
    %c0_i32 = arith.constant 0 : i32
    %c0_i32_0 = arith.constant 0 : i32
    %c0_i32_1 = arith.constant 0 : i32
    return %c0_i32, %c0_i32_0 : i32, i32
  }
  func.func @transform_6(%arg0: i32) -> (i32, i32) {
    %c0_i32 = arith.constant 0 : i32
    %c0_i32_0 = arith.constant 0 : i32
    %c0_i32_1 = arith.constant 0 : i32
    return %c0_i32, %c0_i32_0 : i32, i32
  }
  func.func @transform_7(%arg0: i32) -> (i32, i32) {
    %c0_i32 = arith.constant 0 : i32
    %c0_i32_0 = arith.constant 0 : i32
    %c0_i32_1 = arith.constant 0 : i32
    return %c0_i32, %c0_i32_0 : i32, i32
  }
  func.func @transform_8(%arg0: i32) -> (i32, i32) {
    %c0_i32 = arith.constant 0 : i32
    %c0_i32_0 = arith.constant 0 : i32
    %c0_i32_1 = arith.constant 0 : i32
    return %c0_i32, %c0_i32_0 : i32, i32
  }
  func.func @transform_9(%arg0: i32) -> (i32, i32) {
    %c0_i32 = arith.constant 0 : i32
    %c0_i32_0 = arith.constant 0 : i32
    %c0_i32_1 = arith.constant 0 : i32
    return %c0_i32, %c0_i32_0 : i32, i32
  }
  func.func @transform_10(%arg0: i32) -> (i32, i32) {
    %c0_i32 = arith.constant 0 : i32
    %c0_i32_0 = arith.constant 0 : i32
    %c0_i32_1 = arith.constant 0 : i32
    return %c0_i32, %c0_i32_0 : i32, i32
  }
  func.func @transform_11(%arg0: i32) -> (i32, i32, i32) {
    %c0_i32 = arith.constant 0 : i32
    %c0_i32_0 = arith.constant 0 : i32
    %c0_i32_1 = arith.constant 0 : i32
    %c0_i32_2 = arith.constant 0 : i32
    return %c0_i32, %c0_i32_0, %c0_i32_1 : i32, i32, i32
  }
  func.func @transform_12(%arg0: i32) -> (i32, i32) {
    %c0_i32 = arith.constant 0 : i32
    %c0_i32_0 = arith.constant 0 : i32
    %c0_i32_1 = arith.constant 0 : i32
    return %c0_i32, %c0_i32_0 : i32, i32
  }
  func.func @transform_13(%arg0: i32) -> (i32, i32, i32) {
    %c0_i32 = arith.constant 0 : i32
    %c0_i32_0 = arith.constant 0 : i32
    %c0_i32_1 = arith.constant 0 : i32
    %c0_i32_2 = arith.constant 0 : i32
    return %c0_i32, %c0_i32_0, %c0_i32_1 : i32, i32, i32
  }
  func.func @transform_14(%arg0: i32) -> (i32, i32) {
    %c0_i32 = arith.constant 0 : i32
    %c0_i32_0 = arith.constant 0 : i32
    %c0_i32_1 = arith.constant 0 : i32
    return %c0_i32, %c0_i32_0 : i32, i32
  }
  func.func @transform_15(%arg0: i32) -> (i32, i32) {
    %c0_i32 = arith.constant 0 : i32
    %c0_i32_0 = arith.constant 0 : i32
    %c0_i32_1 = arith.constant 0 : i32
    return %c0_i32, %c0_i32_0 : i32, i32
  }
  func.func @transform_16(%arg0: i32) -> (i32, i32) {
    %c0_i32 = arith.constant 0 : i32
    %c0_i32_0 = arith.constant 0 : i32
    %c0_i32_1 = arith.constant 0 : i32
    return %c0_i32, %c0_i32_0 : i32, i32
  }
  func.func @transform_17(%arg0: i32) -> (i32, i32) {
    %c0_i32 = arith.constant 0 : i32
    %c0_i32_0 = arith.constant 0 : i32
    %c0_i32_1 = arith.constant 0 : i32
    return %c0_i32, %c0_i32_0 : i32, i32
  }
  func.func @transform_18(%arg0: i32) -> (i32, i32) {
    %c0_i32 = arith.constant 0 : i32
    %c0_i32_0 = arith.constant 0 : i32
    %c0_i32_1 = arith.constant 0 : i32
    return %c0_i32, %c0_i32_0 : i32, i32
  }
  func.func @transform_19(%arg0: i32) -> (i32, i32) {
    %c0_i32 = arith.constant 0 : i32
    %c0_i32_0 = arith.constant 0 : i32
    %c0_i32_1 = arith.constant 0 : i32
    return %c0_i32, %c0_i32_0 : i32, i32
  }
  func.func @transform_20(%arg0: i32) -> (i32, i32) {
    %c0_i32 = arith.constant 0 : i32
    %c0_i32_0 = arith.constant 0 : i32
    %c0_i32_1 = arith.constant 0 : i32
    return %c0_i32, %c0_i32_0 : i32, i32
  }
  func.func @transform_21(%arg0: i32) -> (i32, i32, i32) {
    %c0_i32 = arith.constant 0 : i32
    %c0_i32_0 = arith.constant 0 : i32
    %c0_i32_1 = arith.constant 0 : i32
    return %arg0, %c0_i32, %c0_i32_0 : i32, i32, i32
  }
}

</mosaic_0001>

<bundles_post_ra>
// kernel: sc_attention_forward.1
= control target key start
LH: loop header
LB: loop body
LE: loop exit
PB: predicated region body
PF: predicated region fallthrough
CT: control target
= control target key end

     0   :  { %s16765_s0 = inlined_call_operand.vmem [shape: f32[2,64,64], index: 0, kind: input, shape index: {}]   ;;  %s16766_s1 = inlined_call_operand.vmem [shape: f32[4,256,64], index: 1, kind: input, shape index: {}]   ;;  %s16767_s2 = inlined_call_operand.vmem [shape: f32[256,2], index: 2, kind: input, shape index: {}]   ;;  %s16768_s3 = inlined_call_operand.vmem [shape: bf16[4,64,64], index: 3, kind: input, shape index: {}]   ;;  %s16769_s4 = inlined_call_operand.vmem [shape: f32[1,64], index: 4, kind: input, shape index: {}]   ;;  %s16770_s5 = inlined_call_operand.vmem [shape: bf16[64,64], index: 5, kind: input, shape index: {}]   ;;  %s16771_s6 = inlined_call_operand.vmem [shape: f32[1,64], index: 6, kind: input, shape index: {}]   ;;  %s16772_s7 = inlined_call_operand.vmem [shape: f32[64,4], index: 7, kind: input, shape index: {}]   ;;  %s16773_s8 = inlined_call_operand.vmem [shape: f32[1,4], index: 8, kind: input, shape index: {}]   ;;  %s16774_s9 = inlined_call_operand.vmem [shape: f32[4,64], index: 9, kind: input, shape index: {}]   ;;  %s16775_s10 = inlined_call_operand.vmem [shape: f32[1,64], index: 10, kind: input, shape index: {}]   ;;  %s16776_s11 = inlined_call_operand.vmem [shape: bf16[9,64,64], index: 11, kind: input, shape index: {}]   ;;  %s16777_s12 = inlined_call_operand.vmem [shape: f32[1,64], index: 12, kind: input, shape index: {}]   ;;  %s16778_s13 = inlined_call_operand.vmem [shape: bf16[9,64,32], index: 13, kind: input, shape index: {}]   ;;  %s16779_s14 = inlined_call_operand.vmem [shape: f32[1,32], index: 14, kind: input, shape index: {}]   ;;  %s16780_s15 = inlined_call_operand.vmem [shape: bf16[32,32], index: 15, kind: input, shape index: {}]   ;;  %s16781_s16 = inlined_call_operand.vmem [shape: f32[1,32], index: 16, kind: input, shape index: {}]   ;;  %s16782_s17 = inlined_call_operand.vmem [shape: f32[32,2], index: 17, kind: input, shape index: {}]   ;;  %s16783_s18 = inlined_call_operand.vmem [shape: f32[1,2], index: 18, kind: input, shape index: {}]   ;;  %s16784_s19 = inlined_call_operand.vmem [shape: f32[2,32], index: 19, kind: input, shape index: {}]   ;;  %s16785_s20 = inlined_call_operand.vmem [shape: f32[1,32], index: 20, kind: input, shape index: {}]   ;;  %s16786_s21 = inlined_call_operand.vmem [shape: f32[2,32,256], index: 21, kind: output, shape index: {}]  }
   0x1   :  { %17026 = sst [smem:[#allocation82_spill]] %s16765_s0 }
   0x2   :  { %17027 = sst [smem:[#allocation83_spill]] %s16766_s1 }
   0x3   :  { %17028 = sst [smem:[#allocation84_spill]] %s16767_s2  ;;  %s11661_s2 = smov 0  }
   0x4   :  { %17029 = sst [smem:[#allocation85_spill]] %s16768_s3 }
   0x5   :  { %17030 = sst [smem:[#allocation86_spill]] %s16769_s4 }
   0x6   :  { %17031 = sst [smem:[#allocation87_spill]] %s16770_s5 }
   0x7 LB: > { %s9900_s25 = sadd.s32 4294967295, %s11545_s2   ;;  %p9904_p0 = scmp.ge.s32.totalorder %s11545_s2, 1  ;;  %s11545_s2 = sphi %s11661_s2, %s31_s2  }
   0x8   : > { %p587_p1 = scmp.lt.s32.totalorder %s11545_s2, 3 }
   0xa   : > { %p588_p2 = pnand %p9904_p0, %p587_p1 }
   0xc   : > { %591 = sbr.rel (%p588_p2) target bundleno = 3740 (0xe9c), region = 104 }
  0x11   : > { %p647_p3 = scmp.lt.s32.totalorder %s9900_s25, 1  ;;  %s17032_s28 = sld [smem:[#allocation82_spill]]  ;;  %vm658_vm0 = vcmask 523264   ;;  %vm2151_vm2 = vcmask 1043456   ;;  %vm2147_vm3 = vcmask 31744  }
  0x12   : > { %s17033_s30 = sld [smem:[#allocation85_spill]] }
  0x13   : > { %s17571_s25 = smov (!%p647_p3, %s9900_s25), 1  ;;  %s17034_s1 = sld [smem:[#allocation83_spill]] }
  0x14   : > { %s11071_s26 = sshll.u32 %s17571_s25, 6  ;;  %s17128_s22 = sld [smem:[#allocation84_spill]] }
  0x15   : > { %s656_s23 = scalar_lea.vmem %s16786_s21, %s11071_s26 }
  0x17   : > { %s651_s29 = scalar_lea.vmem %s17032_s28, %s11071_s26  ;;  %s17049_s28 = sld [smem:[#allocation87_spill]] }
  0x18   : > { %v665_v0 = vld [vmem:[%s651_s29] sm:$0xff]  ;;  %v666_v1 = vld [vmem:[%s651_s29 + $0x8] sm:$0xff]  ;;  %v667_v2 = vld [vmem:[%s651_s29 + $0x10] sm:$0xff] }
  0x19   : > { %673 = vxpose.xlu0.b32.start [1/8] (short) (narrow) %v665_v0, 64  ;;  %v668_v3 = vld [vmem:[%s651_s29 + $0x18] sm:$0xff]  ;;  %v11075_v7 = vld [vmem:[%s17033_s30 + $0x10] sm:$0xff]  ;;  %v669_v10 = vld [vmem:[%s651_s29 + $0x20] sm:$0xff] }
  0x1a   : > { %v11076_v4 = vld [vmem:[%s17033_s30 + $0x18] sm:$0xff]  ;;  %v11079_v8 = vld [vmem:[%s17033_s30 + $0x30] sm:$0xff]  ;;  %v670_v11 = vld [vmem:[%s651_s29 + $0x28] sm:$0xff] }
  0x1b   : > { %v11080_v5 = vld [vmem:[%s17033_s30 + $0x38] sm:$0xff]  ;;  %757 = vmatpush.bf16.msra.mxu2 %v11076_v4  ;;  %v11087_v9 = vld [vmem:[%s17033_s30 + $0x70] sm:$0xff]  ;;  %v11074_v14 = vld [vmem:[%s17033_s30 + $0x8] sm:$0xff] }
  0x1c   : > { %v11088_v6 = vld [vmem:[%s17033_s30 + $0x78] sm:$0xff]  ;;  %851 = vmatpush.bf16.msra.mxu1 %v11080_v5  ;;  %v671_v12 = vld [vmem:[%s651_s29 + $0x30] sm:$0xff]  ;;  %v11078_v15 = vld [vmem:[%s17033_s30 + $0x28] sm:$0xff] }
  0x1d   : > { %1700 = vmatpush.bf16.msra.mxu0 %v11088_v6  ;;  %v672_v13 = vld [vmem:[%s651_s29 + $0x38] sm:$0xff]  ;;  %v11086_v16 = vld [vmem:[%s17033_s30 + $0x68] sm:$0xff]  ;;  %v11073_v17 = vld [vmem:[%s17033_s30] sm:$0xff]  ;;  %s17038_s29 = sld [smem:[#allocation86_spill]] }
  0x1e   : > { %v11077_v18 = vld [vmem:[%s17033_s30 + $0x20] sm:$0xff]  ;;  %v9958_v58 = vld [vmem:[%s17034_s1 + $0x108] sm:$0xff]  ;;  %v9959_v60 = vld [vmem:[%s17034_s1 + $0x110] sm:$0xff] }
  0x1f   : > { %758 = vmatpush.bf16.msra.mxu2 %v11075_v7  ;;  %v11085_v19 = vld [vmem:[%s17033_s30 + $0x60] sm:$0xff]  ;;  %v783_v59 = vld [vmem:[%s17034_s1 + $0x8] sm:$0xff]  ;;  %v784_v61 = vld [vmem:[%s17034_s1 + $0x10] sm:$0xff] }
  0x20   : > { %852 = vmatpush.bf16.msra.mxu1 %v11079_v8  ;;  %v9957_v56 = vld [vmem:[%s17034_s1 + $0x100] sm:$0xff]  ;;  %v9960_v62 = vld [vmem:[%s17034_s1 + $0x118] sm:$0xff]  ;;  %v787_v4 = vld [vmem:[%s17034_s1 + $0x28] sm:$0xff] }
  0x21   : > { %674 = vxpose.xlu0.b32.cont [2/8] (short) (narrow) %v666_v1, 64  ;;  %1701 = vmatpush.bf16.msra.mxu0 %v11087_v9  ;;  %v782_v57 = vld [vmem:[%s17034_s1] sm:$0xff]  ;;  %v11084_v63 = vld [vmem:[%s17033_s30 + $0x58] sm:$0xff]  ;;  %v9963_v5 = vld [vmem:[%s17034_s1 + $0x130] sm:$0xff] }
  0x22   : > { %v785_v0 = vld [vmem:[%s17034_s1 + $0x18] sm:$0xff]  ;;  %v9961_v1 = vld [vmem:[%s17034_s1 + $0x120] sm:$0xff]  ;;  %v788_v6 = vld [vmem:[%s17034_s1 + $0x30] sm:$0xff] }
  0x23   : > { %759 = vmatpush.bf16.msra.mxu2 %v11074_v14  ;;  %v9964_v7 = vld [vmem:[%s17034_s1 + $0x138] sm:$0xff]  ;;  %v9965_v9 = vld [vmem:[%s17034_s1 + $0x140] sm:$0xff]  ;;  %v792_v14 = vld [vmem:[%s17034_s1 + $0x50] sm:$0xff] }
  0x24   : > { %853 = vmatpush.bf16.msra.mxu1 %v11078_v15  ;;  %v789_v8 = vld [vmem:[%s17034_s1 + $0x38] sm:$0xff] }
  0x25   : > { %1702 = vmatpush.bf16.msra.mxu0 %v11086_v16  ;;  %v9968_v15 = vld [vmem:[%s17034_s1 + $0x158] sm:$0xff]  ;;  %v11083_v16 = vld [vmem:[%s17033_s30 + $0x50] sm:$0xff] }
  0x27   : > { %760 = vmatpush.bf16.msra.mxu2 %v11073_v17  ;;  %v793_v17 = vld [vmem:[%s17034_s1 + $0x58] sm:$0xff] }
  0x28   : > { %854 = vmatpush.bf16.msra.mxu1 %v11077_v18  ;;  %v9969_v18 = vld [vmem:[%s17034_s1 + $0x160] sm:$0xff] }
  0x29   : > { %675 = vxpose.xlu0.b32.cont [3/8] (short) (narrow) %v667_v2, 64  ;;  %1703 = vmatpush.bf16.msra.mxu0 %v11085_v19  ;;  %v786_v2 = vld [vmem:[%s17034_s1 + $0x20] sm:$0xff] }
  0x2a   : > { %v794_v19 = vld [vmem:[%s17034_s1 + $0x60] sm:$0xff] }
  0x31   : > { %676 = vxpose.xlu0.b32.cont [4/8] (short) (narrow) %v668_v3, 64  ;;  %v9962_v3 = vld [vmem:[%s17034_s1 + $0x128] sm:$0xff] }
  0x39   : > { %677 = vxpose.xlu0.b32.cont [5/8] (short) (narrow) %v669_v10, 64  ;;  %v790_v10 = vld [vmem:[%s17034_s1 + $0x40] sm:$0xff] }
  0x41   : > { %678 = vxpose.xlu0.b32.cont [6/8] (short) (narrow) %v670_v11, 64  ;;  %v9966_v11 = vld [vmem:[%s17034_s1 + $0x148] sm:$0xff] }
  0x49   : > { %679 = vxpose.xlu0.b32.cont [7/8] (short) (narrow) %v671_v12, 64  ;;  %v791_v12 = vld [vmem:[%s17034_s1 + $0x48] sm:$0xff] }
  0x51   : > { %680 = vxpose.xlu0.b32.end [8/8] (short) (narrow) %v672_v13, 64  ;;  %v9967_v13 = vld [vmem:[%s17034_s1 + $0x150] sm:$0xff] }
  0xbd   : > { %v689_v20 = vpop.trf.xlu0 }
  0xc5   : > { %v690_v21 = vpop.trf.xlu0 }
  0xc6   : > { %v11713_v22 = vpack.c.bf16 %v690_v21, %v689_v20  ;;  %v9970_v20 = vld [vmem:[%s17034_s1 + $0x168] sm:$0xff] }
  0xc7   : > { %v795_v21 = vld [vmem:[%s17034_s1 + $0x68] sm:$0xff] }
  0xc8   : > { %9925 = vmatmul.msk.bf16.vlgmr.msra.gmra.mxu2 %vm658_vm0, %v11713_v22  ;;  %9953 = vmatmul.msk.bf16.vlgmr.msra.gmra.mxu1 %vm658_vm0, %v11713_v22 }
  0xc9   : > { %10169 = vmatmul.msk.bf16.vlgmr.msra.gmra.mxu0 %vm658_vm0, %v11713_v22 }
  0xcd   : > { %v691_v23 = vpop.trf.xlu0 }
  0xd5   : > { %v692_v24 = vpop.trf.xlu0 }
  0xd6   : > { %v11721_v25 = vpack.c.bf16 %v692_v24, %v691_v23  ;;  %v9971_v23 = vld [vmem:[%s17034_s1 + $0x170] sm:$0xff] }
  0xd7   : > { %v796_v24 = vld [vmem:[%s17034_s1 + $0x70] sm:$0xff] }
  0xd8   : > { %9926 = vmatmul.msk.bf16.gmra.mxu2 %vm658_vm0, %v11721_v25  ;;  %9954 = vmatmul.msk.bf16.gmra.mxu1 %vm658_vm0, %v11721_v25 }
  0xd9   : > { %10170 = vmatmul.msk.bf16.gmra.mxu0 %vm658_vm0, %v11721_v25 }
  0xdd   : > { %v693_v26 = vpop.trf.xlu0 }
  0xe5   : > { %v694_v27 = vpop.trf.xlu0 }
  0xe6   : > { %v11729_v28 = vpack.c.bf16 %v694_v27, %v693_v26  ;;  %v9972_v26 = vld [vmem:[%s17034_s1 + $0x178] sm:$0xff] }
  0xe7   : > { %v797_v27 = vld [vmem:[%s17034_s1 + $0x78] sm:$0xff] }
  0xe8   : > { %9927 = vmatmul.msk.bf16.gmra.mxu2 %vm658_vm0, %v11729_v28  ;;  %9955 = vmatmul.msk.bf16.gmra.mxu1 %vm658_vm0, %v11729_v28 }
  0xe9   : > { %10171 = vmatmul.msk.bf16.gmra.mxu0 %vm658_vm0, %v11729_v28 }
  0xed   : > { %v695_v29 = vpop.trf.xlu0 }
  0xf5   : > { %v696_v30 = vpop.trf.xlu0 }
  0xf6   : > { %v11737_v31 = vpack.c.bf16 %v696_v30, %v695_v29  ;;  %v9973_v29 = vld [vmem:[%s17034_s1 + $0x180] sm:$0xff] }
  0xf7   : > { %v798_v30 = vld [vmem:[%s17034_s1 + $0x80] sm:$0xff] }
  0xf8   : > { %9928 = vmatmul.msk.bf16.gmra.mxu2 %vm658_vm0, %v11737_v31  ;;  %9956 = vmatmul.msk.bf16.gmra.mxu1 %vm658_vm0, %v11737_v31 }
  0xf9   : > { %10172 = vmatmul.msk.bf16.gmra.mxu0 %vm658_vm0, %v11737_v31 }
 0x145   : > { %v856_v32 = vpop.f32.mrf.mxu1 }
 0x146   : > { %v1705_v33 = vpop.f32.mrf.mxu0 }
 0x14b   : > { %v762_v34 = vpop.f32.mrf.mxu2 }
 0x14d   : > { %v858_v35 = vpop.f32.mrf.mxu1 }
 0x14e   : > { %v1707_v36 = vpop.f32.mrf.mxu0 }
 0x153   : > { %v764_v37 = vpop.f32.mrf.mxu2 }
 0x155   : > { %v861_v38 = vpop.f32.mrf.mxu1 }
 0x156   : > { %v1710_v39 = vpop.f32.mrf.mxu0 }
 0x15b   : > { %v767_v40 = vpop.f32.mrf.mxu2 }
 0x15d   : > { %v863_v41 = vpop.f32.mrf.mxu1 }
 0x15e   : > { %v1712_v42 = vpop.f32.mrf.mxu0 }
 0x163   : > { %v769_v43 = vpop.f32.mrf.mxu2 }
 0x165   : > { %v866_v44 = vpop.f32.mrf.mxu1 }
 0x166   : > { %v1715_v45 = vpop.f32.mrf.mxu0 }
 0x16b   : > { %v772_v46 = vpop.f32.mrf.mxu2 }
 0x16d   : > { %v868_v47 = vpop.f32.mrf.mxu1 }
 0x16e   : > { %v1717_v48 = vpop.f32.mrf.mxu0 }
 0x173   : > { %v774_v49 = vpop.f32.mrf.mxu2 }
 0x175   : > { %v871_v50 = vpop.f32.mrf.mxu1 }
 0x176   : > { %v1720_v51 = vpop.f32.mrf.mxu0 }
 0x17b   : > { %v777_v52 = vpop.f32.mrf.mxu2 }
 0x17d   : > { %v873_v53 = vpop.f32.mrf.mxu1 }
 0x17e   : > { %v1722_v54 = vpop.f32.mrf.mxu0  ;;  %1013 = vmatpush.msrb.mxu2 %v873_v53 }
 0x17f   : > { %1862 = vmatpush.msrb.mxu0 %v1722_v54  ;;  %v9978_v54 = vld [vmem:[%s17034_s1 + $0x1a8] sm:$0xff] }
 0x180   : > { %1014 = vmatpush.msrb.mxu2 %v871_v50 }
 0x181   : > { %1863 = vmatpush.msrb.mxu0 %v1720_v51 }
 0x182   : > { %1015 = vmatpush.msrb.mxu2 %v868_v47  ;;  %v801_v47 = vld [vmem:[%s17034_s1 + $0x98] sm:$0xff] }
 0x183   : > { %1864 = vmatpush.msrb.mxu0 %v1717_v48  ;;  %v779_v55 = vpop.f32.mrf.mxu2 }
 0x184   : > { %1016 = vmatpush.msrb.mxu2 %v866_v44  ;;  %1222 = vmatpush.msra.mxu3 %v779_v55  ;;  %v11082_v44 = vld [vmem:[%s17033_s30 + $0x48] sm:$0xff] }
 0x185   : > { %1865 = vmatpush.msrb.mxu0 %v1715_v45 }
 0x186   : > { %1017 = vmatpush.msrb.mxu2 %v863_v41  ;;  %1223 = vmatpush.msra.mxu3 %v777_v52  ;;  %v800_v41 = vld [vmem:[%s17034_s1 + $0x90] sm:$0xff]  ;;  %v802_v52 = vld [vmem:[%s17034_s1 + $0xa0] sm:$0xff] }
 0x187   : > { %1866 = vmatpush.msrb.mxu0 %v1712_v42 }
 0x188   : > { %1018 = vmatpush.msrb.mxu2 %v861_v38  ;;  %1224 = vmatpush.msra.mxu3 %v774_v49  ;;  %v9975_v38 = vld [vmem:[%s17034_s1 + $0x190] sm:$0xff]  ;;  %v9977_v49 = vld [vmem:[%s17034_s1 + $0x1a0] sm:$0xff] }
 0x189   : > { %1867 = vmatpush.msrb.mxu0 %v1710_v39 }
 0x18a   : > { %1019 = vmatpush.msrb.mxu2 %v858_v35  ;;  %1225 = vmatpush.msra.mxu3 %v772_v46 }
 0x18b   : > { %1868 = vmatpush.msrb.mxu0 %v1707_v36  ;;  %v799_v36 = vld [vmem:[%s17034_s1 + $0x88] sm:$0xff] }
 0x18c   : > { %1020 = vmatpush.msrb.mxu2 %v856_v32  ;;  %1226 = vmatpush.msra.mxu3 %v769_v43  ;;  %v9976_v43 = vld [vmem:[%s17034_s1 + $0x198] sm:$0xff] }
 0x18d   : > { %1869 = vmatpush.msrb.mxu0 %v1705_v33  ;;  %9989 = vmatmul.msk.f32.vlgmr.msrb.gmra.mxu2 %vm658_vm0, %v9957_v56  ;;  %v9974_v33 = vld [vmem:[%s17034_s1 + $0x188] sm:$0xff] }
 0x18e   : > { %1227 = vmatpush.msra.mxu3 %v767_v40 }
 0x190   : > { %1228 = vmatpush.msra.mxu3 %v764_v37 }
 0x192   : > { %1229 = vmatpush.msra.mxu3 %v762_v34 }
 0x193   : > { %10021 = vmatmul.msk.f32.vlgmr.msra.gmra.mxu3 %vm658_vm0, %v782_v57  ;;  %v803_v57 = vld [vmem:[%s17034_s1 + $0xa8] sm:$0xff] }
 0x194   : > { %1364 = vmatpush.bf16.msrb.mxu3 %v11084_v63 }
 0x195   : > { %9990 = vmatmul.msk.f32.gmra.mxu2 %vm658_vm0, %v9958_v58 }
 0x198   : > { %1365 = vmatpush.bf16.msrb.mxu3 %v11083_v16 }
 0x19b   : > { %10022 = vmatmul.msk.f32.gmra.mxu3 %vm658_vm0, %v783_v59  ;;  %v9979_v59 = vld [vmem:[%s17034_s1 + $0x1b0] sm:$0xff] }
 0x19c   : > { %1366 = vmatpush.bf16.msrb.mxu3 %v11082_v44  ;;  %v9988_v44 = vld [vmem:[%s17034_s1 + $0x1f8] sm:$0xff] }
 0x19d   : > { %9991 = vmatmul.msk.f32.gmra.mxu2 %vm658_vm0, %v9959_v60 }
 0x1a3   : > { %10023 = vmatmul.msk.f32.gmra.mxu3 %vm658_vm0, %v784_v61 }
 0x1a5   : > { %9992 = vmatmul.msk.f32.gmra.mxu2 %vm658_vm0, %v9960_v62  ;;  %v804_v62 = vld [vmem:[%s17034_s1 + $0xb0] sm:$0xff] }
 0x1ab   : > { %10024 = vmatmul.msk.f32.gmra.mxu3 %vm658_vm0, %v785_v0  ;;  %v9980_v0 = vld [vmem:[%s17034_s1 + $0x1b8] sm:$0xff] }
 0x1ad   : > { %9993 = vmatmul.msk.f32.gmra.mxu2 %vm658_vm0, %v9961_v1 }
 0x1b3   : > { %10025 = vmatmul.msk.f32.gmra.mxu3 %vm658_vm0, %v786_v2 }
 0x1b5   : > { %9994 = vmatmul.msk.f32.gmra.mxu2 %vm658_vm0, %v9962_v3  ;;  %v805_v3 = vld [vmem:[%s17034_s1 + $0xb8] sm:$0xff] }
 0x1bb   : > { %10026 = vmatmul.msk.f32.gmra.mxu3 %vm658_vm0, %v787_v4 }
 0x1bd   : > { %9995 = vmatmul.msk.f32.gmra.mxu2 %vm658_vm0, %v9963_v5  ;;  %v9981_v5 = vld [vmem:[%s17034_s1 + $0x1c0] sm:$0xff] }
 0x1c3   : > { %10027 = vmatmul.msk.f32.gmra.mxu3 %vm658_vm0, %v788_v6 }
 0x1c5   : > { %9996 = vmatmul.msk.f32.gmra.mxu2 %vm658_vm0, %v9964_v7 }
 0x1cb   : > { %10028 = vmatmul.msk.f32.gmra.mxu3 %vm658_vm0, %v789_v8  ;;  %v806_v8 = vld [vmem:[%s17034_s1 + $0xc0] sm:$0xff] }
 0x1cd   : > { %9997 = vmatmul.msk.f32.gmra.mxu2 %vm658_vm0, %v9965_v9 }
 0x1d3   : > { %10029 = vmatmul.msk.f32.gmra.mxu3 %vm658_vm0, %v790_v10  ;;  %v9982_v10 = vld [vmem:[%s17034_s1 + $0x1c8] sm:$0xff] }
 0x1d5   : > { %9998 = vmatmul.msk.f32.gmra.mxu2 %vm658_vm0, %v9966_v11 }
 0x1db   : > { %10030 = vmatmul.msk.f32.gmra.mxu3 %vm658_vm0, %v791_v12  ;;  %v807_v12 = vld [vmem:[%s17034_s1 + $0xc8] sm:$0xff] }
 0x1dd   : > { %9999 = vmatmul.msk.f32.gmra.mxu2 %vm658_vm0, %v9967_v13 }
 0x1e3   : > { %10031 = vmatmul.msk.f32.gmra.mxu3 %vm658_vm0, %v792_v14  ;;  %v9983_v14 = vld [vmem:[%s17034_s1 + $0x1d0] sm:$0xff] }
 0x1e5   : > { %10000 = vmatmul.msk.f32.gmra.mxu2 %vm658_vm0, %v9968_v15 }
 0x1eb   : > { %10032 = vmatmul.msk.f32.gmra.mxu3 %vm658_vm0, %v793_v17  ;;  %v808_v17 = vld [vmem:[%s17034_s1 + $0xd0] sm:$0xff] }
 0x1ed   : > { %10001 = vmatmul.msk.f32.gmra.mxu2 %vm658_vm0, %v9969_v18 }
 0x1f3   : > { %10033 = vmatmul.msk.f32.gmra.mxu3 %vm658_vm0, %v794_v19  ;;  %v9984_v19 = vld [vmem:[%s17034_s1 + $0x1d8] sm:$0xff] }
 0x1f5   : > { %10002 = vmatmul.msk.f32.gmra.mxu2 %vm658_vm0, %v9970_v20  ;;  %v11081_v20 = vld [vmem:[%s17033_s30 + $0x40] sm:$0xff] }
 0x1f6   : > { %1367 = vmatpush.bf16.msrb.mxu3 %v11081_v20  ;;  %v10173_v20 = vld [vmem:[%s17034_s1 + $0x300] sm:$0xff] }
 0x1f7   : > { %10205 = vmatmul.msk.f32.vlgmr.msrb.gmra.mxu0 %vm658_vm0, %v10173_v20  ;;  %v10091_v20 = vld [vmem:[%s17034_s1 + $0x250] sm:$0xff] }
 0x1fb   : > { %10034 = vmatmul.msk.f32.gmra.mxu3 %vm658_vm0, %v795_v21 }
 0x1fd   : > { %10003 = vmatmul.msk.f32.gmra.mxu2 %vm658_vm0, %v9971_v23  ;;  %v809_v23 = vld [vmem:[%s17034_s1 + $0xd8] sm:$0xff] }
 0x203   : > { %10035 = vmatmul.msk.f32.gmra.mxu3 %vm658_vm0, %v796_v24 }
 0x205   : > { %10004 = vmatmul.msk.f32.gmra.mxu2 %vm658_vm0, %v9972_v26  ;;  %v9985_v26 = vld [vmem:[%s17034_s1 + $0x1e0] sm:$0xff] }
 0x20b   : > { %10036 = vmatmul.msk.f32.gmra.mxu3 %vm658_vm0, %v797_v27 }
 0x20d   : > { %10005 = vmatmul.msk.f32.gmra.mxu2 %vm658_vm0, %v9973_v29 }
 0x210   : > { %v1022_v32 = vpop.f32.mrf.mxu2 }
 0x213   : > { %10037 = vmatmul.msk.f32.gmra.mxu3 %vm658_vm0, %v798_v30  ;;  %v810_v30 = vld [vmem:[%s17034_s1 + $0xe0] sm:$0xff] }
 0x215   : > { %10006 = vmatmul.msk.f32.gmra.mxu2 %vm658_vm0, %v9974_v33  ;;  %v9986_v33 = vld [vmem:[%s17034_s1 + $0x1e8] sm:$0xff] }
 0x216   : > { %v1231_v34 = vpop.f32.mrf.mxu3 }
 0x217   : > { %v11891_v35 = vadd.f32 %v1231_v34, %v1022_v32 }
 0x218   : > { %v1025_v37 = vpop.f32.mrf.mxu2 }
 0x21b   : > { %10038 = vmatmul.msk.f32.gmra.mxu3 %vm658_vm0, %v799_v36  ;;  %v811_v36 = vld [vmem:[%s17034_s1 + $0xe8] sm:$0xff] }
 0x21d   : > { %10007 = vmatmul.msk.f32.gmra.mxu2 %vm658_vm0, %v9975_v38  ;;  %v9987_v38 = vld [vmem:[%s17034_s1 + $0x1f0] sm:$0xff] }
 0x21e   : > { %v1234_v39 = vpop.f32.mrf.mxu3 }
 0x21f   : > { %v11901_v40 = vadd.f32 %v1234_v39, %v1025_v37 }
 0x220   : > { %v1028_v42 = vpop.f32.mrf.mxu2 }
 0x223   : > { %10039 = vmatmul.msk.f32.gmra.mxu3 %vm658_vm0, %v800_v41 }
 0x225   : > { %10008 = vmatmul.msk.f32.gmra.mxu2 %vm658_vm0, %v9976_v43 }
 0x226   : > { %v1237_v45 = vpop.f32.mrf.mxu3 }
 0x227   : > { %v11914_v46 = vadd.f32 %v1237_v45, %v1028_v42  ;;  %v812_v42 = vld [vmem:[%s17034_s1 + $0xf0] sm:$0xff] }
 0x228   : > { %v1031_v48 = vpop.f32.mrf.mxu2 }
 0x22b   : > { %10040 = vmatmul.msk.f32.gmra.mxu3 %vm658_vm0, %v801_v47  ;;  %v813_v47 = vld [vmem:[%s17034_s1 + $0xf8] sm:$0xff] }
 0x22d   : > { %10009 = vmatmul.msk.f32.gmra.mxu2 %vm658_vm0, %v9977_v49 }
 0x22e   : > { %v1240_v50 = vpop.f32.mrf.mxu3 }
 0x22f   : > { %v11924_v51 = vadd.f32 %v1240_v50, %v1031_v48 }
 0x230   : > { %v1034_v53 = vpop.f32.mrf.mxu2 }
 0x233   : > { %10041 = vmatmul.msk.f32.gmra.mxu3 %vm658_vm0, %v802_v52 }
 0x235   : > { %10010 = vmatmul.msk.f32.gmra.mxu2 %vm658_vm0, %v9978_v54 }
 0x236   : > { %v1243_v55 = vpop.f32.mrf.mxu3 }
 0x237   : > { %v11934_v56 = vadd.f32 %v1243_v55, %v1034_v53 }
 0x238   : > { %v1037_v58 = vpop.f32.mrf.mxu2 }
 0x23b   : > { %10042 = vmatmul.msk.f32.gmra.mxu3 %vm658_vm0, %v803_v57 }
 0x23d   : > { %10011 = vmatmul.msk.f32.gmra.mxu2 %vm658_vm0, %v9979_v59 }
 0x23e   : > { %v1246_v60 = vpop.f32.mrf.mxu3 }
 0x23f   : > { %v11944_v61 = vadd.f32 %v1246_v60, %v1037_v58 }
 0x240   : > { %v1040_v63 = vpop.f32.mrf.mxu2 }
 0x243   : > { %10043 = vmatmul.msk.f32.gmra.mxu3 %vm658_vm0, %v804_v62 }
 0x245   : > { %10012 = vmatmul.msk.f32.gmra.mxu2 %vm658_vm0, %v9980_v0 }
 0x246   : > { %v1249_v1 = vpop.f32.mrf.mxu3 }
 0x247   : > { %v11954_v2 = vadd.f32 %v1249_v1, %v1040_v63 }
 0x248   : > { %v1043_v4 = vpop.f32.mrf.mxu2 }
 0x24b   : > { %10044 = vmatmul.msk.f32.gmra.mxu3 %vm658_vm0, %v805_v3 }
 0x24d   : > { %10013 = vmatmul.msk.f32.gmra.mxu2 %vm658_vm0, %v9981_v5 }
 0x24e   : > { %v1252_v6 = vpop.f32.mrf.mxu3 }
 0x24f   : > { %v11964_v7 = vadd.f32 %v1252_v6, %v1043_v4 }
 0x250   : > { %v11969_v9 = vpop.f32.mrf.mxu2 }
 0x253   : > { %10045 = vmatmul.msk.f32.gmra.mxu3 %vm658_vm0, %v806_v8 }
 0x255   : > { %10014 = vmatmul.msk.f32.gmra.mxu2 %vm658_vm0, %v9982_v10 }
 0x256   : > { %v11976_v11 = vpop.f32.mrf.mxu3 }
 0x258   : > { %v1049_v13 = vpop.f32.mrf.mxu2 }
 0x25b   : > { %10046 = vmatmul.msk.f32.gmra.mxu3 %vm658_vm0, %v807_v12 }
 0x25d   : > { %10015 = vmatmul.msk.f32.gmra.mxu2 %vm658_vm0, %v9983_v14 }
 0x25e   : > { %v1258_v15 = vpop.f32.mrf.mxu3 }
 0x25f   : > { %v11986_v16 = vadd.f32 %v1258_v15, %v1049_v13 }
 0x260   : > { %v11991_v18 = vpop.f32.mrf.mxu2 }
 0x263   : > { %10047 = vmatmul.msk.f32.gmra.mxu3 %vm658_vm0, %v808_v17 }
 0x265   : > { %10016 = vmatmul.msk.f32.gmra.mxu2 %vm658_vm0, %v9984_v19 }
 0x266   : > { %v12001_v21 = vpop.f32.mrf.mxu3 }
 0x268   : > { %v1055_v24 = vpop.f32.mrf.mxu2 }
 0x26b   : > { %10048 = vmatmul.msk.f32.gmra.mxu3 %vm658_vm0, %v809_v23 }
 0x26d   : > { %10017 = vmatmul.msk.f32.gmra.mxu2 %vm658_vm0, %v9985_v26 }
 0x26e   : > { %v1264_v27 = vpop.f32.mrf.mxu3 }
 0x26f   : > { %v12011_v29 = vadd.f32 %v1264_v27, %v1055_v24  ;;  %v10174_v24 = vld [vmem:[%s17034_s1 + $0x308] sm:$0xff]  ;;  %v10175_v27 = vld [vmem:[%s17034_s1 + $0x310] sm:$0xff] }
 0x270   : > { %v12016_v32 = vpop.f32.mrf.mxu2  ;;  %10206 = vmatmul.msk.f32.gmra.mxu0 %vm658_vm0, %v10174_v24  ;;  %v10092_v24 = vld [vmem:[%s17034_s1 + $0x258] sm:$0xff] }
 0x273   : > { %10049 = vmatmul.msk.f32.gmra.mxu3 %vm658_vm0, %v810_v30  ;;  %v10176_v30 = vld [vmem:[%s17034_s1 + $0x318] sm:$0xff] }
 0x275   : > { %10018 = vmatmul.msk.f32.gmra.mxu2 %vm658_vm0, %v9986_v33  ;;  %v10081_v33 = vld [vmem:[%s17034_s1 + $0x200] sm:$0xff] }
 0x276   : > { %v12023_v34 = vpop.f32.mrf.mxu3 }
 0x278   : > { %v1061_v37 = vpop.f32.mrf.mxu2  ;;  %10207 = vmatmul.msk.f32.gmra.mxu0 %vm658_vm0, %v10175_v27  ;;  %v10093_v27 = vld [vmem:[%s17034_s1 + $0x260] sm:$0xff] }
 0x27b   : > { %10050 = vmatmul.msk.f32.gmra.mxu3 %vm658_vm0, %v811_v36  ;;  %v10177_v36 = vld [vmem:[%s17034_s1 + $0x320] sm:$0xff] }
 0x27d   : > { %10019 = vmatmul.msk.f32.gmra.mxu2 %vm658_vm0, %v9987_v38  ;;  %v10178_v38 = vld [vmem:[%s17034_s1 + $0x328] sm:$0xff] }
 0x27e   : > { %v1270_v39 = vpop.f32.mrf.mxu3 }
 0x27f   : > { %v12033_v41 = vadd.f32 %v1270_v39, %v1061_v37  ;;  %v10082_v37 = vld [vmem:[%s17034_s1 + $0x208] sm:$0xff]  ;;  %v10083_v39 = vld [vmem:[%s17034_s1 + $0x210] sm:$0xff] }
 0x280   : > { %v12038_v43 = vpop.f32.mrf.mxu2  ;;  %10208 = vmatmul.msk.f32.gmra.mxu0 %vm658_vm0, %v10176_v30  ;;  %v1871_v30 = vpop.f32.mrf.mxu0 }
 0x283   : > { %10051 = vmatmul.msk.f32.gmra.mxu3 %vm658_vm0, %v812_v42  ;;  %v10179_v42 = vld [vmem:[%s17034_s1 + $0x330] sm:$0xff] }
 0x285   : > { %10020 = vmatmul.msk.f32.gmra.mxu2 %vm658_vm0, %v9988_v44  ;;  %v10084_v44 = vld [vmem:[%s17034_s1 + $0x218] sm:$0xff] }
 0x286   : > { %v12045_v45 = vpop.f32.mrf.mxu3 }
 0x288   : > { %v1067_v48 = vpop.f32.mrf.mxu2  ;;  %10209 = vmatmul.msk.f32.gmra.mxu0 %vm658_vm0, %v10177_v36  ;;  %v10094_v36 = vld [vmem:[%s17034_s1 + $0x268] sm:$0xff] }
 0x28b   : > { %10052 = vmatmul.msk.f32.gmra.mxu3 %vm658_vm0, %v813_v47  ;;  %v10180_v47 = vld [vmem:[%s17034_s1 + $0x338] sm:$0xff] }
 0x28e   : > { %v1276_v49 = vpop.f32.mrf.mxu3 }
 0x28f   : > { %v12051_v50 = vadd.f32 %v1276_v49, %v1067_v48  ;;  %v10085_v48 = vld [vmem:[%s17034_s1 + $0x220] sm:$0xff] }
 0x290   : > { %v12053_v52 = vpop.f32.mrf.mxu2  ;;  %10210 = vmatmul.msk.f32.gmra.mxu0 %vm658_vm0, %v10178_v38  ;;  %v10181_v49 = vld [vmem:[%s17034_s1 + $0x340] sm:$0xff]  ;;  %v10190_v38 = vld [vmem:[%s17034_s1 + $0x388] sm:$0xff] }
 0x293   : > { %10077 = vmatmul.msk.bf16.vlgmr.msrb.gmra.mxu3 %vm658_vm0, %v11713_v22 }
 0x296   : > { %v12057_v53 = vpop.f32.mrf.mxu3 }
 0x298   : > { %v1073_v54 = vpop.f32.mrf.mxu2  ;;  %10211 = vmatmul.msk.f32.gmra.mxu0 %vm658_vm0, %v10179_v42 }
 0x29e   : > { %v1282_v55 = vpop.f32.mrf.mxu3 }
 0x29f   : > { %v12059_v57 = vadd.f32 %v1282_v55, %v1073_v54  ;;  %v10086_v54 = vld [vmem:[%s17034_s1 + $0x228] sm:$0xff] }
 0x2a0   : > { %v12061_v58 = vpop.f32.mrf.mxu2  ;;  %10212 = vmatmul.msk.f32.gmra.mxu0 %vm658_vm0, %v10180_v47  ;;  %v10182_v55 = vld [vmem:[%s17034_s1 + $0x348] sm:$0xff]  ;;  %v10096_v47 = vld [vmem:[%s17034_s1 + $0x278] sm:$0xff] }
 0x2a3   : > { %10078 = vmatmul.msk.bf16.gmra.mxu3 %vm658_vm0, %v11721_v25 }
 0x2a6   : > { %v12065_v59 = vpop.f32.mrf.mxu3 }
 0x2a8   : > { %v1079_v60 = vpop.f32.mrf.mxu2  ;;  %10213 = vmatmul.msk.f32.gmra.mxu0 %vm658_vm0, %v10181_v49  ;;  %v10192_v49 = vld [vmem:[%s17034_s1 + $0x398] sm:$0xff] }
 0x2ae   : > { %v1288_v62 = vpop.f32.mrf.mxu3 }
 0x2af   : > { %v12067_v63 = vadd.f32 %v1288_v62, %v1079_v60  ;;  %v10087_v60 = vld [vmem:[%s17034_s1 + $0x230] sm:$0xff] }
 0x2b0   : > { %10214 = vmatmul.msk.f32.gmra.mxu0 %vm658_vm0, %v10182_v55  ;;  %v10183_v62 = vld [vmem:[%s17034_s1 + $0x350] sm:$0xff]  ;;  %v10097_v55 = vld [vmem:[%s17034_s1 + $0x280] sm:$0xff] }
 0x2b3   : > { %10079 = vmatmul.msk.bf16.gmra.mxu3 %vm658_vm0, %v11729_v28 }
 0x2b6   : > { %v12071_v22 = vpop.f32.mrf.mxu3 }
 0x2b8   : > { %10215 = vmatmul.msk.f32.gmra.mxu0 %vm658_vm0, %v10183_v62 }
 0x2be   : > { %v12073_v0 = vpop.f32.mrf.mxu3 }
 0x2c3   : > { %10080 = vmatmul.msk.bf16.gmra.mxu3 %vm658_vm0, %v11737_v31 }
 0x2c6   : > { %v12077_v1 = vpop.f32.mrf.mxu3 }
 0x2ce   : > { %v12079_v3 = vpop.f32.mrf.mxu3 }
 0x2d6   : > { %v12081_v25 = vpop.f32.mrf.mxu3 }
 0x2de   : > { %v12083_v4 = vpop.f32.mrf.mxu3 }
 0x2e6   : > { %v12085_v5 = vpop.f32.mrf.mxu3 }
 0x2ee   : > { %v12087_v6 = vpop.f32.mrf.mxu3 }
 0x2f6   : > { %v12089_v28 = vpop.f32.mrf.mxu3 }
 0x2fe   : > { %v12091_v8 = vpop.f32.mrf.mxu3 }
 0x2ff   : > { %17035 = vst [vmem:[#allocation3_spill] sm:$0xff] %v12091_v8 }
 0x306   : > { %v12093_v10 = vpop.f32.mrf.mxu3 }
 0x307   : > { %17036 = vst [vmem:[#allocation4_spill] sm:$0xff] %v12093_v10 }
 0x30e   : > { %v12095_v12 = vpop.f32.mrf.mxu3 }
 0x30f   : > { %17037 = vst [vmem:[#allocation5_spill] sm:$0xff] %v12095_v12 }
 0x316   : > { %v1369_v31 = vpop.f32.mrf.mxu3 }
 0x31e   : > { %v1371_v13 = vpop.f32.mrf.mxu3 }
 0x326   : > { %v1374_v14 = vpop.f32.mrf.mxu3 }
 0x32e   : > { %v1376_v15 = vpop.f32.mrf.mxu3 }
 0x336   : > { %v1379_v17 = vpop.f32.mrf.mxu3 }
 0x33e   : > { %v1381_v19 = vpop.f32.mrf.mxu3 }
 0x346   : > { %v1384_v23 = vpop.f32.mrf.mxu3 }
 0x34e   : > { %v1386_v26 = vpop.f32.mrf.mxu3 }
 0x34f   : > { %1526 = vmatpush.msrb.mxu1 %v1386_v26  ;;  %v10188_v26 = vld [vmem:[%s17034_s1 + $0x378] sm:$0xff] }
 0x351   : > { %1527 = vmatpush.msrb.mxu1 %v1384_v23  ;;  %v10187_v23 = vld [vmem:[%s17034_s1 + $0x370] sm:$0xff] }
 0x353   : > { %1528 = vmatpush.msrb.mxu1 %v1381_v19  ;;  %v10186_v19 = vld [vmem:[%s17034_s1 + $0x368] sm:$0xff] }
 0x355   : > { %1529 = vmatpush.msrb.mxu1 %v1379_v17  ;;  %v10090_v17 = vld [vmem:[%s17034_s1 + $0x248] sm:$0xff] }
 0x357   : > { %1530 = vmatpush.msrb.mxu1 %v1376_v15  ;;  %v10185_v15 = vld [vmem:[%s17034_s1 + $0x360] sm:$0xff] }
 0x359   : > { %1531 = vmatpush.msrb.mxu1 %v1374_v14  ;;  %v10089_v14 = vld [vmem:[%s17034_s1 + $0x240] sm:$0xff] }
 0x35b   : > { %1532 = vmatpush.msrb.mxu1 %v1371_v13  ;;  %v10184_v13 = vld [vmem:[%s17034_s1 + $0x358] sm:$0xff] }
 0x35c   : > { %10216 = vmatmul.msk.f32.gmra.mxu0 %vm658_vm0, %v10184_v13  ;;  %v10193_v13 = vld [vmem:[%s17034_s1 + $0x3a0] sm:$0xff] }
 0x35d   : > { %1533 = vmatpush.msrb.mxu1 %v1369_v31  ;;  %v10088_v31 = vld [vmem:[%s17034_s1 + $0x238] sm:$0xff] }
 0x35e   : > { %10113 = vmatmul.msk.f32.vlgmr.msrb.gmra.mxu1 %vm658_vm0, %v10081_v33  ;;  %v10189_v33 = vld [vmem:[%s17034_s1 + $0x380] sm:$0xff] }
 0x364   : > { %10217 = vmatmul.msk.f32.gmra.mxu0 %vm658_vm0, %v10185_v15  ;;  %v10098_v15 = vld [vmem:[%s17034_s1 + $0x288] sm:$0xff] }
 0x366   : > { %10114 = vmatmul.msk.f32.gmra.mxu1 %vm658_vm0, %v10082_v37  ;;  %v1874_v37 = vpop.f32.mrf.mxu0 }
 0x36c   : > { %10218 = vmatmul.msk.f32.gmra.mxu0 %vm658_vm0, %v10186_v19 }
 0x36e   : > { %10115 = vmatmul.msk.f32.gmra.mxu1 %vm658_vm0, %v10083_v39  ;;  %v10095_v39 = vld [vmem:[%s17034_s1 + $0x270] sm:$0xff]  ;;  %v1877_v42 = vpop.f32.mrf.mxu0 }
 0x374   : > { %10219 = vmatmul.msk.f32.gmra.mxu0 %vm658_vm0, %v10187_v23 }
 0x376   : > { %10116 = vmatmul.msk.f32.gmra.mxu1 %vm658_vm0, %v10084_v44  ;;  %v10191_v44 = vld [vmem:[%s17034_s1 + $0x390] sm:$0xff] }
 0x37c   : > { %10220 = vmatmul.msk.f32.gmra.mxu0 %vm658_vm0, %v10188_v26 }
 0x37e   : > { %10117 = vmatmul.msk.f32.gmra.mxu1 %vm658_vm0, %v10085_v48  ;;  %v1880_v48 = vpop.f32.mrf.mxu0 }
 0x384   : > { %10221 = vmatmul.msk.f32.gmra.mxu0 %vm658_vm0, %v10189_v33 }
 0x386   : > { %10118 = vmatmul.msk.f32.gmra.mxu1 %vm658_vm0, %v10086_v54  ;;  %v1883_v62 = vpop.f32.mrf.mxu0 }
 0x38c   : > { %10222 = vmatmul.msk.f32.gmra.mxu0 %vm658_vm0, %v10190_v38 }
 0x38e   : > { %10119 = vmatmul.msk.f32.gmra.mxu1 %vm658_vm0, %v10087_v60  ;;  %v1886_v19 = vpop.f32.mrf.mxu0 }
 0x394   : > { %10223 = vmatmul.msk.f32.gmra.mxu0 %vm658_vm0, %v10191_v44  ;;  %v10101_v44 = vld [vmem:[%s17034_s1 + $0x2a0] sm:$0xff] }
 0x396   : > { %10120 = vmatmul.msk.f32.gmra.mxu1 %vm658_vm0, %v10088_v31 }
 0x39c   : > { %10224 = vmatmul.msk.f32.gmra.mxu0 %vm658_vm0, %v10192_v49 }
 0x39e   : > { %10121 = vmatmul.msk.f32.gmra.mxu1 %vm658_vm0, %v10089_v14 }
 0x3a4   : > { %10225 = vmatmul.msk.f32.gmra.mxu0 %vm658_vm0, %v10193_v13 }
 0x3a6   : > { %10122 = vmatmul.msk.f32.gmra.mxu1 %vm658_vm0, %v10090_v17 }
 0x3ae   : > { %10123 = vmatmul.msk.f32.gmra.mxu1 %vm658_vm0, %v10091_v20  ;;  %v10194_v20 = vld [vmem:[%s17034_s1 + $0x3a8] sm:$0xff] }
 0x3af   : > { %10226 = vmatmul.msk.f32.gmra.mxu0 %vm658_vm0, %v10194_v20 }
 0x3b6   : > { %10124 = vmatmul.msk.f32.gmra.mxu1 %vm658_vm0, %v10092_v24  ;;  %v10099_v24 = vld [vmem:[%s17034_s1 + $0x290] sm:$0xff] }
 0x3be   : > { %10125 = vmatmul.msk.f32.gmra.mxu1 %vm658_vm0, %v10093_v27  ;;  %v1889_v27 = vpop.f32.mrf.mxu0 }
 0x3c6   : > { %10126 = vmatmul.msk.f32.gmra.mxu1 %vm658_vm0, %v10094_v36  ;;  %v10100_v36 = vld [vmem:[%s17034_s1 + $0x298] sm:$0xff]  ;;  %v1892_v38 = vpop.f32.mrf.mxu0 }
 0x3ce   : > { %10127 = vmatmul.msk.f32.gmra.mxu1 %vm658_vm0, %v10095_v39  ;;  %v10196_v39 = vld [vmem:[%s17034_s1 + $0x3b8] sm:$0xff] }
 0x3d6   : > { %10128 = vmatmul.msk.f32.gmra.mxu1 %vm658_vm0, %v10096_v47 }
 0x3db   : > { %v1535_v54 = vpop.f32.mrf.mxu1 }
 0x3dc   : > { %v1631_v60 = vadd.f32 %v1535_v54, %v11891_v35  ;;  %v10197_v54 = vld [vmem:[%s17034_s1 + $0x3c0] sm:$0xff] }
 0x3de   : > { %v12245_v31 = vadd.f32 %v1871_v30, %v1631_v60  ;;  %10129 = vmatmul.msk.f32.gmra.mxu1 %vm658_vm0, %v10097_v55  ;;  %v10195_v30 = vld [vmem:[%s17034_s1 + $0x3b0] sm:$0xff] }
 0x3df   : > { %10227 = vmatmul.msk.f32.gmra.mxu0 %vm658_vm0, %v10195_v30 }
 0x3e3   : > { %v1538_v14 = vpop.f32.mrf.mxu1 }
 0x3e4   : > { %v1632_v17 = vadd.f32 %v1538_v14, %v11901_v40 }
 0x3e6   : > { %v12256_v35 = vadd.f32 %v1874_v37, %v1632_v17  ;;  %10130 = vmatmul.msk.f32.gmra.mxu1 %vm658_vm0, %v10098_v15  ;;  %v10103_v17 = vld [vmem:[%s17034_s1 + $0x2b0] sm:$0xff] }
 0x3e7   : > { %10228 = vmatmul.msk.f32.gmra.mxu0 %vm658_vm0, %v10196_v39 }
 0x3eb   : > { %v1541_v23 = vpop.f32.mrf.mxu1 }
 0x3ec   : > { %v1633_v26 = vadd.f32 %v1541_v23, %v11914_v46 }
 0x3ee   : > { %v12267_v40 = vadd.f32 %v1877_v42, %v1633_v26  ;;  %10131 = vmatmul.msk.f32.gmra.mxu1 %vm658_vm0, %v10099_v24  ;;  %v10104_v26 = vld [vmem:[%s17034_s1 + $0x2b8] sm:$0xff] }
 0x3ef   : > { %10229 = vmatmul.msk.f32.gmra.mxu0 %vm658_vm0, %v10197_v54  ;;  %v1262_v54 = vadd.f32 %v12001_v21, %v11991_v18  ;;  %v10108_v18 = vld [vmem:[%s17034_s1 + $0x2d8] sm:$0xff] }
 0x3f3   : > { %v1544_v33 = vpop.f32.mrf.mxu1 }
 0x3f4   : > { %v1634_v37 = vadd.f32 %v1544_v33, %v11924_v51  ;;  %v2119_v51 = vld [vmem:[%s16772_s7 + $0x38] sm:$0xff] }
 0x3f5   : > { %2132 = vmatpush.msra.mxu2 %v2119_v51 }
 0x3f6   : > { %v12278_v46 = vadd.f32 %v1880_v48, %v1634_v37  ;;  %10132 = vmatmul.msk.f32.gmra.mxu1 %vm658_vm0, %v10100_v36  ;;  %v1895_v48 = vpop.f32.mrf.mxu0  ;;  %v1256_v36 = vadd.f32 %v11976_v11, %v11969_v9  ;;  %v10201_v9 = vld [vmem:[%s17034_s1 + $0x3e0] sm:$0xff] }
 0x3fb   : > { %v1547_v42 = vpop.f32.mrf.mxu1 }
 0x3fc   : > { %v1635_v47 = vadd.f32 %v1547_v42, %v11934_v56  ;;  %v10102_v56 = vld [vmem:[%s17034_s1 + $0x2a8] sm:$0xff] }
 0x3fe   : > { %v12292_v49 = vadd.f32 %v1883_v62, %v1635_v47  ;;  %10133 = vmatmul.msk.f32.gmra.mxu1 %vm658_vm0, %v10101_v44  ;;  %v12303_v13 = vpop.f32.mrf.mxu0  ;;  %v10198_v62 = vld [vmem:[%s17034_s1 + $0x3c8] sm:$0xff] }
 0x3ff   : > { %10230 = vmatmul.msk.f32.gmra.mxu0 %vm658_vm0, %v10198_v62  ;;  %v10106_v47 = vld [vmem:[%s17034_s1 + $0x2c8] sm:$0xff] }
 0x403   : > { %v1550_v55 = vpop.f32.mrf.mxu1 }
 0x404   : > { %v1636_v60 = vadd.f32 %v1550_v55, %v11944_v61 }
 0x406   : > { %v12305_v14 = vadd.f32 %v1886_v19, %v1636_v60  ;;  %10134 = vmatmul.msk.f32.gmra.mxu1 %vm658_vm0, %v10102_v56  ;;  %v1901_v61 = vpop.f32.mrf.mxu0  ;;  %v10199_v19 = vld [vmem:[%s17034_s1 + $0x3d0] sm:$0xff] }
 0x407   : > { %10231 = vmatmul.msk.f32.gmra.mxu0 %vm658_vm0, %v10199_v19  ;;  %v10107_v56 = vld [vmem:[%s17034_s1 + $0x2d0] sm:$0xff]  ;;  %v1268_v19 = vadd.f32 %v12023_v34, %v12016_v32  ;;  %v10110_v32 = vld [vmem:[%s17034_s1 + $0x2e8] sm:$0xff] }
 0x40b   : > { %v1553_v15 = vpop.f32.mrf.mxu1 }
 0x40c   : > { %v1637_v20 = vadd.f32 %v1553_v15, %v11954_v2 }
 0x40e   : > { %v12316_v23 = vadd.f32 %v1889_v27, %v1637_v20  ;;  %10135 = vmatmul.msk.f32.gmra.mxu1 %vm658_vm0, %v10103_v17  ;;  %v12327_v33 = vpop.f32.mrf.mxu0  ;;  %v10200_v27 = vld [vmem:[%s17034_s1 + $0x3d8] sm:$0xff]  ;;  %v10203_v17 = vld [vmem:[%s17034_s1 + $0x3f0] sm:$0xff] }
 0x40f   : > { %10232 = vmatmul.msk.f32.gmra.mxu0 %vm658_vm0, %v10200_v27  ;;  %v2117_v27 = vld [vmem:[%s16772_s7 + $0x28] sm:$0xff] }
 0x413   : > { %v1556_v24 = vpop.f32.mrf.mxu1 }
 0x414   : > { %v1638_v30 = vadd.f32 %v1556_v24, %v11964_v7  ;;  %v10105_v7 = vld [vmem:[%s17034_s1 + $0x2c0] sm:$0xff] }
 0x416   : > { %v12329_v2 = vadd.f32 %v1892_v38, %v1638_v30  ;;  %10136 = vmatmul.msk.f32.gmra.mxu1 %vm658_vm0, %v10104_v26  ;;  %v2118_v38 = vld [vmem:[%s16772_s7 + $0x30] sm:$0xff]  ;;  %v1907_v42 = vpop.f32.mrf.mxu0  ;;  %v10109_v26 = vld [vmem:[%s17034_s1 + $0x2e0] sm:$0xff] }
 0x417   : > { %2133 = vmatpush.msra.mxu2 %v2118_v38  ;;  %10233 = vmatmul.msk.f32.gmra.mxu0 %vm658_vm0, %v10201_v9 }
 0x419   : > { %2134 = vmatpush.msra.mxu2 %v2117_v27 }
 0x41b   : > { %v1559_v37 = vpop.f32.mrf.mxu1 }
 0x41c   : > { %v1639_v39 = vadd.f32 %v1559_v37, %v1256_v36 }
 0x41e   : > { %v12344_v44 = vadd.f32 %v1895_v48, %v1639_v39  ;;  %10137 = vmatmul.msk.f32.gmra.mxu1 %vm658_vm0, %v10105_v7  ;;  %v12356_v51 = vpop.f32.mrf.mxu0  ;;  %v10202_v48 = vld [vmem:[%s17034_s1 + $0x3e8] sm:$0xff]  ;;  %v1274_v39 = vadd.f32 %v12045_v45, %v12038_v43  ;;  %v1280_v43 = vadd.f32 %v12057_v53, %v12053_v52 }
 0x41f   : > { %10234 = vmatmul.msk.f32.gmra.mxu0 %vm658_vm0, %v10202_v48 }
 0x423   : > { %v12351_v11 = vpop.f32.mrf.mxu1 }
 0x426   : > { %10138 = vmatmul.msk.f32.gmra.mxu1 %vm658_vm0, %v10106_v47  ;;  %v1913_v62 = vpop.f32.mrf.mxu0 }
 0x427   : > { %10235 = vmatmul.msk.f32.gmra.mxu0 %vm658_vm0, %v10203_v17 }
 0x42b   : > { %v1565_v55 = vpop.f32.mrf.mxu1 }
 0x42c   : > { %v1641_v60 = vadd.f32 %v1565_v55, %v1262_v54  ;;  %v10112_v55 = vld [vmem:[%s17034_s1 + $0x2f8] sm:$0xff] }
 0x42e   : > { %v12368_v15 = vadd.f32 %v1901_v61, %v1641_v60  ;;  %10139 = vmatmul.msk.f32.gmra.mxu1 %vm658_vm0, %v10107_v56  ;;  %v12380_v21 = vpop.f32.mrf.mxu0  ;;  %v10204_v61 = vld [vmem:[%s17034_s1 + $0x3f8] sm:$0xff] }
 0x42f   : > { %10236 = vmatmul.msk.f32.gmra.mxu0 %vm658_vm0, %v10204_v61 }
 0x433   : > { %v12375_v20 = vpop.f32.mrf.mxu1 }
 0x436   : > { %10140 = vmatmul.msk.f32.gmra.mxu1 %vm658_vm0, %v10108_v18  ;;  %v1919_v37 = vpop.f32.mrf.mxu0  ;;  %v1082_v18 = vpop.f32.mrf.mxu2 }
 0x43b   : > { %v1571_v24 = vpop.f32.mrf.mxu1 }
 0x43c   : > { %v1643_v30 = vadd.f32 %v1571_v24, %v1268_v19  ;;  %v1286_v24 = vadd.f32 %v12065_v59, %v12061_v58  ;;  %v2115_v58 = vld [vmem:[%s16772_s7 + $0x18] sm:$0xff] }
 0x43e   : > { %v12395_v36 = vadd.f32 %v1907_v42, %v1643_v30  ;;  %10141 = vmatmul.msk.f32.gmra.mxu1 %vm658_vm0, %v10109_v26  ;;  %v12404_v34 = vpop.f32.mrf.mxu0  ;;  %v10111_v42 = vld [vmem:[%s17034_s1 + $0x2f0] sm:$0xff]  ;;  %v12433_v26 = vpop.f32.mrf.mxu2 }
 0x443   : > { %v12398_v7 = vpop.f32.mrf.mxu1 }
 0x446   : > { %10142 = vmatmul.msk.f32.gmra.mxu1 %vm658_vm0, %v10110_v32  ;;  %v1925_v48 = vpop.f32.mrf.mxu0 }
 0x44b   : > { %v1577_v38 = vpop.f32.mrf.mxu1 }
 0x44c   : > { %v1645_v9 = vadd.f32 %v1577_v38, %v1274_v39  ;;  %v12441_v39 = vpop.f32.mrf.mxu2  ;;  %v1292_v38 = vadd.f32 %v12071_v22, %v1082_v18 }
 0x44e   : > { %v12411_v47 = vadd.f32 %v1913_v62, %v1645_v9  ;;  %10143 = vmatmul.msk.f32.gmra.mxu1 %vm658_vm0, %v10111_v42  ;;  %v12422_v56 = vpop.f32.mrf.mxu0  ;;  %v2116_v62 = vld [vmem:[%s16772_s7 + $0x20] sm:$0xff] }
 0x44f   : > { %2135 = vmatpush.msra.mxu2 %v2116_v62 }
 0x451   : > { %2136 = vmatpush.msra.mxu2 %v2115_v58 }
 0x453   : > { %v12414_v54 = vpop.f32.mrf.mxu1 }
 0x456   : > { %10144 = vmatmul.msk.f32.gmra.mxu1 %vm658_vm0, %v10112_v55  ;;  %v1931_v19 = vpop.f32.mrf.mxu0 }
 0x45b   : > { %v1583_v45 = vpop.f32.mrf.mxu1 }
 0x45c   : > { %v1647_v60 = vadd.f32 %v1583_v45, %v1280_v43 }
 0x45e   : > { %v12427_v17 = vadd.f32 %v1919_v37, %v1647_v60  ;;  %v12437_v27 = vpop.f32.mrf.mxu0 }
 0x463   : > { %v12429_v61 = vpop.f32.mrf.mxu1 }
 0x466   : > { %v12443_v37 = vpop.f32.mrf.mxu0 }
 0x46b   : > { %v1589_v52 = vpop.f32.mrf.mxu1 }
 0x46c   : > { %v1649_v53 = vadd.f32 %v1589_v52, %v1286_v24 }
 0x46e   : > { %v12435_v30 = vadd.f32 %v1925_v48, %v1649_v53  ;;  %v12451_v48 = vpop.f32.mrf.mxu2  ;;  %v12455_v43 = vpop.f32.mrf.mxu0 }
 0x473   : > { %v12439_v32 = vpop.f32.mrf.mxu1 }
 0x476   : > { %v12457_v45 = vpop.f32.mrf.mxu2  ;;  %v12461_v22 = vpop.f32.mrf.mxu0 }
 0x47b   : > { %v1595_v42 = vpop.f32.mrf.mxu1 }
 0x47c   : > { %v1651_v9 = vadd.f32 %v1595_v42, %v1292_v38 }
 0x47e   : > { %v12449_v59 = vadd.f32 %v1931_v19, %v1651_v9  ;;  %v12463_v62 = vpop.f32.mrf.mxu2  ;;  %v12470_v19 = vld [vmem:[%s17038_s29] ss:$0 sm:$0xff]  ;;  %v12472_v24 = vpop.f32.mrf.mxu0 }
 0x47f   : > { %17039 = vst [vmem:[#allocation6_spill] sm:$0xff] %v12472_v24  ;;  %v12476_v52 = vadd.f32 %v12470_v19, %v12256_v35  ;;  %v12480_v53 = vadd.f32 %v12470_v19, %v12245_v31  ;;  %v12484_v38 = vadd.f32 %v12470_v19, %v12267_v40  ;;  %v12492_v58 = vadd.f32 %v12470_v19, %v12278_v46  ;;  %v2114_v35 = vld [vmem:[%s16772_s7 + $0x10] sm:$0xff] }
 0x480   : > { %2137 = vmatpush.msra.mxu2 %v2114_v35  ;;  %v12511_v8 = vadd.f32 %v12470_v19, %v12305_v14  ;;  %v1640_v35 = vadd.f32 %v12351_v11, %v11986_v16 }
 0x481   : > { %17040 = vst [vmem:[#allocation7_spill] sm:$0xff] %v12476_v52  ;;  %v2036_v9 = vsel %vm658_vm0, %v12476_v52, 0.0  ;;  %v2035_v31 = vsel %vm658_vm0, %v12480_v53, 0.0  ;;  %v2038_v40 = vsel %vm658_vm0, %v12484_v38, 0.0  ;;  %v12505_v52 = vadd.f32 %v12470_v19, %v12292_v49 }
 0x482   : > { %17041 = vst [vmem:[#allocation8_spill] sm:$0xff] %v12480_v53  ;;  %v2037_v10 = vadd.f32 %v2036_v9, %v2035_v31  ;;  %v2040_v46 = vsel %vm658_vm0, %v12492_v58, 0.0  ;;  %v12521_v49 = vadd.f32 %v12470_v19, %v12316_v23  ;;  %v2044_v14 = vsel %vm658_vm0, %v12511_v8, 0.0 }
 0x483   : > { %v12453_v55 = vpop.f32.mrf.mxu1  ;;  %17042 = vst [vmem:[#allocation9_spill] sm:$0xff] %v12484_v38  ;;  %v2042_v38 = vsel %vm658_vm0, %v12505_v52, 0.0  ;;  %v1976_v16 = vadd.f32 %v12303_v13, %v1640_v35 }
 0x484   : > { %17043 = vst [vmem:[#allocation10_spill] sm:$0xff] %v12492_v58  ;;  %v2039_v24 = vadd.f32 %v2038_v40, %v2037_v10  ;;  %v12529_v58 = vadd.f32 %v12470_v19, %v12329_v2  ;;  %v1642_v10 = vadd.f32 %v12375_v20, %v12011_v29  ;;  %v2046_v23 = vsel %vm658_vm0, %v12521_v49, 0.0 }
 0x485   : > { %17044 = vst [vmem:[#allocation11_spill] sm:$0xff] %v12511_v8  ;;  %v12545_v8 = vadd.f32 %v12470_v19, %v1976_v16  ;;  %v1644_v29 = vadd.f32 %v12398_v7, %v12033_v41  ;;  %v1646_v7 = vadd.f32 %v12414_v54, %v12051_v50  ;;  %v1648_v50 = vadd.f32 %v12429_v61, %v12059_v57 }
 0x486   : > { %v12497_v12 = vpop.f32.mrf.mxu2  ;;  %v12515_v53 = vpop.f32.mrf.mxu0  ;;  %v2041_v9 = vadd.f32 %v2040_v46, %v2039_v24  ;;  %v12538_v24 = vadd.f32 %v12470_v19, %v12344_v44  ;;  %v2048_v2 = vsel %vm658_vm0, %v12529_v58, 0.0  ;;  %v1978_v13 = vadd.f32 %v12327_v33, %v1642_v10 }
 0x487   : > { %v12554_v44 = vadd.f32 %v12470_v19, %v12368_v15  ;;  %v2052_v16 = vsel %vm658_vm0, %v12545_v8, 0.0  ;;  %v1980_v41 = vadd.f32 %v12356_v51, %v1644_v29  ;;  %v1982_v51 = vadd.f32 %v12380_v21, %v1646_v7 }
 0x488   : > { %v2043_v11 = vadd.f32 %v2042_v38, %v2041_v9  ;;  %v2050_v38 = vsel %vm658_vm0, %v12538_v24, 0.0  ;;  %v12563_v33 = vadd.f32 %v12470_v19, %v1978_v13  ;;  %v1984_v21 = vadd.f32 %v12404_v34, %v1648_v50 }
 0x489   : > { %v2054_v15 = vsel %vm658_vm0, %v12554_v44, 0.0  ;;  %v1650_v57 = vadd.f32 %v12439_v32, %v12067_v63 }
 0x48a   : > { %v2045_v46 = vadd.f32 %v2044_v14, %v2043_v11  ;;  %v12572_v11 = vadd.f32 %v12470_v19, %v12395_v36  ;;  %v12586_v36 = vadd.f32 %v12470_v19, %v12411_v47  ;;  %v1295_v47 = vadd.f32 %v12073_v0, %v12433_v26 }
 0x48b   : > { %v12459_v60 = vpop.f32.mrf.mxu1  ;;  %v12611_v32 = vadd.f32 %v12470_v19, %v1984_v21 }
 0x48c   : > { %v2047_v20 = vadd.f32 %v2046_v23, %v2045_v46  ;;  %v2056_v46 = vsel %vm658_vm0, %v12563_v33, 0.0  ;;  %v2058_v29 = vsel %vm658_vm0, %v12572_v11, 0.0  ;;  %v2062_v7 = vsel %vm658_vm0, %v12586_v36, 0.0 }
 0x48d   : > { %v1652_v0 = vadd.f32 %v12453_v55, %v1295_v47  ;;  %v2068_v55 = vsel %vm658_vm0, %v12611_v32, 0.0 }
 0x48e   : > { %v12540_v40 = vpop.f32.mrf.mxu2  ;;  %v2049_v35 = vadd.f32 %v2048_v2, %v2047_v20  ;;  %v12558_v14 = vpop.f32.mrf.mxu0  ;;  %v12577_v2 = vadd.f32 %v12470_v19, %v1980_v41 }
 0x490   : > { %v2051_v10 = vadd.f32 %v2050_v38, %v2049_v35  ;;  %v2060_v35 = vsel %vm658_vm0, %v12577_v2, 0.0 }
 0x492   : > { %v2053_v23 = vadd.f32 %v2052_v16, %v2051_v10  ;;  %v12591_v16 = vadd.f32 %v12470_v19, %v1982_v51  ;;  %v12604_v10 = vadd.f32 %v12470_v19, %v12427_v17  ;;  %v1304_v51 = vadd.f32 %v12081_v25, %v12457_v45 }
 0x493   : > { %v12465_v18 = vpop.f32.mrf.mxu1  ;;  %v12639_v45 = vadd.f32 %v12470_v19, %v12449_v59 }
 0x494   : > { %v2055_v13 = vadd.f32 %v2054_v15, %v2053_v23  ;;  %v1298_v15 = vadd.f32 %v12077_v1, %v12441_v39  ;;  %v2064_v63 = vsel %vm658_vm0, %v12591_v16, 0.0  ;;  %v1986_v23 = vadd.f32 %v12422_v56, %v1650_v57 }
 0x495   : > { %v2066_v17 = vsel %vm658_vm0, %v12604_v10, 0.0  ;;  %v12621_v1 = vadd.f32 %v12470_v19, %v12435_v30  ;;  %v1307_v30 = vadd.f32 %v12083_v4, %v12463_v62  ;;  %17046 = vst [vmem:[#allocation13_spill] sm:$0xff] %v12639_v45 }
 0x496   : > { %v1106_v54 = vpop.f32.mrf.mxu2  ;;  %v2057_v20 = vadd.f32 %v2056_v46, %v2055_v13  ;;  %v12596_v41 = vpop.f32.mrf.mxu0  ;;  %v1301_v46 = vadd.f32 %v12079_v3, %v12451_v48  ;;  %v1653_v39 = vadd.f32 %v12459_v60, %v1298_v15  ;;  %v12629_v3 = vadd.f32 %v12470_v19, %v1986_v23  ;;  %v11092_v15 = vld [vmem:[%s17049_s28 + $0x18] sm:$0xff] }
 0x497   : > { %v1988_v48 = vadd.f32 %v12437_v27, %v1652_v0  ;;  %v2070_v25 = vsel %vm658_vm0, %v12621_v1, 0.0  ;;  %v1310_v27 = vadd.f32 %v12085_v5, %v12497_v12  ;;  %v2113_v5 = vld [vmem:[%s16772_s7 + $0x8] sm:$0xff]  ;;  %v2074_v12 = vsel %vm658_vm0, %v12639_v45, 0.0 }
 0x498   : > { %v2059_v61 = vadd.f32 %v2058_v29, %v2057_v20  ;;  %17045 = vst [vmem:[#allocation12_spill] sm:$0xff] %v12629_v3  ;;  %v1654_v29 = vadd.f32 %v12465_v18, %v1301_v46  ;;  %v1989_v20 = vadd.f32 %v12443_v37, %v1653_v39  ;;  %v2072_v4 = vsel %vm658_vm0, %v12629_v3, 0.0  ;;  %2138 = vmatpush.msra.mxu2 %v2113_v5 }
 0x499   : > { %v12648_v62 = vadd.f32 %v12470_v19, %v1988_v48  ;;  %v1313_v37 = vadd.f32 %v12087_v6, %v12540_v40  ;;  %v2112_v40 = vld [vmem:[%s16772_s7] sm:$0xff]  ;;  %v11547_v5 = vmov 256.0  }
 0x49a   : > { %v2061_v34 = vadd.f32 %v2060_v35, %v2059_v61  ;;  %v1990_v57 = vadd.f32 %v12455_v43, %v1654_v29  ;;  %2139 = vmatpush.msra.mxu2 %v2112_v40  ;;  %11269 = vrcp.f32 %v11547_v5  ;;  %v17065_v5 = vld [vmem:[#allocation7_spill] sm:$0xff] }
 0x49b   : > { %v12486_v42 = vpop.f32.mrf.mxu1  ;;  %17047 = vst [vmem:[#allocation14_spill] sm:$0xff] %v12648_v62 }
 0x49c   : > { %v2063_v26 = vadd.f32 %v2062_v7, %v2061_v34  ;;  %v1655_v35 = vadd.f32 %v12486_v42, %v1304_v51  ;;  %v12660_v42 = vadd.f32 %v12470_v19, %v1989_v20  ;;  %v2076_v34 = vsel %vm658_vm0, %v12648_v62, 0.0  ;;  %2298 = vmatpush.bf16.msrb.mxu2 %v11092_v15  ;;  %v17060_v15 = vld [vmem:[#allocation5_spill] sm:$0xff] }
 0x49e   : > { %v1109_v50 = vpop.f32.mrf.mxu2  ;;  %v2065_v56 = vadd.f32 %v2064_v63, %v2063_v26  ;;  %v1958_v18 = vpop.f32.mrf.mxu0  ;;  %17048 = vst [vmem:[#allocation15_spill] sm:$0xff] %v12660_v42  ;;  %v1991_v47 = vadd.f32 %v12461_v22, %v1655_v35  ;;  %v12674_v22 = vadd.f32 %v12470_v19, %v1990_v57  ;;  %v2078_v46 = vsel %vm658_vm0, %v12660_v42, 0.0 }
 0x4a0   : > { %v2067_v60 = vadd.f32 %v2066_v17, %v2065_v56  ;;  %17050 = vst [vmem:[#allocation16_spill] sm:$0xff] %v12674_v22  ;;  %v12681_v17 = vadd.f32 %v12470_v19, %v1991_v47 }
 0x4a2   : > { %v2069_v21 = vadd.f32 %v2068_v55, %v2067_v60 }
 0x4a3   : > { %v12523_v31 = vpop.f32.mrf.mxu1 }
 0x4a4   : > { %v1656_v59 = vadd.f32 %v12523_v31, %v1307_v30  ;;  %v2071_v61 = vadd.f32 %v2070_v25, %v2069_v21  ;;  %v1316_v31 = vadd.f32 %v12089_v28, %v1106_v54  ;;  %v17052_v28 = vld [vmem:[#allocation3_spill] sm:$0xff]  ;;  %v17055_v30 = vld [vmem:[#allocation4_spill] sm:$0xff] }
 0x4a5   : > { %v1319_v54 = vadd.f32 %v17052_v28, %v1109_v50  ;;  %v2080_v50 = vsel %vm658_vm0, %v12674_v22, 0.0 }
 0x4a6   : > { %v2073_v7 = vadd.f32 %v2072_v4, %v2071_v61  ;;  %v1112_v0 = vpop.f32.mrf.mxu2  ;;  %v1961_v20 = vpop.f32.mrf.mxu0 }
 0x4a7   : > { %v1322_v60 = vadd.f32 %v17055_v30, %v1112_v0 }
 0x4a8   : > { %v2075_v26 = vadd.f32 %v2074_v12, %v2073_v7 }
 0x4aa   : > { %v2077_v56 = vadd.f32 %v2076_v34, %v2075_v26 }
 0x4ab   : > { %v12556_v9 = vpop.f32.mrf.mxu1 }
 0x4ac   : > { %v1657_v43 = vadd.f32 %v12556_v9, %v1310_v27  ;;  %v17051_v9 = vld [vmem:[#allocation6_spill] sm:$0xff]  ;;  %v2079_v25 = vadd.f32 %v2078_v46, %v2077_v56 }
 0x4ad   : > { %v1992_v63 = vadd.f32 %v17051_v9, %v1656_v59  ;;  %17053 = vst [vmem:[#allocation6_spill] sm:$0xff] %v12681_v17 }
 0x4ae   : > { %v1993_v39 = vadd.f32 %v12515_v53, %v1657_v43  ;;  %v2082_v53 = vsel %vm658_vm0, %v12681_v17, 0.0  ;;  %v2081_v27 = vadd.f32 %v2080_v50, %v2079_v25  ;;  %v1964_v0 = vpop.f32.mrf.mxu0 }
 0x4af   : > { %v12690_v55 = vadd.f32 %v12470_v19, %v1992_v63 }
 0x4b0   : > { %v2083_v61 = vadd.f32 %v2082_v53, %v2081_v27 }
 0x4b1   : > { %17054 = vst [vmem:[#allocation3_spill] sm:$0xff] %v12690_v55  ;;  %v2084_v4 = vsel %vm658_vm0, %v12690_v55, 0.0 }
 0x4b2   : > { %v2085_v7 = vadd.f32 %v2084_v4, %v2083_v61  ;;  %v17064_v61 = vld [vmem:[#allocation8_spill] sm:$0xff] }
 0x4b3   : > { %v1616_v38 = vpop.f32.mrf.mxu1 }
 0x4b4   : > { %v1658_v23 = vadd.f32 %v1616_v38, %v1313_v37  ;;  %v11091_v38 = vld [vmem:[%s17049_s28 + $0x10] sm:$0xff] }
 0x4b5   : > { %2299 = vmatpush.bf16.msrb.mxu2 %v11091_v38 }
 0x4b6   : > { %v1994_v48 = vadd.f32 %v12558_v14, %v1658_v23  ;;  %v11090_v14 = vld [vmem:[%s17049_s28 + $0x8] sm:$0xff]  ;;  %v11270_v23 = vpop.eup %11269 }
 0x4b7   : > { %v2105_v38 = vmul.f32 256.0, %v11270_v23  ;;  %vm2109_vm1 = vweird.f32 %v11270_v23 }
 0x4b8   : > { %v12706_v57 = vadd.f32 %v12470_v19, %v1994_v48 }
 0x4b9   : > { %2300 = vmatpush.bf16.msrb.mxu2 %v11090_v14 }
 0x4ba   : > { %17057 = vst [vmem:[#allocation17_spill] sm:$0xff] %v12706_v57 }
 0x4bb   : > { %v1619_v13 = vpop.f32.mrf.mxu1 }
 0x4bc   : > { %v1659_v51 = vadd.f32 %v1619_v13, %v1316_v31  ;;  %v12697_v13 = vadd.f32 %v12470_v19, %v1993_v39  ;;  %v1115_v31 = vpop.f32.mrf.mxu2 }
 0x4bd   : > { %v1325_v34 = vadd.f32 %v17060_v15, %v1115_v31  ;;  %v2198_v15 = vpack.c.bf16 %v12545_v8, %v12538_v24 }
 0x4be   : > { %17056 = vst [vmem:[#allocation4_spill] sm:$0xff] %v12697_v13  ;;  %v1995_v35 = vadd.f32 %v12596_v41, %v1659_v51  ;;  %v11089_v41 = vld [vmem:[%s17049_s28] sm:$0xff]  ;;  %v2086_v12 = vsel %vm658_vm0, %v12697_v13, 0.0 }
 0x4bf   : > { %v2087_v40 = vadd.f32 %v2086_v12, %v2085_v7  ;;  %2301 = vmatpush.bf16.msrb.mxu2 %v11089_v41  ;;  %v2194_v41 = vpack.c.bf16 %v17065_v5, %v17064_v61  ;;  %v17066_v12 = vld [vmem:[#allocation9_spill] sm:$0xff]  ;;  %v17068_v7 = vld [vmem:[#allocation11_spill] sm:$0xff] }
 0x4c0   : > { %v12714_v47 = vadd.f32 %v12470_v19, %v1995_v35 }
 0x4c2   : > { %17058 = vst [vmem:[#allocation18_spill] sm:$0xff] %v12714_v47  ;;  %v2090_v9 = vsel %vm658_vm0, %v12714_v47, 0.0 }
 0x4c3   : > { %v1622_v6 = vpop.f32.mrf.mxu1 }
 0x4c4   : > { %v1660_v29 = vadd.f32 %v1622_v6, %v1319_v54 }
 0x4c6   : > { %v1996_v59 = vadd.f32 %v1958_v18, %v1660_v29  ;;  %v2088_v18 = vsel %vm658_vm0, %v12706_v57, 0.0 }
 0x4c7   : > { %v2089_v28 = vadd.f32 %v2088_v18, %v2087_v40  ;;  %v2196_v18 = vpack.c.bf16 %v17068_v7, %v12505_v52  ;;  %v2197_v40 = vpack.c.bf16 %v12529_v58, %v12521_v49 }
 0x4c8   : > { %v12719_v6 = vadd.f32 %v12470_v19, %v1996_v59 }
 0x4c9   : > { %v2091_v39 = vadd.f32 %v2090_v9, %v2089_v28  ;;  %v2145_v9 = vld [vmem:[%s16774_s9] sm:$0xf]  ;;  %v2201_v28 = vpack.c.bf16 %v12591_v16, %v12586_v36 }
 0x4ca   : > { %17059 = vst [vmem:[#allocation19_spill] sm:$0xff] %v12719_v6  ;;  %v2092_v26 = vsel %vm658_vm0, %v12719_v6, 0.0  ;;  %10238 = vmatpush.msk.msra.mxu3 %vm2151_vm2, %v2145_v9 }
 0x4cb   : > { %v1625_v21 = vpop.f32.mrf.mxu1  ;;  %v2093_v50 = vadd.f32 %v2092_v26, %v2091_v39  ;;  %v2202_v39 = vpack.c.bf16 %v12611_v32, %v12604_v10 }
 0x4cc   : > { %v1661_v37 = vadd.f32 %v1625_v21, %v1322_v60  ;;  %v2106_v60 = vsub.f32 1.0, %v2105_v38  ;;  %v2203_v38 = vpack.c.bf16 %v12629_v3, %v12621_v1 }
 0x4ce   : > { %v1997_v43 = vadd.f32 %v1961_v20, %v1661_v37  ;;  %v2107_v53 = vmul.f32 %v11270_v23, %v2106_v60 }
 0x4d0   : > { %v12725_v63 = vadd.f32 %v12470_v19, %v1997_v43  ;;  %v2108_v21 = vadd.f32 %v11270_v23, %v2107_v53  ;;  %v17067_v43 = vld [vmem:[#allocation10_spill] sm:$0xff]  ;;  %v12785_v53 = vld [vmem:[%s16771_s6] ss:$0 sm:$0xff] }
 0x4d1   : > { %v2195_v31 = vpack.c.bf16 %v17067_v43, %v17066_v12 }
 0x4d2   : > { %17061 = vst [vmem:[#allocation5_spill] sm:$0xff] %v12725_v63  ;;  %v2094_v51 = vsel %vm658_vm0, %v12725_v63, 0.0  ;;  %v12736_v59 = vsel %vm2109_vm1, %v11270_v23, %v2108_v21  ;;  %v2200_v23 = vpack.c.bf16 %v12577_v2, %v12572_v11 }
 0x4d3   : > { %v1628_v54 = vpop.f32.mrf.mxu1  ;;  %v2095_v29 = vadd.f32 %v2094_v51, %v2093_v50  ;;  %17063 = vst [vmem:[#allocation21_spill] sm:$0xff] %v12736_v59 }
 0x4d4   : > { %v1662_v46 = vadd.f32 %v1628_v54, %v1325_v34  ;;  %v2199_v34 = vpack.c.bf16 %v12563_v33, %v12554_v44  ;;  %v2120_v54 = vld [vmem:[%s16773_s8] sm:$0x1] }
 0x4d6   : > { %v1998_v56 = vadd.f32 %v1964_v0, %v1662_v46 }
 0x4d8   : > { %v12732_v48 = vadd.f32 %v12470_v19, %v1998_v56 }
 0x4da   : > { %17062 = vst [vmem:[#allocation20_spill] sm:$0xff] %v12732_v48  ;;  %v2096_v30 = vsel %vm658_vm0, %v12732_v48, 0.0 }
 0x4db   : > { %v2097_v25 = vadd.f32 %v2096_v30, %v2095_v29  ;;  %v2204_v30 = vpack.c.bf16 %v12648_v62, %v12639_v45 }
 0x4dd   : > { %v2098_v20 = vrot.slane %v2097_v25, 4 }
 0x4df   : > { %v2099_v35 = vadd.f32 %v2098_v20, %v2097_v25  ;;  %v2205_v20 = vpack.c.bf16 %v12674_v22, %v12660_v42 }
 0x4e1   : > { %v2100_v27 = vrot.slane %v2099_v35, 2 }
 0x4e3   : > { %v2101_v14 = vadd.f32 %v2100_v27, %v2099_v35 }
 0x4e5   : > { %v2102_v4 = vrot.slane %v2101_v14, 1 }
 0x4e7   : > { %v2103_v37 = vadd.f32 %v2102_v4, %v2101_v14 }
 0x4e9   : > { %v2111_v19 = vmul.f32 %v12736_v59, %v2103_v37  ;;  %v2206_v37 = vpack.c.bf16 %v12690_v55, %v12681_v17 }
 0x4eb   : > { %10237 = vmatmul.msk.f32.vlgmr.msra.gmra.mxu2 %vm658_vm0, %v2111_v19 }
 0x4f3   : > { %10257 = vmatmul.msk.bf16.vlgmr.msrb.gmra.mxu2 %vm658_vm0, %v2194_v41 }
 0x503   : > { %10258 = vmatmul.msk.bf16.gmra.mxu2 %vm658_vm0, %v2195_v31 }
 0x513   : > { %10259 = vmatmul.msk.bf16.gmra.mxu2 %vm658_vm0, %v2196_v18 }
 0x523   : > { %10260 = vmatmul.msk.bf16.gmra.mxu2 %vm658_vm0, %v2197_v40 }
 0x533   : > { %10261 = vmatmul.msk.bf16.gmra.mxu2 %vm658_vm0, %v2198_v15 }
 0x543   : > { %10262 = vmatmul.msk.bf16.gmra.mxu2 %vm658_vm0, %v2199_v34 }
 0x553   : > { %10263 = vmatmul.msk.bf16.gmra.mxu2 %vm658_vm0, %v2200_v23 }
 0x563   : > { %10264 = vmatmul.msk.bf16.gmra.mxu2 %vm658_vm0, %v2201_v28 }
 0x56e   : > { %v2141_v0 = vpop.f32.mrf.mxu2 }
 0x56f   : > { %v2142_v26 = vadd.f32 %v2141_v0, %v2120_v54 }
 0x571   : > { %v2144_v46 = vmax.f32 %v2142_v26, 0.0 }
 0x573   : > { %10239 = vmatmul.msk.f32.vlgmr.msra.gmra.mxu3 %vm2147_vm3, %v2144_v46  ;;  %10265 = vmatmul.msk.bf16.gmra.mxu2 %vm658_vm0, %v2202_v39 }
 0x576   : > { %v2303_v51 = vpop.f32.mrf.mxu2 }
 0x577   : > { %v2304_v27 = vadd.f32 %v12785_v53, %v2303_v51  ;;  %v2207_v51 = vpack.c.bf16 %v12706_v57, %v12697_v13 }
 0x579   : > { %v10273_v21 = vmul.f32 -1.442695, %v2304_v27 }
 0x57b   : > { %11271 = vpow2.f32 %v10273_v21 }
 0x57e   : > { %v2305_v56 = vpop.f32.mrf.mxu2 }
 0x57f   : > { %v2306_v4 = vadd.f32 %v12785_v53, %v2305_v56 }
 0x581   : > { %v10274_v41 = vmul.f32 -1.442695, %v2306_v4  ;;  %v11272_v15 = vpop.eup %11271 }
 0x582   : > { %v12795_v23 = vadd.f32 1.0, %v11272_v15 }
 0x583   : > { %10266 = vmatmul.msk.bf16.gmra.mxu2 %vm658_vm0, %v2203_v38  ;;  %11273 = vpow2.f32 %v10274_v41 }
 0x584   : > { %vm2516_vm4 = vweird.f32 %v12795_v23 }
 0x586   : > { %v2308_v50 = vpop.f32.mrf.mxu2 }
 0x587   : > { %v2309_v19 = vadd.f32 %v12785_v53, %v2308_v50 }
 0x589   : > { %v10275_v18 = vmul.f32 -1.442695, %v2309_v19  ;;  %v11274_v28 = vpop.eup %11273 }
 0x58a   : > { %v12798_v46 = vadd.f32 1.0, %v11274_v28 }
 0x58b   : > { %11275 = vpow2.f32 %v10275_v18 }
 0x58c   : > { %vm2531_vm8 = vweird.f32 %v12798_v46 }
 0x58e   : > { %v2310_v29 = vpop.f32.mrf.mxu2 }
 0x58f   : > { %v2311_v31 = vadd.f32 %v12785_v53, %v2310_v29 }
 0x591   : > { %v10276_v34 = vmul.f32 -1.442695, %v2311_v31  ;;  %v11276_v26 = vpop.eup %11275  ;;  %v11100_v31 = vld [vmem:[%s16776_s11 + $0x38] sm:$0xff] }
 0x592   : > { %v12804_v50 = vadd.f32 1.0, %v11276_v26  ;;  %3694 = vmatpush.bf16.msra.mxu1 %v11100_v31 }
 0x593   : > { %10267 = vmatmul.msk.bf16.gmra.mxu2 %vm658_vm0, %v2204_v30  ;;  %11277 = vpow2.f32 %v10276_v34 }
 0x594   : > { %11279 = vrcp.f32 %v12795_v23  ;;  %vm2546_vm12 = vweird.f32 %v12804_v50 }
 0x596   : > { %v2313_v60 = vpop.f32.mrf.mxu2 }
 0x597   : > { %v2314_v9 = vadd.f32 %v12785_v53, %v2313_v60 }
 0x599   : > { %v10277_v54 = vmul.f32 -1.442695, %v2314_v9  ;;  %v11278_v56 = vpop.eup %11277 }
 0x59a   : > { %v12808_v30 = vpop.eup %11279  ;;  %v12810_v60 = vadd.f32 1.0, %v11278_v56  ;;  %v2522_v56 = vand.u32 2147483648, %v12795_v23 }
 0x59b   : > { %11281 = vpow2.f32 %v10277_v54  ;;  %vm2517_vm5 = vweird.f32 %v12808_v30 }
 0x59c   : > { %11283 = vrcp.f32 %v12798_v46  ;;  %vm12865_vm7 = vmor %vm2516_vm4, %vm2517_vm5  ;;  %vm2561_vm2 = vweird.f32 %v12810_v60 }
 0x59d   : > { %11285 = vrcp.f32 %v12804_v50 }
 0x59e   : > { %v2315_v25 = vpop.f32.mrf.mxu2 }
 0x59f   : > { %v2316_v39 = vadd.f32 %v12785_v53, %v2315_v25 }
 0x5a1   : > { %v10278_v29 = vmul.f32 -1.442695, %v2316_v39  ;;  %v11282_v21 = vpop.eup %11281 }
 0x5a2   : > { %v12820_v41 = vadd.f32 1.0, %v11282_v21 }
 0x5a3   : > { %10268 = vmatmul.msk.bf16.gmra.mxu2 %vm658_vm0, %v2205_v20  ;;  %11287 = vpow2.f32 %v10278_v29 }
 0x5a4   : > { %11289 = vrcp.f32 %v12810_v60 }
 0x5a6   : > { %v2318_v35 = vpop.f32.mrf.mxu2 }
 0x5a7   : > { %v2319_v38 = vadd.f32 %v12785_v53, %v2318_v35  ;;  %v2512_v35 = vmul.f32 %v12808_v30, %v12795_v23 }
 0x5a9   : > { %v10279_v20 = vmul.f32 -1.442695, %v2319_v38 }
 0x5ab   : > { %11291 = vpow2.f32 %v10279_v20 }
 0x5ae   : > { %v2320_v14 = vpop.f32.mrf.mxu2 }
 0x5af   : > { %v2321_v25 = vadd.f32 %v12785_v53, %v2320_v14  ;;  %v2513_v14 = vsub.f32 1.0, %v2512_v35 }
 0x5b1   : > { %v10280_v4 = vmul.f32 -1.442695, %v2321_v25  ;;  %v2514_v39 = vmul.f32 %v12808_v30, %v2513_v14  ;;  %v2208_v25 = vpack.c.bf16 %v12719_v6, %v12714_v47  ;;  %v2567_v47 = vand.u32 2147483648, %v12810_v60 }
 0x5b3   : > { %10269 = vmatmul.msk.bf16.gmra.mxu2 %vm658_vm0, %v2206_v37  ;;  %v12817_v37 = vpop.eup %11283  ;;  %11293 = vpow2.f32 %v10280_v4  ;;  %v2515_v31 = vadd.f32 %v12808_v30, %v2514_v39 }
 0x5b4   : > { %v12825_v18 = vpop.eup %11285  ;;  %v2527_v15 = vmul.f32 %v12817_v37, %v12798_v46  ;;  %11295 = vrcp.f32 %v12820_v41  ;;  %vm2532_vm9 = vweird.f32 %v12817_v37 }
 0x5b5   : > { %v11288_v34 = vpop.eup %11287  ;;  %v2519_v59 = vsel %vm12865_vm7, %v12808_v30, %v2515_v31  ;;  %vm12899_vm11 = vmor %vm2531_vm8, %vm2532_vm9  ;;  %vm2547_vm14 = vweird.f32 %v12825_v18 }
 0x5b6   : > { %v2323_v40 = vpop.f32.mrf.mxu2  ;;  %v2528_v38 = vsub.f32 1.0, %v2527_v15  ;;  %v12836_v29 = vadd.f32 1.0, %v11288_v34  ;;  %vm12937_vm1 = vmor %vm2546_vm12, %vm2547_vm14 }
 0x5b7   : > { %v2324_v19 = vadd.f32 %v12785_v53, %v2323_v40  ;;  %v12830_v40 = vpop.eup %11289 }
 0x5b8   : > { %v11292_v26 = vpop.eup %11291  ;;  %v2557_v35 = vmul.f32 %v12830_v40, %v12810_v60  ;;  %vm2562_vm15 = vweird.f32 %v12830_v40  ;;  %vm2591_vm9 = vweird.f32 %v12836_v29 }
 0x5b9   : > { %v10281_v9 = vmul.f32 -1.442695, %v2324_v19  ;;  %v11294_v21 = vpop.eup %11293  ;;  %v12844_v4 = vadd.f32 1.0, %v11292_v26  ;;  %v2537_v26 = vand.u32 2147483648, %v12798_v46  ;;  %vm12948_vm3 = vmor %vm2561_vm2, %vm2562_vm15 }
 0x5ba   : > { %v12857_v34 = vpop.eup %11295 }
 0x5bb   : > { %11297 = vpow2.f32 %v10281_v9  ;;  %v2523_v9 = vor.u32 1.1754944e-38, %v2522_v56  ;;  %v2558_v56 = vsub.f32 1.0, %v2557_v35  ;;  %v2552_v35 = vand.u32 2147483648, %v12804_v50 }
 0x5bc   : > { %11299 = vrcp.f32 %v12836_v29  ;;  %v2538_v30 = vor.u32 1.1754944e-38, %v2537_v26  ;;  %vm2577_vm5 = vweird.f32 %v12857_v34  ;;  %vm2606_vm14 = vweird.f32 %v12844_v4 }
 0x5be   : > { %v2325_v0 = vpop.f32.mrf.mxu2 }
 0x5bf   : > { %v2326_v28 = vadd.f32 %v12785_v53, %v2325_v0  ;;  %v2542_v0 = vmul.f32 %v12825_v18, %v12804_v50 }
 0x5c1   : > { %v10282_v20 = vmul.f32 -1.442695, %v2326_v28  ;;  %v2535_v28 = vand.u32 2147483647, %v12798_v46  ;;  %v2543_v39 = vsub.f32 1.0, %v2542_v0  ;;  %v11298_v14 = vpop.eup %11297  ;;  %v2553_v46 = vor.u32 1.1754944e-38, %v2552_v35 }
 0x5c2   : > { %v2550_v0 = vand.u32 2147483647, %v12804_v50  ;;  %v12895_v57 = vadd.f32 1.0, %v11298_v14  ;;  %v2580_v50 = vand.u32 2147483647, %v12820_v41 }
 0x5c3   : > { %10270 = vmatmul.msk.bf16.gmra.mxu2 %vm658_vm0, %v2207_v51  ;;  %v2520_v51 = vand.u32 2147483647, %v12795_v23  ;;  %11301 = vpow2.f32 %v10282_v20  ;;  %v2572_v20 = vmul.f32 %v12857_v34, %v12820_v41  ;;  %vm12882_vm10 = vcmp.eq.f32.partialorder %v2535_v28, 8.507059e+37 }
 0x5c4   : > { %11303 = vrcp.f32 %v12844_v4  ;;  %v2544_v31 = vmul.f32 %v12825_v18, %v2543_v39  ;;  %vm12904_vm13 = vcmp.eq.f32.partialorder %v2550_v0, 8.507059e+37  ;;  %vm12979_vm7 = vcmp.eq.f32.partialorder %v2580_v50, 8.507059e+37 }
 0x5c5   : > { %vm12853_vm6 = vcmp.eq.f32.partialorder %v2520_v51, 8.507059e+37  ;;  %v12888_v51 = vpop.eup %11299 }
 0x5c6   : > { %v2328_v27 = vpop.f32.mrf.mxu2  ;;  %v2587_v0 = vmul.f32 %v12888_v51, %v12836_v29 }
 0x5c7   : > { %v2329_v19 = vadd.f32 %v12785_v53, %v2328_v27  ;;  %v2529_v27 = vmul.f32 %v12817_v37, %v2528_v38 }
 0x5c9   : > { %v10283_v38 = vmul.f32 -1.442695, %v2329_v19  ;;  %v2530_v6 = vadd.f32 %v12817_v37, %v2529_v27  ;;  %v2559_v27 = vmul.f32 %v12830_v40, %v2558_v56  ;;  %v11302_v28 = vpop.eup %11301  ;;  %v2545_v56 = vadd.f32 %v12825_v18, %v2544_v31 }
 0x5ca   : > { %v12921_v26 = vadd.f32 1.0, %v11302_v28 }
 0x5cb   : > { %v2534_v14 = vsel %vm12899_vm11, %v12817_v37, %v2530_v6  ;;  %v2549_v28 = vsel %vm12937_vm1, %v12825_v18, %v2545_v56  ;;  %v17085_v56 = vpack.c.bf16 %v12732_v48, %v12725_v63 }
 0x5cc   : > { %v12928_v35 = vsel %vm12882_vm10, %v2538_v30, %v2534_v14  ;;  %v2588_v14 = vsub.f32 1.0, %v2587_v0  ;;  %vm2592_vm10 = vweird.f32 %v12888_v51 }
 0x5ce   : > { %v2330_v54 = vpop.f32.mrf.mxu2 }
 0x5d3   : > { %10271 = vmatmul.msk.bf16.gmra.mxu2 %vm658_vm0, %v2208_v25  ;;  %v12863_v25 = vadd.f32 1.0, %v11294_v21  ;;  %v2331_v21 = vadd.f32 %v12785_v53, %v2330_v54  ;;  %v12892_v54 = vsel %vm12853_vm6, %v2523_v9, %v2519_v59  ;;  %v2573_v59 = vsub.f32 1.0, %v2572_v20  ;;  %v12908_v9 = vpop.eup %11303 }
 0x5d4   : > { %v2602_v31 = vmul.f32 %v12908_v9, %v12844_v4  ;;  %vm2576_vm6 = vweird.f32 %v12820_v41  ;;  %vm2607_vm12 = vweird.f32 %v12908_v9 }
 0x5d5   : > { %11305 = vrcp.f32 %v12863_v25  ;;  %v10284_v15 = vmul.f32 -1.442695, %v2331_v21  ;;  %v2560_v21 = vadd.f32 %v12830_v40, %v2559_v27  ;;  %vm12991_vm8 = vmor %vm2576_vm6, %vm2577_vm5  ;;  %vm2636_vm6 = vweird.f32 %v12895_v57 }
 0x5d6   : > { %v2333_v23 = vpop.f32.mrf.mxu2  ;;  %11307 = vpow2.f32 %v10283_v38  ;;  %v2565_v38 = vand.u32 2147483647, %v12810_v60  ;;  %vm13049_vm1 = vmor %vm2606_vm14, %vm2607_vm12 }
 0x5d7   : > { %v2334_v19 = vadd.f32 %v12785_v53, %v2333_v23  ;;  %11309 = vrcp.f32 %v12895_v57  ;;  %v2564_v60 = vsel %vm12948_vm3, %v12830_v40, %v2560_v21  ;;  %v12976_v21 = vsel %vm12904_vm13, %v2553_v46, %v2549_v28  ;;  %vm13030_vm13 = vmor %vm2591_vm9, %vm2592_vm10 }
 0x5d8   : > { %11311 = vpow2.f32 %v10284_v15  ;;  %v2582_v15 = vand.u32 2147483648, %v12820_v41  ;;  %vm12957_vm4 = vcmp.eq.f32.partialorder %v2565_v38, 8.507059e+37  ;;  %v2597_v46 = vand.u32 2147483648, %v12836_v29 }
 0x5d9   : > { %v10285_v23 = vmul.f32 -1.442695, %v2334_v19  ;;  %v2574_v19 = vmul.f32 %v12857_v34, %v2573_v59  ;;  %vm2621_vm3 = vweird.f32 %v12863_v25  ;;  %vm2651_vm10 = vweird.f32 %v12921_v26 }
 0x5da   : > { %v2598_v41 = vor.u32 1.1754944e-38, %v2597_v46 }
 0x5db   : > { %v12924_v37 = vpop.eup %11305  ;;  %11313 = vpow2.f32 %v10285_v23  ;;  %v2575_v0 = vadd.f32 %v12857_v34, %v2574_v19  ;;  %v2583_v19 = vor.u32 1.1754944e-38, %v2582_v15 }
 0x5dc   : > { %v11308_v13 = vpop.eup %11307  ;;  %v2617_v18 = vmul.f32 %v12924_v37, %v12863_v25  ;;  %11315 = vrcp.f32 %v12921_v26  ;;  %vm2622_vm2 = vweird.f32 %v12924_v37 }
 0x5dd   : > { %v12970_v40 = vadd.f32 1.0, %v11308_v13  ;;  %v12972_v38 = vpop.eup %11309  ;;  %v2595_v13 = vand.u32 2147483647, %v12836_v29  ;;  %v2579_v28 = vsel %vm12991_vm8, %v12857_v34, %v2575_v0  ;;  %v2625_v29 = vand.u32 2147483647, %v12863_v25 }
 0x5de   : > { %v2335_v20 = vpop.f32.mrf.mxu2  ;;  %v11312_v27 = vpop.eup %11311  ;;  %vm2637_vm8 = vweird.f32 %v12972_v38 }
 0x5df   : > { %v2336_v6 = vadd.f32 %v12785_v53, %v2335_v20  ;;  %v2603_v20 = vsub.f32 1.0, %v2602_v31  ;;  %v2589_v31 = vmul.f32 %v12888_v51, %v2588_v14  ;;  %v2610_v14 = vand.u32 2147483647, %v12844_v4  ;;  %vm13133_vm9 = vmor %vm2636_vm6, %vm2637_vm8 }
 0x5e0   : > { %v13008_v23 = vadd.f32 1.0, %v11312_v27  ;;  %vm13012_vm11 = vcmp.eq.f32.partialorder %v2595_v13, 8.507059e+37  ;;  %vm13078_vm5 = vcmp.eq.f32.partialorder %v2625_v29, 8.507059e+37  ;;  %v2670_v42 = vand.u32 2147483647, %v12970_v40 }
 0x5e1   : > { %v10286_v30 = vmul.f32 -1.442695, %v2336_v6  ;;  %v2568_v6 = vor.u32 1.1754944e-38, %v2567_v47  ;;  %v11314_v48 = vpop.eup %11313  ;;  %v2618_v47 = vsub.f32 1.0, %v2617_v18  ;;  %v2604_v50 = vmul.f32 %v12908_v9, %v2603_v20 }
 0x5e2   : > { %v13003_v15 = vpop.eup %11315  ;;  %v13016_v0 = vadd.f32 1.0, %v11314_v48  ;;  %vm13035_vm15 = vcmp.eq.f32.partialorder %v2610_v14, 8.507059e+37  ;;  %v2640_v48 = vand.u32 2147483647, %v12895_v57 }
 0x5e3   : > { %10272 = vmatmul.msk.bf16.gmra.mxu2 %vm658_vm0, %v17085_v56  ;;  %11317 = vpow2.f32 %v10286_v30  ;;  %v12987_v39 = vsel %vm12957_vm4, %v2568_v6, %v2564_v60  ;;  %v2632_v60 = vmul.f32 %v12972_v38, %v12895_v57  ;;  %v2590_v6 = vadd.f32 %v12888_v51, %v2589_v31  ;;  %vm13074_vm4 = vmor %vm2621_vm3, %vm2622_vm2 }
 0x5e4   : > { %11319 = vrcp.f32 %v12970_v40  ;;  %v2619_v27 = vmul.f32 %v12924_v37, %v2618_v47  ;;  %v2612_v31 = vand.u32 2147483648, %v12844_v4  ;;  %v2647_v13 = vmul.f32 %v13003_v15, %v12921_v26 }
 0x5e5   : > { %v2594_v47 = vsel %vm13030_vm13, %v12888_v51, %v2590_v6  ;;  %v11096_v51 = vld [vmem:[%s16776_s11 + $0x18] sm:$0xff]  ;;  %vm2681_vm3 = vweird.f32 %v13008_v23 }
 0x5e6   : > { %v2338_v56 = vpop.f32.mrf.mxu2  ;;  %v2620_v14 = vadd.f32 %v12924_v37, %v2619_v27  ;;  %v2648_v63 = vsub.f32 1.0, %v2647_v13  ;;  %3220 = vmatpush.bf16.msrb.mxu3 %v11096_v51  ;;  %v13070_v22 = vsel %vm13012_vm11, %v2598_v41, %v2594_v47  ;;  %v2655_v51 = vand.u32 2147483647, %v12921_v26 }
 0x5e7   : > { %v2339_v30 = vadd.f32 %v12785_v53, %v2338_v56  ;;  %v13020_v56 = vsel %vm12979_vm7, %v2583_v19, %v2579_v28  ;;  %v2633_v19 = vsub.f32 1.0, %v2632_v60  ;;  %v2627_v60 = vand.u32 2147483648, %v12863_v25 }
 0x5e8   : > { %v2642_v25 = vand.u32 2147483648, %v12895_v57  ;;  %v2624_v41 = vsel %vm13074_vm4, %v12924_v37, %v2620_v14  ;;  %vm13099_vm7 = vcmp.eq.f32.partialorder %v2640_v48, 8.507059e+37  ;;  %v2649_v59 = vmul.f32 %v13003_v15, %v2648_v63 }
 0x5e9   : > { %v10287_v18 = vmul.f32 -1.442695, %v2339_v30  ;;  %v11318_v20 = vpop.eup %11317  ;;  %v2605_v30 = vadd.f32 %v12908_v9, %v2604_v50  ;;  %v2634_v27 = vmul.f32 %v12972_v38, %v2633_v19  ;;  %v2628_v13 = vor.u32 1.1754944e-38, %v2627_v60  ;;  %v11095_v19 = vld [vmem:[%s16776_s11 + $0x10] sm:$0xff] }
 0x5ea   : > { %v13040_v46 = vpop.eup %11319  ;;  %v13047_v28 = vadd.f32 1.0, %v11318_v20  ;;  %v2613_v20 = vor.u32 1.1754944e-38, %v2612_v31  ;;  %3221 = vmatpush.bf16.msrb.mxu3 %v11095_v19  ;;  %v2657_v48 = vand.u32 2147483648, %v12921_v26  ;;  %vm2652_vm11 = vweird.f32 %v13003_v15 }
 0x5eb   : > { %11321 = vpow2.f32 %v10287_v18  ;;  %v2609_v6 = vsel %vm13049_vm1, %v12908_v9, %v2605_v30  ;;  %v2635_v37 = vadd.f32 %v12972_v38, %v2634_v27  ;;  %v13113_v60 = vsel %vm13078_vm5, %v2628_v13, %v2624_v41  ;;  %v11094_v30 = vld [vmem:[%s16776_s11 + $0x8] sm:$0xff]  ;;  %vm13159_vm13 = vmor %vm2651_vm10, %vm2652_vm11 }
 0x5ec   : > { %11323 = vrcp.f32 %v13008_v23  ;;  %v13088_v34 = vsel %vm13035_vm15, %v2613_v20, %v2609_v6  ;;  %v11548_v20 = vmov 0.0   ;;  %v2650_v13 = vadd.f32 %v13003_v15, %v2649_v59 }
 0x5ed   : > { %11325 = vrcp.f32 %v13016_v0  ;;  %659 = vst.msk [vmem:[#allocation2] sm:$0xff] %vm658_vm0, %v11548_v20  ;;  %vm13147_vm12 = vcmp.eq.f32.partialorder %v2655_v51, 8.507059e+37  ;;  %vm2667_vm14 = vweird.f32 %v13040_v46  ;;  %vm2666_vm15 = vweird.f32 %v12970_v40 }
 0x5ee   : > { %v2340_v4 = vpop.f32.mrf.mxu2  ;;  %11327 = vrcp.f32 %v13047_v28  ;;  %660 = vst.msk [vmem:[#allocation2 + $0x8] sm:$0xff] %vm658_vm0, %v11548_v20  ;;  %3222 = vmatpush.bf16.msrb.mxu3 %v11094_v30  ;;  %v2685_v30 = vand.u32 2147483647, %v13008_v23  ;;  %vm13187_vm1 = vcmp.eq.f32.partialorder %v2670_v42, 8.507059e+37  ;;  %v11098_v42 = vld [vmem:[%s16776_s11 + $0x28] sm:$0xff]  ;;  %vm13204_vm2 = vmor %vm2666_vm15, %vm2667_vm14 }
 0x5ef   : > { %v2341_v18 = vadd.f32 %v12785_v53, %v2340_v4  ;;  %v2662_v4 = vmul.f32 %v13040_v46, %v12970_v40  ;;  %661 = vst.msk [vmem:[#allocation2 + $0x10] sm:$0xff] %vm658_vm0, %v11548_v20 }
 0x5f0   : > { %662 = vst.msk [vmem:[#allocation2 + $0x118] sm:$0xff] %vm658_vm0, %v11548_v20  ;;  %vm13213_vm4 = vcmp.eq.f32.partialorder %v2685_v30, 8.507059e+37  ;;  %v2702_v30 = vand.u32 2147483648, %v13016_v0 }
 0x5f1   : > { %v11322_v55 = vpop.eup %11321  ;;  %v10288_v17 = vmul.f32 -1.442695, %v2341_v18  ;;  %v2663_v14 = vsub.f32 1.0, %v2662_v4  ;;  %v2643_v18 = vor.u32 1.1754944e-38, %v2642_v25  ;;  %663 = vst.msk [vmem:[#allocation2 + $0x120] sm:$0xff] %vm658_vm0, %v11548_v20 }
 0x5f2   : > { %v13084_v31 = vpop.eup %11323  ;;  %v13104_v50 = vadd.f32 1.0, %v11322_v55  ;;  %664 = vst.msk [vmem:[#allocation2 + $0x128] sm:$0xff] %vm658_vm0, %v11548_v20  ;;  %v2687_v20 = vand.u32 2147483648, %v13008_v23 }
 0x5f3   : > { %11329 = vpow2.f32 %v10288_v17  ;;  %v13096_v47 = vpop.eup %11325  ;;  %v2146_v17 = vld [vmem:[%s16775_s10] sm:$0x1]  ;;  %v2677_v55 = vmul.f32 %v13084_v31, %v13008_v23  ;;  %v2664_v57 = vmul.f32 %v13040_v46, %v2663_v14  ;;  %v2672_v14 = vand.u32 2147483648, %v12970_v40 }
 0x5f4   : > { %v2692_v27 = vmul.f32 %v13096_v47, %v13016_v0  ;;  %v13127_v25 = vpop.eup %11327  ;;  %11331 = vrcp.f32 %v13104_v50  ;;  %vm2682_vm5 = vweird.f32 %v13084_v31  ;;  %vm2697_vm6 = vweird.f32 %v13096_v47 }
 0x5f5   : > { %v2678_v62 = vsub.f32 1.0, %v2677_v55  ;;  %v11099_v55 = vld [vmem:[%s16776_s11 + $0x30] sm:$0xff]  ;;  %vm13244_vm8 = vmor %vm2681_vm3, %vm2682_vm5  ;;  %vm2712_vm11 = vweird.f32 %v13127_v25  ;;  %vm2726_vm15 = vweird.f32 %v13104_v50 }
 0x5f6   : > { %v2172_v63 = vpop.f32.mrf.mxu3  ;;  %v2343_v6 = vpop.f32.mrf.mxu2  ;;  %v2693_v51 = vsub.f32 1.0, %v2692_v27  ;;  %v2707_v27 = vmul.f32 %v13127_v25, %v13047_v28  ;;  %3695 = vmatpush.bf16.msra.mxu1 %v11099_v55  ;;  %v3089_v40 = vld [vmem:[#allocation2 + $0xf] sm:$0xff] }
 0x5f7   : > { %v2173_v4 = vadd.f32 %v2172_v63, %v2146_v17  ;;  %v2344_v9 = vadd.f32 %v12785_v53, %v2343_v6  ;;  %v2639_v17 = vsel %vm13133_vm9, %v12972_v38, %v2635_v37  ;;  %v2658_v37 = vor.u32 1.1754944e-38, %v2657_v48 }
 0x5f8   : > { %v13173_v26 = vsel %vm13099_vm7, %v2643_v18, %v2639_v17  ;;  %v2654_v48 = vsel %vm13159_vm13, %v13003_v15, %v2650_v13  ;;  %v2679_v18 = vmul.f32 %v13084_v31, %v2678_v62  ;;  %v3088_v13 = vld [vmem:[#allocation2 + $0x7] sm:$0xff]  ;;  %v2673_v17 = vor.u32 1.1754944e-38, %v2672_v14 }
 0x5f9   : > { %v11330_v19 = vpop.eup %11329  ;;  %v10240_v63 = vmul.f32 -1.442695, %v2173_v4  ;;  %v10289_v6 = vmul.f32 -1.442695, %v2344_v9  ;;  %v11093_v4 = vld [vmem:[%s16776_s11] sm:$0xff]  ;;  %v2665_v9 = vadd.f32 %v13040_v46, %v2664_v57  ;;  %v2694_v57 = vmul.f32 %v13096_v47, %v2693_v51  ;;  %v3561_v62 = vld [vmem:[#allocation2 + $0x8] sm:$0xff] }
 0x5fa   : > { %v13152_v45 = vadd.f32 1.0, %v11330_v19  ;;  %3223 = vmatpush.bf16.msrb.mxu3 %v11093_v4  ;;  %v13184_v29 = vpop.eup %11331  ;;  %v13195_v19 = vsel %vm13147_vm12, %v2658_v37, %v2654_v48  ;;  %v2708_v59 = vsub.f32 1.0, %v2707_v27  ;;  %v3120_v38 = vpack.c.bf16 %v3089_v40, %v3088_v13  ;;  %3696 = vmatpush.bf16.msra.mxu1 %v11098_v42 }
 0x5fb   : > { %11333 = vpow2.f32 %v10240_v63  ;;  %v2669_v14 = vsel %vm13204_vm2, %v13040_v46, %v2665_v9  ;;  %v2722_v55 = vmul.f32 %v13184_v29, %v13104_v50  ;;  %v2688_v27 = vor.u32 1.1754944e-38, %v2687_v20  ;;  %v11107_v20 = vld [vmem:[%s16776_s11 + $0x70] sm:$0xff] }
 0x5fc   : > { %11335 = vrcp.f32 %v13152_v45  ;;  %v2695_v9 = vadd.f32 %v13096_v47, %v2694_v57  ;;  %v2709_v42 = vmul.f32 %v13127_v25, %v2708_v59  ;;  %vm2696_vm9 = vweird.f32 %v13016_v0 }
 0x5fd   : > { %11337 = vpow2.f32 %v10289_v6  ;;  %v2700_v6 = vand.u32 2147483647, %v13016_v0  ;;  %10321 = vmatmul.msk.bf16.vlgmr.msrb.gmra.mxu3 %vm658_vm0, %v3120_v38  ;;  %v2715_v15 = vand.u32 2147483647, %v13047_v28  ;;  %vm13257_vm10 = vmor %vm2696_vm9, %vm2697_vm6  ;;  %v2717_v0 = vand.u32 2147483648, %v13047_v28 }
 0x5fe   : > { %v2345_v41 = vpop.f32.mrf.mxu2  ;;  %v2730_v57 = vand.u32 2147483647, %v13104_v50  ;;  %vm2711_vm12 = vweird.f32 %v13047_v28  ;;  %vm2741_vm3 = vweird.f32 %v13152_v45  ;;  %v11106_v28 = vld [vmem:[%s16776_s11 + $0x68] sm:$0xff] }
 0x5ff   : > { %v2346_v63 = vadd.f32 %v12785_v53, %v2345_v41  ;;  %v2680_v41 = vadd.f32 %v13084_v31, %v2679_v18  ;;  %v13234_v18 = vsel %vm13187_vm1, %v2673_v17, %v2669_v14  ;;  %vm13236_vm7 = vcmp.eq.f32.partialorder %v2700_v6, 8.507059e+37  ;;  %v3562_v6 = vld [vmem:[#allocation2 + $0x10] sm:$0xff]  ;;  %vm13300_vm14 = vmor %vm2711_vm12, %vm2712_vm11 }
 0x600   : > { %v2723_v17 = vsub.f32 1.0, %v2722_v55  ;;  %v3593_v14 = vpack.c.bf16 %v3562_v6, %v3561_v62  ;;  %v2699_v55 = vsel %vm13257_vm10, %v13096_v47, %v2695_v9  ;;  %vm13285_vm13 = vcmp.eq.f32.partialorder %v2715_v15, 8.507059e+37 }
 0x601   : > { %v11334_v37 = vpop.eup %11333  ;;  %v10290_v4 = vmul.f32 -1.442695, %v2346_v63  ;;  %v11097_v63 = vld [vmem:[%s16776_s11 + $0x20] sm:$0xff]  ;;  %v2684_v59 = vsel %vm13244_vm8, %v13084_v31, %v2680_v41  ;;  %v2732_v31 = vand.u32 2147483648, %v13104_v50  ;;  %v11104_v41 = vld [vmem:[%s16776_s11 + $0x58] sm:$0xff]  ;;  %v2718_v23 = vor.u32 1.1754944e-38, %v2717_v0 }
 0x602   : > { %v13219_v48 = vpop.eup %11335  ;;  %v13223_v13 = vadd.f32 1.0, %v11334_v37  ;;  %3697 = vmatpush.bf16.msra.mxu1 %v11097_v63  ;;  %v2710_v63 = vadd.f32 %v13127_v25, %v2709_v42  ;;  %v2724_v42 = vmul.f32 %v13184_v29, %v2723_v17  ;;  %3944 = vmatpush.bf16.msra.mxu0 %v11104_v41  ;;  %v11103_v17 = vld [vmem:[%s16776_s11 + $0x50] sm:$0xff]  ;;  %vm2727_vm1 = vweird.f32 %v13184_v29 }
 0x603   : > { %v11338_v46 = vpop.eup %11337  ;;  %11339 = vpow2.f32 %v10290_v4  ;;  %v2737_v38 = vmul.f32 %v13219_v48, %v13152_v45  ;;  %v2703_v4 = vor.u32 1.1754944e-38, %v2702_v30  ;;  %v13282_v30 = vsel %vm13213_vm4, %v2688_v27, %v2684_v59  ;;  %vm13356_vm5 = vmor %vm2726_vm15, %vm2727_vm1 }
 0x604   : > { %11341 = vrcp.f32 %v13223_v13  ;;  %v13250_v40 = vadd.f32 1.0, %v11338_v46  ;;  %v11108_v46 = vld [vmem:[%s16776_s11 + $0x78] sm:$0xff]  ;;  %v2733_v27 = vor.u32 1.1754944e-38, %v2732_v31  ;;  %v2714_v59 = vsel %vm13300_vm14, %v13127_v25, %v2710_v63 }
 0x605   : > { %10361 = vmatmul.msk.bf16.vlgmr.msra.gmra.mxu1 %vm658_vm0, %v3593_v14  ;;  %4354 = vmatpush.bf16.msra.mxu2 %v11108_v46  ;;  %v13296_v51 = vsel %vm13236_vm7, %v2703_v4, %v2699_v55  ;;  %vm13317_vm2 = vcmp.eq.f32.partialorder %v2730_v57, 8.507059e+37  ;;  %v2725_v4 = vadd.f32 %v13184_v29, %v2724_v42  ;;  %v2188_v41 = vand.u32 2147483647, %v13223_v13 }
 0x606   : > { %v2348_v37 = vpop.f32.mrf.mxu2  ;;  %11343 = vrcp.f32 %v13250_v40  ;;  %3945 = vmatpush.bf16.msra.mxu0 %v11103_v17  ;;  %v2190_v46 = vand.u32 2147483648, %v13223_v13  ;;  %vm2742_vm7 = vweird.f32 %v13219_v48  ;;  %vm2184_vm8 = vweird.f32 %v13223_v13 }
 0x607   : > { %v2349_v47 = vadd.f32 %v12785_v53, %v2348_v37  ;;  %v2738_v37 = vsub.f32 1.0, %v2737_v38  ;;  %v2745_v38 = vand.u32 2147483647, %v13152_v45  ;;  %vm2189_vm10 = vcmp.eq.f32.partialorder %v2188_v41, 8.507059e+37  ;;  %v11105_v41 = vld [vmem:[%s16776_s11 + $0x60] sm:$0xff]  ;;  %vm13397_vm12 = vmor %vm2741_vm3, %vm2742_vm7 }
 0x609   : > { %v11340_v9 = vpop.eup %11339  ;;  %v10291_v3 = vmul.f32 -1.442695, %v2349_v47  ;;  %4355 = vmatpush.bf16.msra.mxu2 %v11107_v20  ;;  %v2739_v25 = vmul.f32 %v13219_v48, %v2738_v37  ;;  %v16815_v47 = vmov 0   ;;  %v11102_v37 = vld [vmem:[%s16776_s11 + $0x48] sm:$0xff]  ;;  %vm13360_vm6 = vcmp.eq.f32.partialorder %v2745_v38, 8.507059e+37 }
 0x60a   : > { %v13290_v6 = vpop.eup %11341  ;;  %v13292_v14 = vadd.f32 1.0, %v11340_v9  ;;  %11179 = vset.pattern.permute.xlu1 %v16815_v47  ;;  %v13335_v9 = vld [vmem:[%s17128_s22] sm:$0xff]  ;;  %11192 = vset.pattern.permute.xlu0 %v16815_v47 }
 0x60b   : > { %v2180_v15 = vmul.f32 %v13290_v6, %v13223_v13  ;;  %vm2185_vm4 = vweird.f32 %v13290_v6  ;;  %3339 = vperm.xlu1 %11179, %v13335_v9   ;;  %3946 = vmatpush.bf16.msra.mxu0 %v11102_v37  ;;  %v2760_v13 = vand.u32 2147483647, %v13250_v40 }
 0x60c   : > { %11345 = vrcp.f32 %v13292_v14  ;;  %v13323_v55 = vpop.eup %11343  ;;  %vm2186_vm9 = vmor %vm2184_vm8, %vm2185_vm4  ;;  %vm2771_vm1 = vweird.f32 %v13292_v14 }
 0x60d   : > { %v2181_v31 = vsub.f32 1.0, %v2180_v15  ;;  %11347 = vpow2.f32 %v10291_v3  ;;  %v2752_v63 = vmul.f32 %v13323_v55, %v13250_v40  ;;  %v13340_v3 = vsel %vm13285_vm13, %v2718_v23, %v2714_v59  ;;  %4356 = vmatpush.bf16.msra.mxu2 %v11106_v28 }
 0x60e   : > { %v2350_v57 = vpop.f32.mrf.mxu2  ;;  %v2747_v15 = vand.u32 2147483648, %v13152_v45  ;;  %v2729_v59 = vsel %vm13356_vm5, %v13184_v29, %v2725_v4  ;;  %vm2757_vm11 = vweird.f32 %v13323_v55  ;;  %vm2756_vm13 = vweird.f32 %v13250_v40 }
 0x60f   : > { %v2182_v42 = vmul.f32 %v13290_v6, %v2181_v31  ;;  %v2753_v17 = vsub.f32 1.0, %v2752_v63  ;;  %v2351_v20 = vadd.f32 %v12785_v53, %v2350_v57  ;;  %v2740_v31 = vadd.f32 %v13219_v48, %v2739_v25  ;;  %v11101_v25 = vld [vmem:[%s16776_s11 + $0x40] sm:$0xff]  ;;  %vm13424_vm14 = vmor %vm2756_vm13, %vm2757_vm11 }
 0x610   : > { %v2191_v63 = vor.u32 1.1754944e-38, %v2190_v46  ;;  %v2734_v62 = vsel %vm13317_vm2, %v2733_v27, %v2729_v59  ;;  %3947 = vmatpush.bf16.msra.mxu0 %v11101_v25  ;;  %v2775_v27 = vand.u32 2147483647, %v13292_v14  ;;  %vm2761_vm15 = vcmp.eq.f32.partialorder %v2760_v13, 8.507059e+37 }
 0x611   : > { %v2183_v50 = vadd.f32 %v13290_v6, %v2182_v42  ;;  %v2754_v57 = vmul.f32 %v13323_v55, %v2753_v17  ;;  %v2762_v42 = vand.u32 2147483648, %v13250_v40  ;;  %4357 = vmatpush.bf16.msra.mxu2 %v11105_v41  ;;  %v2744_v0 = vsel %vm13397_vm12, %v13219_v48, %v2740_v31 }
 0x612   : > { %v13372_v38 = vpop.eup %11345  ;;  %vm13446_vm3 = vcmp.eq.f32.partialorder %v2775_v27, 8.507059e+37 }
 0x613   : > { %v11348_v29 = vpop.eup %11347  ;;  %v2187_v4 = vsel %vm2186_vm9, %v13290_v6, %v2183_v50  ;;  %v2755_v37 = vadd.f32 %v13323_v55, %v2754_v57  ;;  %v10292_v6 = vmul.f32 -1.442695, %v2351_v20  ;;  %v2748_v50 = vor.u32 1.1754944e-38, %v2747_v15  ;;  %v13414_v15 = vld [vmem:[%s17128_s22 + $0x8] sm:$0xff] }
 0x614   : > { %v2192_v46 = vsel %vm2189_vm10, %v2191_v63, %v2187_v4  ;;  %v13389_v28 = vadd.f32 1.0, %v11348_v29  ;;  %v2777_v63 = vand.u32 2147483648, %v13292_v14  ;;  %v2767_v45 = vmul.f32 %v13372_v38, %v13292_v14  ;;  %3344 = vperm.xlu1 %11179, %v13414_v15  }
 0x615   : > { %v13401_v47 = vperm.slane %v2192_v46, 0  ;;  %v2763_v31 = vor.u32 1.1754944e-38, %v2762_v42  ;;  %vm2772_vm2 = vweird.f32 %v13372_v38 }
 0x616   : > { %v2353_v20 = vpop.f32.mrf.mxu2  ;;  %11349 = vrcp.f32 %v13389_v28  ;;  %v2778_v29 = vor.u32 1.1754944e-38, %v2777_v63  ;;  %v2768_v41 = vsub.f32 1.0, %v2767_v45  ;;  %vm2786_vm4 = vweird.f32 %v13389_v28  ;;  %vm2773_vm5 = vmor %vm2771_vm1, %vm2772_vm2 }
 0x617   : > { %v2992_v59 = vadd.f32 %v13401_v47, %v12892_v54  ;;  %v2993_v57 = vadd.f32 %v13401_v47, %v12928_v35  ;;  %v2994_v48 = vadd.f32 %v13401_v47, %v12976_v21  ;;  %v2759_v54 = vsel %vm13424_vm14, %v13323_v55, %v2755_v37 }
 0x618   : > { %11351 = vpow2.f32 %v10292_v6  ;;  %v2749_v35 = vsel %vm13360_vm6, %v2748_v50, %v2744_v0  ;;  %v2995_v21 = vadd.f32 %v13401_v47, %v12987_v39  ;;  %v2996_v4 = vadd.f32 %v13401_v47, %v13020_v56 }
 0x619   : > { %v2997_v25 = vadd.f32 %v13401_v47, %v13070_v22  ;;  %v2764_v55 = vsel %vm2761_vm15, %v2763_v31, %v2759_v54  ;;  %v3024_v13 = vmul.f32 %v2992_v59, %v17064_v61  ;;  %v3025_v23 = vmul.f32 %v2993_v57, %v17065_v5  ;;  %v3811_v31 = vld [vmem:[#allocation2 + $0x9] sm:$0xff] }
 0x61a   : > { %v3026_v42 = vmul.f32 %v2994_v48, %v17066_v12  ;;  %v2998_v56 = vadd.f32 %v13401_v47, %v13088_v34  ;;  %v2999_v22 = vadd.f32 %v13401_v47, %v13113_v60  ;;  %v3000_v46 = vadd.f32 %v13401_v47, %v13173_v26 }
 0x61b   : > { %v3008_v37 = vadd.f32 %v13401_v47, %v2764_v55  ;;  %v3001_v5 = vadd.f32 %v13401_v47, %v13195_v19  ;;  %v3002_v12 = vadd.f32 %v13401_v47, %v13234_v18  ;;  %v3003_v6 = vadd.f32 %v13401_v47, %v13282_v30  ;;  %3056 = vst.msk [vmem:[#allocation2 + $0x18] sm:$0xff] %vm658_vm0, %v3024_v13 }
 0x61c   : > { %v13457_v61 = vpop.eup %11349  ;;  %v3027_v34 = vmul.f32 %v2995_v21, %v17067_v43  ;;  %v3004_v26 = vadd.f32 %v13401_v47, %v13296_v51  ;;  %v3005_v17 = vadd.f32 %v13401_v47, %v13340_v3  ;;  %v3028_v19 = vmul.f32 %v2996_v4, %v12505_v52  ;;  %3057 = vst.msk [vmem:[#allocation2 + $0x20] sm:$0xff] %vm658_vm0, %v3025_v23  ;;  %v13478_v43 = vld [vmem:[%s17128_s22 + $0x10] sm:$0xff] }
 0x61d   : > { %v3040_v50 = vmul.f32 %v3008_v37, %v12604_v10  ;;  %v13481_v30 = vadd.f32 %v13401_v47, %v2734_v62  ;;  %v13484_v51 = vadd.f32 %v13401_v47, %v2749_v35  ;;  %v3029_v10 = vmul.f32 %v2997_v25, %v17068_v7  ;;  %3058 = vst.msk [vmem:[#allocation2 + $0x28] sm:$0xff] %vm658_vm0, %v3026_v42 }
 0x61e   : > { %v11352_v60 = vpop.eup %11351  ;;  %v2355_v18 = vpop.f32.mrf.mxu2  ;;  %v2769_v52 = vmul.f32 %v13372_v38, %v2768_v41  ;;  %v3030_v3 = vmul.f32 %v2998_v56, %v12521_v49  ;;  %v3031_v63 = vmul.f32 %v2999_v22, %v12529_v58  ;;  %v2782_v0 = vmul.f32 %v13457_v61, %v13389_v28  ;;  %3349 = vperm.xlu1 %11179, %v13478_v43  }
 0x61f   : > { %3072 = vst.msk [vmem:[#allocation2 + $0x98] sm:$0xff] %vm658_vm0, %v3040_v50  ;;  %v2790_v62 = vand.u32 2147483647, %v13389_v28  ;;  %v13498_v7 = vadd.f32 1.0, %v11352_v60  ;;  %v2354_v27 = vadd.f32 %v12785_v53, %v2353_v20  ;;  %v2356_v59 = vadd.f32 %v12785_v53, %v2355_v18 }
 0x620   : > { %v2770_v45 = vadd.f32 %v13372_v38, %v2769_v52  ;;  %3059 = vst.msk [vmem:[#allocation2 + $0x30] sm:$0xff] %vm658_vm0, %v3027_v34  ;;  %v3032_v49 = vmul.f32 %v3000_v46, %v12538_v24  ;;  %v3033_v58 = vmul.f32 %v3001_v5, %v12545_v8  ;;  %v2783_v57 = vsub.f32 1.0, %v2782_v0 }
 0x621   : > { %3060 = vst.msk [vmem:[#allocation2 + $0x38] sm:$0xff] %vm658_vm0, %v3028_v19  ;;  %v2792_v48 = vand.u32 2147483648, %v13389_v28  ;;  %v3034_v40 = vmul.f32 %v3002_v12, %v12554_v44  ;;  %v3035_v20 = vmul.f32 %v3003_v6, %v12563_v33  ;;  %11353 = vrcp.f32 %v13498_v7 }
 0x622   : > { %v2774_v53 = vsel %vm2773_vm5, %v13372_v38, %v2770_v45  ;;  %3061 = vst.msk [vmem:[#allocation2 + $0x40] sm:$0xff] %vm658_vm0, %v3029_v10  ;;  %v2784_v24 = vmul.f32 %v13457_v61, %v2783_v57  ;;  %vm2787_vm6 = vweird.f32 %v13457_v61  ;;  %v10293_v14 = vmul.f32 -1.442695, %v2354_v27  ;;  %v3090_v54 = vld [vmem:[#allocation2 + $0x17] sm:$0xff]  ;;  %v3309_v10 = vld [vmem:[%s17128_s22 + $0x20] sm:$0xff] }
 0x623   : > { %v2779_v8 = vsel %vm13446_vm3, %v2778_v29, %v2774_v53  ;;  %3062 = vst.msk [vmem:[#allocation2 + $0x48] sm:$0xff] %vm658_vm0, %v3030_v3  ;;  %v3563_v44 = vld [vmem:[#allocation2 + $0x18] sm:$0xff]  ;;  %v3036_v33 = vmul.f32 %v3004_v26, %v12572_v11  ;;  %v3037_v38 = vmul.f32 %v3005_v17, %v12577_v2  ;;  %v10294_v21 = vmul.f32 -1.442695, %v2356_v59  ;;  %v3564_v4 = vld [vmem:[#allocation2 + $0x20] sm:$0xff]  ;;  %vm13532_vm7 = vmor %vm2786_vm4, %vm2787_vm6 }
 0x624   : > { %v3009_v35 = vadd.f32 %v13401_v47, %v2779_v8  ;;  %3063 = vst.msk [vmem:[#allocation2 + $0x50] sm:$0xff] %vm658_vm0, %v3031_v63  ;;  %v3091_v29 = vld [vmem:[#allocation2 + $0x1f] sm:$0xff]  ;;  %v2785_v25 = vadd.f32 %v13457_v61, %v2784_v24  ;;  %v2793_v41 = vor.u32 1.1754944e-38, %v2792_v48  ;;  %11355 = vpow2.f32 %v10293_v14  ;;  %v3812_v13 = vld [vmem:[#allocation2 + $0x11] sm:$0xff]  ;;  %v3092_v45 = vld [vmem:[#allocation2 + $0x27] sm:$0xff] }
 0x625   : > { %3064 = vst.msk [vmem:[#allocation2 + $0x58] sm:$0xff] %vm658_vm0, %v3032_v49  ;;  %v3121_v55 = vpack.c.bf16 %v3091_v29, %v3090_v54  ;;  %11357 = vpow2.f32 %v10294_v21  ;;  %v3594_v42 = vpack.c.bf16 %v3564_v4, %v3563_v44  ;;  %v3843_v39 = vpack.c.bf16 %v3812_v13, %v3811_v31  ;;  %v3813_v57 = vld [vmem:[#allocation2 + $0x19] sm:$0xff]  ;;  %v3814_v48 = vld [vmem:[#allocation2 + $0x21] sm:$0xff] }
 0x626   : > { %v2358_v23 = vpop.f32.mrf.mxu2  ;;  %v3041_v11 = vmul.f32 %v3009_v35, %v12611_v32  ;;  %3065 = vst.msk [vmem:[#allocation2 + $0x60] sm:$0xff] %vm658_vm0, %v3033_v58  ;;  %v2789_v56 = vsel %vm13532_vm7, %v13457_v61, %v2785_v25  ;;  %vm2791_vm8 = vcmp.eq.f32.partialorder %v2790_v62, 8.507059e+37  ;;  %v13545_v32 = vld [vmem:[%s16771_s6] ss:$0 sm:$0xff]  ;;  %v3038_v46 = vmul.f32 %v13481_v30, %v12586_v36  ;;  %v17142_v53 = vld [vmem:[#allocation12_spill] sm:$0xff] }
 0x627   : > { %3066 = vst.msk [vmem:[#allocation2 + $0x68] sm:$0xff] %vm658_vm0, %v3034_v40  ;;  %10322 = vmatmul.msk.bf16.gmra.mxu3 %vm658_vm0, %v3121_v55  ;;  %10441 = vmatmul.msk.bf16.vlgmr.msra.gmra.mxu2 %vm658_vm0, %v3121_v55  ;;  %v2359_v28 = vadd.f32 %v13545_v32, %v2358_v23  ;;  %v11354_v22 = vpop.eup %11353  ;;  %v3039_v37 = vmul.f32 %v13484_v51, %v12591_v16  ;;  %v16817_v34 = vmov 1   ;;  %v2807_v17 = vand.u32 2147483648, %v13498_v7  ;;  %v3093_v27 = vld [vmem:[#allocation2 + $0x2f] sm:$0xff]  ;;  %v13602_v25 = vld [vmem:[%s17128_s22 + $0x18] sm:$0xff] }
 0x628   : > { %3073 = vst.msk [vmem:[#allocation2 + $0xa0] sm:$0xff] %vm658_vm0, %v3041_v11  ;;  %v2794_v61 = vsel %vm2791_vm8, %v2793_v41, %v2789_v56  ;;  %10362 = vmatmul.msk.bf16.gmra.mxu1 %vm658_vm0, %v3594_v42  ;;  %10401 = vmatmul.msk.bf16.vlgmr.msra.gmra.mxu0 %vm658_vm0, %v3843_v39  ;;  %v2797_v12 = vmul.f32 %v11354_v22, %v13498_v7  ;;  %vm2802_vm9 = vweird.f32 %v11354_v22  ;;  %vm2801_vm10 = vweird.f32 %v13498_v7  ;;  %v3566_v58 = vld [vmem:[#allocation2 + $0x30] sm:$0xff] }
 0x629   : > { %3067 = vst.msk [vmem:[#allocation2 + $0x70] sm:$0xff] %vm658_vm0, %v3035_v20  ;;  %v3010_v5 = vadd.f32 %v13401_v47, %v2794_v61  ;;  %v10295_v6 = vmul.f32 -1.442695, %v2359_v28  ;;  %11180 = vset.pattern.permute.xlu2 %v16817_v34  ;;  %11182 = vset.pattern.permute.xlu1 %v16817_v34  ;;  %vm2803_vm11 = vmor %vm2801_vm10, %vm2802_vm9  ;;  %v2808_v30 = vor.u32 1.1754944e-38, %v2807_v17  ;;  %v17141_v59 = vmov 0  }
 0x62a   : > { %3068 = vst.msk [vmem:[#allocation2 + $0x78] sm:$0xff] %vm658_vm0, %v3036_v33  ;;  %4030 = vperm.xlu2 %11180, %v13335_v9   ;;  %4038 = vperm.xlu1 %11182, %v13478_v43   ;;  %v11356_v36 = vpop.eup %11355  ;;  %v2798_v60 = vsub.f32 1.0, %v2797_v12  ;;  %v2805_v9 = vand.u32 2147483647, %v13498_v7  ;;  %v3565_v7 = vld [vmem:[#allocation2 + $0x28] sm:$0xff]  ;;  %v3122_v14 = vpack.c.bf16 %v3093_v27, %v3092_v45  ;;  %v3844_v31 = vpack.c.bf16 %v3814_v48, %v3813_v57  ;;  %v3568_v57 = vld [vmem:[#allocation2 + $0x40] sm:$0xff] }
 0x62b   : > { %3069 = vst.msk [vmem:[#allocation2 + $0x80] sm:$0xff] %vm658_vm0, %v3037_v38  ;;  %v3042_v16 = vmul.f32 %v3010_v5, %v12621_v1  ;;  %11359 = vpow2.f32 %v10295_v6  ;;  %v11358_v26 = vpop.eup %11357  ;;  %v13567_v50 = vadd.f32 1.0, %v11356_v36  ;;  %v3595_v44 = vpack.c.bf16 %v3566_v58, %v3565_v7  ;;  %v3095_v7 = vld [vmem:[#allocation2 + $0x3f] sm:$0xff]  ;;  %v3816_v48 = vld [vmem:[#allocation2 + $0x31] sm:$0xff] }
 0x62c   : > { %3070 = vst.msk [vmem:[#allocation2 + $0x88] sm:$0xff] %vm658_vm0, %v3038_v46  ;;  %v2799_v19 = vmul.f32 %v11354_v22, %v2798_v60  ;;  %v13571_v18 = vadd.f32 1.0, %v11358_v26  ;;  %vm2806_vm12 = vcmp.eq.f32.partialorder %v2805_v9, 8.507059e+37  ;;  %v3567_v58 = vld [vmem:[#allocation2 + $0x38] sm:$0xff] }
 0x62d   : > { %3071 = vst.msk [vmem:[#allocation2 + $0x90] sm:$0xff] %vm658_vm0, %v3039_v37  ;;  %11361 = vrcp.f32 %v13567_v50  ;;  %v2820_v38 = vand.u32 2147483647, %v13567_v50  ;;  %v2822_v21 = vand.u32 2147483648, %v13567_v50  ;;  %vm2816_vm14 = vweird.f32 %v13567_v50 }
 0x62e   : > { %v2360_v43 = vpop.f32.mrf.mxu2  ;;  %3074 = vst.msk [vmem:[#allocation2 + $0xa8] sm:$0xff] %vm658_vm0, %v3042_v16  ;;  %v2800_v1 = vadd.f32 %v11354_v22, %v2799_v19  ;;  %11363 = vrcp.f32 %v13571_v18  ;;  %v2835_v4 = vand.u32 2147483647, %v13571_v18  ;;  %v2837_v55 = vand.u32 2147483648, %v13571_v18 }
 0x62f   : > { %v2361_v51 = vadd.f32 %v13545_v32, %v2360_v43  ;;  %vm2831_vm15 = vweird.f32 %v13571_v18  ;;  %vm13608_vm2 = vcmp.eq.f32.partialorder %v2820_v38, 8.507059e+37  ;;  %v2823_v28 = vor.u32 1.1754944e-38, %v2822_v21  ;;  %v17145_v43 = vld [vmem:[#allocation13_spill] sm:$0xff] }
 0x630   : > { %v2804_v3 = vsel %vm2803_vm11, %v11354_v22, %v2800_v1  ;;  %vm2836_vm4 = vcmp.eq.f32.partialorder %v2835_v4, 8.507059e+37  ;;  %v2838_v61 = vor.u32 1.1754944e-38, %v2837_v55  ;;  %v3310_v55 = vld [vmem:[%s17128_s22 + $0x28] sm:$0xff] }
 0x631   : > { %v11360_v52 = vpop.eup %11359  ;;  %v2809_v63 = vsel %vm2806_vm12, %v2808_v30, %v2804_v3  ;;  %v10296_v62 = vmul.f32 -1.442695, %v2361_v51  ;;  %v3094_v51 = vld [vmem:[#allocation2 + $0x37] sm:$0xff] }
 0x632   : > { %v13581_v0 = vadd.f32 1.0, %v11360_v52  ;;  %4034 = vperm.xlu2 %11180, %v13414_v15   ;;  %11184 = vset.pattern.permute.xlu1 %v17141_v59  ;;  %v3011_v49 = vadd.f32 %v13401_v47, %v2809_v63  ;;  %v17146_v52 = vld [vmem:[#allocation14_spill] sm:$0xff] }
 0x633   : > { %3359 = vperm.xlu1 %11184, %v3309_v10   ;;  %v11362_v40 = vpop.eup %11361 }
 0x634   : > { %11365 = vrcp.f32 %v13581_v0  ;;  %v11364_v20 = vpop.eup %11363  ;;  %v3043_v8 = vmul.f32 %v3011_v49, %v17142_v53  ;;  %v2812_v24 = vmul.f32 %v11362_v40, %v13567_v50  ;;  %vm2817_vm13 = vweird.f32 %v11362_v40  ;;  %v3311_v49 = vld [vmem:[%s17128_s22 + $0x30] sm:$0xff] }
 0x635   : > { %11367 = vpow2.f32 %v10296_v62  ;;  %v2827_v15 = vmul.f32 %v11364_v20, %v13571_v18  ;;  %vm2832_vm1 = vweird.f32 %v11364_v20  ;;  %vm2818_vm3 = vmor %vm2816_vm14, %vm2817_vm13  ;;  %v2850_v12 = vand.u32 2147483647, %v13581_v0 }
 0x636   : > { %v2363_v54 = vpop.f32.mrf.mxu2  ;;  %3075 = vst.msk [vmem:[#allocation2 + $0xb0] sm:$0xff] %vm658_vm0, %v3043_v8  ;;  %v2813_v33 = vsub.f32 1.0, %v2812_v24  ;;  %vm2833_vm5 = vmor %vm2831_vm15, %vm2832_vm1  ;;  %v2852_v60 = vand.u32 2147483648, %v13581_v0  ;;  %vm2846_vm7 = vweird.f32 %v13581_v0  ;;  %v3123_v24 = vpack.c.bf16 %v3095_v7, %v3094_v51  ;;  %v3818_v51 = vld [vmem:[#allocation2 + $0x41] sm:$0xff] }
 0x637   : > { %10323 = vmatmul.msk.bf16.gmra.mxu3 %vm658_vm0, %v3122_v14  ;;  %10442 = vmatmul.msk.bf16.gmra.mxu2 %vm658_vm0, %v3122_v14  ;;  %v2364_v35 = vadd.f32 %v13545_v32, %v2363_v54  ;;  %v2828_v29 = vsub.f32 1.0, %v2827_v15  ;;  %vm2851_vm9 = vcmp.eq.f32.partialorder %v2850_v12, 8.507059e+37  ;;  %v3596_v54 = vpack.c.bf16 %v3568_v57, %v3567_v58  ;;  %v17151_v58 = vld [vmem:[#allocation6_spill] sm:$0xff] }
 0x638   : > { %10363 = vmatmul.msk.bf16.gmra.mxu1 %vm658_vm0, %v3595_v44  ;;  %10402 = vmatmul.msk.bf16.gmra.mxu0 %vm658_vm0, %v3844_v31  ;;  %v2814_v41 = vmul.f32 %v11362_v40, %v2813_v33  ;;  %v2853_v62 = vor.u32 1.1754944e-38, %v2852_v60  ;;  %v17149_v31 = vld [vmem:[#allocation15_spill] sm:$0xff] }
 0x639   : > { %v10297_v13 = vmul.f32 -1.442695, %v2364_v35  ;;  %v2829_v11 = vmul.f32 %v11364_v20, %v2828_v29  ;;  %v11112_v29 = vld [vmem:[%s16776_s11 + $0x98] sm:$0xff] }
 0x63a   : > { %v11366_v23 = vpop.eup %11365  ;;  %11181 = vset.pattern.permute.xlu2 %v17141_v59  ;;  %v2815_v42 = vadd.f32 %v11362_v40, %v2814_v41  ;;  %4636 = vmatpush.bf16.msra.mxu3 %v11112_v29 }
 0x63b   : > { %v11368_v2 = vpop.eup %11367  ;;  %v2842_v56 = vmul.f32 %v11366_v23, %v13581_v0  ;;  %11369 = vpow2.f32 %v10297_v13  ;;  %3354 = vperm.xlu2 %11181, %v13602_v25   ;;  %11186 = vset.pattern.permute.xlu1 %v16817_v34  ;;  %v2830_v22 = vadd.f32 %v11364_v20, %v2829_v11  ;;  %vm2847_vm6 = vweird.f32 %v11366_v23 }
 0x63c   : > { %v13616_v46 = vadd.f32 1.0, %v11368_v2  ;;  %4046 = vperm.xlu1 %11186, %v3309_v10   ;;  %v2819_v37 = vsel %vm2818_vm3, %v11362_v40, %v2815_v42  ;;  %v3815_v10 = vld [vmem:[#allocation2 + $0x29] sm:$0xff]  ;;  %vm13632_vm8 = vmor %vm2846_vm7, %vm2847_vm6 }
 0x63d   : > { %v2843_v5 = vsub.f32 1.0, %v2842_v56  ;;  %v2824_v36 = vsel %vm13608_vm2, %v2823_v28, %v2819_v37  ;;  %v2834_v16 = vsel %vm2833_vm5, %v11364_v20, %v2830_v22  ;;  %v3845_v15 = vpack.c.bf16 %v3816_v48, %v3815_v10  ;;  %v13697_v48 = vld [vmem:[%s17128_s22 + $0x40] sm:$0xff] }
 0x63e   : > { %v2365_v6 = vpop.f32.mrf.mxu2  ;;  %11371 = vrcp.f32 %v13616_v46  ;;  %v3012_v26 = vadd.f32 %v13401_v47, %v2824_v36  ;;  %v2839_v17 = vsel %vm2836_vm4, %v2838_v61, %v2834_v16  ;;  %v2867_v35 = vand.u32 2147483648, %v13616_v46  ;;  %v17150_v16 = vld [vmem:[#allocation16_spill] sm:$0xff]  ;;  %3379 = vperm.xlu0 %11192, %v13697_v48  }
 0x63f   : > { %v2844_v50 = vmul.f32 %v11366_v23, %v2843_v5  ;;  %v3013_v19 = vadd.f32 %v13401_v47, %v2839_v17  ;;  %v2366_v9 = vadd.f32 %v13545_v32, %v2365_v6  ;;  %vm2861_vm11 = vweird.f32 %v13616_v46 }
 0x640   : > { %v3044_v1 = vmul.f32 %v3012_v26, %v17145_v43  ;;  %v2868_v2 = vor.u32 1.1754944e-38, %v2867_v35  ;;  %v3570_v43 = vld [vmem:[#allocation2 + $0x50] sm:$0xff] }
 0x641   : > { %v11370_v18 = vpop.eup %11369  ;;  %v2845_v30 = vadd.f32 %v11366_v23, %v2844_v50  ;;  %v3045_v3 = vmul.f32 %v3013_v19, %v17146_v52  ;;  %v10298_v27 = vmul.f32 -1.442695, %v2366_v9  ;;  %v3096_v50 = vld [vmem:[#allocation2 + $0x47] sm:$0xff] }
 0x642   : > { %v13636_v45 = vadd.f32 1.0, %v11370_v18  ;;  %3076 = vst.msk [vmem:[#allocation2 + $0xb8] sm:$0xff] %vm658_vm0, %v3044_v1  ;;  %v3569_v19 = vld [vmem:[#allocation2 + $0x48] sm:$0xff] }
 0x643   : > { %v2849_v0 = vsel %vm13632_vm8, %v11366_v23, %v2845_v30  ;;  %11183 = vset.pattern.permute.xlu2 %v16817_v34  ;;  %3077 = vst.msk [vmem:[#allocation2 + $0xc0] sm:$0xff] %vm658_vm0, %v3045_v3  ;;  %v3097_v18 = vld [vmem:[#allocation2 + $0x4f] sm:$0xff]  ;;  %v3817_v30 = vld [vmem:[#allocation2 + $0x39] sm:$0xff] }
 0x644   : > { %v11372_v40 = vpop.eup %11371  ;;  %v2854_v20 = vsel %vm2851_vm9, %v2853_v62, %v2849_v0  ;;  %11373 = vrcp.f32 %v13636_v45  ;;  %4042 = vperm.xlu2 %11183, %v13602_v25   ;;  %11188 = vset.pattern.permute.xlu1 %v17141_v59  ;;  %v2865_v25 = vand.u32 2147483647, %v13616_v46  ;;  %v2880_v37 = vand.u32 2147483647, %v13636_v45  ;;  %v3314_v0 = vld [vmem:[%s17128_s22 + $0x48] sm:$0xff] }
 0x645   : > { %v3014_v53 = vadd.f32 %v13401_v47, %v2854_v20  ;;  %v2857_v8 = vmul.f32 %v11372_v40, %v13616_v46  ;;  %3369 = vperm.xlu1 %11188, %v3311_v49   ;;  %11375 = vpow2.f32 %v10298_v27  ;;  %vm2862_vm10 = vweird.f32 %v11372_v40 }
 0x646   : > { %v2368_v14 = vpop.f32.mrf.mxu2  ;;  %vm2863_vm12 = vmor %vm2861_vm11, %vm2862_vm10  ;;  %vm2866_vm13 = vcmp.eq.f32.partialorder %v2865_v25, 8.507059e+37  ;;  %v2882_v46 = vand.u32 2147483648, %v13636_v45  ;;  %vm2876_vm15 = vweird.f32 %v13636_v45  ;;  %vm2881_vm2 = vcmp.eq.f32.partialorder %v2880_v37, 8.507059e+37  ;;  %v3099_v37 = vld [vmem:[#allocation2 + $0x5f] sm:$0xff] }
 0x647   : > { %v2369_v44 = vadd.f32 %v13545_v32, %v2368_v14  ;;  %v3046_v33 = vmul.f32 %v3014_v53, %v17149_v31  ;;  %v2858_v38 = vsub.f32 1.0, %v2857_v8  ;;  %10324 = vmatmul.msk.bf16.gmra.mxu3 %vm658_vm0, %v3123_v24  ;;  %10443 = vmatmul.msk.bf16.gmra.mxu2 %vm658_vm0, %v3123_v24  ;;  %v3124_v63 = vpack.c.bf16 %v3097_v18, %v3096_v50 }
 0x648   : > { %10364 = vmatmul.msk.bf16.gmra.mxu1 %vm658_vm0, %v3596_v54  ;;  %10403 = vmatmul.msk.bf16.gmra.mxu0 %vm658_vm0, %v3845_v15  ;;  %v2883_v9 = vor.u32 1.1754944e-38, %v2882_v46  ;;  %v3597_v62 = vpack.c.bf16 %v3570_v43, %v3569_v19  ;;  %v3846_v7 = vpack.c.bf16 %v3818_v51, %v3817_v30  ;;  %v3571_v46 = vld [vmem:[#allocation2 + $0x58] sm:$0xff] }
 0x649   : > { %v10299_v21 = vmul.f32 -1.442695, %v2369_v44  ;;  %3078 = vst.msk [vmem:[#allocation2 + $0xc8] sm:$0xff] %vm658_vm0, %v3046_v33  ;;  %v2859_v4 = vmul.f32 %v11372_v40, %v2858_v38  ;;  %v13713_v38 = vld [vmem:[%s17128_s22 + $0x38] sm:$0xff] }
 0x64a   : > { %v11374_v41 = vpop.eup %11373  ;;  %v17153_v51 = vld [vmem:[#allocation4_spill] sm:$0xff] }
 0x64b   : > { %11377 = vpow2.f32 %v10299_v21  ;;  %v2860_v13 = vadd.f32 %v11372_v40, %v2859_v4  ;;  %v2872_v23 = vmul.f32 %v11374_v41, %v13636_v45  ;;  %v11376_v11 = vpop.eup %11375  ;;  %vm2877_vm14 = vweird.f32 %v11374_v41 }
 0x64c   : > { %11185 = vset.pattern.permute.xlu2 %v17141_v59  ;;  %v13669_v56 = vadd.f32 1.0, %v11376_v11  ;;  %vm2878_vm1 = vmor %vm2876_vm15, %vm2877_vm14 }
 0x64d   : > { %v2864_v42 = vsel %vm2863_vm12, %v11372_v40, %v2860_v13  ;;  %v2873_v39 = vsub.f32 1.0, %v2872_v23  ;;  %3364 = vperm.xlu2 %11185, %v3310_v55   ;;  %11190 = vset.pattern.permute.xlu1 %v16817_v34 }
 0x64e   : > { %v2370_v28 = vpop.f32.mrf.mxu2  ;;  %v2869_v22 = vsel %vm2866_vm13, %v2868_v2, %v2864_v42  ;;  %4054 = vperm.xlu1 %11190, %v3311_v49   ;;  %11379 = vrcp.f32 %v13669_v56  ;;  %v2895_v24 = vand.u32 2147483647, %v13669_v56  ;;  %v2897_v14 = vand.u32 2147483648, %v13669_v56 }
 0x64f   : > { %v2371_v61 = vadd.f32 %v13545_v32, %v2370_v28  ;;  %v3015_v5 = vadd.f32 %v13401_v47, %v2869_v22  ;;  %v2874_v12 = vmul.f32 %v11374_v41, %v2873_v39  ;;  %vm2891_vm4 = vweird.f32 %v13669_v56  ;;  %v3098_v39 = vld [vmem:[#allocation2 + $0x57] sm:$0xff] }
 0x650   : > { %vm2896_vm6 = vcmp.eq.f32.partialorder %v2895_v24, 8.507059e+37  ;;  %v2898_v35 = vor.u32 1.1754944e-38, %v2897_v14  ;;  %v3125_v19 = vpack.c.bf16 %v3099_v37, %v3098_v39 }
 0x651   : > { %v11378_v6 = vpop.eup %11377  ;;  %v10300_v36 = vmul.f32 -1.442695, %v2371_v61  ;;  %v3047_v60 = vmul.f32 %v3015_v5, %v17150_v16  ;;  %v2875_v26 = vadd.f32 %v11374_v41, %v2874_v12  ;;  %v17152_v61 = vld [vmem:[#allocation3_spill] sm:$0xff] }
 0x652   : > { %v13679_v17 = vadd.f32 1.0, %v11378_v6  ;;  %v3819_v16 = vld [vmem:[#allocation2 + $0x49] sm:$0xff] }
 0x653   : > { %11381 = vpow2.f32 %v10300_v36  ;;  %3079 = vst.msk [vmem:[#allocation2 + $0xd0] sm:$0xff] %vm658_vm0, %v3047_v60  ;;  %v2879_v1 = vsel %vm2878_vm1, %v11374_v41, %v2875_v26  ;;  %v3572_v36 = vld [vmem:[#allocation2 + $0x60] sm:$0xff]  ;;  %v3820_v60 = vld [vmem:[#allocation2 + $0x51] sm:$0xff] }
 0x654   : > { %11383 = vrcp.f32 %v13679_v17  ;;  %v2884_v10 = vsel %vm2881_vm2, %v2883_v9, %v2879_v1  ;;  %v11380_v52 = vpop.eup %11379  ;;  %v2910_v21 = vand.u32 2147483647, %v13679_v17  ;;  %v2912_v29 = vand.u32 2147483648, %v13679_v17 }
 0x655   : > { %v3016_v3 = vadd.f32 %v13401_v47, %v2884_v10  ;;  %11187 = vset.pattern.permute.xlu2 %v16817_v34  ;;  %v2887_v27 = vmul.f32 %v11380_v52, %v13669_v56  ;;  %vm2892_vm3 = vweird.f32 %v11380_v52  ;;  %vm2906_vm8 = vweird.f32 %v13679_v17 }
 0x656   : > { %v2373_v45 = vpop.f32.mrf.mxu2  ;;  %4050 = vperm.xlu2 %11187, %v3310_v55   ;;  %11193 = vset.pattern.permute.xlu1 %v17141_v59  ;;  %vm2893_vm5 = vmor %vm2891_vm4, %vm2892_vm3  ;;  %v2913_v28 = vor.u32 1.1754944e-38, %v2912_v29  ;;  %vm2911_vm10 = vcmp.eq.f32.partialorder %v2910_v21, 8.507059e+37  ;;  %v3598_v43 = vpack.c.bf16 %v3572_v36, %v3571_v46  ;;  %v3847_v1 = vpack.c.bf16 %v3820_v60, %v3819_v16  ;;  %v11111_v21 = vld [vmem:[%s16776_s11 + $0x90] sm:$0xff] }
 0x657   : > { %v2374_v49 = vadd.f32 %v13545_v32, %v2373_v45  ;;  %v3048_v57 = vmul.f32 %v3016_v3, %v17151_v58  ;;  %10325 = vmatmul.msk.bf16.gmra.mxu3 %vm658_vm0, %v3124_v63  ;;  %10444 = vmatmul.msk.bf16.gmra.mxu2 %vm658_vm0, %v3124_v63  ;;  %v2888_v20 = vsub.f32 1.0, %v2887_v27  ;;  %v3316_v45 = vld [vmem:[%s17128_s22 + $0x58] sm:$0xff]  ;;  %v3315_v16 = vld [vmem:[%s17128_s22 + $0x50] sm:$0xff] }
 0x658   : > { %10365 = vmatmul.msk.bf16.gmra.mxu1 %vm658_vm0, %v3597_v62  ;;  %10404 = vmatmul.msk.bf16.gmra.mxu0 %vm658_vm0, %v3846_v7 }
 0x659   : > { %v11382_v40 = vpop.eup %11381  ;;  %v10301_v53 = vmul.f32 -1.442695, %v2374_v49  ;;  %3080 = vst.msk [vmem:[#allocation2 + $0xd8] sm:$0xff] %vm658_vm0, %v3048_v57  ;;  %3384 = vperm.xlu1 %11193, %v3314_v0   ;;  %v2889_v15 = vmul.f32 %v11380_v52, %v2888_v20  ;;  %4637 = vmatpush.bf16.msra.mxu3 %v11111_v21 }
 0x65a   : > { %v11384_v8 = vpop.eup %11383  ;;  %v13704_v54 = vadd.f32 1.0, %v11382_v40 }
 0x65b   : > { %v2902_v44 = vmul.f32 %v11384_v8, %v13679_v17  ;;  %11385 = vpow2.f32 %v10301_v53  ;;  %v2890_v31 = vadd.f32 %v11380_v52, %v2889_v15  ;;  %vm2907_vm7 = vweird.f32 %v11384_v8 }
 0x65c   : > { %11387 = vrcp.f32 %v13704_v54  ;;  %vm2908_vm9 = vmor %vm2906_vm8, %vm2907_vm7  ;;  %v2925_v9 = vand.u32 2147483647, %v13704_v54  ;;  %v2927_v18 = vand.u32 2147483648, %v13704_v54  ;;  %vm2921_vm12 = vweird.f32 %v13704_v54 }
 0x65d   : > { %v2903_v33 = vsub.f32 1.0, %v2902_v44  ;;  %v2894_v25 = vsel %vm2893_vm5, %v11380_v52, %v2890_v31 }
 0x65e   : > { %v2375_v4 = vpop.f32.mrf.mxu2  ;;  %11189 = vset.pattern.permute.xlu2 %v17141_v59  ;;  %v2899_v13 = vsel %vm2896_vm6, %v2898_v35, %v2894_v25  ;;  %v2928_v7 = vor.u32 1.1754944e-38, %v2927_v18  ;;  %vm2926_vm14 = vcmp.eq.f32.partialorder %v2925_v9, 8.507059e+37 }
 0x65f   : > { %v2904_v41 = vmul.f32 %v11384_v8, %v2903_v33  ;;  %v2376_v55 = vadd.f32 %v13545_v32, %v2375_v4  ;;  %3374 = vperm.xlu2 %11189, %v13713_v38   ;;  %v3017_v11 = vadd.f32 %v13401_v47, %v2899_v13 }
 0x661   : > { %v11386_v23 = vpop.eup %11385  ;;  %v2905_v2 = vadd.f32 %v11384_v8, %v2904_v41  ;;  %v10302_v42 = vmul.f32 -1.442695, %v2376_v55  ;;  %11194 = vset.pattern.permute.xlu1 %v16817_v34  ;;  %v3049_v5 = vmul.f32 %v3017_v11, %v17152_v61  ;;  %v3100_v41 = vld [vmem:[#allocation2 + $0x67] sm:$0xff]  ;;  %v3574_v11 = vld [vmem:[#allocation2 + $0x70] sm:$0xff] }
 0x662   : > { %v11388_v56 = vpop.eup %11387  ;;  %v13722_v22 = vadd.f32 1.0, %v11386_v23  ;;  %4066 = vperm.xlu1 %11194, %v3314_v0   ;;  %v3573_v55 = vld [vmem:[#allocation2 + $0x68] sm:$0xff] }
 0x663   : > { %v2909_v12 = vsel %vm2908_vm9, %v11384_v8, %v2905_v2  ;;  %v2917_v6 = vmul.f32 %v11388_v56, %v13704_v54  ;;  %3081 = vst.msk [vmem:[#allocation2 + $0xe0] sm:$0xff] %vm658_vm0, %v3049_v5  ;;  %vm2922_vm11 = vweird.f32 %v11388_v56  ;;  %v17154_v54 = vld [vmem:[#allocation17_spill] sm:$0xff] }
 0x664   : > { %v2914_v26 = vsel %vm2911_vm10, %v2913_v28, %v2909_v12  ;;  %11389 = vrcp.f32 %v13722_v22  ;;  %vm2923_vm13 = vmor %vm2921_vm12, %vm2922_vm11  ;;  %v2940_v8 = vand.u32 2147483647, %v13722_v22  ;;  %v2942_v24 = vand.u32 2147483648, %v13722_v22  ;;  %v3821_v2 = vld [vmem:[#allocation2 + $0x59] sm:$0xff] }
 0x665   : > { %v3018_v17 = vadd.f32 %v13401_v47, %v2914_v26  ;;  %v2918_v50 = vsub.f32 1.0, %v2917_v6  ;;  %11391 = vpow2.f32 %v10302_v42  ;;  %vm2936_vm1 = vweird.f32 %v13722_v22  ;;  %v3822_v42 = vld [vmem:[#allocation2 + $0x61] sm:$0xff] }
 0x666   : > { %v2378_v30 = vpop.f32.mrf.mxu2  ;;  %v2943_v29 = vor.u32 1.1754944e-38, %v2942_v24  ;;  %vm2941_vm3 = vcmp.eq.f32.partialorder %v2940_v8, 8.507059e+37  ;;  %v3848_v61 = vpack.c.bf16 %v3822_v42, %v3821_v2  ;;  %v3824_v8 = vld [vmem:[#allocation2 + $0x71] sm:$0xff]  ;;  %v3317_v2 = vld [vmem:[%s17128_s22 + $0x60] sm:$0xff] }
 0x667   : > { %v3050_v10 = vmul.f32 %v3018_v17, %v17153_v51  ;;  %v2919_v52 = vmul.f32 %v11388_v56, %v2918_v50  ;;  %v2379_v3 = vadd.f32 %v13545_v32, %v2378_v30  ;;  %10326 = vmatmul.msk.bf16.gmra.mxu3 %vm658_vm0, %v3125_v19  ;;  %10445 = vmatmul.msk.bf16.gmra.mxu2 %vm658_vm0, %v3125_v19  ;;  %v3318_v19 = vld [vmem:[%s17128_s22 + $0x68] sm:$0xff] }
 0x668   : > { %10366 = vmatmul.msk.bf16.gmra.mxu1 %vm658_vm0, %v3598_v43  ;;  %10405 = vmatmul.msk.bf16.gmra.mxu0 %vm658_vm0, %v3847_v1 }
 0x669   : > { %3082 = vst.msk [vmem:[#allocation2 + $0xe8] sm:$0xff] %vm658_vm0, %v3050_v10  ;;  %v2920_v63 = vadd.f32 %v11388_v56, %v2919_v52  ;;  %v10303_v62 = vmul.f32 -1.442695, %v2379_v3  ;;  %11191 = vset.pattern.permute.xlu2 %v16817_v34  ;;  %v17156_v3 = vld [vmem:[#allocation19_spill] sm:$0xff] }
 0x66a   : > { %v11390_v27 = vpop.eup %11389  ;;  %4058 = vperm.xlu2 %11191, %v13713_v38   ;;  %11196 = vset.pattern.permute.xlu1 %v17141_v59 }
 0x66b   : > { %v11392_v49 = vpop.eup %11391  ;;  %v2924_v0 = vsel %vm2923_vm13, %v11388_v56, %v2920_v63  ;;  %v2932_v58 = vmul.f32 %v11390_v27, %v13722_v22  ;;  %11393 = vpow2.f32 %v10303_v62  ;;  %3394 = vperm.xlu1 %11196, %v3316_v45   ;;  %vm2937_vm15 = vweird.f32 %v11390_v27  ;;  %v17155_v22 = vld [vmem:[#allocation18_spill] sm:$0xff] }
 0x66c   : > { %v2929_v57 = vsel %vm2926_vm14, %v2928_v7, %v2924_v0  ;;  %v13747_v40 = vadd.f32 1.0, %v11392_v49  ;;  %vm2938_vm2 = vmor %vm2936_vm1, %vm2937_vm15  ;;  %v3102_v49 = vld [vmem:[#allocation2 + $0x77] sm:$0xff]  ;;  %v3103_v0 = vld [vmem:[#allocation2 + $0x7f] sm:$0xff]  ;;  %vm8778_vm1 = vcmask 261120  }
 0x66d   : > { %v3019_v20 = vadd.f32 %v13401_v47, %v2929_v57  ;;  %v2933_v53 = vsub.f32 1.0, %v2932_v58 }
 0x66e   : > { %11395 = vrcp.f32 %v13747_v40  ;;  %v2380_v14 = vpop.f32.mrf.mxu2  ;;  %v2957_v5 = vand.u32 2147483648, %v13747_v40  ;;  %v2955_v36 = vand.u32 2147483647, %v13747_v40  ;;  %vm2951_vm5 = vweird.f32 %v13747_v40 }
 0x66f   : > { %v3051_v15 = vmul.f32 %v3019_v20, %v17154_v54  ;;  %v2934_v44 = vmul.f32 %v11390_v27, %v2933_v53  ;;  %v2381_v31 = vadd.f32 %v13545_v32, %v2380_v14  ;;  %v3101_v32 = vld [vmem:[#allocation2 + $0x6f] sm:$0xff]  ;;  %v3575_v20 = vld [vmem:[#allocation2 + $0x78] sm:$0xff]  ;;  %v3576_v53 = vld [vmem:[#allocation2 + $0x80] sm:$0xff] }
 0x670   : > { %v3126_v28 = vpack.c.bf16 %v3101_v32, %v3100_v41  ;;  %v2958_v9 = vor.u32 1.1754944e-38, %v2957_v5  ;;  %vm2956_vm7 = vcmp.eq.f32.partialorder %v2955_v36, 8.507059e+37  ;;  %v3577_v5 = vld [vmem:[#allocation2 + $0x88] sm:$0xff] }
 0x671   : > { %v11394_v33 = vpop.eup %11393  ;;  %3083 = vst.msk [vmem:[#allocation2 + $0xf0] sm:$0xff] %vm658_vm0, %v3051_v15  ;;  %v2935_v38 = vadd.f32 %v11390_v27, %v2934_v44  ;;  %v10304_v35 = vmul.f32 -1.442695, %v2381_v31  ;;  %v3127_v15 = vpack.c.bf16 %v3103_v0, %v3102_v49 }
 0x672   : > { %v13760_v4 = vadd.f32 1.0, %v11394_v33  ;;  %4062 = vperm.xlu2 %11191, %v13697_v48   ;;  %v3599_v48 = vpack.c.bf16 %v3574_v11, %v3573_v55  ;;  %v3600_v33 = vpack.c.bf16 %v3576_v53, %v3575_v20  ;;  %v11110_v53 = vld [vmem:[%s16776_s11 + $0x88] sm:$0xff] }
 0x673   : > { %v2939_v25 = vsel %vm2938_vm2, %v11390_v27, %v2935_v38  ;;  %11397 = vpow2.f32 %v10304_v35  ;;  %11198 = vset.pattern.permute.xlu1 %v16817_v34  ;;  %4638 = vmatpush.bf16.msra.mxu3 %v11110_v53  ;;  %v3584_v53 = vld [vmem:[#allocation2 + $0xc0] sm:$0xff]  ;;  %vm8880_vm2 = vcmask 15360  }
 0x674   : > { %v11396_v13 = vpop.eup %11395  ;;  %v2944_v23 = vsel %vm2941_vm3, %v2943_v29, %v2939_v25  ;;  %11399 = vrcp.f32 %v13760_v4  ;;  %4074 = vperm.xlu1 %11198, %v3316_v45   ;;  %v2972_v30 = vand.u32 2147483648, %v13760_v4  ;;  %v2970_v52 = vand.u32 2147483647, %v13760_v4  ;;  %v3823_v45 = vld [vmem:[#allocation2 + $0x69] sm:$0xff]  ;;  %v17158_v29 = vld [vmem:[#allocation5_spill] sm:$0xff] }
 0x675   : > { %v3020_v39 = vadd.f32 %v13401_v47, %v2944_v23  ;;  %v2947_v56 = vmul.f32 %v11396_v13, %v13747_v40  ;;  %vm2952_vm4 = vweird.f32 %v11396_v13  ;;  %vm2966_vm9 = vweird.f32 %v13760_v4 }
 0x676   : > { %vm2953_vm6 = vmor %vm2951_vm5, %vm2952_vm4  ;;  %v2973_v7 = vor.u32 1.1754944e-38, %v2972_v30  ;;  %vm2971_vm11 = vcmp.eq.f32.partialorder %v2970_v52, 8.507059e+37  ;;  %v3849_v38 = vpack.c.bf16 %v3824_v8, %v3823_v45  ;;  %v3107_v30 = vld [vmem:[#allocation2 + $0x9f] sm:$0xff]  ;;  %v3828_v52 = vld [vmem:[#allocation2 + $0x91] sm:$0xff] }
 0x677   : > { %v3052_v37 = vmul.f32 %v3020_v39, %v17155_v22  ;;  %v2948_v46 = vsub.f32 1.0, %v2947_v56  ;;  %10327 = vmatmul.msk.bf16.gmra.mxu3 %vm658_vm0, %v3126_v28  ;;  %10446 = vmatmul.msk.bf16.gmra.mxu2 %vm658_vm0, %v3126_v28  ;;  %v3320_v28 = vld [vmem:[%s17128_s22 + $0x78] sm:$0xff] }
 0x678   : > { %10367 = vmatmul.msk.bf16.gmra.mxu1 %vm658_vm0, %v3599_v48  ;;  %10406 = vmatmul.msk.bf16.gmra.mxu0 %vm658_vm0, %v3848_v61  ;;  %v3104_v48 = vld [vmem:[#allocation2 + $0x87] sm:$0xff]  ;;  %v3105_v61 = vld [vmem:[#allocation2 + $0x8f] sm:$0xff] }
 0x679   : > { %v11398_v12 = vpop.eup %11397  ;;  %3084 = vst.msk [vmem:[#allocation2 + $0xf8] sm:$0xff] %vm658_vm0, %v3052_v37  ;;  %v2949_v6 = vmul.f32 %v11396_v13, %v2948_v46  ;;  %v17159_v37 = vld [vmem:[#allocation20_spill] sm:$0xff] }
 0x67a   : > { %v11400_v60 = vpop.eup %11399  ;;  %v13778_v26 = vadd.f32 1.0, %v11398_v12  ;;  %11195 = vset.pattern.permute.xlu2 %v17141_v59  ;;  %v3825_v12 = vld [vmem:[#allocation2 + $0x79] sm:$0xff] }
 0x67b   : > { %v2950_v17 = vadd.f32 %v11396_v13, %v2949_v6  ;;  %v2962_v50 = vmul.f32 %v11400_v60, %v13760_v4  ;;  %3389 = vperm.xlu2 %11195, %v3315_v16   ;;  %vm2967_vm8 = vweird.f32 %v11400_v60  ;;  %v3826_v6 = vld [vmem:[#allocation2 + $0x81] sm:$0xff] }
 0x67c   : > { %11401 = vrcp.f32 %v13778_v26  ;;  %11200 = vset.pattern.permute.xlu1 %v17141_v59  ;;  %vm2968_vm10 = vmor %vm2966_vm9, %vm2967_vm8  ;;  %v2987_v31 = vand.u32 2147483648, %v13778_v26  ;;  %v2985_v41 = vand.u32 2147483647, %v13778_v26  ;;  %vm2981_vm13 = vweird.f32 %v13778_v26 }
 0x67d   : > { %v2954_v18 = vsel %vm2953_vm6, %v11396_v13, %v2950_v17  ;;  %v2963_v43 = vsub.f32 1.0, %v2962_v50  ;;  %3404 = vperm.xlu1 %11200, %v3318_v19   ;;  %v13793_v58 = vpop.permute.xlu1 %3339  ;;  %v3850_v17 = vpack.c.bf16 %v3826_v6, %v3825_v12 }
 0x67e   : > { %v2959_v1 = vsel %vm2956_vm7, %v2958_v9, %v2954_v18  ;;  %v2988_v23 = vor.u32 1.1754944e-38, %v2987_v31  ;;  %vm2986_vm15 = vcmp.eq.f32.partialorder %v2985_v41, 8.507059e+37  ;;  %v3321_v31 = vld [vmem:[%s17128_s22 + $0x80] sm:$0xff] }
 0x67f   : > { %v3021_v51 = vadd.f32 %v13401_v47, %v2959_v1  ;;  %v2964_v10 = vmul.f32 %v11400_v60, %v2963_v43  ;;  %v3322_v43 = vld [vmem:[%s17128_s22 + $0x88] sm:$0xff] }
 0x680   : > { %v3225_v44 = vpop.f32.mrf.mxu3 }
 0x681   : > { %v3053_v63 = vmul.f32 %v3021_v51, %v17156_v3  ;;  %v2965_v62 = vadd.f32 %v11400_v60, %v2964_v10  ;;  %v3497_v35 = vmul.f32 %v13793_v58, %v3225_v44  ;;  %v3580_v51 = vld [vmem:[#allocation2 + $0xa0] sm:$0xff]  ;;  %v3827_v10 = vld [vmem:[#allocation2 + $0x89] sm:$0xff]  ;;  %v3106_v3 = vld [vmem:[#allocation2 + $0x97] sm:$0xff] }
 0x682   : > { %v11402_v27 = vpop.eup %11401  ;;  %v3699_v32 = vpop.f32.mrf.mxu1  ;;  %v3129_v45 = vpack.c.bf16 %v3107_v30, %v3106_v3  ;;  %v3851_v0 = vpack.c.bf16 %v3828_v52, %v3827_v10 }
 0x683   : > { %3085 = vst.msk [vmem:[#allocation2 + $0x100] sm:$0xff] %vm658_vm0, %v3053_v63  ;;  %v2969_v57 = vsel %vm2968_vm10, %v11400_v60, %v2965_v62  ;;  %v2977_v40 = vmul.f32 %v11402_v27, %v13778_v26  ;;  %11197 = vset.pattern.permute.xlu2 %v16817_v34  ;;  %vm2982_vm12 = vweird.f32 %v11402_v27  ;;  %v13808_v55 = vadd.f32 %v3699_v32, %v3497_v35  ;;  %v3582_v32 = vld [vmem:[#allocation2 + $0xb0] sm:$0xff] }
 0x684   : > { %v2974_v24 = vsel %vm2971_vm11, %v2973_v7, %v2969_v57  ;;  %4070 = vperm.xlu2 %11197, %v3315_v16   ;;  %v13802_v21 = vpop.permute.xlu2 %4030  ;;  %vm2983_vm14 = vmor %vm2981_vm13, %vm2982_vm12  ;;  %v3128_v16 = vpack.c.bf16 %v3105_v61, %v3104_v48 }
 0x685   : > { %v3022_v14 = vadd.f32 %v13401_v47, %v2974_v24  ;;  %v2978_v54 = vsub.f32 1.0, %v2977_v40  ;;  %11202 = vset.pattern.permute.xlu1 %v16817_v34  ;;  %17157 = vst [vmem:[#allocation8_spill] sm:$0xff] %v13802_v21 }
 0x686   : > { %4082 = vperm.xlu1 %11202, %v3318_v19   ;;  %v13817_v39 = vpop.permute.xlu1 %3344  ;;  %v3319_v19 = vld [vmem:[%s17128_s22 + $0x70] sm:$0xff] }
 0x687   : > { %v3054_v4 = vmul.f32 %v3022_v14, %v17158_v29  ;;  %v2979_v25 = vmul.f32 %v11402_v27, %v2978_v54  ;;  %10328 = vmatmul.msk.bf16.gmra.mxu3 %vm658_vm0, %v3127_v15  ;;  %10447 = vmatmul.msk.bf16.gmra.mxu2 %vm658_vm0, %v3127_v15 }
 0x688   : > { %10368 = vmatmul.msk.bf16.gmra.mxu1 %vm658_vm0, %v3600_v33  ;;  %10407 = vmatmul.msk.bf16.gmra.mxu0 %vm658_vm0, %v3849_v38  ;;  %v13852_v1 = vpop.f32.mrf.mxu3 }
 0x689   : > { %3086 = vst.msk [vmem:[#allocation2 + $0x108] sm:$0xff] %vm658_vm0, %v3054_v4  ;;  %v2980_v13 = vadd.f32 %v11402_v27, %v2979_v25  ;;  %v3109_v4 = vld [vmem:[#allocation2 + $0xaf] sm:$0xff]  ;;  %v3324_v25 = vld [vmem:[%s17128_s22 + $0x98] sm:$0xff] }
 0x68a   : > { %v13839_v50 = vpop.f32.mrf.mxu1 }
 0x68b   : > { %v2984_v11 = vsel %vm2983_vm14, %v11402_v27, %v2980_v13  ;;  %v3579_v27 = vld [vmem:[#allocation2 + $0x98] sm:$0xff]  ;;  %v3108_v13 = vld [vmem:[#allocation2 + $0xa7] sm:$0xff] }
 0x68c   : > { %v2989_v42 = vsel %vm2986_vm15, %v2988_v23, %v2984_v11  ;;  %11199 = vset.pattern.permute.xlu2 %v17141_v59  ;;  %v13824_v22 = vpop.permute.xlu2 %4034  ;;  %v3602_v49 = vpack.c.bf16 %v3580_v51, %v3579_v27 }
 0x68d   : > { %v3023_v56 = vadd.f32 %v13401_v47, %v2989_v42  ;;  %3399 = vperm.xlu2 %11199, %v3317_v2   ;;  %v3578_v47 = vld [vmem:[#allocation2 + $0x90] sm:$0xff]  ;;  %v3130_v42 = vpack.c.bf16 %v3109_v4, %v3108_v13  ;;  %v3583_v4 = vld [vmem:[#allocation2 + $0xb8] sm:$0xff]  ;;  %v3326_v13 = vld [vmem:[%s17128_s22 + $0xa8] sm:$0xff] }
 0x68e   : > { %11204 = vset.pattern.permute.xlu1 %v17141_v59  ;;  %v3601_v26 = vpack.c.bf16 %v3578_v47, %v3577_v5  ;;  %v11116_v47 = vld [vmem:[%s16776_s11 + $0xb8] sm:$0xff] }
 0x68f   : > { %v3055_v46 = vmul.f32 %v3023_v56, %v17159_v37  ;;  %3414 = vperm.xlu1 %11204, %v3320_v28   ;;  %v3581_v56 = vld [vmem:[#allocation2 + $0xa8] sm:$0xff]  ;;  %4886 = vmatpush.bf16.msrb.mxu1 %v11116_v47 }
 0x690   : > { %v13829_v36 = vpop.permute.xlu1 %3349 }
 0x691   : > { %3087 = vst.msk [vmem:[#allocation2 + $0x110] sm:$0xff] %vm658_vm0, %v3055_v46  ;;  %v3603_v46 = vpack.c.bf16 %v3582_v32, %v3581_v56  ;;  %v3604_v32 = vpack.c.bf16 %v3584_v53, %v3583_v4  ;;  %v3585_v53 = vld [vmem:[#allocation2 + $0xc8] sm:$0xff] }
 0x695   : > { %11201 = vset.pattern.permute.xlu2 %v16817_v34  ;;  %v13832_v60 = vpop.permute.xlu2 %3354 }
 0x696   : > { %4078 = vperm.xlu2 %11201, %v3317_v2  }
 0x697   : > { %10329 = vmatmul.msk.bf16.gmra.mxu3 %vm658_vm0, %v3128_v16  ;;  %10448 = vmatmul.msk.bf16.gmra.mxu2 %vm658_vm0, %v3128_v16 }
 0x698   : > { %10369 = vmatmul.msk.bf16.gmra.mxu1 %vm658_vm0, %v3601_v26  ;;  %10408 = vmatmul.msk.bf16.gmra.mxu0 %vm658_vm0, %v3850_v17 }
 0x699   : > { %11206 = vset.pattern.permute.xlu1 %v16817_v34 }
 0x69a   : > { %4090 = vperm.xlu1 %11206, %v3320_v28   ;;  %v3829_v28 = vld [vmem:[#allocation2 + $0x99] sm:$0xff] }
 0x69c   : > { %v13844_v9 = vpop.permute.xlu1 %4038 }
 0x69e   : > { %11203 = vset.pattern.permute.xlu2 %v17141_v59  ;;  %v13847_v18 = vpop.permute.xlu2 %4042 }
 0x69f   : > { %3409 = vperm.xlu2 %11203, %v3319_v19  }
 0x6a2   : > { %11208 = vset.pattern.permute.xlu1 %v17141_v59 }
 0x6a3   : > { %3424 = vperm.xlu1 %11208, %v3322_v43  }
 0x6a5   : > { %v3704_v63 = vpop.f32.mrf.mxu1  ;;  %v3949_v62 = vpop.f32.mrf.mxu0 }
 0x6a6   : > { %v4157_v7 = vmul.f32 %v13802_v21, %v3949_v62  ;;  %v13858_v57 = vpop.permute.xlu1 %3359 }
 0x6a7   : > { %10330 = vmatmul.msk.bf16.gmra.mxu3 %vm658_vm0, %v3129_v45  ;;  %10449 = vmatmul.msk.bf16.gmra.mxu2 %vm658_vm0, %v3129_v45  ;;  %v13860_v40 = vpop.permute.xlu2 %3364 }
 0x6a8   : > { %v4189_v20 = vadd.f32 %v4157_v7, %v13808_v55  ;;  %10370 = vmatmul.msk.bf16.gmra.mxu1 %vm658_vm0, %v3602_v49  ;;  %10409 = vmatmul.msk.bf16.gmra.mxu0 %vm658_vm0, %v3851_v0  ;;  %v3830_v55 = vld [vmem:[#allocation2 + $0xa1] sm:$0xff] }
 0x6a9   : > { %11205 = vset.pattern.permute.xlu2 %v16817_v34  ;;  %v3852_v48 = vpack.c.bf16 %v3830_v55, %v3829_v28  ;;  %v3111_v0 = vld [vmem:[#allocation2 + $0xbf] sm:$0xff] }
 0x6aa   : > { %v3230_v8 = vpop.f32.mrf.mxu3  ;;  %v4359_v24 = vpop.f32.mrf.mxu2  ;;  %4086 = vperm.xlu2 %11205, %v3319_v19   ;;  %v3498_v19 = vmul.f32 %v13817_v39, %v13852_v1  ;;  %v13915_v1 = vld [vmem:[%s17128_s22 + $0xb8] sm:$0xff] }
 0x6ab   : > { %v3499_v14 = vmul.f32 %v13829_v36, %v3230_v8  ;;  %11210 = vset.pattern.permute.xlu1 %v16817_v34  ;;  %v4439_v61 = vmul.f32 %v4359_v24, %v13793_v58  ;;  %3454 = vperm.xlu0 %11192, %v13915_v1   ;;  %v3832_v8 = vld [vmem:[#allocation2 + $0xb1] sm:$0xff] }
 0x6ac   : > { %4098 = vperm.xlu1 %11210, %v3322_v43  }
 0x6ad   : > { %v3781_v54 = vadd.f32 %v3704_v63, %v3499_v14  ;;  %v3706_v15 = vpop.f32.mrf.mxu1  ;;  %v3951_v44 = vpop.f32.mrf.mxu0  ;;  %v13903_v43 = vadd.f32 %v4439_v61, %v4189_v20  ;;  %v3780_v63 = vadd.f32 %v13839_v50, %v3498_v19  ;;  %v3323_v20 = vld [vmem:[%s17128_s22 + $0x90] sm:$0xff] }
 0x6ae   : > { %v13876_v38 = vpop.permute.xlu1 %4046  ;;  %v4158_v52 = vmul.f32 %v13824_v22, %v3951_v44  ;;  %v3110_v14 = vld [vmem:[#allocation2 + $0xb7] sm:$0xff] }
 0x6b0   : > { %v13874_v33 = vpop.permute.xlu2 %4050  ;;  %v4190_v27 = vadd.f32 %v4158_v52, %v3780_v63  ;;  %v3834_v63 = vld [vmem:[#allocation2 + $0xc1] sm:$0xff] }
 0x6b2   : > { %v3232_v35 = vpop.f32.mrf.mxu3  ;;  %v4361_v29 = vpop.f32.mrf.mxu2  ;;  %11207 = vset.pattern.permute.xlu2 %v17141_v59 }
 0x6b3   : > { %v3500_v41 = vmul.f32 %v13832_v60, %v3232_v35  ;;  %3419 = vperm.xlu2 %11207, %v3321_v31   ;;  %v4440_v62 = vmul.f32 %v4361_v29, %v13817_v39  ;;  %v3131_v29 = vpack.c.bf16 %v3111_v0, %v3110_v14 }
 0x6b4   : > { %11212 = vset.pattern.permute.xlu1 %v17141_v59 }
 0x6b5   : > { %v3782_v23 = vadd.f32 %v3706_v15, %v3500_v41  ;;  %v3709_v11 = vpop.f32.mrf.mxu1  ;;  %v3954_v2 = vpop.f32.mrf.mxu0  ;;  %3434 = vperm.xlu1 %11212, %v3324_v25   ;;  %v13927_v15 = vadd.f32 %v4440_v62, %v4190_v27  ;;  %v3112_v62 = vld [vmem:[#allocation2 + $0xc7] sm:$0xff] }
 0x6b6   : > { %v4159_v37 = vmul.f32 %v13844_v9, %v3954_v2  ;;  %v13942_v2 = vld [vmem:[%s17128_s22 + $0xc0] sm:$0xff] }
 0x6b7   : > { %10331 = vmatmul.msk.bf16.gmra.mxu3 %vm658_vm0, %v3130_v42  ;;  %10450 = vmatmul.msk.bf16.gmra.mxu2 %vm658_vm0, %v3130_v42  ;;  %v13899_v17 = vpop.permute.xlu1 %3369 }
 0x6b8   : > { %v13888_v5 = vadd.f32 %v4159_v37, %v3781_v54  ;;  %10371 = vmatmul.msk.bf16.gmra.mxu1 %vm658_vm0, %v3603_v46  ;;  %10410 = vmatmul.msk.bf16.gmra.mxu0 %vm658_vm0, %v3852_v48 }
 0x6b9   : > { %v13895_v12 = vpop.permute.xlu2 %3374  ;;  %3459 = vperm.xlu0 %11192, %v13942_v2  }
 0x6ba   : > { %17160 = vst [vmem:[#allocation7_spill] sm:$0xff] %v13895_v12  ;;  %v3235_v6 = vpop.f32.mrf.mxu3  ;;  %v4364_v16 = vpop.f32.mrf.mxu2 }
 0x6bb   : > { %v3501_v26 = vmul.f32 %v13858_v57, %v3235_v6  ;;  %11209 = vset.pattern.permute.xlu2 %v16817_v34 }
 0x6bc   : > { %4094 = vperm.xlu2 %11209, %v3321_v31  }
 0x6bd   : > { %v3783_v30 = vadd.f32 %v3709_v11, %v3501_v26  ;;  %v3711_v51 = vpop.f32.mrf.mxu1  ;;  %v3956_v10 = vpop.f32.mrf.mxu0  ;;  %11214 = vset.pattern.permute.xlu1 %v16817_v34 }
 0x6be   : > { %v4160_v3 = vmul.f32 %v13847_v18, %v3956_v10  ;;  %4106 = vperm.xlu1 %11214, %v3324_v25   ;;  %v3831_v25 = vld [vmem:[#allocation2 + $0xa9] sm:$0xff] }
 0x6bf   : > { %v3853_v55 = vpack.c.bf16 %v3832_v8, %v3831_v25  ;;  %v3113_v10 = vld [vmem:[#allocation2 + $0xcf] sm:$0xff]  ;;  %v3833_v8 = vld [vmem:[#allocation2 + $0xb9] sm:$0xff] }
 0x6c0   : > { %v13910_v45 = vadd.f32 %v4160_v3, %v3782_v23  ;;  %v13922_v24 = vpop.permute.xlu1 %4054  ;;  %v4441_v23 = vmul.f32 %v4364_v16, %v13829_v36  ;;  %v3586_v3 = vld [vmem:[#allocation2 + $0xd0] sm:$0xff] }
 0x6c1   : > { %11222 = vset.pattern.permute.xlu0 %v16817_v34 }
 0x6c2   : > { %v3237_v7 = vpop.f32.mrf.mxu3  ;;  %v4366_v49 = vpop.f32.mrf.mxu2  ;;  %v13951_v48 = vadd.f32 %v4441_v23, %v13888_v5 }
 0x6c3   : > { %v3502_v50 = vmul.f32 %v13860_v40, %v3237_v7  ;;  %v4442_v26 = vmul.f32 %v4366_v49, %v13832_v60 }
 0x6c4   : > { %11211 = vset.pattern.permute.xlu2 %v17141_v59  ;;  %v13925_v54 = vpop.permute.xlu2 %4058 }
 0x6c5   : > { %v3784_v44 = vadd.f32 %v3711_v51, %v3502_v50  ;;  %v3714_v31 = vpop.f32.mrf.mxu1  ;;  %v3959_v35 = vpop.f32.mrf.mxu0  ;;  %3429 = vperm.xlu2 %11211, %v3323_v20   ;;  %v13965_v7 = vadd.f32 %v4442_v26, %v13910_v45  ;;  %v3132_v50 = vpack.c.bf16 %v3113_v10, %v3112_v62  ;;  %v3327_v45 = vld [vmem:[%s17128_s22 + $0xb0] sm:$0xff] }
 0x6c6   : > { %v4161_v41 = vmul.f32 %v13876_v38, %v3959_v35  ;;  %11216 = vset.pattern.permute.xlu1 %v17141_v59  ;;  %v3325_v35 = vld [vmem:[%s17128_s22 + $0xa0] sm:$0xff]  ;;  %v3114_v62 = vld [vmem:[#allocation2 + $0xd7] sm:$0xff] }
 0x6c7   : > { %10332 = vmatmul.msk.bf16.gmra.mxu3 %vm658_vm0, %v3131_v29  ;;  %10451 = vmatmul.msk.bf16.gmra.mxu2 %vm658_vm0, %v3131_v29 }
 0x6c8   : > { %v4193_v11 = vadd.f32 %v4161_v41, %v3783_v30  ;;  %10372 = vmatmul.msk.bf16.gmra.mxu1 %vm658_vm0, %v3604_v32  ;;  %10411 = vmatmul.msk.bf16.gmra.mxu0 %vm658_vm0, %v3853_v55  ;;  %v3330_v30 = vld [vmem:[%s17128_s22 + $0xc8] sm:$0xff]  ;;  %v13982_v41 = vpop.permute.xlu0 %3379 }
 0x6c9   : > { %3444 = vperm.xlu1 %11216, %v3326_v13   ;;  %4130 = vperm.xlu0 %11222, %v3330_v30   ;;  %17164 = vst [vmem:[#allocation12_spill] sm:$0xff] %v13982_v41 }
 0x6ca   : > { %v3240_v42 = vpop.f32.mrf.mxu3  ;;  %v4369_v56 = vpop.f32.mrf.mxu2 }
 0x6cb   : > { %v3503_v28 = vmul.f32 %v13899_v17, %v3240_v42  ;;  %v13946_v37 = vpop.permute.xlu1 %3384  ;;  %v4443_v4 = vmul.f32 %v4369_v56, %v13858_v57 }
 0x6cc   : > { %17161 = vst [vmem:[#allocation9_spill] sm:$0xff] %v13946_v37  ;;  %v13948_v46 = vpop.permute.xlu2 %4062 }
 0x6cd   : > { %v3785_v61 = vadd.f32 %v3714_v31, %v3503_v28  ;;  %v3716_v47 = vpop.f32.mrf.mxu1  ;;  %v3961_v6 = vpop.f32.mrf.mxu0  ;;  %11213 = vset.pattern.permute.xlu2 %v16817_v34  ;;  %v3854_v31 = vpack.c.bf16 %v3834_v63, %v3833_v8  ;;  %v13986_v23 = vadd.f32 %v4443_v4, %v4193_v11  ;;  %v3115_v11 = vld [vmem:[#allocation2 + $0xdf] sm:$0xff]  ;;  %v3836_v63 = vld [vmem:[#allocation2 + $0xd1] sm:$0xff]  ;;  %v3835_v8 = vld [vmem:[#allocation2 + $0xc9] sm:$0xff] }
 0x6ce   : > { %v4162_v16 = vmul.f32 %v13874_v33, %v3961_v6  ;;  %4102 = vperm.xlu2 %11213, %v3323_v20  }
 0x6d0   : > { %v4194_v19 = vadd.f32 %v4162_v16, %v3784_v44  ;;  %v3605_v44 = vpack.c.bf16 %v3586_v3, %v3585_v53  ;;  %v3588_v3 = vld [vmem:[#allocation2 + $0xe0] sm:$0xff]  ;;  %v3587_v53 = vld [vmem:[#allocation2 + $0xd8] sm:$0xff] }
 0x6d1   : > { %11218 = vset.pattern.permute.xlu1 %v16817_v34  ;;  %11226 = vset.pattern.permute.xlu0 %v17141_v59 }
 0x6d2   : > { %v3242_v5 = vpop.f32.mrf.mxu3  ;;  %v4371_v51 = vpop.f32.mrf.mxu2  ;;  %4114 = vperm.xlu1 %11218, %v3326_v13  }
 0x6d3   : > { %v3504_v52 = vmul.f32 %v13895_v12, %v3242_v5  ;;  %v4444_v16 = vmul.f32 %v4371_v51, %v13860_v40 }
 0x6d4   : > { %v13962_v27 = vpop.permute.xlu1 %4066 }
 0x6d5   : > { %17162 = vst [vmem:[#allocation10_spill] sm:$0xff] %v13962_v27  ;;  %v3786_v49 = vadd.f32 %v3716_v47, %v3504_v52  ;;  %v3719_v0 = vpop.f32.mrf.mxu1  ;;  %v3964_v20 = vpop.f32.mrf.mxu0 }
 0x6d6   : > { %v4163_v14 = vmul.f32 %v13922_v24, %v3964_v20  ;;  %11215 = vset.pattern.permute.xlu2 %v17141_v59  ;;  %v13972_v29 = vpop.permute.xlu2 %3389 }
 0x6d7   : > { %17163 = vst [vmem:[#allocation11_spill] sm:$0xff] %v13972_v29  ;;  %10333 = vmatmul.msk.bf16.gmra.mxu3 %vm658_vm0, %v3132_v50  ;;  %10452 = vmatmul.msk.bf16.gmra.mxu2 %vm658_vm0, %v3132_v50  ;;  %v3133_v50 = vpack.c.bf16 %v3115_v11, %v3114_v62 }
 0x6d8   : > { %v4195_v25 = vadd.f32 %v4163_v14, %v3785_v61  ;;  %10373 = vmatmul.msk.bf16.gmra.mxu1 %vm658_vm0, %v3605_v44  ;;  %10412 = vmatmul.msk.bf16.gmra.mxu0 %vm658_vm0, %v3854_v31  ;;  %v3606_v44 = vpack.c.bf16 %v3588_v3, %v3587_v53  ;;  %v3855_v31 = vpack.c.bf16 %v3836_v63, %v3835_v8  ;;  %v11114_v53 = vld [vmem:[%s16776_s11 + $0xa8] sm:$0xff] }
 0x6d9   : > { %3439 = vperm.xlu2 %11215, %v3325_v35   ;;  %v3838_v8 = vld [vmem:[#allocation2 + $0xe1] sm:$0xff] }
 0x6da   : > { %v3245_v32 = vpop.f32.mrf.mxu3  ;;  %v4374_v55 = vpop.f32.mrf.mxu2  ;;  %4118 = vperm.xlu1 %11218, %v3327_v45  }
 0x6db   : > { %v3505_v13 = vmul.f32 %v13982_v41, %v3245_v32  ;;  %v3331_v32 = vld [vmem:[%s17128_s22 + $0xd0] sm:$0xff] }
 0x6dd   : > { %v3721_v42 = vpop.f32.mrf.mxu1  ;;  %v3966_v28 = vpop.f32.mrf.mxu0  ;;  %v3787_v56 = vadd.f32 %v3719_v0, %v3505_v13  ;;  %v13999_v0 = vadd.f32 %v4444_v16, %v4194_v19  ;;  %v4445_v19 = vmul.f32 %v4374_v55, %v13899_v17  ;;  %v14019_v13 = vld [vmem:[%s17128_s22 + $0xe0] sm:$0xff] }
 0x6de   : > { %v4164_v61 = vmul.f32 %v13925_v54, %v3966_v28  ;;  %v13989_v47 = vpop.permute.xlu2 %4070  ;;  %v13991_v6 = vpop.permute.xlu1 %3394  ;;  %3479 = vperm.xlu0 %11226, %v14019_v13  }
 0x6df   : > { %17165 = vst [vmem:[#allocation13_spill] sm:$0xff] %v13989_v47 }
 0x6e0   : > { %17166 = vst [vmem:[#allocation14_spill] sm:$0xff] %v13991_v6  ;;  %v13994_v26 = vadd.f32 %v4164_v61, %v3786_v49  ;;  %v14027_v61 = vadd.f32 %v4445_v19, %v4195_v25 }
 0x6e1   : > { %11217 = vset.pattern.permute.xlu2 %v16817_v34 }
 0x6e2   : > { %v3247_v5 = vpop.f32.mrf.mxu3  ;;  %v4376_v10 = vpop.f32.mrf.mxu2  ;;  %4110 = vperm.xlu2 %11217, %v3325_v35   ;;  %11221 = vset.pattern.permute.xlu1 %v17141_v59 }
 0x6e3   : > { %v3506_v52 = vmul.f32 %v13946_v37, %v3247_v5  ;;  %3464 = vperm.xlu1 %11221, %v3330_v30   ;;  %v4446_v63 = vmul.f32 %v4376_v10, %v13895_v12 }
 0x6e5   : > { %v3788_v20 = vadd.f32 %v3721_v42, %v3506_v52  ;;  %v3724_v51 = vpop.f32.mrf.mxu1  ;;  %v3969_v49 = vpop.f32.mrf.mxu0  ;;  %v11109_v42 = vld [vmem:[%s16776_s11 + $0x80] sm:$0xff] }
 0x6e6   : > { %v4165_v14 = vmul.f32 %v13948_v46, %v3969_v49  ;;  %v14002_v35 = vpop.permute.xlu1 %4074  ;;  %4639 = vmatpush.bf16.msra.mxu3 %v11109_v42  ;;  %11230 = vset.pattern.permute.xlu0 %v16817_v34 }
 0x6e7   : > { %17167 = vst [vmem:[#allocation15_spill] sm:$0xff] %v14002_v35  ;;  %10334 = vmatmul.msk.bf16.gmra.mxu3 %vm658_vm0, %v3133_v50  ;;  %10453 = vmatmul.msk.bf16.gmra.mxu2 %vm658_vm0, %v3133_v50  ;;  %v14006_v30 = vpop.permute.xlu2 %3399  ;;  %v3117_v50 = vld [vmem:[#allocation2 + $0xef] sm:$0xff] }
 0x6e8   : > { %17168 = vst [vmem:[#allocation16_spill] sm:$0xff] %v14006_v30  ;;  %v14009_v4 = vadd.f32 %v4165_v14, %v3787_v56  ;;  %10374 = vmatmul.msk.bf16.gmra.mxu1 %vm658_vm0, %v3606_v44  ;;  %10413 = vmatmul.msk.bf16.gmra.mxu0 %vm658_vm0, %v3855_v31  ;;  %v3116_v14 = vld [vmem:[#allocation2 + $0xe7] sm:$0xff]  ;;  %v14049_v44 = vadd.f32 %v4446_v63, %v13994_v26  ;;  %v11120_v63 = vld [vmem:[%s16776_s11 + $0xd8] sm:$0xff] }
 0x6e9   : > { %5168 = vmatpush.bf16.msrb.mxu0 %v11120_v63 }
 0x6ea   : > { %v3250_v55 = vpop.f32.mrf.mxu3  ;;  %v4379_v28 = vpop.f32.mrf.mxu2  ;;  %11219 = vset.pattern.permute.xlu2 %v17141_v59 }
 0x6eb   : > { %v3507_v56 = vmul.f32 %v13972_v29, %v3250_v55  ;;  %3449 = vperm.xlu2 %11219, %v3327_v45   ;;  %3469 = vperm.xlu1 %11221, %v3331_v32   ;;  %v11115_v45 = vld [vmem:[%s16776_s11 + $0xb0] sm:$0xff]  ;;  %v3134_v55 = vpack.c.bf16 %v3117_v50, %v3116_v14 }
 0x6ec   : > { %4887 = vmatpush.bf16.msrb.mxu1 %v11115_v45 }
 0x6ed   : > { %v3789_v16 = vadd.f32 %v3724_v51, %v3507_v56  ;;  %v3726_v5 = vpop.f32.mrf.mxu1  ;;  %v3971_v11 = vpop.f32.mrf.mxu0  ;;  %v3589_v56 = vld [vmem:[#allocation2 + $0xe8] sm:$0xff] }
 0x6ee   : > { %v4166_v52 = vmul.f32 %v13962_v27, %v3971_v11  ;;  %v3837_v11 = vld [vmem:[#allocation2 + $0xd9] sm:$0xff]  ;;  %v3839_v27 = vld [vmem:[#allocation2 + $0xe9] sm:$0xff] }
 0x6ef   : > { %v14030_v3 = vpop.permute.xlu1 %3404 }
 0x6f0   : > { %17169 = vst [vmem:[#allocation6_spill] sm:$0xff] %v14030_v3  ;;  %v14033_v62 = vadd.f32 %v4166_v52, %v3788_v20  ;;  %v14035_v49 = vpop.permute.xlu2 %4078  ;;  %v3590_v20 = vld [vmem:[#allocation2 + $0xf0] sm:$0xff]  ;;  %4888 = vmatpush.bf16.msrb.mxu1 %v11114_v53 }
 0x6f1   : > { %17170 = vst [vmem:[#allocation3_spill] sm:$0xff] %v14035_v49  ;;  %v3607_v45 = vpack.c.bf16 %v3590_v20, %v3589_v56 }
 0x6f2   : > { %v3252_v25 = vpop.f32.mrf.mxu3  ;;  %v4381_v51 = vpop.f32.mrf.mxu2 }
 0x6f3   : > { %v3508_v10 = vmul.f32 %v13991_v6, %v3252_v25  ;;  %11220 = vset.pattern.permute.xlu2 %v16817_v34  ;;  %11224 = vset.pattern.permute.xlu1 %v16817_v34  ;;  %v3856_v25 = vpack.c.bf16 %v3838_v8, %v3837_v11  ;;  %v4448_v11 = vmul.f32 %v4381_v51, %v13946_v37  ;;  %v3119_v51 = vld [vmem:[#allocation2 + $0xff] sm:$0xff] }
 0x6f4   : > { %4122 = vperm.xlu2 %11220, %v13915_v1   ;;  %4134 = vperm.xlu1 %11224, %v3331_v32   ;;  %v4447_v1 = vmul.f32 %v4379_v28, %v13982_v41  ;;  %v11124_v28 = vld [vmem:[%s16776_s11 + $0xf8] sm:$0xff] }
 0x6f5   : > { %v3790_v31 = vadd.f32 %v3726_v5, %v3508_v10  ;;  %v3729_v19 = vpop.f32.mrf.mxu1  ;;  %v3974_v42 = vpop.f32.mrf.mxu0  ;;  %v11113_v5 = vld [vmem:[%s16776_s11 + $0xa0] sm:$0xff]  ;;  %v3334_v10 = vld [vmem:[%s17128_s22 + $0xe8] sm:$0xff]  ;;  %5450 = vmatpush.bf16.msrb.mxu2 %v11124_v28  ;;  %v3591_v37 = vld [vmem:[#allocation2 + $0xf8] sm:$0xff] }
 0x6f6   : > { %v4167_v52 = vmul.f32 %v13989_v47, %v3974_v42  ;;  %4889 = vmatpush.bf16.msrb.mxu1 %v11113_v5  ;;  %v14079_v8 = vadd.f32 %v4447_v1, %v14009_v4  ;;  %v11118_v5 = vld [vmem:[%s16776_s11 + $0xc8] sm:$0xff]  ;;  %v3592_v28 = vld [vmem:[#allocation2 + $0x100] sm:$0xff] }
 0x6f7   : > { %10335 = vmatmul.msk.bf16.gmra.mxu3 %vm658_vm0, %v3134_v55  ;;  %10454 = vmatmul.msk.bf16.gmra.mxu2 %vm658_vm0, %v3134_v55  ;;  %v11122_v47 = vld [vmem:[%s16776_s11 + $0xe8] sm:$0xff]  ;;  %v3608_v12 = vpack.c.bf16 %v3592_v28, %v3591_v37 }
 0x6f8   : > { %v14055_v32 = vadd.f32 %v4167_v52, %v3789_v16  ;;  %10375 = vmatmul.msk.bf16.gmra.mxu1 %vm658_vm0, %v3607_v45  ;;  %10414 = vmatmul.msk.bf16.gmra.mxu0 %vm658_vm0, %v3856_v25  ;;  %v14059_v26 = vpop.permute.xlu1 %4082  ;;  %17173 = vst [vmem:[#allocation18_spill] sm:$0xff] %v14079_v8  ;;  %v11119_v45 = vld [vmem:[%s16776_s11 + $0xd0] sm:$0xff] }
 0x6f9   : > { %17171 = vst [vmem:[#allocation4_spill] sm:$0xff] %v14059_v26  ;;  %v14067_v50 = vpop.permute.xlu2 %3409  ;;  %5169 = vmatpush.bf16.msrb.mxu0 %v11119_v45 }
 0x6fa   : > { %17172 = vst [vmem:[#allocation17_spill] sm:$0xff] %v14067_v50  ;;  %v3255_v16 = vpop.f32.mrf.mxu3  ;;  %v4384_v53 = vpop.f32.mrf.mxu2 }
 0x6fb   : > { %v3509_v20 = vmul.f32 %v14006_v30, %v3255_v16  ;;  %v3840_v16 = vld [vmem:[#allocation2 + $0xf1] sm:$0xff] }
 0x6fc   : > { %4126 = vperm.xlu2 %11220, %v13942_v2   ;;  %11227 = vset.pattern.permute.xlu1 %v17141_v59  ;;  %v11123_v2 = vld [vmem:[%s16776_s11 + $0xf0] sm:$0xff]  ;;  %v3857_v8 = vpack.c.bf16 %v3840_v16, %v3839_v27 }
 0x6fd   : > { %v3791_v14 = vadd.f32 %v3729_v19, %v3509_v20  ;;  %v3731_v42 = vpop.f32.mrf.mxu1  ;;  %v3976_v55 = vpop.f32.mrf.mxu0  ;;  %3484 = vperm.xlu1 %11227, %v3334_v10   ;;  %v14096_v19 = vld [vmem:[%s17128_s22 + $0xf0] sm:$0xff]  ;;  %5451 = vmatpush.bf16.msrb.mxu2 %v11123_v2 }
 0x6fe   : > { %v4168_v56 = vmul.f32 %v14002_v35, %v3976_v55  ;;  %4150 = vperm.xlu0 %11230, %v14096_v19   ;;  %v3118_v20 = vld [vmem:[#allocation2 + $0xf7] sm:$0xff]  ;;  %5170 = vmatpush.bf16.msrb.mxu0 %v11118_v5  ;;  %v4252_v16 = vld [vmem:[#allocation2 + $0x10f] sm:$0xff] }
 0x6ff   : > { %v3135_v35 = vpack.c.bf16 %v3119_v51, %v3118_v20  ;;  %v4503_v20 = vld [vmem:[#allocation2 + $0x18] sm:$0xff] }
 0x700   : > { %v14083_v52 = vadd.f32 %v4168_v56, %v3790_v31  ;;  %v3332_v31 = vld [vmem:[%s17128_s22 + $0xd8] sm:$0xff]  ;;  %v14110_v56 = vadd.f32 %v4448_v11, %v14033_v62  ;;  %v4449_v62 = vmul.f32 %v4384_v53, %v13972_v29  ;;  %v11117_v11 = vld [vmem:[%s16776_s11 + $0xc0] sm:$0xff] }
 0x701   : > { %v14091_v4 = vpop.permute.xlu1 %3414  ;;  %5452 = vmatpush.bf16.msrb.mxu2 %v11122_v47 }
 0x702   : > { %17174 = vst [vmem:[#allocation19_spill] sm:$0xff] %v14091_v4  ;;  %v3257_v25 = vpop.f32.mrf.mxu3  ;;  %v4386_v1 = vpop.f32.mrf.mxu2  ;;  %5171 = vmatpush.bf16.msrb.mxu0 %v11117_v11  ;;  %v3842_v11 = vld [vmem:[#allocation2 + $0x101] sm:$0xff] }
 0x703   : > { %v3510_v63 = vmul.f32 %v14030_v3, %v3257_v25  ;;  %17175 = vst [vmem:[#allocation5_spill] sm:$0xff] %v14110_v56  ;;  %v17176_v25 = vmov 1   ;;  %v4450_v5 = vmul.f32 %v4386_v1, %v13991_v6 }
 0x704   : > { %v14106_v55 = vpop.permute.xlu2 %4086  ;;  %11223 = vset.pattern.permute.xlu2 %v17141_v59 }
 0x705   : > { %v3792_v45 = vadd.f32 %v3731_v42, %v3510_v63  ;;  %v3734_v2 = vpop.f32.mrf.mxu1  ;;  %v3979_v34 = vpop.f32.mrf.mxu0  ;;  %3474 = vperm.xlu2 %11223, %v3332_v31   ;;  %11228 = vset.pattern.permute.xlu1 %v17176_v25 }
 0x706   : > { %v4169_v41 = vmul.f32 %v14035_v49, %v3979_v34  ;;  %4146 = vperm.xlu1 %11228, %v3334_v10   ;;  %v11121_v34 = vld [vmem:[%s16776_s11 + $0xe0] sm:$0xff] }
 0x707   : > { %10336 = vmatmul.msk.bf16.gmra.mxu3 %vm658_vm0, %v3135_v35  ;;  %10455 = vmatmul.msk.bf16.gmra.mxu2 %vm658_vm0, %v3135_v35  ;;  %v3841_v49 = vld [vmem:[#allocation2 + $0xf9] sm:$0xff] }
 0x708   : > { %v4201_v42 = vadd.f32 %v4169_v41, %v3791_v14  ;;  %10376 = vmatmul.msk.bf16.gmra.mxu1 %vm658_vm0, %v3608_v12  ;;  %10415 = vmatmul.msk.bf16.gmra.mxu0 %vm658_vm0, %v3857_v8  ;;  %v14134_v12 = vld [vmem:[%s17128_s22 + $0xf8] sm:$0xff]  ;;  %v14137_v41 = vadd.f32 %v4449_v62, %v14055_v32  ;;  %v3858_v6 = vpack.c.bf16 %v3842_v11, %v3841_v49 }
 0x709   : > { %5453 = vmatpush.bf16.msrb.mxu2 %v11121_v34  ;;  %v4753_v34 = vld [vmem:[#allocation2 + $0x19] sm:$0xff] }
 0x70a   : > { %v3260_v37 = vpop.f32.mrf.mxu3  ;;  %v4389_v27 = vpop.f32.mrf.mxu2  ;;  %17178 = vst [vmem:[#allocation22_spill] sm:$0xff] %v14137_v41 }
 0x70b   : > { %v3511_v35 = vmul.f32 %v14067_v50, %v3260_v37  ;;  %v4754_v37 = vld [vmem:[#allocation2 + $0x21] sm:$0xff] }
 0x70c   : > { %v14129_v53 = vpop.permute.xlu1 %4090  ;;  %v4785_v41 = vpack.c.bf16 %v4754_v37, %v4753_v34  ;;  %v4506_v37 = vld [vmem:[#allocation2 + $0x30] sm:$0xff] }
 0x70d   : > { %17177 = vst [vmem:[#allocation20_spill] sm:$0xff] %v14129_v53  ;;  %v3793_v47 = vadd.f32 %v3734_v2, %v3511_v35  ;;  %v3736_v10 = vpop.f32.mrf.mxu1  ;;  %v3981_v8 = vpop.f32.mrf.mxu0  ;;  %11225 = vset.pattern.permute.xlu2 %v17176_v25  ;;  %v4504_v2 = vld [vmem:[#allocation2 + $0x20] sm:$0xff] }
 0x70e   : > { %v4170_v14 = vmul.f32 %v14059_v26, %v3981_v8  ;;  %v14141_v51 = vpop.permute.xlu2 %3419  ;;  %4138 = vperm.xlu2 %11225, %v3332_v31   ;;  %11231 = vset.pattern.permute.xlu1 %v17141_v59  ;;  %v4251_v35 = vld [vmem:[#allocation2 + $0x107] sm:$0xff]  ;;  %v14148_v31 = vadd.f32 %v4450_v5, %v14083_v52 }
 0x70f   : > { %17179 = vst [vmem:[#allocation23_spill] sm:$0xff] %v14141_v51  ;;  %3494 = vperm.xlu1 %11231, %v14134_v12   ;;  %v4268_v1 = vpack.c.bf16 %v4252_v16, %v4251_v35 }
 0x710   : > { %v4202_v63 = vadd.f32 %v4170_v14, %v3792_v45  ;;  %v4535_v45 = vpack.c.bf16 %v4504_v2, %v4503_v20 }
 0x712   : > { %v3262_v32 = vpop.f32.mrf.mxu3  ;;  %v4391_v28 = vpop.f32.mrf.mxu2 }
 0x713   : > { %v3512_v62 = vmul.f32 %v14091_v4, %v3262_v32 }
 0x715   : > { %v3794_v8 = vadd.f32 %v3736_v10, %v3512_v62  ;;  %v3739_v26 = vpop.f32.mrf.mxu1  ;;  %v3984_v29 = vpop.f32.mrf.mxu0  ;;  %v4451_v10 = vmul.f32 %v4389_v27, %v14006_v30 }
 0x716   : > { %v4171_v14 = vmul.f32 %v14106_v55, %v3984_v29  ;;  %v14151_v56 = vpop.permute.xlu2 %4094  ;;  %4142 = vperm.xlu2 %11225, %v14019_v13   ;;  %v14156_v52 = vpop.permute.xlu1 %3424 }
 0x717   : > { %17180 = vst [vmem:[#allocation24_spill] sm:$0xff] %v14151_v56  ;;  %10456 = vmatmul.msk.bf16.gmra.mxu2 %vm658_vm0, %v4268_v1  ;;  %10481 = vmatmul.msk.bf16.vlgmr.msra.gmra.mxu3 %vm658_vm0, %v4535_v45  ;;  %v14162_v16 = vadd.f32 %v4451_v10, %v4201_v42  ;;  %v4505_v42 = vld [vmem:[#allocation2 + $0x28] sm:$0xff]  ;;  %v4756_v1 = vld [vmem:[#allocation2 + $0x31] sm:$0xff] }
 0x718   : > { %17181 = vst [vmem:[#allocation25_spill] sm:$0xff] %v14156_v52  ;;  %v4203_v5 = vadd.f32 %v4171_v14, %v3793_v47  ;;  %10416 = vmatmul.msk.bf16.gmra.mxu0 %vm658_vm0, %v3858_v6  ;;  %10521 = vmatmul.msk.bf16.vlgmr.msrb.gmra.mxu1 %vm658_vm0, %v4785_v41  ;;  %v4452_v6 = vmul.f32 %v4391_v28, %v14030_v3  ;;  %v5035_v45 = vld [vmem:[#allocation2 + $0x27] sm:$0xff]  ;;  %v5036_v14 = vld [vmem:[#allocation2 + $0x2f] sm:$0xff] }
 0x71a   : > { %v3265_v29 = vpop.f32.mrf.mxu3  ;;  %v4394_v49 = vpop.f32.mrf.mxu2  ;;  %v14173_v10 = vadd.f32 %v4452_v6, %v4202_v63  ;;  %v11128_v63 = vld [vmem:[%s16776_s11 + $0x118] sm:$0xff] }
 0x71b   : > { %v3513_v32 = vmul.f32 %v14141_v51, %v3265_v29  ;;  %5700 = vmatpush.bf16.msrb.mxu3 %v11128_v63 }
 0x71d   : > { %v3795_v13 = vadd.f32 %v3739_v26, %v3513_v32  ;;  %v3741_v20 = vpop.f32.mrf.mxu1  ;;  %v3986_v2 = vpop.f32.mrf.mxu0  ;;  %v4755_v26 = vld [vmem:[#allocation2 + $0x29] sm:$0xff] }
 0x71e   : > { %v4172_v62 = vmul.f32 %v14129_v53, %v3986_v2  ;;  %11229 = vset.pattern.permute.xlu2 %v17141_v59  ;;  %v14170_v41 = vpop.permute.xlu1 %4098  ;;  %v4536_v2 = vpack.c.bf16 %v4506_v37, %v4505_v42  ;;  %v4453_v53 = vmul.f32 %v4394_v49, %v14067_v50 }
 0x71f   : > { %v14166_v11 = vpop.permute.xlu2 %3429  ;;  %3489 = vperm.xlu2 %11229, %v14096_v19   ;;  %17183 = vst [vmem:[#allocation27_spill] sm:$0xff] %v14170_v41 }
 0x720   : > { %17182 = vst [vmem:[#allocation26_spill] sm:$0xff] %v14166_v11  ;;  %v4204_v27 = vadd.f32 %v4172_v62, %v3794_v8  ;;  %v4786_v8 = vpack.c.bf16 %v4756_v1, %v4755_v26  ;;  %v5067_v62 = vpack.c.bf16 %v5036_v14, %v5035_v45  ;;  %v14191_v37 = vadd.f32 %v4453_v53, %v4203_v5  ;;  %v5037_v53 = vld [vmem:[#allocation2 + $0x37] sm:$0xff]  ;;  %v5038_v5 = vld [vmem:[#allocation2 + $0x3f] sm:$0xff] }
 0x721   : > { %v5068_v50 = vpack.c.bf16 %v5038_v5, %v5037_v53 }
 0x722   : > { %v3267_v47 = vpop.f32.mrf.mxu3  ;;  %v4396_v34 = vpop.f32.mrf.mxu2 }
 0x723   : > { %v3514_v35 = vmul.f32 %v14156_v52, %v3267_v47  ;;  %v4454_v14 = vmul.f32 %v4396_v34, %v14091_v4 }
 0x725   : > { %v3796_v29 = vadd.f32 %v3741_v20, %v3514_v35  ;;  %v3744_v32 = vpop.f32.mrf.mxu1  ;;  %v3989_v19 = vpop.f32.mrf.mxu0 }
 0x726   : > { %v4173_v28 = vmul.f32 %v14151_v56, %v3989_v19 }
 0x727   : > { %10482 = vmatmul.msk.bf16.gmra.mxu3 %vm658_vm0, %v4536_v2  ;;  %10601 = vmatmul.msk.bf16.vlgmr.msrb.gmra.mxu2 %vm658_vm0, %v4536_v2 }
 0x728   : > { %v4205_v47 = vadd.f32 %v4173_v28, %v3795_v13  ;;  %10522 = vmatmul.msk.bf16.gmra.mxu1 %vm658_vm0, %v4786_v8  ;;  %10561 = vmatmul.msk.bf16.vlgmr.msrb.gmra.mxu0 %vm658_vm0, %v5067_v62  ;;  %v14184_v20 = vpop.permute.xlu2 %4102  ;;  %v14189_v13 = vpop.permute.xlu1 %3434  ;;  %v4507_v8 = vld [vmem:[#allocation2 + $0x38] sm:$0xff]  ;;  %v4508_v62 = vld [vmem:[#allocation2 + $0x40] sm:$0xff] }
 0x729   : > { %17184 = vst [vmem:[#allocation28_spill] sm:$0xff] %v14184_v20  ;;  %11232 = vset.pattern.permute.xlu2 %v17176_v25 }
 0x72a   : > { %v3270_v6 = vpop.f32.mrf.mxu3  ;;  %v4399_v42 = vpop.f32.mrf.mxu2  ;;  %4154 = vperm.xlu2 %11232, %v14134_v12   ;;  %17185 = vst [vmem:[#allocation29_spill] sm:$0xff] %v14189_v13  ;;  %v4757_v12 = vld [vmem:[#allocation2 + $0x39] sm:$0xff] }
 0x72b   : > { %v3515_v49 = vmul.f32 %v14166_v11, %v3270_v6  ;;  %v4758_v6 = vld [vmem:[#allocation2 + $0x41] sm:$0xff] }
 0x72c   : > { %v4787_v4 = vpack.c.bf16 %v4758_v6, %v4757_v12 }
 0x72d   : > { %v3797_v26 = vadd.f32 %v3744_v32, %v3515_v49  ;;  %v3746_v35 = vpop.f32.mrf.mxu1  ;;  %v3991_v1 = vpop.f32.mrf.mxu0  ;;  %v14199_v49 = vadd.f32 %v4454_v14, %v4204_v27 }
 0x72e   : > { %v4174_v45 = vmul.f32 %v14170_v41, %v3991_v1 }
 0x72f   : > { %17187 = vst [vmem:[#allocation31_spill] sm:$0xff] %v14199_v49 }
 0x730   : > { %v4206_v19 = vadd.f32 %v4174_v45, %v3796_v29  ;;  %v4537_v29 = vpack.c.bf16 %v4508_v62, %v4507_v8  ;;  %v14202_v3 = vpop.permute.xlu1 %4106  ;;  %v4455_v8 = vmul.f32 %v4399_v42, %v14141_v51  ;;  %v5040_v51 = vld [vmem:[#allocation2 + $0x4f] sm:$0xff] }
 0x731   : > { %17188 = vst [vmem:[#allocation32_spill] sm:$0xff] %v14202_v3 }
 0x732   : > { %v3272_v2 = vpop.f32.mrf.mxu3  ;;  %v4401_v28 = vpop.f32.mrf.mxu2  ;;  %11233 = vset.pattern.permute.xlu2 %v17141_v59 }
 0x733   : > { %v3516_v63 = vmul.f32 %v14189_v13, %v3272_v2  ;;  %v14197_v32 = vpop.permute.xlu2 %3439 }
 0x734   : > { %17186 = vst [vmem:[#allocation30_spill] sm:$0xff] %v14197_v32 }
 0x735   : > { %v3798_v1 = vadd.f32 %v3746_v35, %v3516_v63  ;;  %v3749_v41 = vpop.f32.mrf.mxu1  ;;  %v3994_v34 = vpop.f32.mrf.mxu0 }
 0x736   : > { %v4175_v45 = vmul.f32 %v14184_v20, %v3994_v34 }
 0x737   : > { %10483 = vmatmul.msk.bf16.gmra.mxu3 %vm658_vm0, %v4537_v29  ;;  %10602 = vmatmul.msk.bf16.gmra.mxu2 %vm658_vm0, %v4537_v29  ;;  %v4509_v29 = vld [vmem:[#allocation2 + $0x48] sm:$0xff] }
 0x738   : > { %v4207_v2 = vadd.f32 %v4175_v45, %v3797_v26  ;;  %10523 = vmatmul.msk.bf16.gmra.mxu1 %vm658_vm0, %v4787_v4  ;;  %10562 = vmatmul.msk.bf16.gmra.mxu0 %vm658_vm0, %v5068_v50  ;;  %v14217_v4 = vadd.f32 %v4455_v8, %v4205_v47  ;;  %v4510_v45 = vld [vmem:[#allocation2 + $0x50] sm:$0xff] }
 0x73a   : > { %v3275_v27 = vpop.f32.mrf.mxu3  ;;  %v4404_v35 = vpop.f32.mrf.mxu2  ;;  %17191 = vst [vmem:[#allocation35_spill] sm:$0xff] %v14217_v4 }
 0x73b   : > { %v3517_v14 = vmul.f32 %v14197_v32, %v3275_v27  ;;  %v14215_v26 = vpop.permute.xlu1 %3444  ;;  %v4759_v27 = vld [vmem:[#allocation2 + $0x49] sm:$0xff] }
 0x73c   : > { %v14211_v53 = vpop.permute.xlu2 %4110  ;;  %17190 = vst [vmem:[#allocation34_spill] sm:$0xff] %v14215_v26 }
 0x73d   : > { %v3799_v62 = vadd.f32 %v3749_v41, %v3517_v14  ;;  %v3751_v12 = vpop.f32.mrf.mxu1  ;;  %v3996_v63 = vpop.f32.mrf.mxu0  ;;  %17189 = vst [vmem:[#allocation33_spill] sm:$0xff] %v14211_v53  ;;  %v4760_v41 = vld [vmem:[#allocation2 + $0x51] sm:$0xff]  ;;  %v5039_v14 = vld [vmem:[#allocation2 + $0x47] sm:$0xff] }
 0x73e   : > { %v4176_v6 = vmul.f32 %v14202_v3, %v3996_v63  ;;  %v4456_v63 = vmul.f32 %v4401_v28, %v14156_v52  ;;  %v4788_v47 = vpack.c.bf16 %v4760_v41, %v4759_v27  ;;  %v5069_v8 = vpack.c.bf16 %v5040_v51, %v5039_v14  ;;  %v4761_v52 = vld [vmem:[#allocation2 + $0x59] sm:$0xff] }
 0x73f   : > { %v4457_v51 = vmul.f32 %v4404_v35, %v14166_v11  ;;  %v5041_v35 = vld [vmem:[#allocation2 + $0x57] sm:$0xff] }
 0x740   : > { %v14213_v5 = vadd.f32 %v4176_v6, %v3798_v1  ;;  %v4538_v6 = vpack.c.bf16 %v4510_v45, %v4509_v29  ;;  %v14228_v28 = vadd.f32 %v4456_v63, %v4206_v19 }
 0x742   : > { %v3277_v50 = vpop.f32.mrf.mxu3  ;;  %v4406_v34 = vpop.f32.mrf.mxu2  ;;  %17193 = vst [vmem:[#allocation37_spill] sm:$0xff] %v14228_v28 }
 0x743   : > { %v3518_v42 = vmul.f32 %v14215_v26, %v3277_v50 }
 0x745   : > { %v3800_v3 = vadd.f32 %v3751_v12, %v3518_v42  ;;  %v3754_v30 = vpop.f32.mrf.mxu1  ;;  %v3999_v1 = vpop.f32.mrf.mxu0 }
 0x746   : > { %v4177_v59 = vmul.f32 %v14211_v53, %v3999_v1  ;;  %v14226_v50 = vpop.permute.xlu2 %3449  ;;  %v14230_v12 = vpop.permute.xlu1 %4114 }
 0x747   : > { %10484 = vmatmul.msk.bf16.gmra.mxu3 %vm658_vm0, %v4538_v6  ;;  %10603 = vmatmul.msk.bf16.gmra.mxu2 %vm658_vm0, %v4538_v6  ;;  %17192 = vst [vmem:[#allocation36_spill] sm:$0xff] %v14226_v50  ;;  %v14239_v6 = vadd.f32 %v4457_v51, %v4207_v2 }
 0x748   : > { %v4209_v25 = vadd.f32 %v4177_v59, %v3799_v62  ;;  %10524 = vmatmul.msk.bf16.gmra.mxu1 %vm658_vm0, %v4788_v47  ;;  %10563 = vmatmul.msk.bf16.gmra.mxu0 %vm658_vm0, %v5069_v8  ;;  %17194 = vst [vmem:[#allocation38_spill] sm:$0xff] %v14230_v12  ;;  %v14235_v62 = vpop.permute.xlu0 %3454  ;;  %v4511_v47 = vld [vmem:[#allocation2 + $0x58] sm:$0xff]  ;;  %v4512_v8 = vld [vmem:[#allocation2 + $0x60] sm:$0xff] }
 0x749   : > { %17195 = vst [vmem:[#allocation39_spill] sm:$0xff] %v14235_v62 }
 0x74a   : > { %v3280_v29 = vpop.f32.mrf.mxu3  ;;  %v4409_v45 = vpop.f32.mrf.mxu2  ;;  %17196 = vst [vmem:[#allocation40_spill] sm:$0xff] %v14239_v6 }
 0x74b   : > { %v3519_v27 = vmul.f32 %v14226_v50, %v3280_v29 }
 0x74d   : > { %v3801_v42 = vadd.f32 %v3754_v30, %v3519_v27  ;;  %v3756_v41 = vpop.f32.mrf.mxu1  ;;  %v4001_v14 = vpop.f32.mrf.mxu0  ;;  %v4762_v30 = vld [vmem:[#allocation2 + $0x61] sm:$0xff] }
 0x74e   : > { %v4178_v59 = vmul.f32 %v14230_v12, %v4001_v14  ;;  %v14242_v53 = vpop.permute.xlu1 %4118  ;;  %v5042_v27 = vld [vmem:[#allocation2 + $0x5f] sm:$0xff]  ;;  %v4458_v14 = vmul.f32 %v4406_v34, %v14189_v13  ;;  %v4789_v51 = vpack.c.bf16 %v4762_v30, %v4761_v52  ;;  %v4514_v13 = vld [vmem:[#allocation2 + $0x70] sm:$0xff] }
 0x74f   : > { %17197 = vst [vmem:[#allocation41_spill] sm:$0xff] %v14242_v53  ;;  %v5070_v6 = vpack.c.bf16 %v5042_v27, %v5041_v35 }
 0x750   : > { %v14237_v1 = vadd.f32 %v4178_v59, %v3800_v3  ;;  %v4539_v59 = vpack.c.bf16 %v4512_v8, %v4511_v47  ;;  %v14254_v34 = vpop.permute.xlu0 %3459 }
 0x751   : > { %17199 = vst [vmem:[#allocation43_spill] sm:$0xff] %v14254_v34 }
 0x752   : > { %v3282_v19 = vpop.f32.mrf.mxu3  ;;  %v4411_v63 = vpop.f32.mrf.mxu2 }
 0x753   : > { %v3520_v29 = vmul.f32 %v14235_v62, %v3282_v19  ;;  %v14248_v19 = vpop.permute.xlu2 %4122 }
 0x754   : > { %17198 = vst [vmem:[#allocation42_spill] sm:$0xff] %v14248_v19 }
 0x755   : > { %v3802_v12 = vadd.f32 %v3756_v41, %v3520_v29  ;;  %v3759_v11 = vpop.f32.mrf.mxu1  ;;  %v4004_v3 = vpop.f32.mrf.mxu0  ;;  %v14257_v41 = vadd.f32 %v4458_v14, %v14213_v5  ;;  %v4459_v29 = vmul.f32 %v4409_v45, %v14197_v32  ;;  %v4764_v32 = vld [vmem:[#allocation2 + $0x71] sm:$0xff] }
 0x756   : > { %v4179_v2 = vmul.f32 %v14242_v53, %v4004_v3  ;;  %v14262_v3 = vpop.permute.xlu1 %3464  ;;  %v5043_v53 = vld [vmem:[#allocation2 + $0x67] sm:$0xff] }
 0x757   : > { %10485 = vmatmul.msk.bf16.gmra.mxu3 %vm658_vm0, %v4539_v59  ;;  %10604 = vmatmul.msk.bf16.gmra.mxu2 %vm658_vm0, %v4539_v59  ;;  %17200 = vst [vmem:[#allocation44_spill] sm:$0xff] %v14257_v41 }
 0x758   : > { %v14250_v20 = vadd.f32 %v4179_v2, %v3801_v42  ;;  %10525 = vmatmul.msk.bf16.gmra.mxu1 %vm658_vm0, %v4789_v51  ;;  %10564 = vmatmul.msk.bf16.gmra.mxu0 %vm658_vm0, %v5070_v6  ;;  %17201 = vst [vmem:[#allocation45_spill] sm:$0xff] %v14262_v3  ;;  %v14268_v2 = vadd.f32 %v4459_v29, %v4209_v25  ;;  %v4513_v51 = vld [vmem:[#allocation2 + $0x68] sm:$0xff] }
 0x75a   : > { %v3285_v47 = vpop.f32.mrf.mxu3  ;;  %v4414_v52 = vpop.f32.mrf.mxu2  ;;  %17203 = vst [vmem:[#allocation47_spill] sm:$0xff] %v14268_v2 }
 0x75b   : > { %v3521_v8 = vmul.f32 %v14254_v34, %v3285_v47  ;;  %v14266_v6 = vpop.permute.xlu2 %4126  ;;  %v4763_v47 = vld [vmem:[#allocation2 + $0x69] sm:$0xff] }
 0x75c   : > { %17202 = vst [vmem:[#allocation46_spill] sm:$0xff] %v14266_v6  ;;  %v4790_v25 = vpack.c.bf16 %v4764_v32, %v4763_v47 }
 0x75d   : > { %v3761_v30 = vpop.f32.mrf.mxu1  ;;  %v4006_v35 = vpop.f32.mrf.mxu0  ;;  %v3803_v27 = vadd.f32 %v3759_v11, %v3521_v8  ;;  %v5044_v11 = vld [vmem:[#allocation2 + $0x6f] sm:$0xff]  ;;  %v4460_v8 = vmul.f32 %v4411_v63, %v14215_v26  ;;  %v4765_v26 = vld [vmem:[#allocation2 + $0x79] sm:$0xff] }
 0x75e   : > { %v4180_v42 = vmul.f32 %v14248_v19, %v4006_v35  ;;  %v5071_v29 = vpack.c.bf16 %v5044_v11, %v5043_v53 }
 0x75f   : > { %v14287_v32 = vadd.f32 %v4460_v8, %v14237_v1  ;;  %v4515_v1 = vld [vmem:[#allocation2 + $0x78] sm:$0xff]  ;;  %v4516_v8 = vld [vmem:[#allocation2 + $0x80] sm:$0xff] }
 0x760   : > { %v14264_v59 = vadd.f32 %v4180_v42, %v3802_v12  ;;  %v4540_v42 = vpack.c.bf16 %v4514_v13, %v4513_v51  ;;  %v11127_v13 = vld [vmem:[%s16776_s11 + $0x110] sm:$0xff] }
 0x761   : > { %17206 = vst [vmem:[#allocation50_spill] sm:$0xff] %v14287_v32  ;;  %5701 = vmatpush.bf16.msrb.mxu3 %v11127_v13 }
 0x762   : > { %v3287_v5 = vpop.f32.mrf.mxu3  ;;  %v4416_v14 = vpop.f32.mrf.mxu2 }
 0x763   : > { %v3522_v45 = vmul.f32 %v14262_v3, %v3287_v5  ;;  %v14279_v5 = vpop.permute.xlu1 %3469  ;;  %v14284_v63 = vpop.permute.xlu2 %3474 }
 0x764   : > { %17204 = vst [vmem:[#allocation48_spill] sm:$0xff] %v14279_v5 }
 0x765   : > { %v3804_v35 = vadd.f32 %v3761_v30, %v3522_v45  ;;  %v3764_v19 = vpop.f32.mrf.mxu1  ;;  %v4009_v12 = vpop.f32.mrf.mxu0  ;;  %17205 = vst [vmem:[#allocation49_spill] sm:$0xff] %v14284_v63 }
 0x766   : > { %v4181_v41 = vmul.f32 %v14266_v6, %v4009_v12  ;;  %v4766_v6 = vld [vmem:[#allocation2 + $0x81] sm:$0xff] }
 0x767   : > { %10486 = vmatmul.msk.bf16.gmra.mxu3 %vm658_vm0, %v4540_v42  ;;  %10605 = vmatmul.msk.bf16.gmra.mxu2 %vm658_vm0, %v4540_v42  ;;  %v4461_v42 = vmul.f32 %v4414_v52, %v14226_v50  ;;  %v4791_v50 = vpack.c.bf16 %v4766_v6, %v4765_v26 }
 0x768   : > { %v14275_v2 = vadd.f32 %v4181_v41, %v3803_v27  ;;  %10526 = vmatmul.msk.bf16.gmra.mxu1 %vm658_vm0, %v4790_v25  ;;  %10565 = vmatmul.msk.bf16.gmra.mxu0 %vm658_vm0, %v5071_v29  ;;  %v14290_v27 = vpop.permute.xlu0 %4130 }
 0x769   : > { %17207 = vst [vmem:[#allocation51_spill] sm:$0xff] %v14290_v27  ;;  %v14305_v4 = vadd.f32 %v4461_v42, %v14250_v20 }
 0x76a   : > { %v3290_v53 = vpop.f32.mrf.mxu3  ;;  %v4419_v30 = vpop.f32.mrf.mxu2 }
 0x76b   : > { %v3523_v41 = vmul.f32 %v14279_v5, %v3290_v53  ;;  %v14299_v53 = vpop.permute.xlu1 %4134  ;;  %v14301_v32 = vpop.permute.xlu2 %4138  ;;  %17210 = vst [vmem:[#allocation54_spill] sm:$0xff] %v14305_v4  ;;  %v4768_v4 = vld [vmem:[#allocation2 + $0x91] sm:$0xff] }
 0x76c   : > { %17208 = vst [vmem:[#allocation52_spill] sm:$0xff] %v14299_v53 }
 0x76d   : > { %v3805_v51 = vadd.f32 %v3764_v19, %v3523_v41  ;;  %v3766_v47 = vpop.f32.mrf.mxu1  ;;  %v4011_v45 = vpop.f32.mrf.mxu0  ;;  %v5045_v19 = vld [vmem:[#allocation2 + $0x77] sm:$0xff]  ;;  %v5046_v41 = vld [vmem:[#allocation2 + $0x7f] sm:$0xff]  ;;  %17209 = vst [vmem:[#allocation53_spill] sm:$0xff] %v14301_v32 }
 0x76e   : > { %v4182_v11 = vmul.f32 %v14290_v27, %v4011_v45  ;;  %v4541_v27 = vpack.c.bf16 %v4516_v8, %v4515_v1  ;;  %v5072_v28 = vpack.c.bf16 %v5046_v41, %v5045_v19  ;;  %v4462_v1 = vmul.f32 %v4416_v14, %v14235_v62  ;;  %v4767_v62 = vld [vmem:[#allocation2 + $0x89] sm:$0xff] }
 0x770   : > { %v14293_v12 = vadd.f32 %v4182_v11, %v3804_v35 }
 0x772   : > { %v3292_v25 = vpop.f32.mrf.mxu3  ;;  %v14296_v29 = vpop.f32.mrf.mxu2 }
 0x773   : > { %v3524_v13 = vmul.f32 %v14284_v63, %v3292_v25  ;;  %v14317_v20 = vpop.permute.xlu1 %3484 }
 0x774   : > { %17212 = vst [vmem:[#allocation56_spill] sm:$0xff] %v14317_v20 }
 0x775   : > { %v3806_v45 = vadd.f32 %v3766_v47, %v3524_v13  ;;  %v3769_v35 = vpop.f32.mrf.mxu1  ;;  %v4014_v11 = vpop.f32.mrf.mxu0 }
 0x776   : > { %v4183_v52 = vmul.f32 %v14299_v53, %v4014_v11  ;;  %v14313_v47 = vpop.permute.xlu0 %3479  ;;  %v4517_v11 = vld [vmem:[#allocation2 + $0x88] sm:$0xff] }
 0x777   : > { %10487 = vmatmul.msk.bf16.gmra.mxu3 %vm658_vm0, %v4541_v27  ;;  %10606 = vmatmul.msk.bf16.gmra.mxu2 %vm658_vm0, %v4541_v27  ;;  %17211 = vst [vmem:[#allocation55_spill] sm:$0xff] %v14313_v47 }
 0x778   : > { %v14309_v25 = vadd.f32 %v4183_v52, %v3805_v51  ;;  %10527 = vmatmul.msk.bf16.gmra.mxu1 %vm658_vm0, %v4791_v50  ;;  %10566 = vmatmul.msk.bf16.gmra.mxu0 %vm658_vm0, %v5072_v28  ;;  %v14320_v51 = vpop.permute.xlu2 %4142  ;;  %v14323_v50 = vadd.f32 %v4462_v1, %v14264_v59  ;;  %v4518_v52 = vld [vmem:[#allocation2 + $0x90] sm:$0xff] }
 0x779   : > { %17213 = vst [vmem:[#allocation57_spill] sm:$0xff] %v14320_v51  ;;  %v4542_v49 = vpack.c.bf16 %v4518_v52, %v4517_v11 }
 0x77a   : > { %v3295_v8 = vpop.f32.mrf.mxu3  ;;  %v4424_v26 = vpop.f32.mrf.mxu2 }
 0x77b   : > { %v3525_v6 = vmul.f32 %v14313_v47, %v3295_v8  ;;  %v4463_v8 = vmul.f32 %v4419_v30, %v14254_v34 }
 0x77d   : > { %v3771_v42 = vpop.f32.mrf.mxu1  ;;  %v4016_v13 = vpop.f32.mrf.mxu0  ;;  %v3807_v19 = vadd.f32 %v3769_v35, %v3525_v6  ;;  %v5047_v35 = vld [vmem:[#allocation2 + $0x87] sm:$0xff]  ;;  %v5048_v6 = vld [vmem:[#allocation2 + $0x8f] sm:$0xff]  ;;  %v14335_v30 = vadd.f32 %v4463_v8, %v14275_v2 }
 0x77e   : > { %v4184_v27 = vmul.f32 %v14301_v32, %v4016_v13  ;;  %v5073_v1 = vpack.c.bf16 %v5048_v6, %v5047_v35 }
 0x780   : > { %v14325_v28 = vadd.f32 %v4184_v27, %v3806_v45  ;;  %v4792_v45 = vpack.c.bf16 %v4768_v4, %v4767_v62  ;;  %v14330_v27 = vpop.permute.xlu1 %4146  ;;  %v4464_v62 = vmul.f32 %v14296_v29, %v14262_v3  ;;  %v4465_v29 = vmul.f32 %v4424_v26, %v14279_v5 }
 0x781   : > { %17214 = vst [vmem:[#allocation58_spill] sm:$0xff] %v14330_v27 }
 0x782   : > { %v3297_v41 = vpop.f32.mrf.mxu3  ;;  %v4426_v14 = vpop.f32.mrf.mxu2  ;;  %v14350_v52 = vadd.f32 %v4464_v62, %v14293_v12  ;;  %v4769_v12 = vld [vmem:[#allocation2 + $0x99] sm:$0xff]  ;;  %v14363_v26 = vadd.f32 %v4465_v29, %v14309_v25 }
 0x783   : > { %v3526_v53 = vmul.f32 %v14317_v20, %v3297_v41  ;;  %v5049_v62 = vld [vmem:[#allocation2 + $0x97] sm:$0xff] }
 0x785   : > { %v3808_v13 = vadd.f32 %v3771_v42, %v3526_v53  ;;  %v3774_v32 = vpop.f32.mrf.mxu1  ;;  %v4019_v56 = vpop.f32.mrf.mxu0 }
 0x786   : > { %v4185_v59 = vmul.f32 %v14320_v51, %v4019_v56  ;;  %v14341_v53 = vpop.permute.xlu2 %3489 }
 0x787   : > { %10488 = vmatmul.msk.bf16.gmra.mxu3 %vm658_vm0, %v4542_v49  ;;  %10607 = vmatmul.msk.bf16.gmra.mxu2 %vm658_vm0, %v4542_v49  ;;  %17215 = vst [vmem:[#allocation59_spill] sm:$0xff] %v14341_v53 }
 0x788   : > { %v14337_v41 = vadd.f32 %v4185_v59, %v3807_v19  ;;  %10528 = vmatmul.msk.bf16.gmra.mxu1 %vm658_vm0, %v4792_v45  ;;  %10567 = vmatmul.msk.bf16.gmra.mxu0 %vm658_vm0, %v5073_v1  ;;  %v14354_v35 = vpop.permute.xlu1 %3494  ;;  %v4520_v45 = vld [vmem:[#allocation2 + $0xa0] sm:$0xff] }
 0x789   : > { %17216 = vst [vmem:[#allocation60_spill] sm:$0xff] %v14354_v35 }
 0x78a   : > { %v3300_v56 = vpop.f32.mrf.mxu3  ;;  %v4429_v4 = vpop.f32.mrf.mxu2 }
 0x78b   : > { %v3527_v42 = vmul.f32 %v14341_v53, %v3300_v56  ;;  %v5050_v56 = vld [vmem:[#allocation2 + $0x9f] sm:$0xff] }
 0x78d   : > { %v14346_v11 = vadd.f32 %v3774_v32, %v3527_v42  ;;  %v3776_v49 = vpop.f32.mrf.mxu1  ;;  %v4021_v2 = vpop.f32.mrf.mxu0  ;;  %v4770_v32 = vld [vmem:[#allocation2 + $0xa1] sm:$0xff]  ;;  %v4519_v42 = vld [vmem:[#allocation2 + $0x98] sm:$0xff] }
 0x78e   : > { %v4186_v19 = vmul.f32 %v14330_v27, %v4021_v2  ;;  %v4543_v27 = vpack.c.bf16 %v4520_v45, %v4519_v42  ;;  %v4466_v45 = vmul.f32 %v4426_v14, %v14284_v63  ;;  %v4522_v14 = vld [vmem:[#allocation2 + $0xb0] sm:$0xff]  ;;  %v4521_v63 = vld [vmem:[#allocation2 + $0xa8] sm:$0xff] }
 0x790   : > { %v14352_v8 = vadd.f32 %v4186_v19, %v3808_v13  ;;  %v14358_v13 = vpack.c.bf16 %v4770_v32, %v4769_v12  ;;  %v5074_v19 = vpack.c.bf16 %v5050_v56, %v5049_v62  ;;  %v14371_v56 = vpop.permute.xlu2 %4154  ;;  %v14375_v29 = vadd.f32 %v4466_v45, %v14325_v28  ;;  %v4771_v45 = vld [vmem:[#allocation2 + $0xa9] sm:$0xff] }
 0x791   : > { %17218 = vst [vmem:[#allocation62_spill] sm:$0xff] %v14371_v56  ;;  %v4544_v28 = vpack.c.bf16 %v4522_v14, %v4521_v63  ;;  %v14398_v63 = vpop.permute.xlu0 %4150 }
 0x792   : > { %v3302_v6 = vpop.f32.mrf.mxu3  ;;  %v4431_v59 = vpop.f32.mrf.mxu2  ;;  %17217 = vst [vmem:[#allocation61_spill] sm:$0xff] %v14358_v13 }
 0x793   : > { %v3528_v1 = vmul.f32 %v14354_v35, %v3302_v6  ;;  %17219 = vst [vmem:[#allocation63_spill] sm:$0xff] %v14398_v63 }
 0x795   : > { %v3810_v3 = vadd.f32 %v3776_v49, %v3528_v1  ;;  %v4024_v34 = vpop.f32.mrf.mxu0  ;;  %v4891_v2 = vpop.f32.mrf.mxu1 }
 0x796   : > { %v4971_v1 = vmul.f32 %v4891_v2, %v13802_v21  ;;  %v4467_v2 = vmul.f32 %v4429_v4, %v14313_v47 }
 0x797   : > { %10489 = vmatmul.msk.bf16.gmra.mxu3 %vm658_vm0, %v4543_v27  ;;  %10608 = vmatmul.msk.bf16.gmra.mxu2 %vm658_vm0, %v4543_v27 }
 0x798   : > { %10529 = vmatmul.msk.bf16.gmra.mxu1 %vm658_vm0, %v14358_v13  ;;  %10568 = vmatmul.msk.bf16.gmra.mxu0 %vm658_vm0, %v5074_v19 }
 0x79a   : > { %v4434_v49 = vpop.f32.mrf.mxu2  ;;  %v4641_v6 = vpop.f32.mrf.mxu3 }
 0x79b   : > { %v4721_v32 = vadd.f32 %v4641_v6, %v13903_v43 }
 0x79d   : > { %v5003_v42 = vadd.f32 %v4971_v1, %v4721_v32  ;;  %v4026_v27 = vpop.f32.mrf.mxu0  ;;  %v4893_v12 = vpop.f32.mrf.mxu1  ;;  %v4772_v1 = vld [vmem:[#allocation2 + $0xb1] sm:$0xff] }
 0x79e   : > { %v4188_v25 = vmul.f32 %v14371_v56, %v4026_v27  ;;  %v4972_v43 = vmul.f32 %v4893_v12, %v13824_v22  ;;  %v5052_v32 = vld [vmem:[#allocation2 + $0xaf] sm:$0xff]  ;;  %v14385_v13 = vpack.c.bf16 %v4772_v1, %v4771_v45  ;;  %v4468_v12 = vmul.f32 %v4431_v59, %v14317_v20 }
 0x79f   : > { %v5572_v20 = vld [vmem:[#allocation2 + $0x51] sm:$0xff] }
 0x7a0   : > { %v14377_v62 = vadd.f32 %v4188_v25, %v3810_v3  ;;  %v5051_v3 = vld [vmem:[#allocation2 + $0xa7] sm:$0xff] }
 0x7a1   : > { %v5075_v51 = vpack.c.bf16 %v5052_v32, %v5051_v3  ;;  %v14408_v32 = vadd.f32 %v4468_v12, %v14352_v8 }
 0x7a2   : > { %v14379_v19 = vpop.f32.mrf.mxu2  ;;  %v4643_v5 = vpop.f32.mrf.mxu3 }
 0x7a3   : > { %v4722_v6 = vadd.f32 %v4643_v5, %v13927_v15  ;;  %v14390_v15 = vadd.f32 %v4467_v2, %v14337_v41 }
 0x7a5   : > { %v5004_v21 = vadd.f32 %v4972_v43, %v4722_v6  ;;  %v4896_v27 = vpop.f32.mrf.mxu1  ;;  %v5173_v56 = vpop.f32.mrf.mxu0 }
 0x7a6   : > { %v5253_v25 = vmul.f32 %v5173_v56, %v13793_v58  ;;  %v11126_v58 = vld [vmem:[%s16776_s11 + $0x108] sm:$0xff]  ;;  %v4973_v41 = vmul.f32 %v4896_v27, %v13844_v9  ;;  %v4524_v27 = vld [vmem:[#allocation2 + $0xc0] sm:$0xff] }
 0x7a7   : > { %10490 = vmatmul.msk.bf16.gmra.mxu3 %vm658_vm0, %v4544_v28  ;;  %10609 = vmatmul.msk.bf16.gmra.mxu2 %vm658_vm0, %v4544_v28 }
 0x7a8   : > { %10530 = vmatmul.msk.bf16.gmra.mxu1 %vm658_vm0, %v14385_v13  ;;  %10569 = vmatmul.msk.bf16.gmra.mxu0 %vm658_vm0, %v5075_v51  ;;  %v5285_v5 = vadd.f32 %v5253_v25, %v5003_v42  ;;  %v4187_v51 = vmul.f32 %v14398_v63, %v4024_v34 }
 0x7a9   : > { %5702 = vmatpush.bf16.msrb.mxu3 %v11126_v58  ;;  %v4774_v58 = vld [vmem:[#allocation2 + $0xc1] sm:$0xff] }
 0x7aa   : > { %v4646_v4 = vpop.f32.mrf.mxu3  ;;  %v5455_v56 = vpop.f32.mrf.mxu2  ;;  %v4219_v45 = vadd.f32 %v4187_v51, %v14346_v11  ;;  %v5053_v11 = vld [vmem:[#allocation2 + $0xb7] sm:$0xff] }
 0x7ab   : > { %v4723_v14 = vadd.f32 %v4646_v4, %v13951_v48  ;;  %v14403_v2 = vadd.f32 %v5455_v56, %v5285_v5  ;;  %v4469_v48 = vmul.f32 %v4434_v49, %v14341_v53  ;;  %v5054_v4 = vld [vmem:[#allocation2 + $0xbf] sm:$0xff]  ;;  %v5571_v53 = vld [vmem:[#allocation2 + $0x49] sm:$0xff] }
 0x7ac   : > { %v11132_v49 = vld [vmem:[%s16778_s13 + $0x18] sm:$0xff] }
 0x7ad   : > { %v5005_v42 = vadd.f32 %v4973_v41, %v4723_v14  ;;  %v4898_v43 = vpop.f32.mrf.mxu1  ;;  %v5175_v6 = vpop.f32.mrf.mxu0  ;;  %v4773_v41 = vld [vmem:[#allocation2 + $0xb9] sm:$0xff]  ;;  %6081 = vmatpush.bf16.msra.mxu1 %v11132_v49  ;;  %v4775_v49 = vld [vmem:[#allocation2 + $0xc9] sm:$0xff] }
 0x7ae   : > { %v5254_v1 = vmul.f32 %v5175_v6, %v13817_v39  ;;  %v4974_v25 = vmul.f32 %v4898_v43, %v13847_v18  ;;  %v4523_v39 = vld [vmem:[#allocation2 + $0xb8] sm:$0xff]  ;;  %v4795_v51 = vpack.c.bf16 %v4774_v58, %v4773_v41  ;;  %v5076_v6 = vpack.c.bf16 %v5054_v4, %v5053_v11  ;;  %v5056_v41 = vld [vmem:[#allocation2 + $0xcf] sm:$0xff] }
 0x7af   : > { %v4525_v11 = vld [vmem:[#allocation2 + $0xc8] sm:$0xff] }
 0x7b0   : > { %v5286_v28 = vadd.f32 %v5254_v1, %v5004_v21  ;;  %v4545_v21 = vpack.c.bf16 %v4524_v27, %v4523_v39 }
 0x7b2   : > { %v4648_v59 = vpop.f32.mrf.mxu3  ;;  %v5457_v3 = vpop.f32.mrf.mxu2 }
 0x7b3   : > { %v4724_v34 = vadd.f32 %v4648_v59, %v13965_v7  ;;  %v14414_v5 = vadd.f32 %v5457_v3, %v5286_v28  ;;  %v14422_v7 = vadd.f32 %v4469_v48, %v4219_v45  ;;  %v4470_v28 = vmul.f32 %v14379_v19, %v14354_v35 }
 0x7b5   : > { %v5006_v56 = vadd.f32 %v4974_v25, %v4724_v34  ;;  %v4901_v8 = vpop.f32.mrf.mxu1  ;;  %v5178_v12 = vpop.f32.mrf.mxu0  ;;  %v14434_v58 = vadd.f32 %v4470_v28, %v14377_v62  ;;  %v5055_v62 = vld [vmem:[#allocation2 + $0xc7] sm:$0xff] }
 0x7b6   : > { %v5255_v14 = vmul.f32 %v5178_v12, %v13829_v36  ;;  %v4975_v59 = vmul.f32 %v4901_v8, %v13876_v38  ;;  %v4526_v12 = vld [vmem:[#allocation2 + $0xd0] sm:$0xff] }
 0x7b7   : > { %10491 = vmatmul.msk.bf16.gmra.mxu3 %vm658_vm0, %v4545_v21  ;;  %10610 = vmatmul.msk.bf16.gmra.mxu2 %vm658_vm0, %v4545_v21 }
 0x7b8   : > { %10531 = vmatmul.msk.bf16.gmra.mxu1 %vm658_vm0, %v4795_v51  ;;  %10570 = vmatmul.msk.bf16.gmra.mxu0 %vm658_vm0, %v5076_v6  ;;  %v5287_v43 = vadd.f32 %v5255_v14, %v5005_v42 }
 0x7ba   : > { %v4651_v1 = vpop.f32.mrf.mxu3  ;;  %v5460_v36 = vpop.f32.mrf.mxu2 }
 0x7bb   : > { %v4725_v3 = vadd.f32 %v4651_v1, %v13986_v23  ;;  %v14430_v27 = vadd.f32 %v5460_v36, %v5287_v43  ;;  %v4776_v23 = vld [vmem:[#allocation2 + $0xd1] sm:$0xff]  ;;  %v5077_v1 = vpack.c.bf16 %v5056_v41, %v5055_v62  ;;  %v4778_v41 = vld [vmem:[#allocation2 + $0xe1] sm:$0xff]  ;;  %v4777_v62 = vld [vmem:[#allocation2 + $0xd9] sm:$0xff] }
 0x7bc   : > { %v4796_v43 = vpack.c.bf16 %v4776_v23, %v4775_v49 }
 0x7bd   : > { %v5007_v25 = vadd.f32 %v4975_v59, %v4725_v3  ;;  %v4903_v45 = vpop.f32.mrf.mxu1  ;;  %v5180_v48 = vpop.f32.mrf.mxu0 }
 0x7be   : > { %v5256_v34 = vmul.f32 %v5180_v48, %v13832_v60  ;;  %v4976_v19 = vmul.f32 %v4903_v45, %v13874_v33  ;;  %v4546_v60 = vpack.c.bf16 %v4526_v12, %v4525_v11  ;;  %v5058_v11 = vld [vmem:[#allocation2 + $0xdf] sm:$0xff] }
 0x7c0   : > { %v5288_v42 = vadd.f32 %v5256_v34, %v5006_v56 }
 0x7c2   : > { %v4653_v4 = vpop.f32.mrf.mxu3  ;;  %v5462_v39 = vpop.f32.mrf.mxu2 }
 0x7c3   : > { %v4726_v8 = vadd.f32 %v4653_v4, %v13999_v0  ;;  %v14438_v21 = vadd.f32 %v5462_v39, %v5288_v42 }
 0x7c5   : > { %v5008_v14 = vadd.f32 %v4976_v19, %v4726_v8  ;;  %v4906_v51 = vpop.f32.mrf.mxu1  ;;  %v5183_v6 = vpop.f32.mrf.mxu0  ;;  %v4528_v19 = vld [vmem:[#allocation2 + $0xe0] sm:$0xff] }
 0x7c6   : > { %v5257_v56 = vmul.f32 %v5183_v6, %v13858_v57  ;;  %v4977_v59 = vmul.f32 %v4906_v51, %v13922_v24 }
 0x7c7   : > { %10492 = vmatmul.msk.bf16.gmra.mxu3 %vm658_vm0, %v4546_v60  ;;  %10611 = vmatmul.msk.bf16.gmra.mxu2 %vm658_vm0, %v4546_v60 }
 0x7c8   : > { %10532 = vmatmul.msk.bf16.gmra.mxu1 %vm658_vm0, %v4796_v43  ;;  %10571 = vmatmul.msk.bf16.gmra.mxu0 %vm658_vm0, %v5077_v1  ;;  %v5289_v0 = vadd.f32 %v5257_v56, %v5007_v25  ;;  %v5057_v56 = vld [vmem:[#allocation2 + $0xd7] sm:$0xff] }
 0x7c9   : > { %v5078_v43 = vpack.c.bf16 %v5058_v11, %v5057_v56  ;;  %v4780_v11 = vld [vmem:[#allocation2 + $0xf1] sm:$0xff]  ;;  %v4779_v56 = vld [vmem:[#allocation2 + $0xe9] sm:$0xff] }
 0x7ca   : > { %v4656_v36 = vpop.f32.mrf.mxu3  ;;  %v5465_v28 = vpop.f32.mrf.mxu2 }
 0x7cb   : > { %v4727_v3 = vadd.f32 %v4656_v36, %v14027_v61  ;;  %v14447_v45 = vadd.f32 %v5465_v28, %v5289_v0  ;;  %v4527_v61 = vld [vmem:[#allocation2 + $0xd8] sm:$0xff]  ;;  %v17220_v28 = vld [vmem:[#allocation18_spill] sm:$0xff] }
 0x7cc   : > { %v4547_v49 = vpack.c.bf16 %v4528_v19, %v4527_v61  ;;  %v5060_v61 = vld [vmem:[#allocation2 + $0xef] sm:$0xff] }
 0x7cd   : > { %v5009_v57 = vadd.f32 %v4977_v59, %v4727_v3  ;;  %v4908_v48 = vpop.f32.mrf.mxu1  ;;  %v5185_v34 = vpop.f32.mrf.mxu0 }
 0x7ce   : > { %v5258_v42 = vmul.f32 %v5185_v34, %v13860_v40  ;;  %v4978_v8 = vmul.f32 %v4908_v48, %v13925_v54 }
 0x7d0   : > { %v5290_v4 = vadd.f32 %v5258_v42, %v5008_v14  ;;  %v4797_v14 = vpack.c.bf16 %v4778_v41, %v4777_v62  ;;  %v17221_v42 = vld [vmem:[#allocation7_spill] sm:$0xff] }
 0x7d2   : > { %v4658_v39 = vpop.f32.mrf.mxu3  ;;  %v5467_v12 = vpop.f32.mrf.mxu2 }
 0x7d3   : > { %v4728_v25 = vadd.f32 %v4658_v39, %v14049_v44  ;;  %v14452_v23 = vadd.f32 %v5467_v12, %v5290_v4 }
 0x7d5   : > { %v5010_v51 = vadd.f32 %v4978_v8, %v4728_v25  ;;  %v4911_v6 = vpop.f32.mrf.mxu1  ;;  %v5188_v60 = vpop.f32.mrf.mxu0  ;;  %v4530_v8 = vld [vmem:[#allocation2 + $0xf0] sm:$0xff]  ;;  %v17222_v25 = vld [vmem:[#allocation5_spill] sm:$0xff] }
 0x7d6   : > { %v5259_v40 = vmul.f32 %v5188_v60, %v13899_v17  ;;  %v4979_v36 = vmul.f32 %v4911_v6, %v13948_v46  ;;  %v4529_v6 = vld [vmem:[#allocation2 + $0xe8] sm:$0xff] }
 0x7d7   : > { %10493 = vmatmul.msk.bf16.gmra.mxu3 %vm658_vm0, %v4547_v49  ;;  %10612 = vmatmul.msk.bf16.gmra.mxu2 %vm658_vm0, %v4547_v49  ;;  %v4548_v62 = vpack.c.bf16 %v4530_v8, %v4529_v6 }
 0x7d8   : > { %10533 = vmatmul.msk.bf16.gmra.mxu1 %vm658_vm0, %v4797_v14  ;;  %10572 = vmatmul.msk.bf16.gmra.mxu0 %vm658_vm0, %v5078_v43  ;;  %v5291_v44 = vadd.f32 %v5259_v40, %v5009_v57  ;;  %v5059_v40 = vld [vmem:[#allocation2 + $0xe7] sm:$0xff]  ;;  %v17223_v14 = vld [vmem:[#allocation12_spill] sm:$0xff] }
 0x7da   : > { %v4661_v1 = vpop.f32.mrf.mxu3  ;;  %v5470_v0 = vpop.f32.mrf.mxu2 }
 0x7db   : > { %v4729_v59 = vadd.f32 %v4661_v1, %v17220_v28  ;;  %v14461_v3 = vadd.f32 %v5470_v0, %v5291_v44  ;;  %v4798_v44 = vpack.c.bf16 %v4780_v11, %v4779_v56  ;;  %v11125_v0 = vld [vmem:[%s16776_s11 + $0x100] sm:$0xff]  ;;  %v4531_v11 = vld [vmem:[#allocation2 + $0xf8] sm:$0xff] }
 0x7dc   : > { %5703 = vmatpush.bf16.msrb.mxu3 %v11125_v0  ;;  %v17224_v28 = vld [vmem:[#allocation13_spill] sm:$0xff] }
 0x7dd   : > { %v5011_v17 = vadd.f32 %v4979_v36, %v4729_v59  ;;  %v14463_v48 = vpop.f32.mrf.mxu1  ;;  %v5190_v34 = vpop.f32.mrf.mxu0 }
 0x7de   : > { %v5260_v4 = vmul.f32 %v5190_v34, %v17221_v42  ;;  %v17225_v34 = vld [vmem:[#allocation22_spill] sm:$0xff] }
 0x7e0   : > { %v5292_v39 = vadd.f32 %v5260_v4, %v5010_v51  ;;  %v5079_v51 = vpack.c.bf16 %v5060_v61, %v5059_v40  ;;  %v11131_v40 = vld [vmem:[%s16778_s13 + $0x10] sm:$0xff] }
 0x7e1   : > { %6082 = vmatpush.bf16.msra.mxu1 %v11131_v40  ;;  %v5347_v40 = vld [vmem:[#allocation2 + $0x118] sm:$0xff] }
 0x7e2   : > { %v4663_v12 = vpop.f32.mrf.mxu3  ;;  %v5472_v19 = vpop.f32.mrf.mxu2 }
 0x7e3   : > { %v14467_v57 = vadd.f32 %v4663_v12, %v17222_v25  ;;  %v14469_v41 = vadd.f32 %v5472_v19, %v5292_v39  ;;  %v4532_v19 = vld [vmem:[#allocation2 + $0x100] sm:$0xff] }
 0x7e4   : > { %v5062_v25 = vld [vmem:[#allocation2 + $0xff] sm:$0xff]  ;;  %v4549_v6 = vpack.c.bf16 %v4532_v19, %v4531_v11  ;;  %v5064_v19 = vld [vmem:[#allocation2 + $0x10f] sm:$0xff] }
 0x7e5   : > { %v4916_v60 = vpop.f32.mrf.mxu1  ;;  %v5193_v49 = vpop.f32.mrf.mxu0 }
 0x7e6   : > { %v5261_v43 = vmul.f32 %v5193_v49, %v17223_v14  ;;  %v4981_v59 = vmul.f32 %v4916_v60, %v17224_v28  ;;  %v4781_v49 = vld [vmem:[#allocation2 + $0xf9] sm:$0xff]  ;;  %v17226_v14 = vld [vmem:[#allocation3_spill] sm:$0xff] }
 0x7e7   : > { %10494 = vmatmul.msk.bf16.gmra.mxu3 %vm658_vm0, %v4548_v62  ;;  %10613 = vmatmul.msk.bf16.gmra.mxu2 %vm658_vm0, %v4548_v62  ;;  %v5061_v62 = vld [vmem:[#allocation2 + $0xf7] sm:$0xff] }
 0x7e8   : > { %10534 = vmatmul.msk.bf16.gmra.mxu1 %vm658_vm0, %v4798_v44  ;;  %10573 = vmatmul.msk.bf16.gmra.mxu0 %vm658_vm0, %v5079_v51  ;;  %v14476_v1 = vadd.f32 %v5261_v43, %v5011_v17  ;;  %v4782_v17 = vld [vmem:[#allocation2 + $0x101] sm:$0xff]  ;;  %v5080_v60 = vpack.c.bf16 %v5062_v25, %v5061_v62 }
 0x7e9   : > { %v4799_v56 = vpack.c.bf16 %v4782_v17, %v4781_v49  ;;  %v4533_v17 = vld [vmem:[#allocation2 + $0x108] sm:$0xff] }
 0x7ea   : > { %v4666_v36 = vpop.f32.mrf.mxu3 }
 0x7eb   : > { %v4731_v42 = vadd.f32 %v4666_v36, %v17225_v34 }
 0x7ed   : > { %v14483_v4 = vadd.f32 %v4981_v59, %v4731_v42  ;;  %v14485_v39 = vpop.f32.mrf.mxu1  ;;  %v4534_v59 = vld [vmem:[#allocation2 + $0x110] sm:$0xff] }
 0x7ee   : > { %v4783_v42 = vld [vmem:[#allocation2 + $0x109] sm:$0xff]  ;;  %v4550_v11 = vpack.c.bf16 %v4534_v59, %v4533_v17 }
 0x7ef   : > { %v17227_v59 = vld [vmem:[#allocation31_spill] sm:$0xff] }
 0x7f2   : > { %v4668_v12 = vpop.f32.mrf.mxu3 }
 0x7f3   : > { %v14488_v8 = vadd.f32 %v4668_v12, %v14148_v31  ;;  %v4784_v12 = vld [vmem:[#allocation2 + $0x111] sm:$0xff] }
 0x7f4   : > { %v4800_v49 = vpack.c.bf16 %v4784_v12, %v4783_v42  ;;  %v5065_v12 = vld [vmem:[#allocation2 + $0x117] sm:$0xff] }
 0x7f5   : > { %v4921_v61 = vpop.f32.mrf.mxu1 }
 0x7f6   : > { %v4983_v43 = vmul.f32 %v4921_v61, %v17226_v14 }
 0x7f7   : > { %10495 = vmatmul.msk.bf16.gmra.mxu3 %vm658_vm0, %v4549_v6  ;;  %10614 = vmatmul.msk.bf16.gmra.mxu2 %vm658_vm0, %v4549_v6  ;;  %v5063_v6 = vld [vmem:[#allocation2 + $0x107] sm:$0xff] }
 0x7f8   : > { %10535 = vmatmul.msk.bf16.gmra.mxu1 %vm658_vm0, %v4799_v56  ;;  %10574 = vmatmul.msk.bf16.gmra.mxu0 %vm658_vm0, %v5080_v60  ;;  %v5081_v61 = vpack.c.bf16 %v5064_v19, %v5063_v6  ;;  %v5066_v19 = vld [vmem:[#allocation2 + $0x11f] sm:$0xff] }
 0x7fa   : > { %v4671_v31 = vpop.f32.mrf.mxu3 }
 0x7fb   : > { %v4733_v44 = vadd.f32 %v4671_v31, %v14162_v16  ;;  %v5348_v31 = vld [vmem:[#allocation2 + $0x120] sm:$0xff] }
 0x7fc   : > { %v5364_v17 = vpack.c.bf16 %v5348_v31, %v5347_v40  ;;  %v5569_v40 = vld [vmem:[#allocation2 + $0x39] sm:$0xff]  ;;  %v5570_v31 = vld [vmem:[#allocation2 + $0x41] sm:$0xff] }
 0x7fd   : > { %v14499_v51 = vadd.f32 %v4983_v43, %v4733_v44  ;;  %v14501_v0 = vpop.f32.mrf.mxu1  ;;  %v5567_v44 = vld [vmem:[#allocation2 + $0x29] sm:$0xff] }
 0x802   : > { %v4673_v36 = vpop.f32.mrf.mxu3 }
 0x803   : > { %v14504_v34 = vadd.f32 %v4673_v36, %v14173_v10  ;;  %v5568_v36 = vld [vmem:[#allocation2 + $0x31] sm:$0xff] }
 0x804   : > { %v5599_v6 = vpack.c.bf16 %v5568_v36, %v5567_v44  ;;  %v17233_v44 = vld [vmem:[#allocation37_spill] sm:$0xff] }
 0x805   : > { %v4926_v25 = vpop.f32.mrf.mxu1 }
 0x806   : > { %v4985_v10 = vmul.f32 %v4926_v25, %v14106_v55  ;;  %v5082_v25 = vpack.c.bf16 %v5066_v19, %v5065_v12  ;;  %v5600_v19 = vpack.c.bf16 %v5570_v31, %v5569_v40  ;;  %v5601_v31 = vpack.c.bf16 %v5572_v20, %v5571_v53 }
 0x807   : > { %10496 = vmatmul.msk.bf16.gmra.mxu3 %vm658_vm0, %v4550_v11  ;;  %10615 = vmatmul.msk.bf16.gmra.mxu2 %vm658_vm0, %v4550_v11 }
 0x808   : > { %10536 = vmatmul.msk.bf16.gmra.mxu1 %vm658_vm0, %v4800_v49  ;;  %10575 = vmatmul.msk.bf16.gmra.mxu0 %vm658_vm0, %v5081_v61  ;;  %v17229_v49 = vld [vmem:[#allocation24_spill] sm:$0xff] }
 0x80a   : > { %v4676_v16 = vpop.f32.mrf.mxu3 }
 0x80b   : > { %v4735_v62 = vadd.f32 %v4676_v16, %v14191_v37  ;;  %v17230_v16 = vld [vmem:[#allocation35_spill] sm:$0xff] }
 0x80d   : > { %v14512_v56 = vadd.f32 %v4985_v10, %v4735_v62  ;;  %v14514_v60 = vpop.f32.mrf.mxu1 }
 0x812   : > { %v4678_v43 = vpop.f32.mrf.mxu3 }
 0x813   : > { %v14517_v42 = vadd.f32 %v4678_v43, %v17227_v59 }
 0x815   : > { %17228 = vst [vmem:[#allocation18_spill] sm:$0xff] %v14517_v42  ;;  %v4931_v11 = vpop.f32.mrf.mxu1 }
 0x816   : > { %v4987_v61 = vmul.f32 %v4931_v11, %v17229_v49  ;;  %v17236_v11 = vld [vmem:[#allocation40_spill] sm:$0xff] }
 0x817   : > { %10616 = vmatmul.msk.bf16.gmra.mxu2 %vm658_vm0, %v5364_v17  ;;  %10641 = vmatmul.msk.bf16.vlgmr.msrb.gmra.mxu3 %vm658_vm0, %v5599_v6  ;;  %v17235_v6 = vld [vmem:[#allocation28_spill] sm:$0xff] }
 0x818   : > { %10576 = vmatmul.msk.bf16.gmra.mxu0 %vm658_vm0, %v5082_v25 }
 0x81a   : > { %v4681_v37 = vpop.f32.mrf.mxu3 }
 0x81b   : > { %v4737_v10 = vadd.f32 %v4681_v37, %v17230_v16  ;;  %v14538_v16 = vpop.f32.mrf.mxu0 }
 0x81d   : > { %v14524_v62 = vadd.f32 %v4987_v61, %v4737_v10  ;;  %v14526_v43 = vpop.f32.mrf.mxu1 }
 0x81e   : > { %17232 = vst [vmem:[#allocation5_spill] sm:$0xff] %v14526_v43 }
 0x81f   : > { %17231 = vst [vmem:[#allocation7_spill] sm:$0xff] %v14524_v62 }
 0x822   : > { %v4683_v59 = vpop.f32.mrf.mxu3 }
 0x823   : > { %v14529_v36 = vadd.f32 %v4683_v59, %v17233_v44  ;;  %v17239_v59 = vld [vmem:[#allocation44_spill] sm:$0xff] }
 0x825   : > { %17234 = vst [vmem:[#allocation12_spill] sm:$0xff] %v14529_v36  ;;  %v4936_v12 = vpop.f32.mrf.mxu1 }
 0x826   : > { %v4989_v25 = vmul.f32 %v4936_v12, %v17235_v6  ;;  %v11130_v12 = vld [vmem:[%s16778_s13 + $0x8] sm:$0xff] }
 0x827   : > { %10642 = vmatmul.msk.bf16.gmra.mxu3 %vm658_vm0, %v5600_v19  ;;  %6083 = vmatpush.bf16.msra.mxu1 %v11130_v12  ;;  %v5574_v6 = vld [vmem:[#allocation2 + $0x61] sm:$0xff] }
 0x82a   : > { %v4686_v17 = vpop.f32.mrf.mxu3 }
 0x82b   : > { %v4739_v35 = vadd.f32 %v4686_v17, %v17236_v11  ;;  %v17241_v17 = vld [vmem:[#allocation33_spill] sm:$0xff]  ;;  %v17242_v11 = vld [vmem:[#allocation47_spill] sm:$0xff] }
 0x82d   : > { %v14534_v37 = vadd.f32 %v4989_v25, %v4739_v35  ;;  %v14536_v61 = vpop.f32.mrf.mxu1  ;;  %v14547_v35 = vpop.f32.mrf.mxu0 }
 0x82e   : > { %17238 = vst [vmem:[#allocation22_spill] sm:$0xff] %v14536_v61 }
 0x82f   : > { %17237 = vst [vmem:[#allocation13_spill] sm:$0xff] %v14534_v37 }
 0x832   : > { %v4688_v10 = vpop.f32.mrf.mxu3 }
 0x833   : > { %v14541_v44 = vadd.f32 %v4688_v10, %v17239_v59  ;;  %v14555_v59 = vpop.f32.mrf.mxu2 }
 0x835   : > { %17240 = vst [vmem:[#allocation3_spill] sm:$0xff] %v14541_v44  ;;  %v4941_v40 = vpop.f32.mrf.mxu1  ;;  %v14557_v20 = vpop.f32.mrf.mxu0  ;;  %v5573_v44 = vld [vmem:[#allocation2 + $0x59] sm:$0xff] }
 0x836   : > { %v4991_v25 = vmul.f32 %v4941_v40, %v17241_v17  ;;  %v5602_v36 = vpack.c.bf16 %v5574_v6, %v5573_v44 }
 0x837   : > { %10643 = vmatmul.msk.bf16.gmra.mxu3 %vm658_vm0, %v5601_v31  ;;  %v17245_v31 = vld [vmem:[#allocation50_spill] sm:$0xff] }
 0x83a   : > { %v4691_v19 = vpop.f32.mrf.mxu3 }
 0x83b   : > { %v4741_v47 = vadd.f32 %v4691_v19, %v17242_v11  ;;  %v14563_v19 = vpop.f32.mrf.mxu2  ;;  %v17248_v11 = vld [vmem:[#allocation54_spill] sm:$0xff] }
 0x83d   : > { %v14551_v61 = vadd.f32 %v4991_v25, %v4741_v47  ;;  %v14553_v10 = vpop.f32.mrf.mxu1  ;;  %v17247_v47 = vld [vmem:[#allocation41_spill] sm:$0xff]  ;;  %v14567_v17 = vpop.f32.mrf.mxu0 }
 0x83e   : > { %17244 = vst [vmem:[#allocation35_spill] sm:$0xff] %v14553_v10 }
 0x83f   : > { %17243 = vst [vmem:[#allocation31_spill] sm:$0xff] %v14551_v61 }
 0x842   : > { %v4693_v53 = vpop.f32.mrf.mxu3 }
 0x843   : > { %v14560_v37 = vadd.f32 %v4693_v53, %v17245_v31  ;;  %v5575_v53 = vld [vmem:[#allocation2 + $0x69] sm:$0xff]  ;;  %v5576_v31 = vld [vmem:[#allocation2 + $0x71] sm:$0xff] }
 0x845   : > { %17246 = vst [vmem:[#allocation37_spill] sm:$0xff] %v14560_v37  ;;  %v4946_v12 = vpop.f32.mrf.mxu1  ;;  %v5603_v37 = vpack.c.bf16 %v5576_v31, %v5575_v53  ;;  %v14578_v62 = vpop.f32.mrf.mxu0  ;;  %v5578_v53 = vld [vmem:[#allocation2 + $0x81] sm:$0xff] }
 0x846   : > { %v4993_v25 = vmul.f32 %v4946_v12, %v17247_v47 }
 0x847   : > { %10644 = vmatmul.msk.bf16.gmra.mxu3 %vm658_vm0, %v5602_v36  ;;  %v14576_v36 = vpop.f32.mrf.mxu2 }
 0x84a   : > { %v4696_v40 = vpop.f32.mrf.mxu3 }
 0x84b   : > { %v4743_v10 = vadd.f32 %v4696_v40, %v17248_v11  ;;  %v17252_v40 = vld [vmem:[#allocation46_spill] sm:$0xff] }
 0x84d   : > { %v14569_v61 = vadd.f32 %v4993_v25, %v4743_v10  ;;  %v14571_v43 = vpop.f32.mrf.mxu1 }
 0x84e   : > { %17250 = vst [vmem:[#allocation44_spill] sm:$0xff] %v14571_v43 }
 0x84f   : > { %17249 = vst [vmem:[#allocation40_spill] sm:$0xff] %v14569_v61  ;;  %v14587_v47 = vpop.f32.mrf.mxu2 }
 0x852   : > { %v4698_v49 = vpop.f32.mrf.mxu3 }
 0x853   : > { %v14574_v6 = vadd.f32 %v4698_v49, %v14323_v50  ;;  %v14589_v50 = vpop.f32.mrf.mxu0 }
 0x855   : > { %17251 = vst [vmem:[#allocation47_spill] sm:$0xff] %v14574_v6  ;;  %v4951_v44 = vpop.f32.mrf.mxu1  ;;  %v5577_v6 = vld [vmem:[#allocation2 + $0x79] sm:$0xff] }
 0x856   : > { %v4995_v10 = vmul.f32 %v4951_v44, %v17252_v40  ;;  %v5604_v61 = vpack.c.bf16 %v5578_v53, %v5577_v6 }
 0x857   : > { %10645 = vmatmul.msk.bf16.gmra.mxu3 %vm658_vm0, %v5603_v37  ;;  %v14595_v44 = vpop.f32.mrf.mxu2 }
 0x85a   : > { %v4701_v12 = vpop.f32.mrf.mxu3 }
 0x85b   : > { %v4745_v25 = vadd.f32 %v4701_v12, %v14335_v30  ;;  %v14597_v30 = vpop.f32.mrf.mxu0 }
 0x85c   : > { %17256 = vst [vmem:[#allocation65_spill] sm:$0xff] %v14597_v30 }
 0x85d   : > { %v14583_v11 = vadd.f32 %v4995_v10, %v4745_v25  ;;  %v14585_v43 = vpop.f32.mrf.mxu1  ;;  %v17257_v10 = vld [vmem:[#allocation52_spill] sm:$0xff] }
 0x85e   : > { %17254 = vst [vmem:[#allocation54_spill] sm:$0xff] %v14585_v43 }
 0x85f   : > { %17253 = vst [vmem:[#allocation50_spill] sm:$0xff] %v14583_v11 }
 0x862   : > { %v4703_v49 = vpop.f32.mrf.mxu3 }
 0x863   : > { %v14592_v31 = vadd.f32 %v4703_v49, %v14350_v52  ;;  %v5579_v52 = vld [vmem:[#allocation2 + $0x89] sm:$0xff]  ;;  %v5580_v49 = vld [vmem:[#allocation2 + $0x91] sm:$0xff]  ;;  %v14610_v6 = vpop.f32.mrf.mxu0 }
 0x864   : > { %v5605_v30 = vpack.c.bf16 %v5580_v49, %v5579_v52 }
 0x865   : > { %17255 = vst [vmem:[#allocation64_spill] sm:$0xff] %v14592_v31  ;;  %v4956_v37 = vpop.f32.mrf.mxu1  ;;  %v14605_v31 = vpop.f32.mrf.mxu2 }
 0x866   : > { %v4997_v25 = vmul.f32 %v4956_v37, %v17257_v10  ;;  %v14621_v37 = vld [vmem:[%s17128_s22 + $0x20] sm:$0xff] }
 0x867   : > { %10646 = vmatmul.msk.bf16.gmra.mxu3 %vm658_vm0, %v5604_v61  ;;  %6907 = vperm.xlu0 %11230, %v14621_v37  }
 0x86a   : > { %v4706_v12 = vpop.f32.mrf.mxu3 }
 0x86b   : > { %v4747_v43 = vadd.f32 %v4706_v12, %v14363_v26  ;;  %v11129_v26 = vld [vmem:[%s16778_s13] sm:$0xff] }
 0x86c   : > { %6084 = vmatpush.bf16.msra.mxu1 %v11129_v26  ;;  %v11135_v26 = vld [vmem:[%s16778_s13 + $0x30] sm:$0xff] }
 0x86d   : > { %v14601_v40 = vadd.f32 %v4997_v25, %v4747_v43  ;;  %v14603_v11 = vpop.f32.mrf.mxu1  ;;  %v11136_v43 = vld [vmem:[%s16778_s13 + $0x38] sm:$0xff]  ;;  %v14627_v52 = vpop.f32.mrf.mxu2 }
 0x86e   : > { %17259 = vst [vmem:[#allocation67_spill] sm:$0xff] %v14603_v11  ;;  %6555 = vmatpush.bf16.msra.mxu0 %v11136_v43  ;;  %v11134_v43 = vld [vmem:[%s16778_s13 + $0x28] sm:$0xff] }
 0x86f   : > { %17258 = vst [vmem:[#allocation66_spill] sm:$0xff] %v14601_v40  ;;  %v6423_v40 = vld [vmem:[#allocation2 + $0x10] sm:$0xff] }
 0x872   : > { %v4708_v42 = vpop.f32.mrf.mxu3  ;;  %6556 = vmatpush.bf16.msra.mxu0 %v11135_v26 }
 0x873   : > { %v14608_v61 = vadd.f32 %v4708_v42, %v14375_v29  ;;  %v17261_v42 = vld [vmem:[#allocation57_spill] sm:$0xff] }
 0x875   : > { %17260 = vst [vmem:[#allocation68_spill] sm:$0xff] %v14608_v61  ;;  %v4961_v53 = vpop.f32.mrf.mxu1  ;;  %v14631_v61 = vpop.f32.mrf.mxu0 }
 0x876   : > { %v4999_v12 = vmul.f32 %v4961_v53, %v17261_v42  ;;  %17263 = vst [vmem:[#allocation70_spill] sm:$0xff] %v14631_v61  ;;  %v14647_v53 = vld [vmem:[%s17128_s22 + $0x48] sm:$0xff]  ;;  %6557 = vmatpush.bf16.msra.mxu0 %v11134_v43 }
 0x877   : > { %10647 = vmatmul.msk.bf16.gmra.mxu3 %vm658_vm0, %v5605_v30  ;;  %6927 = vperm.xlu0 %11230, %v14647_v53   ;;  %v5949_v42 = vld [vmem:[#allocation2 + $0x7] sm:$0xff] }
 0x87a   : > { %v4711_v29 = vpop.f32.mrf.mxu3 }
 0x87b   : > { %v4749_v25 = vadd.f32 %v4711_v29, %v14390_v15  ;;  %v11140_v15 = vld [vmem:[%s16778_s13 + $0x58] sm:$0xff] }
 0x87c   : > { %6805 = vmatpush.bf16.msra.mxu2 %v11140_v15  ;;  %v11133_v15 = vld [vmem:[%s16778_s13 + $0x20] sm:$0xff] }
 0x87d   : > { %v14629_v49 = vadd.f32 %v4999_v12, %v4749_v25  ;;  %v14633_v11 = vpop.f32.mrf.mxu1  ;;  %v14657_v29 = vpop.f32.mrf.mxu0  ;;  %6558 = vmatpush.bf16.msra.mxu0 %v11133_v15 }
 0x87e   : > { %17264 = vst [vmem:[#allocation71_spill] sm:$0xff] %v14633_v11  ;;  %v11139_v11 = vld [vmem:[%s16778_s13 + $0x50] sm:$0xff] }
 0x87f   : > { %17262 = vst [vmem:[#allocation69_spill] sm:$0xff] %v14629_v49  ;;  %v5950_v49 = vld [vmem:[#allocation2 + $0xf] sm:$0xff] }
 0x880   : > { %6806 = vmatpush.bf16.msra.mxu2 %v11139_v11  ;;  %v5981_v43 = vpack.c.bf16 %v5950_v49, %v5949_v42  ;;  %v11137_v49 = vld [vmem:[%s16778_s13 + $0x40] sm:$0xff] }
 0x882   : > { %v4713_v10 = vpop.f32.mrf.mxu3  ;;  %10673 = vmatmul.msk.bf16.vlgmr.msra.gmra.mxu1 %vm658_vm0, %v5981_v43 }
 0x883   : > { %v14636_v30 = vadd.f32 %v4713_v10, %v14408_v32  ;;  %v14653_v32 = vpop.f32.mrf.mxu2  ;;  %v17266_v10 = vld [vmem:[#allocation61_spill] sm:$0xff] }
 0x884   : > { %17267 = vst [vmem:[#allocation61_spill] sm:$0xff] %v14657_v29 }
 0x885   : > { %17265 = vst [vmem:[#allocation72_spill] sm:$0xff] %v14636_v30  ;;  %v4966_v12 = vpop.f32.mrf.mxu1  ;;  %v14682_v11 = vpop.f32.mrf.mxu0 }
 0x886   : > { %v5001_v30 = vmul.f32 %v4966_v12, %v14398_v63  ;;  %17269 = vst [vmem:[#allocation74_spill] sm:$0xff] %v14682_v11  ;;  %v5586_v63 = vld [vmem:[#allocation2 + $0xc1] sm:$0xff]  ;;  %v17275_v11 = vmov 1  }
 0x887   : > { %10648 = vmatmul.msk.bf16.gmra.mxu3 %vm658_vm0, %v17266_v10  ;;  %v6422_v10 = vld [vmem:[#allocation2 + $0x8] sm:$0xff] }
 0x888   : > { %v6454_v12 = vpack.c.bf16 %v6423_v40, %v6422_v10 }
 0x88a   : > { %v4716_v25 = vpop.f32.mrf.mxu3  ;;  %10713 = vmatmul.msk.bf16.vlgmr.msra.gmra.mxu0 %vm658_vm0, %v6454_v12  ;;  %v14704_v12 = vld [vmem:[%s16777_s12] ss:$0 sm:$0xff] }
 0x88b   : > { %v4751_v26 = vadd.f32 %v4716_v25, %v14422_v7  ;;  %v11138_v7 = vld [vmem:[%s16778_s13 + $0x48] sm:$0xff]  ;;  %v14675_v25 = vld [vmem:[%s17128_s22 + $0x70] sm:$0xff] }
 0x88c   : > { %6947 = vperm.xlu0 %11230, %v14675_v25   ;;  %6807 = vmatpush.bf16.msra.mxu2 %v11138_v7  ;;  %v6166_v7 = vld [vmem:[%s17128_s22] sm:$0xff] }
 0x88d   : > { %v14667_v29 = vadd.f32 %v5001_v30, %v4751_v26  ;;  %v14680_v30 = vpop.f32.mrf.mxu2  ;;  %v14693_v26 = vld [vmem:[%s17128_s22 + $0x98] sm:$0xff]  ;;  %6200 = vperm.xlu1 %11231, %v6166_v7  }
 0x88e   : > { %17271 = vst [vmem:[#allocation76_spill] sm:$0xff] %v14693_v26 }
 0x88f   : > { %17268 = vst [vmem:[#allocation73_spill] sm:$0xff] %v14667_v29 }
 0x890   : > { %6808 = vmatpush.bf16.msra.mxu2 %v11137_v49  ;;  %v14712_v49 = vpop.f32.mrf.mxu0 }
 0x892   : > { %v4718_v40 = vpop.f32.mrf.mxu3 }
 0x893   : > { %v14685_v42 = vadd.f32 %v4718_v40, %v14434_v58  ;;  %v17273_v58 = vld [vmem:[#allocation8_spill] sm:$0xff]  ;;  %v6190_v40 = vld [vmem:[%s17128_s22 + $0xc0] sm:$0xff] }
 0x894   : > { %6967 = vperm.xlu0 %11230, %v14693_v26   ;;  %17274 = vst [vmem:[#allocation8_spill] sm:$0xff] %v14712_v49  ;;  %v5585_v26 = vld [vmem:[#allocation2 + $0xb9] sm:$0xff]  ;;  %v14722_v49 = vld [vmem:[%s17128_s22 + $0x10] sm:$0xff] }
 0x895   : > { %17270 = vst [vmem:[#allocation75_spill] sm:$0xff] %v14685_v42  ;;  %v14698_v10 = vpop.f32.mrf.mxu2  ;;  %11234 = vset.pattern.permute.xlu1 %v17275_v11 }
 0x896   : > { %17272 = vst [vmem:[#allocation77_spill] sm:$0xff] %v14698_v10  ;;  %6891 = vperm.xlu1 %11234, %v6166_v7  }
 0x897   : > { %10649 = vmatmul.msk.bf16.gmra.mxu3 %vm658_vm0, %v14385_v13 }
 0x89a   : > { %v5705_v15 = vpop.f32.mrf.mxu3 }
 0x89b   : > { %v5785_v43 = vmul.f32 %v5705_v15, %v17273_v58 }
 0x89c   : > { %6987 = vperm.xlu0 %11230, %v6190_v40   ;;  %v14727_v40 = vpop.f32.mrf.mxu0 }
 0x89d   : > { %v5817_v13 = vadd.f32 %v5785_v43, %v14403_v2  ;;  %v14724_v10 = vpop.f32.mrf.mxu2  ;;  %v5608_v43 = vpack.c.bf16 %v5586_v63, %v5585_v26  ;;  %17276 = vst [vmem:[#allocation78_spill] sm:$0xff] %v14727_v40 }
 0x89f   : > { %v5853_v15 = vadd.f32 %v14704_v12, %v5817_v13  ;;  %v17277_v13 = vmov 0  }
 0x8a0   : > { %11236 = vset.pattern.permute.xlu1 %v17277_v13 }
 0x8a1   : > { %v5885_v58 = vmax.f32 %v5853_v15, 0.0 }
 0x8a2   : > { %v5707_v42 = vpop.f32.mrf.mxu3 }
 0x8a3   : > { %5917 = vst.msk [vmem:[#allocation2 + $0x18] sm:$0xff] %vm658_vm0, %v5885_v58  ;;  %v5786_v29 = vmul.f32 %v5707_v42, %v13824_v22  ;;  %v6672_v42 = vld [vmem:[#allocation2 + $0x9] sm:$0xff] }
 0x8a4   : > { %11255 = vset.pattern.permute.xlu0 %v17277_v13 }
 0x8a5   : > { %v5818_v2 = vadd.f32 %v5786_v29, %v14414_v5  ;;  %6210 = vperm.xlu0 %11255, %v14722_v49   ;;  %v6169_v29 = vld [vmem:[%s17128_s22 + $0x18] sm:$0xff]  ;;  %v14741_v7 = vpop.f32.mrf.mxu2 }
 0x8a6   : > { %6215 = vperm.xlu1 %11236, %v6169_v29  }
 0x8a7   : > { %v5854_v22 = vadd.f32 %v14704_v12, %v5818_v2  ;;  %10650 = vmatmul.msk.bf16.gmra.mxu3 %vm658_vm0, %v5608_v43  ;;  %v14745_v43 = vpop.f32.mrf.mxu0 }
 0x8a8   : > { %17278 = vst [vmem:[#allocation79_spill] sm:$0xff] %v14745_v43 }
 0x8a9   : > { %v5886_v15 = vmax.f32 %v5854_v22, 0.0  ;;  %v5588_v22 = vld [vmem:[#allocation2 + $0xd1] sm:$0xff] }
 0x8aa   : > { %v5710_v58 = vpop.f32.mrf.mxu3  ;;  %v6673_v61 = vld [vmem:[#allocation2 + $0x11] sm:$0xff] }
 0x8ab   : > { %5918 = vst.msk [vmem:[#allocation2 + $0x20] sm:$0xff] %vm658_vm0, %v5886_v15  ;;  %v5787_v5 = vmul.f32 %v5710_v58, %v13844_v9  ;;  %v6704_v63 = vpack.c.bf16 %v6673_v61, %v6672_v42  ;;  %v5951_v61 = vld [vmem:[#allocation2 + $0x17] sm:$0xff] }
 0x8ac   : > { %v6424_v58 = vld [vmem:[#allocation2 + $0x18] sm:$0xff] }
 0x8ad   : > { %v5819_v26 = vadd.f32 %v5787_v5, %v14430_v27  ;;  %10753 = vmatmul.msk.bf16.vlgmr.msra.gmra.mxu2 %vm658_vm0, %v6704_v63  ;;  %6220 = vperm.xlu0 %11255, %v14621_v37   ;;  %v11144_v37 = vld [vmem:[%s16778_s13 + $0x78] sm:$0xff] }
 0x8ae   : > { %7215 = vmatpush.bf16.msra.mxu3 %v11144_v37  ;;  %11237 = vset.pattern.permute.xlu1 %v17275_v11 }
 0x8af   : > { %v5855_v2 = vadd.f32 %v14704_v12, %v5819_v26  ;;  %v5587_v26 = vld [vmem:[#allocation2 + $0xc9] sm:$0xff]  ;;  %6903 = vperm.xlu1 %11237, %v6169_v29   ;;  %v11148_v29 = vld [vmem:[%s16778_s13 + $0x98] sm:$0xff] }
 0x8b0   : > { %v5609_v43 = vpack.c.bf16 %v5588_v22, %v5587_v26  ;;  %7497 = vmatpush.bf16.msrb.mxu1 %v11148_v29  ;;  %v5590_v26 = vld [vmem:[#allocation2 + $0xe1] sm:$0xff] }
 0x8b1   : > { %v5887_v9 = vmax.f32 %v5855_v2, 0.0 }
 0x8b2   : > { %v5712_v42 = vpop.f32.mrf.mxu3  ;;  %v5952_v15 = vld [vmem:[#allocation2 + $0x1f] sm:$0xff] }
 0x8b3   : > { %v6425_v27 = vld [vmem:[#allocation2 + $0x20] sm:$0xff]  ;;  %5919 = vst.msk [vmem:[#allocation2 + $0x28] sm:$0xff] %vm658_vm0, %v5887_v9  ;;  %v5788_v5 = vmul.f32 %v5712_v42, %v13847_v18  ;;  %v14749_v63 = vpack.c.bf16 %v5952_v15, %v5951_v61  ;;  %v14761_v9 = vpop.f32.mrf.mxu2  ;;  %v14763_v42 = vpop.f32.mrf.mxu0 }
 0x8b4   : > { %v6455_v40 = vpack.c.bf16 %v6425_v27, %v6424_v58  ;;  %v6674_v15 = vld [vmem:[#allocation2 + $0x19] sm:$0xff]  ;;  %v6167_v27 = vld [vmem:[%s17128_s22 + $0x8] sm:$0xff] }
 0x8b5   : > { %v5820_v2 = vadd.f32 %v5788_v5, %v14438_v21  ;;  %10674 = vmatmul.msk.bf16.gmra.mxu1 %vm658_vm0, %v14749_v63  ;;  %6205 = vperm.xlu2 %11233, %v6167_v27  }
 0x8b6   : > { %10714 = vmatmul.msk.bf16.gmra.mxu0 %vm658_vm0, %v6455_v40 }
 0x8b7   : > { %v5856_v18 = vadd.f32 %v14704_v12, %v5820_v2  ;;  %10651 = vmatmul.msk.bf16.gmra.mxu3 %vm658_vm0, %v5609_v43  ;;  %11239 = vset.pattern.permute.xlu1 %v17277_v13 }
 0x8b9   : > { %v5888_v61 = vmax.f32 %v5856_v18, 0.0 }
 0x8ba   : > { %v5715_v21 = vpop.f32.mrf.mxu3  ;;  %v6675_v58 = vld [vmem:[#allocation2 + $0x21] sm:$0xff] }
 0x8bb   : > { %5920 = vst.msk [vmem:[#allocation2 + $0x30] sm:$0xff] %vm658_vm0, %v5888_v61  ;;  %v5789_v40 = vmul.f32 %v5715_v21, %v13876_v38  ;;  %v6705_v22 = vpack.c.bf16 %v6675_v58, %v6674_v15  ;;  %v5953_v37 = vld [vmem:[#allocation2 + $0x27] sm:$0xff]  ;;  %v14777_v15 = vpop.f32.mrf.mxu2  ;;  %v14788_v29 = vpop.f32.mrf.mxu0 }
 0x8bc   : > { %v6426_v61 = vld [vmem:[#allocation2 + $0x28] sm:$0xff] }
 0x8bd   : > { %v5821_v43 = vadd.f32 %v5789_v40, %v14447_v45  ;;  %10754 = vmatmul.msk.bf16.gmra.mxu2 %vm658_vm0, %v6705_v22  ;;  %v14786_v22 = vld [vmem:[%s17128_s22 + $0x30] sm:$0xff]  ;;  %11235 = vset.pattern.permute.xlu2 %v17275_v11 }
 0x8be   : > { %6230 = vperm.xlu1 %11239, %v14786_v22   ;;  %6895 = vperm.xlu2 %11235, %v6167_v27  }
 0x8bf   : > { %v5857_v5 = vadd.f32 %v14704_v12, %v5821_v43  ;;  %v5589_v43 = vld [vmem:[#allocation2 + $0xd9] sm:$0xff] }
 0x8c1   : > { %v5889_v38 = vmax.f32 %v5857_v5, 0.0 }
 0x8c2   : > { %v5717_v2 = vpop.f32.mrf.mxu3  ;;  %v5954_v18 = vld [vmem:[#allocation2 + $0x2f] sm:$0xff] }
 0x8c3   : > { %v6427_v21 = vld [vmem:[#allocation2 + $0x30] sm:$0xff]  ;;  %5921 = vst.msk [vmem:[#allocation2 + $0x38] sm:$0xff] %vm658_vm0, %v5889_v38  ;;  %v5790_v45 = vmul.f32 %v5717_v2, %v13874_v33  ;;  %v14781_v58 = vpack.c.bf16 %v5954_v18, %v5953_v37  ;;  %v5610_v33 = vpack.c.bf16 %v5590_v26, %v5589_v43  ;;  %v14803_v26 = vpop.f32.mrf.mxu2 }
 0x8c4   : > { %v6456_v40 = vpack.c.bf16 %v6427_v21, %v6426_v61  ;;  %v6676_v18 = vld [vmem:[#allocation2 + $0x29] sm:$0xff] }
 0x8c5   : > { %v5822_v5 = vadd.f32 %v5790_v45, %v14452_v23  ;;  %10675 = vmatmul.msk.bf16.gmra.mxu1 %vm658_vm0, %v14781_v58  ;;  %v6173_v45 = vld [vmem:[%s17128_s22 + $0x38] sm:$0xff] }
 0x8c6   : > { %10715 = vmatmul.msk.bf16.gmra.mxu0 %vm658_vm0, %v6456_v40  ;;  %6235 = vperm.xlu1 %11239, %v6173_v45   ;;  %v14807_v40 = vpop.f32.mrf.mxu0 }
 0x8c7   : > { %v5858_v38 = vadd.f32 %v14704_v12, %v5822_v5  ;;  %10652 = vmatmul.msk.bf16.gmra.mxu3 %vm658_vm0, %v5610_v33  ;;  %17279 = vst [vmem:[#allocation80_spill] sm:$0xff] %v14807_v40  ;;  %6899 = vperm.xlu2 %11235, %v14722_v49   ;;  %v5592_v33 = vld [vmem:[#allocation2 + $0xf1] sm:$0xff]  ;;  %v6174_v49 = vld [vmem:[%s17128_s22 + $0x40] sm:$0xff] }
 0x8c8   : > { %6240 = vperm.xlu0 %11255, %v6174_v49  }
 0x8c9   : > { %v5890_v37 = vmax.f32 %v5858_v38, 0.0 }
 0x8ca   : > { %v5720_v2 = vpop.f32.mrf.mxu3  ;;  %v6677_v61 = vld [vmem:[#allocation2 + $0x31] sm:$0xff] }
 0x8cb   : > { %5922 = vst.msk [vmem:[#allocation2 + $0x40] sm:$0xff] %vm658_vm0, %v5890_v37  ;;  %v5791_v21 = vmul.f32 %v5720_v2, %v13922_v24  ;;  %v6706_v23 = vpack.c.bf16 %v6677_v61, %v6676_v18  ;;  %v5955_v24 = vld [vmem:[#allocation2 + $0x37] sm:$0xff] }
 0x8cc   : > { %v6428_v2 = vld [vmem:[#allocation2 + $0x38] sm:$0xff] }
 0x8cd   : > { %v5823_v27 = vadd.f32 %v5791_v21, %v14461_v3  ;;  %10755 = vmatmul.msk.bf16.gmra.mxu2 %vm658_vm0, %v6706_v23  ;;  %v5591_v23 = vld [vmem:[#allocation2 + $0xe9] sm:$0xff] }
 0x8ce   : > { %11241 = vset.pattern.permute.xlu1 %v17275_v11 }
 0x8cf   : > { %v5859_v43 = vadd.f32 %v14704_v12, %v5823_v27  ;;  %v6171_v27 = vld [vmem:[%s17128_s22 + $0x28] sm:$0xff]  ;;  %11238 = vset.pattern.permute.xlu2 %v17277_v13  ;;  %6919 = vperm.xlu1 %11241, %v6173_v45  }
 0x8d0   : > { %6225 = vperm.xlu2 %11238, %v6171_v27  }
 0x8d1   : > { %v5891_v5 = vmax.f32 %v5859_v43, 0.0 }
 0x8d2   : > { %v5722_v38 = vpop.f32.mrf.mxu3  ;;  %v5956_v37 = vld [vmem:[#allocation2 + $0x3f] sm:$0xff] }
 0x8d3   : > { %v6429_v18 = vld [vmem:[#allocation2 + $0x40] sm:$0xff]  ;;  %5923 = vst.msk [vmem:[#allocation2 + $0x48] sm:$0xff] %vm658_vm0, %v5891_v5  ;;  %v5792_v61 = vmul.f32 %v5722_v38, %v13925_v54  ;;  %v14813_v3 = vpack.c.bf16 %v5956_v37, %v5955_v24  ;;  %v5611_v54 = vpack.c.bf16 %v5592_v33, %v5591_v23  ;;  %v14827_v5 = vpop.f32.mrf.mxu2  ;;  %v14831_v38 = vpop.f32.mrf.mxu0 }
 0x8d4   : > { %v6457_v21 = vpack.c.bf16 %v6429_v18, %v6428_v2  ;;  %17280 = vst [vmem:[#allocation81_spill] sm:$0xff] %v14831_v38  ;;  %v6678_v2 = vld [vmem:[#allocation2 + $0x39] sm:$0xff] }
 0x8d5   : > { %v5824_v43 = vadd.f32 %v5792_v61, %v14469_v41  ;;  %10676 = vmatmul.msk.bf16.gmra.mxu1 %vm658_vm0, %v14813_v3  ;;  %v5543_v61 = vadd.f32 %v14555_v59, %v14476_v1 }
 0x8d6   : > { %10716 = vmatmul.msk.bf16.gmra.mxu0 %vm658_vm0, %v6457_v21  ;;  %v17281_v21 = vld [vmem:[#allocation10_spill] sm:$0xff] }
 0x8d7   : > { %v5860_v24 = vadd.f32 %v14704_v12, %v5824_v43  ;;  %10653 = vmatmul.msk.bf16.gmra.mxu3 %vm658_vm0, %v5611_v54  ;;  %v4980_v23 = vmul.f32 %v14463_v48, %v17281_v21  ;;  %v17282_v43 = vld [vmem:[#allocation9_spill] sm:$0xff]  ;;  %6923 = vperm.xlu1 %11241, %v6174_v49  }
 0x8d8   : > { %v5262_v54 = vmul.f32 %v14538_v16, %v17282_v43  ;;  %11240 = vset.pattern.permute.xlu2 %v17275_v11  ;;  %v5594_v48 = vld [vmem:[#allocation2 + $0x101] sm:$0xff] }
 0x8d9   : > { %v5892_v37 = vmax.f32 %v5860_v24, 0.0  ;;  %v5012_v24 = vadd.f32 %v4980_v23, %v14467_v57  ;;  %6911 = vperm.xlu2 %11240, %v6171_v27  }
 0x8da   : > { %v5725_v41 = vpop.f32.mrf.mxu3  ;;  %v6679_v18 = vld [vmem:[#allocation2 + $0x41] sm:$0xff] }
 0x8db   : > { %5924 = vst.msk [vmem:[#allocation2 + $0x50] sm:$0xff] %vm658_vm0, %v5892_v37  ;;  %v5793_v45 = vmul.f32 %v5725_v41, %v13948_v46  ;;  %v6707_v33 = vpack.c.bf16 %v6679_v18, %v6678_v2  ;;  %v5294_v1 = vadd.f32 %v5262_v54, %v5012_v24  ;;  %v14845_v46 = vpop.f32.mrf.mxu2  ;;  %v5957_v37 = vld [vmem:[#allocation2 + $0x47] sm:$0xff]  ;;  %v14847_v41 = vpop.f32.mrf.mxu0 }
 0x8dc   : > { %v6430_v18 = vld [vmem:[#allocation2 + $0x48] sm:$0xff] }
 0x8dd   : > { %v5825_v40 = vadd.f32 %v5793_v45, %v5543_v61  ;;  %10756 = vmatmul.msk.bf16.gmra.mxu2 %vm658_vm0, %v6707_v33  ;;  %v5544_v49 = vadd.f32 %v14563_v19, %v5294_v1  ;;  %v5593_v45 = vld [vmem:[#allocation2 + $0xf9] sm:$0xff]  ;;  %v17283_v33 = vld [vmem:[#allocation11_spill] sm:$0xff] }
 0x8de   : > { %v5612_v43 = vpack.c.bf16 %v5594_v48, %v5593_v45 }
 0x8df   : > { %v5861_v38 = vadd.f32 %v14704_v12, %v5825_v40  ;;  %11243 = vset.pattern.permute.xlu1 %v17277_v13 }
 0x8e1   : > { %v5893_v59 = vmax.f32 %v5861_v38, 0.0  ;;  %v5263_v38 = vmul.f32 %v14547_v35, %v17283_v33  ;;  %6915 = vperm.xlu2 %11240, %v14786_v22  }
 0x8e2   : > { %v5727_v16 = vpop.f32.mrf.mxu3  ;;  %v5958_v2 = vld [vmem:[#allocation2 + $0x4f] sm:$0xff] }
 0x8e3   : > { %v6431_v61 = vld [vmem:[#allocation2 + $0x50] sm:$0xff]  ;;  %5925 = vst.msk [vmem:[#allocation2 + $0x58] sm:$0xff] %vm658_vm0, %v5893_v59  ;;  %v5794_v57 = vmul.f32 %v5727_v16, %v17281_v21  ;;  %v14852_v40 = vpack.c.bf16 %v5958_v2, %v5957_v37  ;;  %v5295_v21 = vadd.f32 %v5263_v38, %v14483_v4  ;;  %v14865_v37 = vpop.f32.mrf.mxu2  ;;  %v14872_v2 = vld [vmem:[%s17128_s22 + $0x58] sm:$0xff]  ;;  %v14874_v22 = vpop.f32.mrf.mxu0 }
 0x8e4   : > { %v6458_v27 = vpack.c.bf16 %v6431_v61, %v6430_v18  ;;  %v6680_v35 = vld [vmem:[#allocation2 + $0x49] sm:$0xff]  ;;  %6255 = vperm.xlu1 %11243, %v14872_v2  }
 0x8e5   : > { %v5826_v23 = vadd.f32 %v5794_v57, %v5544_v49  ;;  %10677 = vmatmul.msk.bf16.gmra.mxu1 %vm658_vm0, %v14852_v40  ;;  %v5545_v59 = vadd.f32 %v14576_v36, %v5295_v21  ;;  %v17284_v4 = vld [vmem:[#allocation15_spill] sm:$0xff]  ;;  %v17285_v36 = vld [vmem:[#allocation14_spill] sm:$0xff] }
 0x8e6   : > { %10717 = vmatmul.msk.bf16.gmra.mxu0 %vm658_vm0, %v6458_v27  ;;  %v4982_v18 = vmul.f32 %v14485_v39, %v17284_v4  ;;  %v5264_v61 = vmul.f32 %v14557_v20, %v17285_v36  ;;  %v5595_v38 = vld [vmem:[#allocation2 + $0x109] sm:$0xff] }
 0x8e7   : > { %v5862_v19 = vadd.f32 %v14704_v12, %v5826_v23  ;;  %10654 = vmatmul.msk.bf16.gmra.mxu3 %vm658_vm0, %v5612_v43  ;;  %v5596_v23 = vld [vmem:[#allocation2 + $0x111] sm:$0xff] }
 0x8e9   : > { %v5894_v54 = vmax.f32 %v5862_v19, 0.0  ;;  %11242 = vset.pattern.permute.xlu2 %v17277_v13 }
 0x8ea   : > { %v5730_v24 = vpop.f32.mrf.mxu3  ;;  %v6681_v1 = vld [vmem:[#allocation2 + $0x51] sm:$0xff]  ;;  %6245 = vperm.xlu2 %11242, %v14647_v53   ;;  %v6178_v53 = vld [vmem:[%s17128_s22 + $0x60] sm:$0xff] }
 0x8eb   : > { %5926 = vst.msk [vmem:[#allocation2 + $0x60] sm:$0xff] %vm658_vm0, %v5894_v54  ;;  %v5795_v48 = vmul.f32 %v5730_v24, %v17224_v28  ;;  %v6708_v16 = vpack.c.bf16 %v6681_v1, %v6680_v35  ;;  %v5014_v28 = vadd.f32 %v4982_v18, %v14488_v8  ;;  %v5959_v33 = vld [vmem:[#allocation2 + $0x57] sm:$0xff]  ;;  %v11142_v18 = vld [vmem:[%s16778_s13 + $0x68] sm:$0xff] }
 0x8ec   : > { %v6432_v19 = vld [vmem:[#allocation2 + $0x58] sm:$0xff]  ;;  %v11143_v35 = vld [vmem:[%s16778_s13 + $0x70] sm:$0xff]  ;;  %6260 = vperm.xlu1 %11243, %v6178_v53  }
 0x8ed   : > { %v5827_v49 = vadd.f32 %v5795_v48, %v5545_v59  ;;  %10757 = vmatmul.msk.bf16.gmra.mxu2 %vm658_vm0, %v6708_v16  ;;  %v5296_v27 = vadd.f32 %v5264_v61, %v5014_v28  ;;  %v17286_v1 = vld [vmem:[#allocation16_spill] sm:$0xff]  ;;  %v5613_v16 = vpack.c.bf16 %v5596_v23, %v5595_v38  ;;  %7216 = vmatpush.bf16.msra.mxu3 %v11143_v35  ;;  %v11141_v38 = vld [vmem:[%s16778_s13 + $0x60] sm:$0xff]  ;;  %v6176_v23 = vld [vmem:[%s17128_s22 + $0x50] sm:$0xff] }
 0x8ee   : > { %v5265_v59 = vmul.f32 %v14567_v17, %v17286_v1  ;;  %v5597_v1 = vld [vmem:[#allocation2 + $0x119] sm:$0xff] }
 0x8ef   : > { %v5863_v57 = vadd.f32 %v14704_v12, %v5827_v49  ;;  %v5546_v21 = vadd.f32 %v14587_v47, %v5296_v27  ;;  %v14899_v47 = vpop.f32.mrf.mxu2 }
 0x8f0   : > { %v5297_v17 = vadd.f32 %v5265_v59, %v14499_v51  ;;  %v11147_v51 = vld [vmem:[%s16778_s13 + $0x90] sm:$0xff]  ;;  %v5598_v59 = vld [vmem:[#allocation2 + $0x121] sm:$0xff] }
 0x8f1   : > { %v5895_v45 = vmax.f32 %v5863_v57, 0.0  ;;  %7217 = vmatpush.bf16.msra.mxu3 %v11142_v18  ;;  %7498 = vmatpush.bf16.msrb.mxu1 %v11147_v51 }
 0x8f2   : > { %v5732_v39 = vpop.f32.mrf.mxu3  ;;  %v5960_v43 = vld [vmem:[#allocation2 + $0x5f] sm:$0xff]  ;;  %v5547_v27 = vadd.f32 %v14595_v44, %v5297_v17  ;;  %6250 = vperm.xlu2 %11242, %v6176_v23  }
 0x8f3   : > { %v6433_v20 = vld [vmem:[#allocation2 + $0x60] sm:$0xff]  ;;  %5927 = vst.msk [vmem:[#allocation2 + $0x68] sm:$0xff] %vm658_vm0, %v5895_v45  ;;  %v5796_v8 = vmul.f32 %v5732_v39, %v17284_v4  ;;  %v14889_v54 = vpack.c.bf16 %v5960_v43, %v5959_v33  ;;  %v14904_v4 = vpop.f32.mrf.mxu0  ;;  %v17287_v39 = vld [vmem:[#allocation4_spill] sm:$0xff]  ;;  %v17288_v43 = vld [vmem:[#allocation6_spill] sm:$0xff] }
 0x8f4   : > { %v6459_v24 = vpack.c.bf16 %v6433_v20, %v6432_v19  ;;  %v6682_v28 = vld [vmem:[#allocation2 + $0x59] sm:$0xff]  ;;  %v4984_v44 = vmul.f32 %v14501_v0, %v17287_v39  ;;  %v5266_v19 = vmul.f32 %v14578_v62, %v17288_v43  ;;  %11245 = vset.pattern.permute.xlu1 %v17275_v11 }
 0x8f5   : > { %v5828_v48 = vadd.f32 %v5796_v8, %v5546_v21  ;;  %10678 = vmatmul.msk.bf16.gmra.mxu1 %vm658_vm0, %v14889_v54  ;;  %v14933_v21 = vpop.permute.xlu0 %6907  ;;  %7218 = vmatpush.bf16.msra.mxu3 %v11141_v38 }
 0x8f6   : > { %10718 = vmatmul.msk.bf16.gmra.mxu0 %vm658_vm0, %v6459_v24  ;;  %17289 = vst [vmem:[#allocation10_spill] sm:$0xff] %v14933_v21  ;;  %v5016_v8 = vadd.f32 %v4984_v44, %v14504_v34  ;;  %6939 = vperm.xlu1 %11245, %v6178_v53  }
 0x8f7   : > { %v5864_v36 = vadd.f32 %v14704_v12, %v5828_v48  ;;  %10655 = vmatmul.msk.bf16.gmra.mxu3 %vm658_vm0, %v5613_v16  ;;  %v14936_v0 = vpop.f32.mrf.mxu2 }
 0x8f8   : > { %v5298_v24 = vadd.f32 %v5266_v19, %v5016_v8 }
 0x8f9   : > { %v5896_v61 = vmax.f32 %v5864_v36, 0.0 }
 0x8fa   : > { %v5735_v49 = vpop.f32.mrf.mxu3  ;;  %v6683_v57 = vld [vmem:[#allocation2 + $0x61] sm:$0xff]  ;;  %v5548_v18 = vadd.f32 %v14605_v31, %v5298_v24  ;;  %11244 = vset.pattern.permute.xlu2 %v17275_v11  ;;  %v14952_v31 = vpop.f32.mrf.mxu1 }
 0x8fb   : > { %5928 = vst.msk [vmem:[#allocation2 + $0x70] sm:$0xff] %vm658_vm0, %v5896_v61  ;;  %v5797_v45 = vmul.f32 %v5735_v49, %v17226_v14  ;;  %v6709_v33 = vpack.c.bf16 %v6683_v57, %v6682_v28  ;;  %v6179_v14 = vld [vmem:[%s17128_s22 + $0x68] sm:$0xff]  ;;  %v14939_v35 = vpop.f32.mrf.mxu0  ;;  %v5614_v57 = vpack.c.bf16 %v5598_v59, %v5597_v1  ;;  %6931 = vperm.xlu2 %11244, %v6176_v23   ;;  %v17292_v1 = vld [vmem:[#allocation20_spill] sm:$0xff]  ;;  %v17293_v59 = vld [vmem:[#allocation19_spill] sm:$0xff] }
 0x8fc   : > { %6265 = vperm.xlu0 %11255, %v6179_v14   ;;  %v5961_v16 = vld [vmem:[#allocation2 + $0x67] sm:$0xff] }
 0x8fd   : > { %v5829_v20 = vadd.f32 %v5797_v45, %v5547_v27  ;;  %10758 = vmatmul.msk.bf16.gmra.mxu2 %vm658_vm0, %v6709_v33  ;;  %v6434_v61 = vld [vmem:[#allocation2 + $0x68] sm:$0xff]  ;;  %v17290_v27 = vld [vmem:[#allocation17_spill] sm:$0xff]  ;;  %v14956_v51 = vpop.permute.xlu0 %6927 }
 0x8fe   : > { %v5267_v45 = vmul.f32 %v14589_v50, %v17290_v27  ;;  %17291 = vst [vmem:[#allocation9_spill] sm:$0xff] %v14956_v51  ;;  %6943 = vperm.xlu1 %11245, %v6179_v14   ;;  %v4986_v14 = vmul.f32 %v14514_v60, %v17292_v1 }
 0x8ff   : > { %v5865_v62 = vadd.f32 %v14704_v12, %v5829_v20  ;;  %v14959_v44 = vpop.f32.mrf.mxu2 }
 0x901   : > { %v5897_v48 = vmax.f32 %v5865_v62, 0.0 }
 0x902   : > { %v5737_v36 = vpop.f32.mrf.mxu3  ;;  %v5962_v17 = vld [vmem:[#allocation2 + $0x6f] sm:$0xff] }
 0x903   : > { %v6435_v34 = vld [vmem:[#allocation2 + $0x70] sm:$0xff]  ;;  %5929 = vst.msk [vmem:[#allocation2 + $0x78] sm:$0xff] %vm658_vm0, %v5897_v48  ;;  %v5798_v49 = vmul.f32 %v5737_v36, %v17287_v39  ;;  %v14944_v28 = vpack.c.bf16 %v5962_v17, %v5961_v16  ;;  %v5299_v39 = vadd.f32 %v5267_v45, %v14512_v56  ;;  %v14961_v43 = vpop.f32.mrf.mxu0  ;;  %v17294_v56 = vld [vmem:[#allocation65_spill] sm:$0xff]  ;;  %v6086_v17 = vpop.f32.mrf.mxu1  ;;  %6935 = vperm.xlu2 %11244, %v14872_v2  }
 0x904   : > { %v6460_v53 = vpack.c.bf16 %v6435_v34, %v6434_v61  ;;  %v6684_v20 = vld [vmem:[#allocation2 + $0x69] sm:$0xff]  ;;  %v5268_v48 = vmul.f32 %v17294_v56, %v17293_v59  ;;  %v14972_v61 = vpop.permute.xlu1 %6200 }
 0x905   : > { %v5830_v33 = vadd.f32 %v5798_v49, %v5548_v18  ;;  %10679 = vmatmul.msk.bf16.gmra.mxu1 %vm658_vm0, %v14944_v28  ;;  %v5549_v62 = vadd.f32 %v14627_v52, %v5299_v39  ;;  %v17295_v18 = vld [vmem:[#allocation18_spill] sm:$0xff] }
 0x906   : > { %10719 = vmatmul.msk.bf16.gmra.mxu0 %vm658_vm0, %v6460_v53  ;;  %v5018_v36 = vadd.f32 %v4986_v14, %v17295_v18  ;;  %11247 = vset.pattern.permute.xlu1 %v17277_v13  ;;  %v14978_v53 = vpop.permute.xlu0 %6947  ;;  %v17298_v14 = vld [vmem:[#allocation7_spill] sm:$0xff] }
 0x907   : > { %v5866_v38 = vadd.f32 %v14704_v12, %v5830_v33  ;;  %10656 = vmatmul.msk.bf16.gmra.mxu3 %vm658_vm0, %v5614_v57  ;;  %17296 = vst [vmem:[#allocation11_spill] sm:$0xff] %v14978_v53 }
 0x908   : > { %v5300_v60 = vadd.f32 %v5268_v48, %v5018_v36  ;;  %v17299_v36 = vld [vmem:[#allocation24_spill] sm:$0xff] }
 0x909   : > { %v5898_v50 = vmax.f32 %v5866_v38, 0.0 }
 0x90a   : > { %v5740_v19 = vpop.f32.mrf.mxu3  ;;  %v6685_v8 = vld [vmem:[#allocation2 + $0x71] sm:$0xff]  ;;  %v5550_v57 = vadd.f32 %v14653_v32, %v5300_v60  ;;  %v14992_v32 = vpop.f32.mrf.mxu2  ;;  %v17302_v60 = vld [vmem:[#allocation5_spill] sm:$0xff] }
 0x90b   : > { %5930 = vst.msk [vmem:[#allocation2 + $0x80] sm:$0xff] %vm658_vm0, %v5898_v50  ;;  %v5799_v23 = vmul.f32 %v5740_v19, %v14106_v55  ;;  %v6710_v24 = vpack.c.bf16 %v6685_v8, %v6684_v20  ;;  %v6358_v55 = vmul.f32 %v14972_v61, %v6086_v17  ;;  %v5963_v49 = vld [vmem:[#allocation2 + $0x77] sm:$0xff]  ;;  %v6560_v39 = vpop.f32.mrf.mxu0  ;;  %v14988_v20 = vld [vmem:[%s17128_s22 + $0x80] sm:$0xff]  ;;  %11246 = vset.pattern.permute.xlu2 %v17277_v13 }
 0x90c   : > { %v6436_v33 = vld [vmem:[#allocation2 + $0x78] sm:$0xff]  ;;  %6280 = vperm.xlu1 %11247, %v14988_v20   ;;  %6270 = vperm.xlu2 %11246, %v14675_v25   ;;  %v17301_v25 = vld [vmem:[#allocation27_spill] sm:$0xff] }
 0x90d   : > { %v5831_v16 = vadd.f32 %v5799_v23, %v5549_v62  ;;  %10759 = vmatmul.msk.bf16.gmra.mxu2 %vm658_vm0, %v6710_v24  ;;  %v14990_v8 = vadd.f32 %v6560_v39, %v6358_v55  ;;  %v17297_v62 = vld [vmem:[#allocation23_spill] sm:$0xff]  ;;  %v6183_v55 = vld [vmem:[%s17128_s22 + $0x88] sm:$0xff] }
 0x90e   : > { %v5269_v23 = vmul.f32 %v14610_v6, %v17297_v62 }
 0x90f   : > { %v5867_v52 = vadd.f32 %v14704_v12, %v5831_v16 }
 0x910   : > { %v5301_v59 = vadd.f32 %v5269_v23, %v17298_v14 }
 0x911   : > { %v5899_v34 = vmax.f32 %v5867_v52, 0.0 }
 0x912   : > { %v5742_v27 = vpop.f32.mrf.mxu3  ;;  %v5964_v45 = vld [vmem:[#allocation2 + $0x7f] sm:$0xff]  ;;  %v5551_v18 = vadd.f32 %v14680_v30, %v5301_v59  ;;  %v15019_v30 = vpop.f32.mrf.mxu2 }
 0x913   : > { %v6437_v38 = vld [vmem:[#allocation2 + $0x80] sm:$0xff]  ;;  %5931 = vst.msk [vmem:[#allocation2 + $0x88] sm:$0xff] %vm658_vm0, %v5899_v34  ;;  %v5800_v2 = vmul.f32 %v5742_v27, %v17292_v1  ;;  %v14983_v50 = vpack.c.bf16 %v5964_v45, %v5963_v49  ;;  %v4988_v34 = vmul.f32 %v17302_v60, %v17301_v25 }
 0x914   : > { %v6461_v19 = vpack.c.bf16 %v6437_v38, %v6436_v33  ;;  %v6686_v6 = vld [vmem:[#allocation2 + $0x79] sm:$0xff]  ;;  %6285 = vperm.xlu1 %11247, %v6183_v55  }
 0x915   : > { %v5832_v24 = vadd.f32 %v5800_v2, %v5550_v57  ;;  %10680 = vmatmul.msk.bf16.gmra.mxu1 %vm658_vm0, %v14983_v50  ;;  %v17303_v49 = vld [vmem:[#allocation25_spill] sm:$0xff]  ;;  %v17304_v57 = vld [vmem:[#allocation70_spill] sm:$0xff]  ;;  %v17305_v33 = vld [vmem:[#allocation12_spill] sm:$0xff] }
 0x916   : > { %10720 = vmatmul.msk.bf16.gmra.mxu0 %vm658_vm0, %v6461_v19  ;;  %v5270_v27 = vmul.f32 %v17304_v57, %v17303_v49  ;;  %v5020_v38 = vadd.f32 %v4988_v34, %v17305_v33  ;;  %v17306_v59 = vld [vmem:[#allocation77_spill] sm:$0xff] }
 0x917   : > { %v5868_v1 = vadd.f32 %v14704_v12, %v5832_v24  ;;  %10793 = vmatmul.msk.bf16.vlgmr.msra.gmra.mxu3 %vm658_vm0, %v14749_v63  ;;  %v15012_v63 = vpop.permute.xlu0 %6967 }
 0x918   : > { %17300 = vst [vmem:[#allocation15_spill] sm:$0xff] %v15012_v63  ;;  %v5302_v2 = vadd.f32 %v5270_v27, %v5020_v38  ;;  %v17310_v27 = vld [vmem:[#allocation13_spill] sm:$0xff] }
 0x919   : > { %v5900_v56 = vmax.f32 %v5868_v1, 0.0 }
 0x91a   : > { %v5745_v48 = vpop.f32.mrf.mxu3  ;;  %v6687_v16 = vld [vmem:[#allocation2 + $0x81] sm:$0xff]  ;;  %v15045_v57 = vpop.f32.mrf.mxu2 }
 0x91b   : > { %5932 = vst.msk [vmem:[#allocation2 + $0x90] sm:$0xff] %vm658_vm0, %v5900_v56  ;;  %v5801_v17 = vmul.f32 %v5745_v48, %v17299_v36  ;;  %v6711_v52 = vpack.c.bf16 %v6687_v16, %v6686_v6  ;;  %v5965_v62 = vld [vmem:[#allocation2 + $0x87] sm:$0xff]  ;;  %v5552_v56 = vadd.f32 %v17306_v59, %v5302_v2  ;;  %v6184_v36 = vld [vmem:[%s17128_s22 + $0x90] sm:$0xff] }
 0x91c   : > { %v6438_v1 = vld [vmem:[#allocation2 + $0x88] sm:$0xff]  ;;  %6290 = vperm.xlu0 %11255, %v6184_v36   ;;  %11249 = vset.pattern.permute.xlu1 %v17275_v11 }
 0x91d   : > { %v5833_v45 = vadd.f32 %v5801_v17, %v5551_v18  ;;  %10760 = vmatmul.msk.bf16.gmra.mxu2 %vm658_vm0, %v6711_v52  ;;  %v6181_v18 = vld [vmem:[%s17128_s22 + $0x78] sm:$0xff]  ;;  %v17307_v17 = vld [vmem:[#allocation26_spill] sm:$0xff]  ;;  %v17308_v52 = vld [vmem:[#allocation61_spill] sm:$0xff]  ;;  %6959 = vperm.xlu1 %11249, %v6183_v55  }
 0x91e   : > { %6275 = vperm.xlu2 %11246, %v6181_v18   ;;  %v5271_v60 = vmul.f32 %v17308_v52, %v17307_v17  ;;  %v17312_v55 = vld [vmem:[#allocation32_spill] sm:$0xff]  ;;  %v15059_v17 = vpop.permute.xlu2 %6205 }
 0x91f   : > { %v5869_v39 = vadd.f32 %v14704_v12, %v5833_v45 }
 0x920   : > { %v5303_v45 = vadd.f32 %v5271_v60, %v17310_v27 }
 0x921   : > { %v5901_v19 = vmax.f32 %v5869_v39, 0.0  ;;  %v15048_v39 = vpop.f32.mrf.mxu1 }
 0x922   : > { %v5747_v23 = vpop.f32.mrf.mxu3  ;;  %v5966_v24 = vld [vmem:[#allocation2 + $0x8f] sm:$0xff] }
 0x923   : > { %v6439_v14 = vld [vmem:[#allocation2 + $0x90] sm:$0xff]  ;;  %5933 = vst.msk [vmem:[#allocation2 + $0x98] sm:$0xff] %vm658_vm0, %v5901_v19  ;;  %v5802_v48 = vmul.f32 %v5747_v23, %v17301_v25  ;;  %v15026_v6 = vpack.c.bf16 %v5966_v24, %v5965_v62  ;;  %v15039_v25 = vpop.permute.xlu0 %6987  ;;  %v5553_v62 = vadd.f32 %v14724_v10, %v5303_v45  ;;  %v17311_v23 = vld [vmem:[#allocation28_spill] sm:$0xff] }
 0x924   : > { %v6462_v16 = vpack.c.bf16 %v6439_v14, %v6438_v1  ;;  %17309 = vst [vmem:[#allocation14_spill] sm:$0xff] %v15039_v25  ;;  %v6688_v2 = vld [vmem:[#allocation2 + $0x89] sm:$0xff]  ;;  %v15053_v1 = vpop.f32.mrf.mxu0 }
 0x925   : > { %v5834_v34 = vadd.f32 %v5802_v48, %v5552_v56  ;;  %10681 = vmatmul.msk.bf16.gmra.mxu1 %vm658_vm0, %v15026_v6  ;;  %v17313_v14 = vld [vmem:[#allocation22_spill] sm:$0xff]  ;;  %v17314_v56 = vld [vmem:[#allocation29_spill] sm:$0xff]  ;;  %v17316_v10 = vld [vmem:[#allocation3_spill] sm:$0xff]  ;;  %6963 = vperm.xlu1 %11249, %v6184_v36  }
 0x926   : > { %10721 = vmatmul.msk.bf16.gmra.mxu0 %vm658_vm0, %v6462_v16  ;;  %v4990_v59 = vmul.f32 %v17313_v14, %v17312_v55  ;;  %v17315_v48 = vld [vmem:[#allocation74_spill] sm:$0xff]  ;;  %11248 = vset.pattern.permute.xlu2 %v17275_v11 }
 0x927   : > { %v5870_v49 = vadd.f32 %v14704_v12, %v5834_v34  ;;  %10794 = vmatmul.msk.bf16.gmra.mxu3 %vm658_vm0, %v14781_v58  ;;  %v5272_v16 = vmul.f32 %v17315_v48, %v17314_v56  ;;  %6951 = vperm.xlu2 %11248, %v6181_v18   ;;  %v15064_v34 = vpop.permute.xlu1 %6891 }
 0x928   : > { %v5022_v60 = vadd.f32 %v4990_v59, %v17316_v10  ;;  %17317 = vst [vmem:[#allocation16_spill] sm:$0xff] %v15064_v34  ;;  %v17320_v10 = vld [vmem:[#allocation30_spill] sm:$0xff] }
 0x929   : > { %v5902_v33 = vmax.f32 %v5870_v49, 0.0 }
 0x92a   : > { %v5750_v38 = vpop.f32.mrf.mxu3  ;;  %v6689_v19 = vld [vmem:[#allocation2 + $0x91] sm:$0xff]  ;;  %v5304_v27 = vadd.f32 %v5272_v16, %v5022_v60 }
 0x92b   : > { %5934 = vst.msk [vmem:[#allocation2 + $0xa0] sm:$0xff] %vm658_vm0, %v5902_v33  ;;  %v5803_v24 = vmul.f32 %v5750_v38, %v17311_v23  ;;  %v6712_v58 = vpack.c.bf16 %v6689_v19, %v6688_v2  ;;  %v15067_v33 = vpop.permute.xlu0 %6210  ;;  %v6440_v16 = vld [vmem:[#allocation2 + $0x98] sm:$0xff] }
 0x92c   : > { %17318 = vst [vmem:[#allocation4_spill] sm:$0xff] %v15067_v33  ;;  %v5554_v19 = vadd.f32 %v14741_v7, %v5304_v27  ;;  %v15079_v7 = vpop.permute.xlu2 %6895  ;;  %v17321_v60 = vld [vmem:[#allocation8_spill] sm:$0xff] }
 0x92d   : > { %v5835_v52 = vadd.f32 %v5803_v24, %v5553_v62  ;;  %10761 = vmatmul.msk.bf16.gmra.mxu2 %vm658_vm0, %v6712_v58  ;;  %v5967_v24 = vld [vmem:[#allocation2 + $0x97] sm:$0xff]  ;;  %17319 = vst [vmem:[#allocation6_spill] sm:$0xff] %v15079_v7  ;;  %11251 = vset.pattern.permute.xlu1 %v17277_v13 }
 0x92f   : > { %v5871_v49 = vadd.f32 %v14704_v12, %v5835_v52  ;;  %6955 = vperm.xlu2 %11248, %v14988_v20  }
 0x930   : > { %v6810_v45 = vpop.f32.mrf.mxu2 }
 0x931   : > { %v5903_v38 = vmax.f32 %v5871_v49, 0.0  ;;  %v7018_v2 = vmul.f32 %v15064_v34, %v6810_v45  ;;  %v5273_v49 = vmul.f32 %v17321_v60, %v17320_v10  ;;  %v15106_v10 = vld [vmem:[%s17128_s22 + $0xa8] sm:$0xff] }
 0x932   : > { %v5752_v62 = vpop.f32.mrf.mxu3  ;;  %v6091_v23 = vpop.f32.mrf.mxu1  ;;  %v5968_v18 = vld [vmem:[#allocation2 + $0x9f] sm:$0xff]  ;;  %v17325_v60 = vld [vmem:[#allocation38_spill] sm:$0xff]  ;;  %6305 = vperm.xlu1 %11251, %v15106_v10  }
 0x933   : > { %v6441_v58 = vld [vmem:[#allocation2 + $0xa0] sm:$0xff]  ;;  %5935 = vst.msk [vmem:[#allocation2 + $0xa8] sm:$0xff] %vm658_vm0, %v5903_v38  ;;  %v15073_v14 = vadd.f32 %v7018_v2, %v14990_v8  ;;  %v5804_v36 = vmul.f32 %v5752_v62, %v17312_v55  ;;  %v6565_v59 = vpop.f32.mrf.mxu0  ;;  %v6360_v56 = vmul.f32 %v15067_v33, %v6091_v23  ;;  %v15077_v48 = vpack.c.bf16 %v5968_v18, %v5967_v24  ;;  %v15093_v38 = vpop.permute.xlu1 %6215  ;;  %v17323_v2 = vld [vmem:[#allocation31_spill] sm:$0xff] }
 0x934   : > { %v6463_v52 = vpack.c.bf16 %v6441_v58, %v6440_v16  ;;  %17322 = vst [vmem:[#allocation17_spill] sm:$0xff] %v15093_v38  ;;  %v6690_v18 = vld [vmem:[#allocation2 + $0x99] sm:$0xff] }
 0x935   : > { %v5836_v27 = vadd.f32 %v5804_v36, %v5554_v19  ;;  %10682 = vmatmul.msk.bf16.gmra.mxu1 %vm658_vm0, %v15077_v48  ;;  %v6642_v8 = vadd.f32 %v6565_v59, %v6360_v56  ;;  %v5305_v19 = vadd.f32 %v5273_v49, %v17323_v2  ;;  %v17324_v36 = vld [vmem:[#allocation33_spill] sm:$0xff]  ;;  %v17326_v49 = vld [vmem:[#allocation35_spill] sm:$0xff] }
 0x936   : > { %10722 = vmatmul.msk.bf16.gmra.mxu0 %vm658_vm0, %v6463_v52  ;;  %v11146_v52 = vld [vmem:[%s16778_s13 + $0x88] sm:$0xff] }
 0x937   : > { %v5872_v55 = vadd.f32 %v14704_v12, %v5836_v27  ;;  %10795 = vmatmul.msk.bf16.gmra.mxu3 %vm658_vm0, %v14813_v3  ;;  %v5555_v58 = vadd.f32 %v14761_v9, %v5305_v19  ;;  %v4992_v9 = vmul.f32 %v17326_v49, %v17325_v60  ;;  %v17327_v27 = vld [vmem:[#allocation34_spill] sm:$0xff]  ;;  %7499 = vmatpush.bf16.msrb.mxu1 %v11146_v52 }
 0x938   : > { %v15091_v45 = vpop.f32.mrf.mxu2  ;;  %11250 = vset.pattern.permute.xlu2 %v17277_v13 }
 0x939   : > { %v5904_v62 = vmax.f32 %v5872_v55, 0.0  ;;  %v17328_v55 = vld [vmem:[#allocation78_spill] sm:$0xff] }
 0x93a   : > { %v5755_v23 = vpop.f32.mrf.mxu3  ;;  %v6093_v24 = vpop.f32.mrf.mxu1  ;;  %v6691_v20 = vld [vmem:[#allocation2 + $0xa1] sm:$0xff]  ;;  %v5274_v2 = vmul.f32 %v17328_v55, %v17327_v27 }
 0x93b   : > { %5936 = vst.msk [vmem:[#allocation2 + $0xb0] sm:$0xff] %vm658_vm0, %v5904_v62  ;;  %v5805_v59 = vmul.f32 %v5755_v23, %v17324_v36  ;;  %v6361_v3 = vmul.f32 %v15093_v38, %v6093_v24  ;;  %v6567_v56 = vpop.f32.mrf.mxu0  ;;  %v6713_v16 = vpack.c.bf16 %v6691_v20, %v6690_v18  ;;  %v17329_v23 = vld [vmem:[#allocation37_spill] sm:$0xff]  ;;  %v15115_v18 = vpop.permute.xlu2 %6899  ;;  %v17331_v36 = vld [vmem:[#allocation76_spill] sm:$0xff] }
 0x93c   : > { %v5024_v24 = vadd.f32 %v4992_v9, %v17329_v23  ;;  %17330 = vst [vmem:[#allocation20_spill] sm:$0xff] %v15115_v18  ;;  %6295 = vperm.xlu2 %11250, %v17331_v36   ;;  %v15120_v27 = vpop.permute.xlu0 %6220 }
 0x93d   : > { %v5837_v19 = vadd.f32 %v5805_v59, %v5555_v58  ;;  %v6643_v62 = vadd.f32 %v6567_v56, %v6361_v3  ;;  %10762 = vmatmul.msk.bf16.gmra.mxu2 %vm658_vm0, %v6713_v16  ;;  %17332 = vst [vmem:[#allocation19_spill] sm:$0xff] %v15120_v27  ;;  %v5969_v16 = vld [vmem:[#allocation2 + $0xa7] sm:$0xff] }
 0x93e   : > { %v5306_v49 = vadd.f32 %v5274_v2, %v5024_v24 }
 0x93f   : > { %v5873_v20 = vadd.f32 %v14704_v12, %v5837_v19 }
 0x940   : > { %v6815_v34 = vpop.f32.mrf.mxu2  ;;  %v5556_v59 = vadd.f32 %v14777_v15, %v5306_v49  ;;  %v6188_v15 = vld [vmem:[%s17128_s22 + $0xb0] sm:$0xff] }
 0x941   : > { %v5905_v55 = vmax.f32 %v5873_v20, 0.0  ;;  %v7020_v58 = vmul.f32 %v15115_v18, %v6815_v34  ;;  %v6442_v20 = vld [vmem:[#allocation2 + $0xa8] sm:$0xff]  ;;  %v17333_v34 = vld [vmem:[#allocation36_spill] sm:$0xff]  ;;  %v17334_v49 = vld [vmem:[#allocation79_spill] sm:$0xff]  ;;  %6310 = vperm.xlu1 %11251, %v6188_v15  }
 0x942   : > { %v5757_v3 = vpop.f32.mrf.mxu3  ;;  %v6096_v56 = vpop.f32.mrf.mxu1  ;;  %v5970_v52 = vld [vmem:[#allocation2 + $0xaf] sm:$0xff]  ;;  %v5275_v18 = vmul.f32 %v17334_v49, %v17333_v34  ;;  %v17338_v34 = vld [vmem:[#allocation41_spill] sm:$0xff] }
 0x943   : > { %v6443_v9 = vld [vmem:[#allocation2 + $0xb0] sm:$0xff]  ;;  %5937 = vst.msk [vmem:[#allocation2 + $0xb8] sm:$0xff] %vm658_vm0, %v5905_v55  ;;  %v15125_v23 = vadd.f32 %v7020_v58, %v6642_v8  ;;  %v5806_v19 = vmul.f32 %v5757_v3, %v17325_v60  ;;  %v6570_v2 = vpop.f32.mrf.mxu0  ;;  %v6362_v24 = vmul.f32 %v15120_v27, %v6096_v56  ;;  %v15129_v36 = vpack.c.bf16 %v5970_v52, %v5969_v16  ;;  %v15139_v60 = vpop.permute.xlu1 %6903  ;;  %v17336_v3 = vld [vmem:[#allocation40_spill] sm:$0xff] }
 0x944   : > { %v6464_v25 = vpack.c.bf16 %v6443_v9, %v6442_v20  ;;  %17335 = vst [vmem:[#allocation65_spill] sm:$0xff] %v15139_v60  ;;  %v5307_v56 = vadd.f32 %v5275_v18, %v17336_v3  ;;  %v15145_v52 = vpop.permute.xlu2 %6225  ;;  %v17339_v3 = vld [vmem:[#allocation42_spill] sm:$0xff] }
 0x945   : > { %v5838_v55 = vadd.f32 %v5806_v19, %v5556_v59  ;;  %10683 = vmatmul.msk.bf16.gmra.mxu1 %vm658_vm0, %v15129_v36  ;;  %v6644_v8 = vadd.f32 %v6570_v2, %v6362_v24  ;;  %17337 = vst [vmem:[#allocation18_spill] sm:$0xff] %v15145_v52 }
 0x946   : > { %10723 = vmatmul.msk.bf16.gmra.mxu0 %vm658_vm0, %v6464_v25  ;;  %v5557_v19 = vadd.f32 %v14803_v26, %v5307_v56  ;;  %v6692_v25 = vld [vmem:[#allocation2 + $0xa9] sm:$0xff]  ;;  %v6189_v26 = vld [vmem:[%s17128_s22 + $0xb8] sm:$0xff] }
 0x947   : > { %v5874_v58 = vadd.f32 %v14704_v12, %v5838_v55  ;;  %10796 = vmatmul.msk.bf16.gmra.mxu3 %vm658_vm0, %v14852_v40  ;;  %v17340_v56 = vld [vmem:[#allocation44_spill] sm:$0xff]  ;;  %6315 = vperm.xlu0 %11255, %v6189_v26  }
 0x948   : > { %v6817_v16 = vpop.f32.mrf.mxu2 }
 0x949   : > { %v5906_v9 = vmax.f32 %v5874_v58, 0.0  ;;  %v7021_v59 = vmul.f32 %v15139_v60, %v6817_v16  ;;  %v6186_v58 = vld [vmem:[%s17128_s22 + $0xa0] sm:$0xff]  ;;  %v4994_v16 = vmul.f32 %v17340_v56, %v17339_v3  ;;  %11253 = vset.pattern.permute.xlu1 %v17275_v11 }
 0x94a   : > { %v5760_v2 = vpop.f32.mrf.mxu3  ;;  %v6098_v24 = vpop.f32.mrf.mxu1  ;;  %v6693_v20 = vld [vmem:[#allocation2 + $0xb1] sm:$0xff]  ;;  %6300 = vperm.xlu2 %11250, %v6186_v58   ;;  %6979 = vperm.xlu1 %11253, %v6188_v15  }
 0x94b   : > { %5938 = vst.msk [vmem:[#allocation2 + $0xc0] sm:$0xff] %vm658_vm0, %v5906_v9  ;;  %v15150_v12 = vadd.f32 %v7021_v59, %v6643_v62  ;;  %v5807_v40 = vmul.f32 %v5760_v2, %v17338_v34  ;;  %v6363_v18 = vmul.f32 %v15145_v52, %v6098_v24  ;;  %v6572_v49 = vpop.f32.mrf.mxu0  ;;  %v6714_v55 = vpack.c.bf16 %v6693_v20, %v6692_v25  ;;  %v17341_v9 = vld [vmem:[#allocation39_spill] sm:$0xff]  ;;  %v15167_v20 = vpop.permute.xlu1 %6230  ;;  %v15172_v34 = vld [vmem:[%s16777_s12] ss:$0 sm:$0xff] }
 0x94c   : > { %v5276_v62 = vmul.f32 %v14763_v42, %v17341_v9  ;;  %v17342_v24 = vld [vmem:[#allocation47_spill] sm:$0xff]  ;;  %17343 = vst [vmem:[#allocation23_spill] sm:$0xff] %v15167_v20 }
 0x94d   : > { %v5839_v59 = vadd.f32 %v5807_v40, %v5557_v19  ;;  %v6645_v2 = vadd.f32 %v6572_v49, %v6363_v18  ;;  %10763 = vmatmul.msk.bf16.gmra.mxu2 %vm658_vm0, %v6714_v55  ;;  %v5026_v25 = vadd.f32 %v4994_v16, %v17342_v24  ;;  %v5971_v16 = vld [vmem:[#allocation2 + $0xb7] sm:$0xff] }
 0x94f   : > { %v5875_v42 = vadd.f32 %v15172_v34, %v5839_v59  ;;  %v5308_v56 = vadd.f32 %v5276_v62, %v5026_v25 }
 0x950   : > { %v6820_v9 = vpop.f32.mrf.mxu2 }
 0x951   : > { %v5907_v19 = vmax.f32 %v5875_v42, 0.0  ;;  %v7022_v40 = vmul.f32 %v14933_v21, %v6820_v9  ;;  %v5558_v18 = vadd.f32 %v14827_v5, %v5308_v56  ;;  %v6444_v42 = vld [vmem:[#allocation2 + $0xb8] sm:$0xff]  ;;  %v17344_v9 = vld [vmem:[#allocation43_spill] sm:$0xff]  ;;  %v15186_v21 = vpop.permute.xlu2 %6911 }
 0x952   : > { %v5762_v49 = vpop.f32.mrf.mxu3  ;;  %v6101_v55 = vpop.f32.mrf.mxu1  ;;  %v5972_v24 = vld [vmem:[#allocation2 + $0xbf] sm:$0xff]  ;;  %v5277_v5 = vmul.f32 %v14788_v29, %v17344_v9  ;;  %17345 = vst [vmem:[#allocation7_spill] sm:$0xff] %v15186_v21  ;;  %11252 = vset.pattern.permute.xlu2 %v17275_v11  ;;  %6983 = vperm.xlu1 %11253, %v6189_v26   ;;  %v17346_v29 = vld [vmem:[#allocation50_spill] sm:$0xff]  ;;  %v17349_v9 = vld [vmem:[#allocation51_spill] sm:$0xff] }
 0x953   : > { %v6445_v60 = vld [vmem:[#allocation2 + $0xc0] sm:$0xff]  ;;  %5939 = vst.msk [vmem:[#allocation2 + $0xc8] sm:$0xff] %vm658_vm0, %v5907_v19  ;;  %v15178_v15 = vadd.f32 %v7022_v40, %v6644_v8  ;;  %v5808_v52 = vmul.f32 %v5762_v49, %v17339_v3  ;;  %v6364_v59 = vmul.f32 %v15167_v20, %v6101_v55  ;;  %v6575_v62 = vpop.f32.mrf.mxu0  ;;  %v15182_v25 = vpack.c.bf16 %v5972_v24, %v5971_v16  ;;  %v15196_v40 = vpop.permute.xlu1 %6235  ;;  %v17348_v26 = vld [vmem:[#allocation46_spill] sm:$0xff] }
 0x954   : > { %v6465_v56 = vpack.c.bf16 %v6445_v60, %v6444_v42  ;;  %6971 = vperm.xlu2 %11252, %v6186_v58   ;;  %v5309_v60 = vadd.f32 %v5277_v5, %v17346_v29  ;;  %17347 = vst [vmem:[#allocation24_spill] sm:$0xff] %v15196_v40  ;;  %v6694_v16 = vld [vmem:[#allocation2 + $0xb9] sm:$0xff]  ;;  %v17350_v5 = vld [vmem:[#allocation54_spill] sm:$0xff] }
 0x955   : > { %v5840_v27 = vadd.f32 %v5808_v52, %v5558_v18  ;;  %v6646_v19 = vadd.f32 %v6575_v62, %v6364_v59  ;;  %10684 = vmatmul.msk.bf16.gmra.mxu1 %vm658_vm0, %v15182_v25  ;;  %v17352_v29 = vld [vmem:[#allocation80_spill] sm:$0xff] }
 0x956   : > { %10724 = vmatmul.msk.bf16.gmra.mxu0 %vm658_vm0, %v6465_v56  ;;  %v5559_v18 = vadd.f32 %v14845_v46, %v5309_v60  ;;  %v4996_v56 = vmul.f32 %v17350_v5, %v17349_v9 }
 0x957   : > { %v5876_v8 = vadd.f32 %v15172_v34, %v5840_v27  ;;  %10797 = vmatmul.msk.bf16.gmra.mxu3 %vm658_vm0, %v14889_v54 }
 0x958   : > { %v6822_v3 = vpop.f32.mrf.mxu2 }
 0x959   : > { %v5908_v49 = vmax.f32 %v5876_v8, 0.0  ;;  %v7023_v52 = vmul.f32 %v15186_v21, %v6822_v3  ;;  %v17351_v8 = vld [vmem:[#allocation45_spill] sm:$0xff] }
 0x95a   : > { %v5765_v55 = vpop.f32.mrf.mxu3  ;;  %v6103_v58 = vpop.f32.mrf.mxu1  ;;  %v6695_v24 = vld [vmem:[#allocation2 + $0xc1] sm:$0xff]  ;;  %v5278_v46 = vmul.f32 %v17352_v29, %v17351_v8  ;;  %11256 = vset.pattern.permute.xlu1 %v17277_v13 }
 0x95b   : > { %5940 = vst.msk [vmem:[#allocation2 + $0xd0] sm:$0xff] %vm658_vm0, %v5908_v49  ;;  %v15201_v27 = vadd.f32 %v7023_v52, %v6645_v2  ;;  %v5809_v54 = vmul.f32 %v5765_v55, %v17348_v26  ;;  %v6365_v59 = vmul.f32 %v15196_v40, %v6103_v58  ;;  %v6577_v62 = vpop.f32.mrf.mxu0  ;;  %v6715_v42 = vpack.c.bf16 %v6695_v24, %v6694_v16  ;;  %v17353_v2 = vld [vmem:[#allocation64_spill] sm:$0xff]  ;;  %v15212_v52 = vpop.permute.xlu2 %6915 }
 0x95c   : > { %6975 = vperm.xlu2 %11252, %v15106_v10   ;;  %v5028_v49 = vadd.f32 %v4996_v56, %v17353_v2  ;;  %17354 = vst [vmem:[#allocation27_spill] sm:$0xff] %v15212_v52  ;;  %v15216_v24 = vpop.permute.xlu0 %6240  ;;  %v5973_v10 = vld [vmem:[#allocation2 + $0xc7] sm:$0xff] }
 0x95d   : > { %v5841_v60 = vadd.f32 %v5809_v54, %v5559_v18  ;;  %v6647_v3 = vadd.f32 %v6577_v62, %v6365_v59  ;;  %10764 = vmatmul.msk.bf16.gmra.mxu2 %vm658_vm0, %v6715_v42  ;;  %17355 = vst [vmem:[#allocation5_spill] sm:$0xff] %v15216_v24  ;;  %v6446_v2 = vld [vmem:[#allocation2 + $0xc8] sm:$0xff] }
 0x95e   : > { %v5310_v58 = vadd.f32 %v5278_v46, %v5028_v49  ;;  %v17356_v49 = vld [vmem:[#allocation48_spill] sm:$0xff] }
 0x95f   : > { %v5877_v55 = vadd.f32 %v15172_v34, %v5841_v60 }
 0x960   : > { %v6825_v16 = vpop.f32.mrf.mxu2  ;;  %v5560_v54 = vadd.f32 %v14865_v37, %v5310_v58  ;;  %v15230_v37 = vld [vmem:[%s17128_s22 + $0xd0] sm:$0xff] }
 0x961   : > { %v5909_v26 = vmax.f32 %v5877_v55, 0.0  ;;  %v7024_v18 = vmul.f32 %v15212_v52, %v6825_v16  ;;  %v17357_v55 = vld [vmem:[#allocation81_spill] sm:$0xff]  ;;  %6330 = vperm.xlu1 %11256, %v15230_v37  }
 0x962   : > { %v5767_v59 = vpop.f32.mrf.mxu3  ;;  %v6106_v62 = vpop.f32.mrf.mxu1  ;;  %v5974_v42 = vld [vmem:[#allocation2 + $0xcf] sm:$0xff]  ;;  %v5279_v58 = vmul.f32 %v17357_v55, %v17356_v49 }
 0x963   : > { %v6447_v5 = vld [vmem:[#allocation2 + $0xd0] sm:$0xff]  ;;  %5941 = vst.msk [vmem:[#allocation2 + $0xd8] sm:$0xff] %vm658_vm0, %v5909_v26  ;;  %v15221_v56 = vadd.f32 %v7024_v18, %v6646_v19  ;;  %v5810_v8 = vmul.f32 %v5767_v59, %v17349_v9  ;;  %v6580_v29 = vpop.f32.mrf.mxu0  ;;  %v6366_v46 = vmul.f32 %v15216_v24, %v6106_v62  ;;  %v15225_v60 = vpack.c.bf16 %v5974_v42, %v5973_v10  ;;  %v15234_v26 = vpop.permute.xlu1 %6919  ;;  %v11537_v59 = vld [vmem:[%s17128_s22 + $0xc0] sm:$0xff] }
 0x964   : > { %v6466_v16 = vpack.c.bf16 %v6447_v5, %v6446_v2  ;;  %17358 = vst [vmem:[#allocation25_spill] sm:$0xff] %v15234_v26  ;;  %11254 = vset.pattern.permute.xlu2 %v17277_v13  ;;  %v15241_v18 = vpop.permute.xlu2 %6245  ;;  %v6696_v49 = vld [vmem:[#allocation2 + $0xc9] sm:$0xff] }
 0x965   : > { %v5842_v19 = vadd.f32 %v5810_v8, %v5560_v54  ;;  %10685 = vmatmul.msk.bf16.gmra.mxu1 %vm658_vm0, %v15225_v60  ;;  %v6648_v9 = vadd.f32 %v6580_v29, %v6366_v46  ;;  %17359 = vst [vmem:[#allocation70_spill] sm:$0xff] %v15241_v18  ;;  %6320 = vperm.xlu2 %11254, %v11537_v59   ;;  %v17360_v54 = vld [vmem:[#allocation66_spill] sm:$0xff] }
 0x966   : > { %10725 = vmatmul.msk.bf16.gmra.mxu0 %vm658_vm0, %v6466_v16  ;;  %v5311_v10 = vadd.f32 %v5279_v58, %v17360_v54  ;;  %v17362_v54 = vld [vmem:[#allocation53_spill] sm:$0xff] }
 0x967   : > { %v5878_v62 = vadd.f32 %v15172_v34, %v5842_v19  ;;  %10798 = vmatmul.msk.bf16.gmra.mxu3 %vm658_vm0, %v14944_v28  ;;  %v17361_v19 = vld [vmem:[#allocation52_spill] sm:$0xff] }
 0x968   : > { %v6827_v42 = vpop.f32.mrf.mxu2  ;;  %v5561_v29 = vadd.f32 %v14899_v47, %v5311_v10  ;;  %v17363_v47 = vld [vmem:[#allocation67_spill] sm:$0xff] }
 0x969   : > { %v5910_v5 = vmax.f32 %v5878_v62, 0.0  ;;  %v7025_v8 = vmul.f32 %v15234_v26, %v6827_v42  ;;  %v6193_v62 = vld [vmem:[%s17128_s22 + $0xd8] sm:$0xff]  ;;  %v4998_v10 = vmul.f32 %v17363_v47, %v17362_v54  ;;  %v17364_v42 = vld [vmem:[#allocation49_spill] sm:$0xff] }
 0x96a   : > { %v5770_v46 = vpop.f32.mrf.mxu3  ;;  %v6108_v2 = vpop.f32.mrf.mxu1  ;;  %v6697_v55 = vld [vmem:[#allocation2 + $0xd1] sm:$0xff]  ;;  %v5280_v26 = vmul.f32 %v14847_v41, %v17364_v42  ;;  %6335 = vperm.xlu1 %11256, %v6193_v62  }
 0x96b   : > { %5942 = vst.msk [vmem:[#allocation2 + $0xe0] sm:$0xff] %vm658_vm0, %v5910_v5  ;;  %v15253_v16 = vadd.f32 %v7025_v8, %v6647_v3  ;;  %v5811_v59 = vmul.f32 %v5770_v46, %v17361_v19  ;;  %v6367_v28 = vmul.f32 %v15241_v18, %v6108_v2  ;;  %v6582_v52 = vpop.f32.mrf.mxu0  ;;  %v6716_v58 = vpack.c.bf16 %v6697_v55, %v6696_v49  ;;  %v17365_v8 = vld [vmem:[#allocation68_spill] sm:$0xff]  ;;  %v15266_v2 = vpop.permute.xlu1 %6923 }
 0x96c   : > { %v5030_v46 = vadd.f32 %v4998_v10, %v17365_v8  ;;  %17366 = vst [vmem:[#allocation12_spill] sm:$0xff] %v15266_v2  ;;  %v15269_v21 = vpop.permute.xlu2 %6250 }
 0x96d   : > { %v5843_v5 = vadd.f32 %v5811_v59, %v5561_v29  ;;  %v6649_v3 = vadd.f32 %v6582_v52, %v6367_v28  ;;  %10765 = vmatmul.msk.bf16.gmra.mxu2 %vm658_vm0, %v6716_v58  ;;  %17367 = vst [vmem:[#allocation77_spill] sm:$0xff] %v15269_v21  ;;  %v5975_v52 = vld [vmem:[#allocation2 + $0xd7] sm:$0xff] }
 0x96e   : > { %v5312_v55 = vadd.f32 %v5280_v26, %v5030_v46  ;;  %v6448_v46 = vld [vmem:[#allocation2 + $0xd8] sm:$0xff] }
 0x96f   : > { %v5879_v49 = vadd.f32 %v15172_v34, %v5843_v5 }
 0x970   : > { %v6830_v19 = vpop.f32.mrf.mxu2  ;;  %v5562_v41 = vadd.f32 %v14936_v0, %v5312_v55  ;;  %v6191_v0 = vld [vmem:[%s17128_s22 + $0xc8] sm:$0xff]  ;;  %v17368_v55 = vld [vmem:[#allocation55_spill] sm:$0xff] }
 0x971   : > { %v5911_v18 = vmax.f32 %v5879_v49, 0.0  ;;  %v7026_v47 = vmul.f32 %v15266_v2, %v6830_v19  ;;  %v6194_v49 = vld [vmem:[%s17128_s22 + $0xe0] sm:$0xff]  ;;  %6325 = vperm.xlu2 %11254, %v6191_v0  }
 0x972   : > { %v5772_v42 = vpop.f32.mrf.mxu3  ;;  %v6111_v29 = vpop.f32.mrf.mxu1  ;;  %v5976_v59 = vld [vmem:[#allocation2 + $0xdf] sm:$0xff]  ;;  %6340 = vperm.xlu0 %11255, %v6194_v49   ;;  %11258 = vset.pattern.permute.xlu1 %v17275_v11 }
 0x973   : > { %v6449_v28 = vld [vmem:[#allocation2 + $0xe0] sm:$0xff]  ;;  %5943 = vst.msk [vmem:[#allocation2 + $0xe8] sm:$0xff] %vm658_vm0, %v5911_v18  ;;  %v15274_v58 = vadd.f32 %v7026_v47, %v6648_v9  ;;  %v5812_v10 = vmul.f32 %v5772_v42, %v17362_v54  ;;  %v6368_v26 = vmul.f32 %v15269_v21, %v6111_v29  ;;  %v6585_v5 = vpop.f32.mrf.mxu0  ;;  %v15278_v8 = vpack.c.bf16 %v5976_v59, %v5975_v52  ;;  %v15292_v47 = vpop.permute.xlu1 %6255 }
 0x974   : > { %v5281_v9 = vmul.f32 %v14874_v22, %v17368_v55  ;;  %v6467_v18 = vpack.c.bf16 %v6449_v28, %v6448_v46  ;;  %17369 = vst [vmem:[#allocation26_spill] sm:$0xff] %v15292_v47  ;;  %6999 = vperm.xlu1 %11258, %v6193_v62   ;;  %v17370_v22 = vld [vmem:[#allocation69_spill] sm:$0xff] }
 0x975   : > { %v5844_v54 = vadd.f32 %v5812_v10, %v5562_v41  ;;  %v6650_v19 = vadd.f32 %v6585_v5, %v6368_v26  ;;  %10686 = vmatmul.msk.bf16.gmra.mxu1 %vm658_vm0, %v15278_v8  ;;  %v6698_v5 = vld [vmem:[#allocation2 + $0xd9] sm:$0xff] }
 0x976   : > { %10726 = vmatmul.msk.bf16.gmra.mxu0 %vm658_vm0, %v6467_v18  ;;  %v5313_v29 = vadd.f32 %v5281_v9, %v17370_v22  ;;  %v17371_v55 = vld [vmem:[#allocation57_spill] sm:$0xff]  ;;  %v17372_v22 = vld [vmem:[#allocation58_spill] sm:$0xff] }
 0x977   : > { %v5880_v42 = vadd.f32 %v15172_v34, %v5844_v54  ;;  %10799 = vmatmul.msk.bf16.gmra.mxu3 %vm658_vm0, %v14983_v50 }
 0x978   : > { %v6832_v52 = vpop.f32.mrf.mxu2  ;;  %v5563_v28 = vadd.f32 %v14959_v44, %v5313_v29  ;;  %v11152_v44 = vld [vmem:[%s16778_s13 + $0xb8] sm:$0xff]  ;;  %v17373_v29 = vld [vmem:[#allocation71_spill] sm:$0xff] }
 0x979   : > { %v5912_v41 = vmax.f32 %v5880_v42, 0.0  ;;  %v7027_v59 = vmul.f32 %v14956_v51, %v6832_v52  ;;  %v11145_v42 = vld [vmem:[%s16778_s13 + $0x80] sm:$0xff]  ;;  %v5000_v52 = vmul.f32 %v17373_v29, %v17372_v22  ;;  %11257 = vset.pattern.permute.xlu2 %v17275_v11  ;;  %7747 = vmatpush.bf16.msrb.mxu0 %v11152_v44 }
 0x97a   : > { %v5775_v10 = vpop.f32.mrf.mxu3  ;;  %v6113_v26 = vpop.f32.mrf.mxu1  ;;  %v6699_v46 = vld [vmem:[#allocation2 + $0xe1] sm:$0xff]  ;;  %11260 = vset.pattern.permute.xlu0 %v17275_v11  ;;  %7500 = vmatpush.bf16.msrb.mxu1 %v11145_v42 }
 0x97b   : > { %5944 = vst.msk [vmem:[#allocation2 + $0xf0] sm:$0xff] %vm658_vm0, %v5912_v41  ;;  %v15301_v62 = vadd.f32 %v7027_v59, %v6649_v3  ;;  %v5813_v18 = vmul.f32 %v5775_v10, %v17371_v55  ;;  %v6369_v50 = vmul.f32 %v15292_v47, %v6113_v26  ;;  %v6587_v54 = vpop.f32.mrf.mxu0  ;;  %v6717_v9 = vpack.c.bf16 %v6699_v46, %v6698_v5  ;;  %v17374_v41 = vld [vmem:[#allocation56_spill] sm:$0xff]  ;;  %v15315_v59 = vpop.permute.xlu2 %6931 }
 0x97c   : > { %v5282_v3 = vmul.f32 %v14904_v4, %v17374_v41  ;;  %17375 = vst [vmem:[#allocation61_spill] sm:$0xff] %v15315_v59  ;;  %v11156_v5 = vld [vmem:[%s16778_s13 + $0xd8] sm:$0xff]  ;;  %v11151_v4 = vld [vmem:[%s16778_s13 + $0xb0] sm:$0xff]  ;;  %6991 = vperm.xlu2 %11257, %v6191_v0   ;;  %7003 = vperm.xlu1 %11258, %v6194_v49   ;;  %v5977_v41 = vld [vmem:[#allocation2 + $0xe7] sm:$0xff] }
 0x97d   : > { %v5845_v10 = vadd.f32 %v5813_v18, %v5563_v28  ;;  %v6651_v26 = vadd.f32 %v6587_v54, %v6369_v50  ;;  %10766 = vmatmul.msk.bf16.gmra.mxu2 %vm658_vm0, %v6717_v9  ;;  %v17376_v46 = vld [vmem:[#allocation72_spill] sm:$0xff]  ;;  %v15328_v50 = vpop.permute.xlu1 %6260  ;;  %7748 = vmatpush.bf16.msrb.mxu0 %v11151_v4 }
 0x97e   : > { %v5032_v55 = vadd.f32 %v5000_v52, %v17376_v46  ;;  %8029 = vmatpush.bf16.msrb.mxu2 %v11156_v5  ;;  %17377 = vst [vmem:[#allocation13_spill] sm:$0xff] %v15328_v50 }
 0x97f   : > { %v5881_v29 = vadd.f32 %v15172_v34, %v5845_v10 }
 0x980   : > { %v5314_v28 = vadd.f32 %v5282_v3, %v5032_v55  ;;  %v6835_v18 = vpop.f32.mrf.mxu2  ;;  %v6450_v55 = vld [vmem:[#allocation2 + $0xe8] sm:$0xff] }
 0x981   : > { %v5913_v54 = vmax.f32 %v5881_v29, 0.0  ;;  %v7028_v9 = vmul.f32 %v15315_v59, %v6835_v18  ;;  %v17378_v29 = vld [vmem:[#allocation59_spill] sm:$0xff] }
 0x982   : > { %v5564_v42 = vadd.f32 %v14992_v32, %v5314_v28  ;;  %v5777_v52 = vpop.f32.mrf.mxu3  ;;  %v6116_v44 = vpop.f32.mrf.mxu1  ;;  %v5978_v46 = vld [vmem:[#allocation2 + $0xef] sm:$0xff]  ;;  %v5283_v28 = vmul.f32 %v14939_v35, %v17378_v29 }
 0x983   : > { %v6451_v2 = vld [vmem:[#allocation2 + $0xf0] sm:$0xff]  ;;  %5945 = vst.msk [vmem:[#allocation2 + $0xf8] sm:$0xff] %vm658_vm0, %v5913_v54  ;;  %v15333_v0 = vadd.f32 %v7028_v9, %v6650_v19  ;;  %v5814_v49 = vmul.f32 %v5777_v52, %v17372_v22  ;;  %v6370_v3 = vmul.f32 %v15328_v50, %v6116_v44  ;;  %v6590_v10 = vpop.f32.mrf.mxu0  ;;  %v15337_v5 = vpack.c.bf16 %v5978_v46, %v5977_v41  ;;  %v11150_v32 = vld [vmem:[%s16778_s13 + $0xa8] sm:$0xff]  ;;  %v15350_v22 = vpop.permute.xlu2 %6935  ;;  %v6197_v9 = vld [vmem:[%s17128_s22 + $0xf8] sm:$0xff] }
 0x984   : > { %v6468_v4 = vpack.c.bf16 %v6451_v2, %v6450_v55  ;;  %v11155_v19 = vld [vmem:[%s16778_s13 + $0xd0] sm:$0xff]  ;;  %17379 = vst [vmem:[#allocation28_spill] sm:$0xff] %v15350_v22  ;;  %6995 = vperm.xlu2 %11257, %v15230_v37   ;;  %v6195_v35 = vld [vmem:[%s17128_s22 + $0xe8] sm:$0xff]  ;;  %7749 = vmatpush.bf16.msrb.mxu0 %v11150_v32  ;;  %v15363_v41 = vpop.permute.xlu0 %6265  ;;  %v11149_v37 = vld [vmem:[%s16778_s13 + $0xa0] sm:$0xff] }
 0x985   : > { %v5846_v18 = vadd.f32 %v5814_v49, %v5564_v42  ;;  %v6652_v54 = vadd.f32 %v6590_v10, %v6370_v3  ;;  %10687 = vmatmul.msk.bf16.gmra.mxu1 %vm658_vm0, %v15337_v5  ;;  %v17380_v42 = vld [vmem:[#allocation73_spill] sm:$0xff]  ;;  %17381 = vst [vmem:[#allocation32_spill] sm:$0xff] %v15363_v41  ;;  %8030 = vmatpush.bf16.msrb.mxu2 %v11155_v19  ;;  %v6700_v32 = vld [vmem:[#allocation2 + $0xe9] sm:$0xff] }
 0x986   : > { %10727 = vmatmul.msk.bf16.gmra.mxu0 %vm658_vm0, %v6468_v4  ;;  %v5315_v52 = vadd.f32 %v5283_v28, %v17380_v42  ;;  %7007 = vperm.xlu0 %11260, %v6195_v35   ;;  %v17382_v4 = vld [vmem:[#allocation63_spill] sm:$0xff] }
 0x987   : > { %v5882_v2 = vadd.f32 %v15172_v34, %v5846_v18  ;;  %10800 = vmatmul.msk.bf16.gmra.mxu3 %vm658_vm0, %v15026_v6  ;;  %v11154_v6 = vld [vmem:[%s16778_s13 + $0xc8] sm:$0xff]  ;;  %11261 = vset.pattern.permute.xlu1 %v17277_v13 }
 0x988   : > { %v6837_v44 = vpop.f32.mrf.mxu2  ;;  %v5565_v3 = vadd.f32 %v15019_v30, %v5315_v52  ;;  %6355 = vperm.xlu1 %11261, %v6197_v9   ;;  %v15383_v52 = vpop.permute.xlu1 %6939  ;;  %7750 = vmatpush.bf16.msrb.mxu0 %v11149_v37 }
 0x989   : > { %v5914_v46 = vmax.f32 %v5882_v2, 0.0  ;;  %v7029_v49 = vmul.f32 %v15350_v22, %v6837_v44  ;;  %v17383_v44 = vld [vmem:[#allocation62_spill] sm:$0xff]  ;;  %v17384_v22 = vld [vmem:[#allocation60_spill] sm:$0xff]  ;;  %17385 = vst [vmem:[#allocation22_spill] sm:$0xff] %v15383_v52  ;;  %8031 = vmatpush.bf16.msrb.mxu2 %v11154_v6 }
 0x98a   : > { %v5780_v10 = vpop.f32.mrf.mxu3  ;;  %v6118_v55 = vpop.f32.mrf.mxu1  ;;  %v6701_v29 = vld [vmem:[#allocation2 + $0xf1] sm:$0xff]  ;;  %v5002_v59 = vmul.f32 %v14952_v31, %v17383_v44  ;;  %v5284_v30 = vmul.f32 %v14961_v43, %v17384_v22 }
 0x98b   : > { %5946 = vst.msk [vmem:[#allocation2 + $0x100] sm:$0xff] %vm658_vm0, %v5914_v46  ;;  %v15375_v28 = vadd.f32 %v7029_v49, %v6651_v26  ;;  %v5815_v18 = vmul.f32 %v5780_v10, %v17382_v4  ;;  %v6592_v19 = vpop.f32.mrf.mxu0  ;;  %v6371_v2 = vmul.f32 %v15363_v41, %v6118_v55  ;;  %v6718_v42 = vpack.c.bf16 %v6701_v29, %v6700_v32  ;;  %v11153_v26 = vld [vmem:[%s16778_s13 + $0xc0] sm:$0xff]  ;;  %v17386_v49 = vld [vmem:[#allocation75_spill] sm:$0xff]  ;;  %v15390_v55 = vpop.permute.xlu2 %6270 }
 0x98c   : > { %v5034_v10 = vadd.f32 %v5002_v59, %v17386_v49  ;;  %11259 = vset.pattern.permute.xlu2 %v17277_v13  ;;  %v5979_v4 = vld [vmem:[#allocation2 + $0xf7] sm:$0xff] }
 0x98d   : > { %v5847_v51 = vadd.f32 %v5815_v18, %v5565_v3  ;;  %v6653_v46 = vadd.f32 %v6592_v19, %v6371_v2  ;;  %10767 = vmatmul.msk.bf16.gmra.mxu2 %vm658_vm0, %v6718_v42  ;;  %6345 = vperm.xlu2 %11259, %v6195_v35   ;;  %v6452_v42 = vld [vmem:[#allocation2 + $0xf8] sm:$0xff] }
 0x98e   : > { %v5316_v43 = vadd.f32 %v5284_v30, %v5034_v10  ;;  %8032 = vmatpush.bf16.msrb.mxu2 %v11153_v26 }
 0x98f   : > { %v5883_v31 = vadd.f32 %v15172_v34, %v5847_v51 }
 0x990   : > { %v6840_v22 = vpop.f32.mrf.mxu2  ;;  %v5566_v3 = vadd.f32 %v15045_v57, %v5316_v43  ;;  %11263 = vset.pattern.permute.xlu1 %v17275_v11  ;;  %v15407_v49 = vpop.permute.xlu1 %6943 }
 0x991   : > { %v5915_v37 = vmax.f32 %v5883_v31, 0.0  ;;  %v7030_v6 = vmul.f32 %v15383_v52, %v6840_v22  ;;  %7015 = vperm.xlu1 %11263, %v6197_v9   ;;  %17387 = vst [vmem:[#allocation29_spill] sm:$0xff] %v15407_v49 }
 0x992   : > { %v5782_v32 = vpop.f32.mrf.mxu3  ;;  %v6121_v29 = vpop.f32.mrf.mxu1  ;;  %v5980_v18 = vld [vmem:[#allocation2 + $0xff] sm:$0xff] }
 0x993   : > { %v6453_v59 = vld [vmem:[#allocation2 + $0x100] sm:$0xff]  ;;  %5947 = vst.msk [vmem:[#allocation2 + $0x108] sm:$0xff] %vm658_vm0, %v5915_v37  ;;  %v15398_v13 = vadd.f32 %v7030_v6, %v6652_v54  ;;  %v5816_v51 = vmul.f32 %v5782_v32, %v17383_v44  ;;  %v6372_v35 = vmul.f32 %v15390_v55, %v6121_v29  ;;  %v6595_v19 = vpop.f32.mrf.mxu0  ;;  %v15402_v2 = vpack.c.bf16 %v5980_v18, %v5979_v4  ;;  %v6196_v44 = vld [vmem:[%s17128_s22 + $0xf0] sm:$0xff]  ;;  %v15415_v9 = vpop.permute.xlu2 %6275 }
 0x994   : > { %v6469_v57 = vpack.c.bf16 %v6453_v59, %v6452_v42  ;;  %17388 = vst [vmem:[#allocation74_spill] sm:$0xff] %v15415_v9  ;;  %v6702_v6 = vld [vmem:[#allocation2 + $0xf9] sm:$0xff] }
 0x995   : > { %v5848_v30 = vadd.f32 %v5816_v51, %v5566_v3  ;;  %v6654_v26 = vadd.f32 %v6595_v19, %v6372_v35  ;;  %10688 = vmatmul.msk.bf16.gmra.mxu1 %vm658_vm0, %v15402_v2  ;;  %6350 = vperm.xlu2 %11259, %v6196_v44   ;;  %v7365_v51 = vld [vmem:[#allocation2 + $0x20] sm:$0xff] }
 0x996   : > { %10728 = vmatmul.msk.bf16.gmra.mxu0 %vm658_vm0, %v6469_v57  ;;  %v7615_v19 = vld [vmem:[#allocation2 + $0x21] sm:$0xff]  ;;  %v7364_v57 = vld [vmem:[#allocation2 + $0x18] sm:$0xff] }
 0x997   : > { %v5884_v54 = vadd.f32 %v15172_v34, %v5848_v30  ;;  %10801 = vmatmul.msk.bf16.gmra.mxu3 %vm658_vm0, %v15077_v48 }
 0x998   : > { %v6842_v10 = vpop.f32.mrf.mxu2  ;;  %v15423_v18 = vpop.permute.xlu1 %6280 }
 0x999   : > { %v5916_v31 = vmax.f32 %v5884_v54, 0.0  ;;  %v7031_v43 = vmul.f32 %v15407_v49, %v6842_v10  ;;  %17389 = vst [vmem:[#allocation3_spill] sm:$0xff] %v15423_v18 }
 0x99a   : > { %v6123_v22 = vpop.f32.mrf.mxu1  ;;  %v7220_v37 = vpop.f32.mrf.mxu3  ;;  %v6703_v3 = vld [vmem:[#allocation2 + $0x101] sm:$0xff] }
 0x99b   : > { %5948 = vst.msk [vmem:[#allocation2 + $0x110] sm:$0xff] %vm658_vm0, %v5916_v31  ;;  %v15419_v34 = vadd.f32 %v7031_v43, %v6653_v46  ;;  %v6373_v48 = vmul.f32 %v15415_v9, %v6123_v22  ;;  %v6597_v32 = vpop.f32.mrf.mxu0  ;;  %v6719_v29 = vpack.c.bf16 %v6703_v3, %v6702_v6  ;;  %v7396_v31 = vpack.c.bf16 %v7365_v51, %v7364_v57  ;;  %v7614_v43 = vld [vmem:[#allocation2 + $0x19] sm:$0xff]  ;;  %v15432_v6 = vpop.permute.xlu2 %6951 }
 0x99c   : > { %v7646_v22 = vpack.c.bf16 %v7615_v19, %v7614_v43  ;;  %17390 = vst [vmem:[#allocation30_spill] sm:$0xff] %v15432_v6 }
 0x99d   : > { %v6655_v4 = vadd.f32 %v6597_v32, %v6373_v48  ;;  %10768 = vmatmul.msk.bf16.gmra.mxu2 %vm658_vm0, %v6719_v29  ;;  %11262 = vset.pattern.permute.xlu2 %v17275_v11 }
 0x99e   : > { %7011 = vperm.xlu2 %11262, %v6196_v44  }
 0x9a0   : > { %v6845_v59 = vpop.f32.mrf.mxu2  ;;  %v15438_v44 = vpop.permute.xlu1 %6285 }
 0x9a1   : > { %v7032_v35 = vmul.f32 %v14978_v53, %v6845_v59  ;;  %v7896_v59 = vld [vmem:[#allocation2 + $0x27] sm:$0xff] }
 0x9a2   : > { %v6126_v42 = vpop.f32.mrf.mxu1  ;;  %v15427_v46 = vpop.f32.mrf.mxu3 }
 0x9a3   : > { %v15429_v30 = vadd.f32 %v7032_v35, %v6654_v26  ;;  %v6374_v54 = vmul.f32 %v15423_v18, %v6126_v42  ;;  %v6600_v10 = vpop.f32.mrf.mxu0  ;;  %v7897_v26 = vld [vmem:[#allocation2 + $0x2f] sm:$0xff] }
 0x9a4   : > { %v7928_v42 = vpack.c.bf16 %v7897_v26, %v7896_v59 }
 0x9a5   : > { %v6656_v3 = vadd.f32 %v6600_v10, %v6374_v54  ;;  %10833 = vmatmul.msk.bf16.vlgmr.msrb.gmra.mxu1 %vm658_vm0, %v7396_v31  ;;  %v15445_v54 = vpop.permute.xlu2 %6955  ;;  %v15447_v10 = vpop.permute.xlu0 %6290  ;;  %v7367_v31 = vld [vmem:[#allocation2 + $0x30] sm:$0xff] }
 0x9a6   : > { %10873 = vmatmul.msk.bf16.vlgmr.msrb.gmra.mxu0 %vm658_vm0, %v7646_v22  ;;  %17391 = vst [vmem:[#allocation8_spill] sm:$0xff] %v15445_v54  ;;  %v7617_v22 = vld [vmem:[#allocation2 + $0x31] sm:$0xff] }
 0x9a7   : > { %10802 = vmatmul.msk.bf16.gmra.mxu3 %vm658_vm0, %v15129_v36  ;;  %17392 = vst [vmem:[#allocation31_spill] sm:$0xff] %v15447_v10 }
 0x9a8   : > { %v6847_v11 = vpop.f32.mrf.mxu2 }
 0x9a9   : > { %v7033_v48 = vmul.f32 %v15432_v6, %v6847_v11 }
 0x9aa   : > { %v6128_v32 = vpop.f32.mrf.mxu1  ;;  %v7225_v29 = vpop.f32.mrf.mxu3 }
 0x9ab   : > { %v15441_v51 = vadd.f32 %v7033_v48, %v6655_v4  ;;  %v6375_v35 = vmul.f32 %v15438_v44, %v6128_v32  ;;  %v6602_v19 = vpop.f32.mrf.mxu0  ;;  %v7366_v4 = vld [vmem:[#allocation2 + $0x28] sm:$0xff]  ;;  %v7300_v48 = vmul.f32 %v7220_v37, %v14972_v61 }
 0x9ad   : > { %v6657_v57 = vadd.f32 %v6602_v19, %v6375_v35  ;;  %10913 = vmatmul.msk.bf16.vlgmr.msrb.gmra.mxu2 %vm658_vm0, %v7928_v42  ;;  %v15456_v35 = vpack.c.bf16 %v7367_v31, %v7366_v4  ;;  %v7616_v19 = vld [vmem:[#allocation2 + $0x29] sm:$0xff]  ;;  %v11160_v42 = vld [vmem:[%s16778_s13 + $0xf8] sm:$0xff]  ;;  %v15466_v37 = vpop.permute.xlu2 %6295  ;;  %v6359_v31 = vmul.f32 %v15059_v17, %v15048_v39  ;;  %v7019_v4 = vmul.f32 %v15079_v7, %v15091_v45 }
 0x9ae   : > { %8311 = vmatpush.bf16.msrb.mxu3 %v11160_v42 }
 0x9af   : > { %v6641_v39 = vadd.f32 %v15053_v1, %v6359_v31  ;;  %v7369_v1 = vld [vmem:[#allocation2 + $0x40] sm:$0xff] }
 0x9b0   : > { %v6850_v36 = vpop.f32.mrf.mxu2 }
 0x9b1   : > { %v7034_v43 = vmul.f32 %v15445_v54, %v6850_v36  ;;  %v7647_v36 = vpack.c.bf16 %v7617_v22, %v7616_v19  ;;  %v15461_v54 = vpop.permute.xlu1 %6959  ;;  %v15476_v22 = vadd.f32 %v7300_v48, %v15073_v14 }
 0x9b2   : > { %v6131_v11 = vpop.f32.mrf.mxu1  ;;  %v15450_v53 = vpop.f32.mrf.mxu3  ;;  %17393 = vst [vmem:[#allocation33_spill] sm:$0xff] %v15461_v54 }
 0x9b3   : > { %v15453_v32 = vadd.f32 %v7034_v43, %v6656_v3  ;;  %v6605_v26 = vpop.f32.mrf.mxu0  ;;  %v6376_v59 = vmul.f32 %v15447_v10, %v6131_v11  ;;  %v11164_v3 = vld [vmem:[%s16778_s13 + $0x118] sm:$0xff] }
 0x9b4   : > { %v7899_v43 = vld [vmem:[#allocation2 + $0x3f] sm:$0xff]  ;;  %8561 = vmatpush.bf16.msra.mxu1 %v11164_v3  ;;  %v7051_v3 = vadd.f32 %v7019_v4, %v6641_v39 }
 0x9b5   : > { %10834 = vmatmul.msk.bf16.gmra.mxu1 %vm658_vm0, %v15456_v35  ;;  %v6658_v52 = vadd.f32 %v6605_v26, %v6376_v59  ;;  %v7898_v59 = vld [vmem:[#allocation2 + $0x37] sm:$0xff] }
 0x9b6   : > { %10874 = vmatmul.msk.bf16.gmra.mxu0 %vm658_vm0, %v7647_v36  ;;  %v7929_v36 = vpack.c.bf16 %v7899_v43, %v7898_v59  ;;  %v15492_v43 = vpop.permute.xlu2 %6300  ;;  %v7368_v59 = vld [vmem:[#allocation2 + $0x38] sm:$0xff] }
 0x9b7   : > { %10803 = vmatmul.msk.bf16.gmra.mxu3 %vm658_vm0, %v15182_v25  ;;  %v7301_v25 = vmul.f32 %v15427_v46, %v15059_v17  ;;  %17395 = vst [vmem:[#allocation35_spill] sm:$0xff] %v15492_v43  ;;  %v7619_v46 = vld [vmem:[#allocation2 + $0x41] sm:$0xff] }
 0x9b8   : > { %v6852_v11 = vpop.f32.mrf.mxu2 }
 0x9b9   : > { %v7035_v26 = vmul.f32 %v15461_v54, %v6852_v11  ;;  %v15488_v45 = vpop.permute.xlu1 %6963  ;;  %v15490_v11 = vadd.f32 %v7301_v25, %v7051_v3  ;;  %v7618_v25 = vld [vmem:[#allocation2 + $0x39] sm:$0xff] }
 0x9ba   : > { %v6133_v19 = vpop.f32.mrf.mxu1  ;;  %v7230_v42 = vpop.f32.mrf.mxu3  ;;  %17394 = vst [vmem:[#allocation38_spill] sm:$0xff] %v15488_v45 }
 0x9bb   : > { %v15484_v6 = vadd.f32 %v7035_v26, %v6657_v57  ;;  %v6377_v14 = vmul.f32 %v15466_v37, %v6133_v19  ;;  %v6607_v48 = vpop.f32.mrf.mxu0  ;;  %v7302_v19 = vmul.f32 %v7225_v29, %v15067_v33  ;;  %v7371_v33 = vld [vmem:[#allocation2 + $0x50] sm:$0xff] }
 0x9bd   : > { %v6659_v49 = vadd.f32 %v6607_v48, %v6377_v14  ;;  %10914 = vmatmul.msk.bf16.gmra.mxu2 %vm658_vm0, %v7929_v36  ;;  %v15499_v14 = vpack.c.bf16 %v7369_v1, %v7368_v59  ;;  %v7648_v48 = vpack.c.bf16 %v7619_v46, %v7618_v25  ;;  %v7900_v59 = vld [vmem:[#allocation2 + $0x47] sm:$0xff] }
 0x9c0   : > { %v6855_v54 = vpop.f32.mrf.mxu2 }
 0x9c1   : > { %v7036_v31 = vmul.f32 %v15488_v45, %v6855_v54  ;;  %v15504_v54 = vpop.permute.xlu1 %6305 }
 0x9c2   : > { %v6136_v57 = vpop.f32.mrf.mxu1  ;;  %v7232_v26 = vpop.f32.mrf.mxu3  ;;  %17396 = vst [vmem:[#allocation34_spill] sm:$0xff] %v15504_v54 }
 0x9c3   : > { %v15496_v4 = vadd.f32 %v7036_v31, %v6658_v52  ;;  %v6378_v36 = vmul.f32 %v15492_v43, %v6136_v57  ;;  %v6610_v39 = vpop.f32.mrf.mxu0  ;;  %v15509_v52 = vadd.f32 %v7302_v19, %v15125_v23  ;;  %v7901_v31 = vld [vmem:[#allocation2 + $0x4f] sm:$0xff] }
 0x9c4   : > { %v7930_v45 = vpack.c.bf16 %v7901_v31, %v7900_v59 }
 0x9c5   : > { %v6660_v3 = vadd.f32 %v6610_v39, %v6378_v36  ;;  %10835 = vmatmul.msk.bf16.gmra.mxu1 %vm658_vm0, %v15499_v14  ;;  %v7303_v36 = vmul.f32 %v15450_v53, %v15093_v38 }
 0x9c6   : > { %10875 = vmatmul.msk.bf16.gmra.mxu0 %vm658_vm0, %v7648_v48 }
 0x9c7   : > { %10804 = vmatmul.msk.bf16.gmra.mxu3 %vm658_vm0, %v15225_v60  ;;  %v15517_v60 = vpop.permute.xlu2 %6971  ;;  %v15521_v19 = vadd.f32 %v7303_v36, %v15150_v12  ;;  %v7620_v12 = vld [vmem:[#allocation2 + $0x49] sm:$0xff] }
 0x9c8   : > { %v6857_v29 = vpop.f32.mrf.mxu2  ;;  %17397 = vst [vmem:[#allocation78_spill] sm:$0xff] %v15517_v60 }
 0x9c9   : > { %v7037_v1 = vmul.f32 %v15012_v63, %v6857_v29  ;;  %v15523_v63 = vpop.permute.xlu1 %6310 }
 0x9ca   : > { %v6138_v57 = vpop.f32.mrf.mxu1  ;;  %v7235_v46 = vpop.f32.mrf.mxu3  ;;  %17398 = vst [vmem:[#allocation37_spill] sm:$0xff] %v15523_v63 }
 0x9cb   : > { %v15514_v39 = vadd.f32 %v7037_v1, %v6659_v49  ;;  %v6379_v25 = vmul.f32 %v15504_v54, %v6138_v57  ;;  %v6612_v48 = vpop.f32.mrf.mxu0  ;;  %v7621_v49 = vld [vmem:[#allocation2 + $0x51] sm:$0xff]  ;;  %v7370_v57 = vld [vmem:[#allocation2 + $0x48] sm:$0xff] }
 0x9cc   : > { %v17399_v54 = vld [vmem:[#allocation19_spill] sm:$0xff]  ;;  %v7649_v36 = vpack.c.bf16 %v7621_v49, %v7620_v12 }
 0x9cd   : > { %v6661_v23 = vadd.f32 %v6612_v48, %v6379_v25  ;;  %10915 = vmatmul.msk.bf16.gmra.mxu2 %vm658_vm0, %v7930_v45  ;;  %v7304_v31 = vmul.f32 %v7230_v42, %v17399_v54  ;;  %v15530_v48 = vpack.c.bf16 %v7371_v33, %v7370_v57  ;;  %v7903_v33 = vld [vmem:[#allocation2 + $0x5f] sm:$0xff] }
 0x9cf   : > { %v15540_v42 = vadd.f32 %v7304_v31, %v15178_v15 }
 0x9d0   : > { %v6860_v29 = vpop.f32.mrf.mxu2 }
 0x9d1   : > { %v7038_v53 = vmul.f32 %v15517_v60, %v6860_v29  ;;  %v15535_v29 = vpop.permute.xlu2 %6975 }
 0x9d2   : > { %v6141_v1 = vpop.f32.mrf.mxu1  ;;  %v7237_v38 = vpop.f32.mrf.mxu3  ;;  %17401 = vst [vmem:[#allocation36_spill] sm:$0xff] %v15535_v29 }
 0x9d3   : > { %v15527_v59 = vadd.f32 %v7038_v53, %v6660_v3  ;;  %v6380_v25 = vmul.f32 %v15523_v63, %v6141_v1  ;;  %v6615_v45 = vpop.f32.mrf.mxu0  ;;  %v15542_v53 = vpop.permute.xlu0 %6315 }
 0x9d4   : > { %17402 = vst [vmem:[#allocation79_spill] sm:$0xff] %v15542_v53  ;;  %v15549_v63 = vpop.permute.xlu1 %6979 }
 0x9d5   : > { %17400 = vst [vmem:[#allocation76_spill] sm:$0xff] %v15527_v59  ;;  %v6662_v43 = vadd.f32 %v6615_v45, %v6380_v25  ;;  %10836 = vmatmul.msk.bf16.gmra.mxu1 %vm658_vm0, %v15530_v48  ;;  %v7902_v25 = vld [vmem:[#allocation2 + $0x57] sm:$0xff]  ;;  %v17403_v45 = vld [vmem:[#allocation18_spill] sm:$0xff]  ;;  %v7373_v59 = vld [vmem:[#allocation2 + $0x60] sm:$0xff] }
 0x9d6   : > { %10876 = vmatmul.msk.bf16.gmra.mxu0 %vm658_vm0, %v7649_v36  ;;  %v7305_v12 = vmul.f32 %v7232_v26, %v17403_v45  ;;  %17404 = vst [vmem:[#allocation40_spill] sm:$0xff] %v15549_v63 }
 0x9d7   : > { %10805 = vmatmul.msk.bf16.gmra.mxu3 %vm658_vm0, %v15278_v8  ;;  %v7931_v8 = vpack.c.bf16 %v7903_v33, %v7902_v25  ;;  %v7306_v33 = vmul.f32 %v7235_v46, %v15167_v20 }
 0x9d8   : > { %v6862_v3 = vpop.f32.mrf.mxu2 }
 0x9d9   : > { %v7039_v49 = vmul.f32 %v15535_v29, %v6862_v3  ;;  %v15552_v31 = vpop.permute.xlu2 %6320  ;;  %v15555_v3 = vadd.f32 %v7305_v12, %v15201_v27  ;;  %v7622_v27 = vld [vmem:[#allocation2 + $0x59] sm:$0xff] }
 0x9da   : > { %v6143_v1 = vpop.f32.mrf.mxu1  ;;  %v7240_v57 = vpop.f32.mrf.mxu3  ;;  %17405 = vst [vmem:[#allocation41_spill] sm:$0xff] %v15552_v31 }
 0x9db   : > { %v15546_v36 = vadd.f32 %v7039_v49, %v6661_v23  ;;  %v6617_v60 = vpop.f32.mrf.mxu0  ;;  %v6381_v54 = vmul.f32 %v15542_v53, %v6143_v1  ;;  %v7623_v23 = vld [vmem:[#allocation2 + $0x61] sm:$0xff]  ;;  %v7372_v1 = vld [vmem:[#allocation2 + $0x58] sm:$0xff] }
 0x9dc   : > { %v7650_v12 = vpack.c.bf16 %v7623_v23, %v7622_v27 }
 0x9dd   : > { %v6663_v15 = vadd.f32 %v6617_v60, %v6381_v54  ;;  %10916 = vmatmul.msk.bf16.gmra.mxu2 %vm658_vm0, %v7931_v8  ;;  %v15564_v8 = vpack.c.bf16 %v7373_v59, %v7372_v1  ;;  %v7905_v59 = vld [vmem:[#allocation2 + $0x6f] sm:$0xff] }
 0x9e0   : > { %v6865_v29 = vpop.f32.mrf.mxu2 }
 0x9e1   : > { %v7040_v26 = vmul.f32 %v15549_v63, %v6865_v29  ;;  %v15569_v29 = vpop.permute.xlu1 %6983 }
 0x9e2   : > { %v6146_v49 = vpop.f32.mrf.mxu1  ;;  %v15558_v45 = vpop.f32.mrf.mxu3  ;;  %17406 = vst [vmem:[#allocation42_spill] sm:$0xff] %v15569_v29 }
 0x9e3   : > { %v15561_v25 = vadd.f32 %v7040_v26, %v6662_v43  ;;  %v6382_v54 = vmul.f32 %v15552_v31, %v6146_v49  ;;  %v6620_v60 = vpop.f32.mrf.mxu0  ;;  %v15574_v43 = vadd.f32 %v7306_v33, %v15221_v56  ;;  %v15576_v26 = vpop.permute.xlu2 %6325  ;;  %v11159_v33 = vld [vmem:[%s16778_s13 + $0xf0] sm:$0xff] }
 0x9e4   : > { %17407 = vst [vmem:[#allocation44_spill] sm:$0xff] %v15576_v26  ;;  %8312 = vmatpush.bf16.msrb.mxu3 %v11159_v33 }
 0x9e5   : > { %v6664_v53 = vadd.f32 %v6620_v60, %v6382_v54  ;;  %10837 = vmatmul.msk.bf16.gmra.mxu1 %vm658_vm0, %v15564_v8  ;;  %v7904_v54 = vld [vmem:[#allocation2 + $0x67] sm:$0xff]  ;;  %v7307_v60 = vmul.f32 %v7237_v38, %v15196_v40 }
 0x9e6   : > { %10877 = vmatmul.msk.bf16.gmra.mxu0 %vm658_vm0, %v7650_v12  ;;  %v7932_v63 = vpack.c.bf16 %v7905_v59, %v7904_v54  ;;  %v7374_v54 = vld [vmem:[#allocation2 + $0x68] sm:$0xff] }
 0x9e7   : > { %10806 = vmatmul.msk.bf16.gmra.mxu3 %vm658_vm0, %v15337_v5 }
 0x9e8   : > { %v6867_v46 = vpop.f32.mrf.mxu2 }
 0x9e9   : > { %v7041_v23 = vmul.f32 %v15569_v29, %v6867_v46  ;;  %v15589_v46 = vpop.permute.xlu1 %6330  ;;  %v15592_v29 = vadd.f32 %v7307_v60, %v15253_v16  ;;  %v7624_v16 = vld [vmem:[#allocation2 + $0x69] sm:$0xff] }
 0x9ea   : > { %v6148_v49 = vpop.f32.mrf.mxu1  ;;  %v15579_v1 = vpop.f32.mrf.mxu3  ;;  %17409 = vst [vmem:[#allocation47_spill] sm:$0xff] %v15589_v46  ;;  %v11158_v60 = vld [vmem:[%s16778_s13 + $0xe8] sm:$0xff] }
 0x9eb   : > { %v15582_v27 = vadd.f32 %v7041_v23, %v6663_v15  ;;  %v6383_v12 = vmul.f32 %v15576_v26, %v6148_v49  ;;  %v6622_v5 = vpop.f32.mrf.mxu0  ;;  %v7375_v15 = vld [vmem:[#allocation2 + $0x70] sm:$0xff]  ;;  %v17410_v23 = vld [vmem:[#allocation14_spill] sm:$0xff]  ;;  %8313 = vmatpush.bf16.msrb.mxu3 %v11158_v60 }
 0x9ec   : > { %v7625_v49 = vld [vmem:[#allocation2 + $0x71] sm:$0xff]  ;;  %v15601_v33 = vpack.c.bf16 %v7375_v15, %v7374_v54  ;;  %v7907_v15 = vld [vmem:[#allocation2 + $0x7f] sm:$0xff]  ;;  %v17414_v60 = vld [vmem:[#allocation70_spill] sm:$0xff] }
 0x9ed   : > { %17408 = vst [vmem:[#allocation39_spill] sm:$0xff] %v15582_v27  ;;  %v6665_v56 = vadd.f32 %v6622_v5, %v6383_v12  ;;  %10917 = vmatmul.msk.bf16.gmra.mxu2 %vm658_vm0, %v7932_v63  ;;  %v7308_v63 = vmul.f32 %v7240_v57, %v15216_v24 }
 0x9ef   : > { %v15620_v57 = vadd.f32 %v7308_v63, %v15274_v58 }
 0x9f0   : > { %v6870_v38 = vpop.f32.mrf.mxu2 }
 0x9f1   : > { %v7042_v40 = vmul.f32 %v17410_v23, %v6870_v38  ;;  %v7651_v38 = vpack.c.bf16 %v7625_v49, %v7624_v16  ;;  %v15606_v23 = vpop.permute.xlu2 %6991  ;;  %v7906_v16 = vld [vmem:[#allocation2 + $0x77] sm:$0xff] }
 0x9f2   : > { %v6151_v26 = vpop.f32.mrf.mxu1  ;;  %v15595_v59 = vpop.f32.mrf.mxu3  ;;  %17412 = vst [vmem:[#allocation50_spill] sm:$0xff] %v15606_v23  ;;  %v7933_v63 = vpack.c.bf16 %v7907_v15, %v7906_v16  ;;  %v7310_v15 = vmul.f32 %v15579_v1, %v15269_v21 }
 0x9f3   : > { %v15598_v12 = vadd.f32 %v7042_v40, %v6664_v53  ;;  %v6384_v5 = vmul.f32 %v15589_v46, %v6151_v26  ;;  %v6625_v20 = vpop.f32.mrf.mxu0  ;;  %v11157_v40 = vld [vmem:[%s16778_s13 + $0xe0] sm:$0xff]  ;;  %v11163_v53 = vld [vmem:[%s16778_s13 + $0x110] sm:$0xff]  ;;  %v15622_v26 = vpop.permute.xlu1 %6335 }
 0x9f4   : > { %17413 = vst [vmem:[#allocation46_spill] sm:$0xff] %v15622_v26  ;;  %8562 = vmatpush.bf16.msra.mxu1 %v11163_v53  ;;  %8314 = vmatpush.bf16.msrb.mxu3 %v11157_v40  ;;  %v15658_v1 = vadd.f32 %v7310_v15, %v15333_v0 }
 0x9f5   : > { %17411 = vst [vmem:[#allocation43_spill] sm:$0xff] %v15598_v12  ;;  %v6666_v31 = vadd.f32 %v6625_v20, %v6384_v5  ;;  %10838 = vmatmul.msk.bf16.gmra.mxu1 %vm658_vm0, %v15601_v33 }
 0x9f6   : > { %10878 = vmatmul.msk.bf16.gmra.mxu0 %vm658_vm0, %v7651_v38  ;;  %v7309_v38 = vmul.f32 %v15558_v45, %v17414_v60 }
 0x9f7   : > { %10807 = vmatmul.msk.bf16.gmra.mxu3 %vm658_vm0, %v15402_v2 }
 0x9f8   : > { %v6872_v20 = vpop.f32.mrf.mxu2  ;;  %v15634_v53 = vadd.f32 %v7309_v38, %v15301_v62 }
 0x9f9   : > { %v7043_v49 = vmul.f32 %v15606_v23, %v6872_v20  ;;  %v15631_v12 = vpop.permute.xlu2 %6995  ;;  %v15636_v20 = vpop.permute.xlu0 %6340  ;;  %v7377_v23 = vld [vmem:[#allocation2 + $0x80] sm:$0xff] }
 0x9fa   : > { %v6153_v54 = vpop.f32.mrf.mxu1  ;;  %v7250_v5 = vpop.f32.mrf.mxu3  ;;  %17416 = vst [vmem:[#allocation54_spill] sm:$0xff] %v15631_v12 }
 0x9fb   : > { %v15627_v24 = vadd.f32 %v7043_v49, %v6665_v56  ;;  %v6385_v2 = vmul.f32 %v15622_v26, %v6153_v54  ;;  %v6627_v58 = vpop.f32.mrf.mxu0  ;;  %17417 = vst [vmem:[#allocation45_spill] sm:$0xff] %v15636_v20  ;;  %v7627_v56 = vld [vmem:[#allocation2 + $0x81] sm:$0xff]  ;;  %v7376_v54 = vld [vmem:[#allocation2 + $0x78] sm:$0xff]  ;;  %v7113_v26 = vld [vmem:[#allocation2 + $0x10f] sm:$0xff]  ;;  %v15646_v27 = vpop.permute.xlu1 %6999 }
 0x9fc   : > { %v15644_v38 = vpack.c.bf16 %v7377_v23, %v7376_v54  ;;  %17418 = vst [vmem:[#allocation80_spill] sm:$0xff] %v15646_v27 }
 0x9fd   : > { %17415 = vst [vmem:[#allocation51_spill] sm:$0xff] %v15627_v24  ;;  %v6667_v46 = vadd.f32 %v6627_v58, %v6385_v2  ;;  %10918 = vmatmul.msk.bf16.gmra.mxu2 %vm658_vm0, %v7933_v63  ;;  %v7626_v58 = vld [vmem:[#allocation2 + $0x79] sm:$0xff]  ;;  %v7112_v24 = vld [vmem:[#allocation2 + $0x107] sm:$0xff] }
 0x9fe   : > { %v7652_v63 = vpack.c.bf16 %v7627_v56, %v7626_v58  ;;  %v7908_v58 = vld [vmem:[#allocation2 + $0x87] sm:$0xff] }
 0xa00   : > { %v6875_v40 = vpop.f32.mrf.mxu2 }
 0xa01   : > { %v7044_v45 = vmul.f32 %v15631_v12, %v6875_v40  ;;  %v15650_v40 = vpack.c.bf16 %v7113_v26, %v7112_v24  ;;  %v7311_v24 = vmul.f32 %v15595_v59, %v15292_v47 }
 0xa02   : > { %v6156_v49 = vpop.f32.mrf.mxu1  ;;  %v7252_v60 = vpop.f32.mrf.mxu3 }
 0xa03   : > { %v15641_v16 = vadd.f32 %v7044_v45, %v6666_v31  ;;  %v6630_v2 = vpop.f32.mrf.mxu0  ;;  %v6386_v62 = vmul.f32 %v15636_v20, %v6156_v49  ;;  %v15653_v31 = vpop.permute.xlu2 %6345  ;;  %v7909_v45 = vld [vmem:[#allocation2 + $0x8f] sm:$0xff]  ;;  %v15670_v15 = vadd.f32 %v7311_v24, %v15375_v28 }
 0xa04   : > { %17419 = vst [vmem:[#allocation64_spill] sm:$0xff] %v15653_v31  ;;  %v15667_v0 = vpop.permute.xlu1 %7003  ;;  %v7379_v20 = vld [vmem:[#allocation2 + $0x90] sm:$0xff] }
 0xa05   : > { %10839 = vmatmul.msk.bf16.gmra.mxu1 %vm658_vm0, %v15644_v38  ;;  %v6668_v12 = vadd.f32 %v6630_v2, %v6386_v62  ;;  %17420 = vst [vmem:[#allocation48_spill] sm:$0xff] %v15667_v0  ;;  %v7628_v28 = vld [vmem:[#allocation2 + $0x89] sm:$0xff] }
 0xa06   : > { %10879 = vmatmul.msk.bf16.gmra.mxu0 %vm658_vm0, %v7652_v63  ;;  %v7934_v63 = vpack.c.bf16 %v7909_v45, %v7908_v58  ;;  %v7312_v45 = vmul.f32 %v7250_v5, %v15328_v50 }
 0xa07   : > { %10808 = vmatmul.msk.bf16.gmra.mxu3 %vm658_vm0, %v15650_v40 }
 0xa08   : > { %v6877_v23 = vpop.f32.mrf.mxu2 }
 0xa09   : > { %v7045_v56 = vmul.f32 %v15646_v27, %v6877_v23 }
 0xa0a   : > { %v6158_v49 = vpop.f32.mrf.mxu1  ;;  %v7255_v54 = vpop.f32.mrf.mxu3 }
 0xa0b   : > { %v15663_v26 = vadd.f32 %v7045_v56, %v6667_v46  ;;  %v6387_v2 = vmul.f32 %v15653_v31, %v6158_v49  ;;  %v6632_v62 = vpop.f32.mrf.mxu0  ;;  %v15672_v27 = vpop.permute.xlu2 %6350  ;;  %v7629_v46 = vld [vmem:[#allocation2 + $0x91] sm:$0xff]  ;;  %v7378_v49 = vld [vmem:[#allocation2 + $0x88] sm:$0xff] }
 0xa0c   : > { %17421 = vst [vmem:[#allocation81_spill] sm:$0xff] %v15672_v27  ;;  %v7653_v24 = vpack.c.bf16 %v7629_v46, %v7628_v28 }
 0xa0d   : > { %v6669_v21 = vadd.f32 %v6632_v62, %v6387_v2  ;;  %10919 = vmatmul.msk.bf16.gmra.mxu2 %vm658_vm0, %v7934_v63  ;;  %v15679_v63 = vpack.c.bf16 %v7379_v20, %v7378_v49  ;;  %v7911_v20 = vld [vmem:[#allocation2 + $0x9f] sm:$0xff] }
 0xa10   : > { %v6880_v23 = vpop.f32.mrf.mxu2 }
 0xa11   : > { %v7046_v59 = vmul.f32 %v15667_v0, %v6880_v23  ;;  %v15684_v23 = vpop.permute.xlu0 %7007 }
 0xa12   : > { %v6161_v56 = vpop.f32.mrf.mxu1  ;;  %v7257_v47 = vpop.f32.mrf.mxu3  ;;  %17423 = vst [vmem:[#allocation52_spill] sm:$0xff] %v15684_v23 }
 0xa13   : > { %v15676_v58 = vadd.f32 %v7046_v59, %v6668_v12  ;;  %v6388_v2 = vmul.f32 %v15672_v27, %v6161_v56  ;;  %v6635_v62 = vpop.f32.mrf.mxu0  ;;  %v15689_v12 = vadd.f32 %v7312_v45, %v15398_v13  ;;  %v15691_v59 = vpop.permute.xlu1 %6355 }
 0xa14   : > { %17424 = vst [vmem:[#allocation53_spill] sm:$0xff] %v15691_v59  ;;  %v15699_v13 = vpop.permute.xlu2 %7011 }
 0xa15   : > { %17422 = vst [vmem:[#allocation66_spill] sm:$0xff] %v15676_v58  ;;  %v6670_v31 = vadd.f32 %v6635_v62, %v6388_v2  ;;  %10840 = vmatmul.msk.bf16.gmra.mxu1 %vm658_vm0, %v15679_v63  ;;  %v7910_v2 = vld [vmem:[#allocation2 + $0x97] sm:$0xff]  ;;  %v7313_v62 = vmul.f32 %v7252_v60, %v15363_v41  ;;  %v7631_v58 = vld [vmem:[#allocation2 + $0xa1] sm:$0xff] }
 0xa16   : > { %10880 = vmatmul.msk.bf16.gmra.mxu0 %vm658_vm0, %v7653_v24  ;;  %17425 = vst [vmem:[#allocation67_spill] sm:$0xff] %v15699_v13 }
 0xa17   : > { %10953 = vmatmul.msk.bf16.vlgmr.msrb.gmra.mxu3 %vm658_vm0, %v15456_v35  ;;  %v7935_v35 = vpack.c.bf16 %v7911_v20, %v7910_v2  ;;  %v15702_v45 = vadd.f32 %v7313_v62, %v15419_v34  ;;  %v17426_v34 = vld [vmem:[#allocation16_spill] sm:$0xff] }
 0xa18   : > { %v6882_v5 = vpop.f32.mrf.mxu2 }
 0xa19   : > { %v7047_v46 = vmul.f32 %v15684_v23, %v6882_v5  ;;  %v7381_v23 = vld [vmem:[#allocation2 + $0xa0] sm:$0xff] }
 0xa1a   : > { %v6163_v56 = vpop.f32.mrf.mxu1  ;;  %v7260_v49 = vpop.f32.mrf.mxu3 }
 0xa1b   : > { %v15695_v28 = vadd.f32 %v7047_v46, %v6669_v21  ;;  %v6389_v24 = vmul.f32 %v15691_v59, %v6163_v56  ;;  %v6637_v0 = vpop.f32.mrf.mxu0  ;;  %v7380_v46 = vld [vmem:[#allocation2 + $0x98] sm:$0xff]  ;;  %v7314_v56 = vmul.f32 %v7255_v54, %v15390_v55  ;;  %v7913_v54 = vld [vmem:[#allocation2 + $0xaf] sm:$0xff] }
 0xa1c   : > { %v15709_v2 = vpack.c.bf16 %v7381_v23, %v7380_v46  ;;  %v7912_v46 = vld [vmem:[#allocation2 + $0xa7] sm:$0xff] }
 0xa1d   : > { %v6671_v50 = vadd.f32 %v6637_v0, %v6389_v24  ;;  %10920 = vmatmul.msk.bf16.gmra.mxu2 %vm658_vm0, %v7935_v35  ;;  %v7630_v24 = vld [vmem:[#allocation2 + $0x99] sm:$0xff] }
 0xa1e   : > { %v15712_v35 = vpack.c.bf16 %v7631_v58, %v7630_v24 }
 0xa20   : > { %v6885_v5 = vpop.f32.mrf.mxu2  ;;  %17427 = vst [vmem:[#allocation49_spill] sm:$0xff] %v15712_v35 }
 0xa21   : > { %v7048_v27 = vmul.f32 %v15699_v13, %v6885_v5  ;;  %v7936_v13 = vpack.c.bf16 %v7913_v54, %v7912_v46  ;;  %v7632_v46 = vld [vmem:[#allocation2 + $0xa9] sm:$0xff] }
 0xa22   : > { %v7262_v60 = vpop.f32.mrf.mxu3  ;;  %v7502_v21 = vpop.f32.mrf.mxu1 }
 0xa23   : > { %v15706_v41 = vadd.f32 %v7048_v27, %v6670_v31  ;;  %v7582_v0 = vadd.f32 %v7502_v21, %v15476_v22  ;;  %v7752_v20 = vpop.f32.mrf.mxu0  ;;  %v15720_v27 = vpop.permute.xlu1 %7015  ;;  %v15725_v22 = vadd.f32 %v7314_v56, %v15429_v30 }
 0xa24   : > { %v7832_v62 = vmul.f32 %v7752_v20, %v17426_v34  ;;  %17428 = vst [vmem:[#allocation68_spill] sm:$0xff] %v15720_v27  ;;  %v7633_v34 = vld [vmem:[#allocation2 + $0xb1] sm:$0xff] }
 0xa25   : > { %10841 = vmatmul.msk.bf16.gmra.mxu1 %vm658_vm0, %v15709_v2 }
 0xa26   : > { %v15716_v5 = vadd.f32 %v7832_v62, %v7582_v0  ;;  %10881 = vmatmul.msk.bf16.gmra.mxu0 %vm658_vm0, %v15712_v35  ;;  %v7315_v0 = vmul.f32 %v7257_v47, %v15415_v9  ;;  %v7384_v9 = vld [vmem:[#allocation2 + $0xb8] sm:$0xff] }
 0xa27   : > { %10954 = vmatmul.msk.bf16.gmra.mxu3 %vm658_vm0, %v15499_v14 }
 0xa28   : > { %v6887_v31 = vpop.f32.mrf.mxu2  ;;  %v15737_v56 = vadd.f32 %v7315_v0, %v15441_v51 }
 0xa29   : > { %v7049_v58 = vmul.f32 %v15720_v27, %v6887_v31  ;;  %v7383_v27 = vld [vmem:[#allocation2 + $0xb0] sm:$0xff] }
 0xa2a   : > { %v7265_v23 = vpop.f32.mrf.mxu3  ;;  %v7504_v21 = vpop.f32.mrf.mxu1 }
 0xa2b   : > { %v15729_v20 = vadd.f32 %v7049_v58, %v6671_v50  ;;  %v7583_v24 = vadd.f32 %v7504_v21, %v15490_v11  ;;  %v7754_v62 = vpop.f32.mrf.mxu0  ;;  %v7382_v50 = vld [vmem:[#allocation2 + $0xa8] sm:$0xff]  ;;  %v7316_v58 = vmul.f32 %v7260_v49, %v15423_v18 }
 0xa2c   : > { %v7833_v14 = vmul.f32 %v7754_v62, %v15079_v7  ;;  %v15741_v21 = vpack.c.bf16 %v7383_v27, %v7382_v50  ;;  %v15744_v62 = vpack.c.bf16 %v7633_v34, %v7632_v46  ;;  %v7915_v27 = vld [vmem:[#allocation2 + $0xbf] sm:$0xff]  ;;  %v7317_v50 = vmul.f32 %v7262_v60, %v15438_v44 }
 0xa2d   : > { %10921 = vmatmul.msk.bf16.gmra.mxu2 %vm658_vm0, %v7936_v13  ;;  %v17429_v13 = vld [vmem:[#allocation20_spill] sm:$0xff]  ;;  %v15758_v49 = vadd.f32 %v7316_v58, %v15453_v32  ;;  %v7635_v7 = vld [vmem:[#allocation2 + $0xc1] sm:$0xff]  ;;  %v7318_v60 = vmul.f32 %v7265_v23, %v15447_v10  ;;  %v7391_v10 = vld [vmem:[#allocation2 + $0xf0] sm:$0xff] }
 0xa2e   : > { %v15734_v30 = vadd.f32 %v7833_v14, %v7583_v24  ;;  %17430 = vst [vmem:[#allocation55_spill] sm:$0xff] %v15744_v62  ;;  %v15767_v32 = vadd.f32 %v7317_v50, %v15484_v6 }
 0xa30   : > { %v8034_v31 = vpop.f32.mrf.mxu2 }
 0xa31   : > { %v8114_v23 = vmul.f32 %v8034_v31, %v14972_v61 }
 0xa32   : > { %v7267_v35 = vpop.f32.mrf.mxu3  ;;  %v7507_v47 = vpop.f32.mrf.mxu1 }
 0xa33   : > { %v7584_v11 = vadd.f32 %v7507_v47, %v15509_v52  ;;  %v7757_v54 = vpop.f32.mrf.mxu0  ;;  %v11162_v52 = vld [vmem:[%s16778_s13 + $0x108] sm:$0xff]  ;;  %v7914_v47 = vld [vmem:[#allocation2 + $0xb7] sm:$0xff] }
 0xa34   : > { %v7834_v24 = vmul.f32 %v7757_v54, %v17429_v13  ;;  %8563 = vmatpush.bf16.msra.mxu1 %v11162_v52  ;;  %v7937_v46 = vpack.c.bf16 %v7915_v27, %v7914_v47  ;;  %v7385_v52 = vld [vmem:[#allocation2 + $0xc0] sm:$0xff] }
 0xa35   : > { %10842 = vmatmul.msk.bf16.gmra.mxu1 %vm658_vm0, %v15741_v21  ;;  %v7634_v47 = vld [vmem:[#allocation2 + $0xb9] sm:$0xff] }
 0xa36   : > { %v15748_v51 = vadd.f32 %v7834_v24, %v7584_v11  ;;  %10882 = vmatmul.msk.bf16.gmra.mxu0 %vm658_vm0, %v15744_v62  ;;  %v17431_v24 = vld [vmem:[#allocation65_spill] sm:$0xff] }
 0xa37   : > { %10955 = vmatmul.msk.bf16.gmra.mxu3 %vm658_vm0, %v15530_v48 }
 0xa38   : > { %v8036_v34 = vpop.f32.mrf.mxu2 }
 0xa3a   : > { %v7270_v0 = vpop.f32.mrf.mxu3  ;;  %v7509_v14 = vpop.f32.mrf.mxu1 }
 0xa3b   : > { %v7585_v11 = vadd.f32 %v7509_v14, %v15521_v19  ;;  %v7759_v54 = vpop.f32.mrf.mxu0  ;;  %v15771_v14 = vpack.c.bf16 %v7385_v52, %v7384_v9  ;;  %v7319_v52 = vmul.f32 %v7267_v35, %v15466_v37  ;;  %v8115_v35 = vmul.f32 %v8036_v34, %v15059_v17 }
 0xa3c   : > { %v7835_v13 = vmul.f32 %v7759_v54, %v17431_v24  ;;  %v17432_v54 = vld [vmem:[#allocation10_spill] sm:$0xff]  ;;  %v7637_v24 = vld [vmem:[#allocation2 + $0xd1] sm:$0xff] }
 0xa3d   : > { %10922 = vmatmul.msk.bf16.gmra.mxu2 %vm658_vm0, %v7937_v46  ;;  %v7916_v46 = vld [vmem:[#allocation2 + $0xc7] sm:$0xff]  ;;  %v15798_v61 = vadd.f32 %v7319_v52, %v15514_v39  ;;  %v15811_v17 = vadd.f32 %v8115_v35, %v15734_v30 }
 0xa3e   : > { %v15764_v48 = vadd.f32 %v7835_v13, %v7585_v11  ;;  %v15774_v11 = vpack.c.bf16 %v7635_v7, %v7634_v47  ;;  %v17440_v30 = vld [vmem:[#allocation34_spill] sm:$0xff] }
 0xa40   : > { %v8039_v58 = vpop.f32.mrf.mxu2  ;;  %17433 = vst [vmem:[#allocation69_spill] sm:$0xff] %v15774_v11 }
 0xa42   : > { %v7272_v62 = vpop.f32.mrf.mxu3  ;;  %v7512_v18 = vpop.f32.mrf.mxu1 }
 0xa43   : > { %v7586_v19 = vadd.f32 %v7512_v18, %v15540_v42  ;;  %v7762_v27 = vpop.f32.mrf.mxu0  ;;  %v15785_v18 = vadd.f32 %v7318_v60, %v15496_v4  ;;  %v7917_v42 = vld [vmem:[#allocation2 + $0xcf] sm:$0xff]  ;;  %v15793_v4 = vadd.f32 %v8114_v23, %v15716_v5  ;;  %v7321_v35 = vmul.f32 %v7272_v62, %v17440_v30  ;;  %v7639_v30 = vld [vmem:[#allocation2 + $0xe1] sm:$0xff] }
 0xa44   : > { %v7836_v13 = vmul.f32 %v7762_v27, %v17432_v54  ;;  %v7938_v47 = vpack.c.bf16 %v7917_v42, %v7916_v46  ;;  %v7387_v60 = vld [vmem:[#allocation2 + $0xd0] sm:$0xff]  ;;  %v7386_v42 = vld [vmem:[#allocation2 + $0xc8] sm:$0xff] }
 0xa45   : > { %10843 = vmatmul.msk.bf16.gmra.mxu1 %vm658_vm0, %v15771_v14  ;;  %v17435_v46 = vld [vmem:[#allocation35_spill] sm:$0xff]  ;;  %v15803_v5 = vpack.c.bf16 %v7387_v60, %v7386_v42 }
 0xa46   : > { %v15778_v6 = vadd.f32 %v7836_v13, %v7586_v19  ;;  %10883 = vmatmul.msk.bf16.gmra.mxu0 %vm658_vm0, %v15774_v11  ;;  %v17434_v13 = vld [vmem:[#allocation7_spill] sm:$0xff] }
 0xa47   : > { %10956 = vmatmul.msk.bf16.gmra.mxu3 %vm658_vm0, %v15564_v8  ;;  %v17436_v23 = vld [vmem:[#allocation27_spill] sm:$0xff] }
 0xa48   : > { %v8041_v9 = vpop.f32.mrf.mxu2 }
 0xa4a   : > { %v7275_v7 = vpop.f32.mrf.mxu3  ;;  %v7514_v50 = vpop.f32.mrf.mxu1 }
 0xa4b   : > { %v7587_v19 = vadd.f32 %v7514_v50, %v15555_v3  ;;  %v7764_v27 = vpop.f32.mrf.mxu0 }
 0xa4c   : > { %v7837_v54 = vmul.f32 %v7764_v27, %v17434_v13  ;;  %v7320_v27 = vmul.f32 %v7270_v0, %v17435_v46  ;;  %v17442_v46 = vld [vmem:[#allocation17_spill] sm:$0xff] }
 0xa4d   : > { %10923 = vmatmul.msk.bf16.gmra.mxu2 %vm658_vm0, %v7938_v47  ;;  %v8117_v62 = vmul.f32 %v8041_v9, %v17442_v46  ;;  %v7921_v46 = vld [vmem:[#allocation2 + $0xef] sm:$0xff] }
 0xa4e   : > { %v15795_v8 = vadd.f32 %v7837_v54, %v7587_v19  ;;  %v7636_v54 = vld [vmem:[#allocation2 + $0xc9] sm:$0xff] }
 0xa4f   : > { %v15806_v39 = vpack.c.bf16 %v7637_v24, %v7636_v54  ;;  %v7919_v24 = vld [vmem:[#allocation2 + $0xdf] sm:$0xff]  ;;  %v7918_v54 = vld [vmem:[#allocation2 + $0xd7] sm:$0xff]  ;;  %v15849_v9 = vadd.f32 %v8117_v62, %v15764_v48 }
 0xa50   : > { %v8044_v31 = vpop.f32.mrf.mxu2 }
 0xa51   : > { %17437 = vst [vmem:[#allocation57_spill] sm:$0xff] %v15806_v39 }
 0xa52   : > { %v7277_v3 = vpop.f32.mrf.mxu3  ;;  %v7517_v50 = vpop.f32.mrf.mxu1 }
 0xa53   : > { %v7588_v47 = vadd.f32 %v7517_v50, %v15574_v43  ;;  %v7767_v13 = vpop.f32.mrf.mxu0  ;;  %v17438_v43 = vld [vmem:[#allocation76_spill] sm:$0xff] }
 0xa54   : > { %v7838_v19 = vmul.f32 %v7767_v13, %v17436_v23  ;;  %v15820_v0 = vadd.f32 %v7320_v27, %v17438_v43  ;;  %v17439_v13 = vld [vmem:[#allocation4_spill] sm:$0xff]  ;;  %v7939_v23 = vpack.c.bf16 %v7919_v24, %v7918_v54  ;;  %v17443_v54 = vld [vmem:[#allocation37_spill] sm:$0xff] }
 0xa55   : > { %10844 = vmatmul.msk.bf16.gmra.mxu1 %vm658_vm0, %v15803_v5  ;;  %v8116_v60 = vmul.f32 %v8039_v58, %v17439_v13  ;;  %v15833_v58 = vadd.f32 %v7321_v35, %v15546_v36  ;;  %v7389_v13 = vld [vmem:[#allocation2 + $0xe0] sm:$0xff]  ;;  %v7388_v24 = vld [vmem:[#allocation2 + $0xd8] sm:$0xff]  ;;  %v17446_v35 = vld [vmem:[#allocation19_spill] sm:$0xff] }
 0xa56   : > { %v15813_v34 = vadd.f32 %v7838_v19, %v7588_v47  ;;  %10884 = vmatmul.msk.bf16.gmra.mxu0 %vm658_vm0, %v15806_v39  ;;  %v17441_v39 = vld [vmem:[#allocation25_spill] sm:$0xff] }
 0xa57   : > { %10957 = vmatmul.msk.bf16.gmra.mxu3 %vm658_vm0, %v15601_v33  ;;  %v15828_v33 = vadd.f32 %v8116_v60, %v15748_v51  ;;  %v7638_v60 = vld [vmem:[#allocation2 + $0xd9] sm:$0xff] }
 0xa58   : > { %v8046_v52 = vpop.f32.mrf.mxu2  ;;  %v15844_v36 = vpack.c.bf16 %v7639_v30, %v7638_v60  ;;  %v8118_v30 = vmul.f32 %v8044_v31, %v17446_v35 }
 0xa5a   : > { %v7280_v50 = vpop.f32.mrf.mxu3  ;;  %v7519_v42 = vpop.f32.mrf.mxu1  ;;  %17444 = vst [vmem:[#allocation58_spill] sm:$0xff] %v15844_v36 }
 0xa5b   : > { %v7589_v47 = vadd.f32 %v7519_v42, %v15592_v29  ;;  %v7769_v19 = vpop.f32.mrf.mxu0 }
 0xa5c   : > { %v7839_v11 = vmul.f32 %v7769_v19, %v17441_v39  ;;  %v7322_v19 = vmul.f32 %v7275_v7, %v17443_v54  ;;  %v17448_v39 = vld [vmem:[#allocation9_spill] sm:$0xff] }
 0xa5d   : > { %10924 = vmatmul.msk.bf16.gmra.mxu2 %vm658_vm0, %v7939_v23 }
 0xa5e   : > { %v15830_v27 = vadd.f32 %v7839_v11, %v7589_v47  ;;  %v15842_v11 = vpack.c.bf16 %v7389_v13, %v7388_v24  ;;  %v17447_v24 = vld [vmem:[#allocation79_spill] sm:$0xff] }
 0xa5f   : > { %v7323_v60 = vmul.f32 %v7277_v3, %v17447_v24  ;;  %v7641_v24 = vld [vmem:[#allocation2 + $0xf1] sm:$0xff] }
 0xa60   : > { %v8049_v43 = vpop.f32.mrf.mxu2 }
 0xa62   : > { %v7282_v29 = vpop.f32.mrf.mxu3  ;;  %v7522_v42 = vpop.f32.mrf.mxu1 }
 0xa63   : > { %v15838_v23 = vadd.f32 %v7522_v42, %v15620_v57  ;;  %v15840_v51 = vpop.f32.mrf.mxu0  ;;  %v15856_v57 = vadd.f32 %v7322_v19, %v15561_v25  ;;  %v7920_v42 = vld [vmem:[#allocation2 + $0xe7] sm:$0xff]  ;;  %v15864_v25 = vadd.f32 %v8118_v30, %v15778_v6  ;;  %v17449_v19 = vld [vmem:[#allocation39_spill] sm:$0xff] }
 0xa64   : > { %v7940_v54 = vpack.c.bf16 %v7921_v46, %v7920_v42  ;;  %v15869_v31 = vadd.f32 %v7323_v60, %v17449_v19  ;;  %v7390_v46 = vld [vmem:[#allocation2 + $0xe8] sm:$0xff]  ;;  %v17452_v42 = vld [vmem:[#allocation41_spill] sm:$0xff] }
 0xa65   : > { %10845 = vmatmul.msk.bf16.gmra.mxu1 %vm658_vm0, %v15842_v11  ;;  %17445 = vst [vmem:[#allocation71_spill] sm:$0xff] %v15856_v57  ;;  %v17451_v57 = vld [vmem:[#allocation18_spill] sm:$0xff] }
 0xa66   : > { %10885 = vmatmul.msk.bf16.gmra.mxu0 %vm658_vm0, %v15844_v36  ;;  %17450 = vst [vmem:[#allocation56_spill] sm:$0xff] %v15869_v31  ;;  %v8119_v3 = vmul.f32 %v8046_v52, %v17451_v57  ;;  %v7640_v30 = vld [vmem:[#allocation2 + $0xe9] sm:$0xff]  ;;  %v17459_v31 = vld [vmem:[#allocation28_spill] sm:$0xff] }
 0xa67   : > { %10958 = vmatmul.msk.bf16.gmra.mxu3 %vm658_vm0, %v15644_v38  ;;  %v15880_v60 = vpack.c.bf16 %v7641_v24, %v7640_v30  ;;  %v7923_v24 = vld [vmem:[#allocation2 + $0xff] sm:$0xff] }
 0xa68   : > { %v8051_v7 = vpop.f32.mrf.mxu2  ;;  %v15885_v52 = vadd.f32 %v8119_v3, %v15795_v8 }
 0xa69   : > { %17454 = vst [vmem:[#allocation59_spill] sm:$0xff] %v15880_v60 }
 0xa6a   : > { %v7285_v47 = vpop.f32.mrf.mxu3  ;;  %v7524_v13 = vpop.f32.mrf.mxu1 }
 0xa6b   : > { %v7591_v48 = vadd.f32 %v7524_v13, %v15634_v53  ;;  %v7774_v62 = vpop.f32.mrf.mxu0 }
 0xa6c   : > { %v7841_v36 = vmul.f32 %v7774_v62, %v17448_v39  ;;  %v7324_v62 = vmul.f32 %v7280_v50, %v17452_v42 }
 0xa6d   : > { %10925 = vmatmul.msk.bf16.gmra.mxu2 %vm658_vm0, %v7940_v54 }
 0xa6e   : > { %v15866_v38 = vadd.f32 %v7841_v36, %v7591_v48  ;;  %v15878_v36 = vpack.c.bf16 %v7391_v10, %v7390_v46  ;;  %v17455_v10 = vld [vmem:[#allocation43_spill] sm:$0xff]  ;;  %v17458_v46 = vld [vmem:[#allocation44_spill] sm:$0xff] }
 0xa6f   : > { %v15895_v50 = vadd.f32 %v7324_v62, %v17455_v10  ;;  %v17457_v48 = vld [vmem:[#allocation23_spill] sm:$0xff]  ;;  %v7325_v30 = vmul.f32 %v7282_v29, %v17458_v46  ;;  %v7643_v46 = vld [vmem:[#allocation2 + $0x101] sm:$0xff] }
 0xa70   : > { %v8054_v35 = vpop.f32.mrf.mxu2  ;;  %17453 = vst [vmem:[#allocation72_spill] sm:$0xff] %v15878_v36  ;;  %v8120_v19 = vmul.f32 %v8049_v43, %v17457_v48  ;;  %v7393_v48 = vld [vmem:[#allocation2 + $0x100] sm:$0xff] }
 0xa71   : > { %17456 = vst [vmem:[#allocation73_spill] sm:$0xff] %v15895_v50  ;;  %v17461_v50 = vld [vmem:[#allocation24_spill] sm:$0xff] }
 0xa72   : > { %v7287_v53 = vpop.f32.mrf.mxu3  ;;  %v7527_v13 = vpop.f32.mrf.mxu1  ;;  %v8121_v29 = vmul.f32 %v8051_v7, %v17461_v50 }
 0xa73   : > { %v15874_v54 = vadd.f32 %v7527_v13, %v15658_v1  ;;  %v15876_v6 = vpop.f32.mrf.mxu0  ;;  %v11161_v1 = vld [vmem:[%s16778_s13 + $0x100] sm:$0xff]  ;;  %v7922_v13 = vld [vmem:[#allocation2 + $0xf7] sm:$0xff] }
 0xa74   : > { %8564 = vmatpush.bf16.msra.mxu1 %v11161_v1  ;;  %v17460_v1 = vld [vmem:[#allocation51_spill] sm:$0xff]  ;;  %v15924_v7 = vadd.f32 %v8121_v29, %v15830_v27  ;;  %v17466_v29 = vld [vmem:[#allocation46_spill] sm:$0xff] }
 0xa75   : > { %10846 = vmatmul.msk.bf16.gmra.mxu1 %vm658_vm0, %v15878_v36  ;;  %v15908_v43 = vadd.f32 %v7325_v30, %v17460_v1  ;;  %v17465_v30 = vld [vmem:[#allocation5_spill] sm:$0xff] }
 0xa76   : > { %10886 = vmatmul.msk.bf16.gmra.mxu0 %vm658_vm0, %v15880_v60  ;;  %v7941_v60 = vpack.c.bf16 %v7923_v24, %v7922_v13  ;;  %v7392_v24 = vld [vmem:[#allocation2 + $0xf8] sm:$0xff]  ;;  %v17462_v13 = vld [vmem:[#allocation47_spill] sm:$0xff]  ;;  %v8122_v1 = vmul.f32 %v8054_v35, %v17465_v30 }
 0xa77   : > { %10959 = vmatmul.msk.bf16.gmra.mxu3 %vm658_vm0, %v15679_v63  ;;  %v15903_v63 = vadd.f32 %v8120_v19, %v15813_v34  ;;  %v7395_v30 = vld [vmem:[#allocation2 + $0x110] sm:$0xff] }
 0xa78   : > { %v8056_v57 = vpop.f32.mrf.mxu2 }
 0xa7a   : > { %v7290_v8 = vpop.f32.mrf.mxu3  ;;  %v7529_v3 = vpop.f32.mrf.mxu1 }
 0xa7b   : > { %v7593_v42 = vadd.f32 %v7529_v3, %v15670_v15  ;;  %v7779_v39 = vpop.f32.mrf.mxu0 }
 0xa7c   : > { %v7843_v36 = vmul.f32 %v7779_v39, %v17459_v31  ;;  %v7326_v39 = vmul.f32 %v7285_v47, %v17462_v13  ;;  %v17464_v47 = vld [vmem:[#allocation12_spill] sm:$0xff]  ;;  %v17467_v31 = vld [vmem:[#allocation29_spill] sm:$0xff] }
 0xa7d   : > { %10926 = vmatmul.msk.bf16.gmra.mxu2 %vm658_vm0, %v7941_v60 }
 0xa7e   : > { %v15905_v62 = vadd.f32 %v7843_v36, %v7593_v42  ;;  %v15917_v42 = vpack.c.bf16 %v7393_v48, %v7392_v24  ;;  %v7642_v36 = vld [vmem:[#allocation2 + $0xf9] sm:$0xff]  ;;  %v15933_v50 = vadd.f32 %v7326_v39, %v15641_v16  ;;  %v7327_v24 = vmul.f32 %v7287_v53, %v17466_v29  ;;  %v7644_v53 = vld [vmem:[#allocation2 + $0x109] sm:$0xff]  ;;  %v7645_v29 = vld [vmem:[#allocation2 + $0x111] sm:$0xff] }
 0xa7f   : > { %v15919_v19 = vpack.c.bf16 %v7643_v46, %v7642_v36 }
 0xa80   : > { %v8059_v10 = vpop.f32.mrf.mxu2  ;;  %v15947_v35 = vadd.f32 %v7327_v24, %v15663_v26  ;;  %v15958_v26 = vpack.c.bf16 %v7645_v29, %v7644_v53  ;;  %v17472_v24 = vld [vmem:[#allocation61_spill] sm:$0xff] }
 0xa81   : > { %17463 = vst [vmem:[#allocation63_spill] sm:$0xff] %v15919_v19 }
 0xa82   : > { %v7292_v15 = vpop.f32.mrf.mxu3  ;;  %v7532_v3 = vpop.f32.mrf.mxu1  ;;  %17468 = vst [vmem:[#allocation62_spill] sm:$0xff] %v15947_v35 }
 0xa83   : > { %v15913_v60 = vadd.f32 %v7532_v3, %v15689_v12  ;;  %v15915_v34 = vpop.f32.mrf.mxu0  ;;  %v7840_v12 = vmul.f32 %v15840_v51, %v17464_v47  ;;  %v7394_v47 = vld [vmem:[#allocation2 + $0x108] sm:$0xff]  ;;  %17471 = vst [vmem:[#allocation60_spill] sm:$0xff] %v15958_v26 }
 0xa85   : > { %10847 = vmatmul.msk.bf16.gmra.mxu1 %vm658_vm0, %v15917_v42  ;;  %v7872_v27 = vadd.f32 %v7840_v12, %v15838_v23  ;;  %v17469_v23 = vld [vmem:[#allocation70_spill] sm:$0xff] }
 0xa86   : > { %10887 = vmatmul.msk.bf16.gmra.mxu0 %vm658_vm0, %v15919_v19  ;;  %v8123_v12 = vmul.f32 %v8056_v57, %v17469_v23 }
 0xa87   : > { %10960 = vmatmul.msk.bf16.gmra.mxu3 %vm658_vm0, %v15709_v2  ;;  %v15942_v2 = vadd.f32 %v8122_v1, %v7872_v27  ;;  %v15956_v27 = vpack.c.bf16 %v7395_v30, %v7394_v47  ;;  %v7927_v47 = vld [vmem:[#allocation2 + $0x11f] sm:$0xff] }
 0xa88   : > { %v8061_v46 = vpop.f32.mrf.mxu2  ;;  %v15963_v57 = vadd.f32 %v8123_v12, %v15866_v38  ;;  %v17474_v30 = vld [vmem:[#allocation77_spill] sm:$0xff] }
 0xa89   : > { %v8124_v23 = vmul.f32 %v8059_v10, %v17474_v30  ;;  %v8428_v30 = vld [vmem:[#allocation2 + $0x29] sm:$0xff] }
 0xa8a   : > { %v7295_v48 = vpop.f32.mrf.mxu3  ;;  %v7534_v3 = vpop.f32.mrf.mxu1 }
 0xa8b   : > { %v7595_v36 = vadd.f32 %v7534_v3, %v15702_v45  ;;  %v7784_v13 = vpop.f32.mrf.mxu0 }
 0xa8c   : > { %v7845_v51 = vmul.f32 %v7784_v13, %v17467_v31  ;;  %v17470_v13 = vld [vmem:[#allocation45_spill] sm:$0xff] }
 0xa8d   : > { %10927 = vmatmul.msk.bf16.gmra.mxu2 %vm658_vm0, %v15650_v40  ;;  %v7328_v31 = vmul.f32 %v7290_v8, %v17470_v13  ;;  %v7842_v8 = vmul.f32 %v15876_v6, %v17472_v24  ;;  %v17475_v13 = vld [vmem:[#allocation64_spill] sm:$0xff]  ;;  %v17476_v24 = vld [vmem:[#allocation30_spill] sm:$0xff] }
 0xa8e   : > { %v15944_v16 = vadd.f32 %v7845_v51, %v7595_v36  ;;  %v17473_v36 = vld [vmem:[#allocation66_spill] sm:$0xff] }
 0xa8f   : > { %v15972_v29 = vadd.f32 %v7328_v31, %v17473_v36 }
 0xa90   : > { %v8064_v39 = vpop.f32.mrf.mxu2 }
 0xa92   : > { %v7297_v45 = vpop.f32.mrf.mxu3  ;;  %v7537_v3 = vpop.f32.mrf.mxu1 }
 0xa93   : > { %v15952_v40 = vadd.f32 %v7537_v3, %v15725_v22  ;;  %v15954_v1 = vpop.f32.mrf.mxu0  ;;  %v7926_v22 = vld [vmem:[#allocation2 + $0x117] sm:$0xff]  ;;  %v7874_v3 = vadd.f32 %v7842_v8, %v15874_v54 }
 0xa94   : > { %v7943_v12 = vpack.c.bf16 %v7927_v47, %v7926_v22  ;;  %v8429_v8 = vld [vmem:[#allocation2 + $0x31] sm:$0xff] }
 0xa95   : > { %10848 = vmatmul.msk.bf16.gmra.mxu1 %vm658_vm0, %v15956_v27  ;;  %v15983_v31 = vadd.f32 %v8124_v23, %v7874_v3 }
 0xa96   : > { %10888 = vmatmul.msk.bf16.gmra.mxu0 %vm658_vm0, %v15958_v26  ;;  %v7329_v26 = vmul.f32 %v7292_v15, %v17475_v13  ;;  %v17477_v15 = vld [vmem:[#allocation26_spill] sm:$0xff] }
 0xa97   : > { %10961 = vmatmul.msk.bf16.gmra.mxu3 %vm658_vm0, %v15741_v21  ;;  %v8125_v47 = vmul.f32 %v8061_v46, %v17477_v15  ;;  %v7331_v15 = vmul.f32 %v7297_v45, %v15691_v59 }
 0xa98   : > { %v8066_v51 = vpop.f32.mrf.mxu2  ;;  %v15988_v22 = vadd.f32 %v7329_v26, %v15695_v28  ;;  %v17479_v26 = vld [vmem:[#allocation22_spill] sm:$0xff] }
 0xa99   : > { %v16000_v28 = vadd.f32 %v8125_v47, %v15905_v62  ;;  %v7844_v46 = vmul.f32 %v15915_v34, %v17479_v26 }
 0xa9a   : > { %v7539_v53 = vpop.f32.mrf.mxu1  ;;  %v8316_v38 = vpop.f32.mrf.mxu3 }
 0xa9b   : > { %v7597_v6 = vadd.f32 %v7539_v53, %v15737_v56  ;;  %v7789_v19 = vpop.f32.mrf.mxu0  ;;  %v15979_v21 = vadd.f32 %v8316_v38, %v15793_v4  ;;  %v17478_v4 = vld [vmem:[#allocation81_spill] sm:$0xff] }
 0xa9c   : > { %v7847_v35 = vmul.f32 %v7789_v19, %v17476_v24  ;;  %v7330_v53 = vmul.f32 %v7295_v48, %v17478_v4 }
 0xa9d   : > { %10928 = vmatmul.msk.bf16.gmra.mxu2 %vm658_vm0, %v7943_v12  ;;  %v17480_v12 = vld [vmem:[#allocation13_spill] sm:$0xff] }
 0xa9e   : > { %v15985_v10 = vadd.f32 %v7847_v35, %v7597_v6  ;;  %v8460_v35 = vpack.c.bf16 %v8429_v8, %v8428_v30  ;;  %v16007_v48 = vadd.f32 %v7330_v53, %v15706_v41  ;;  %v8126_v3 = vmul.f32 %v8064_v39, %v17480_v12  ;;  %v8431_v53 = vld [vmem:[#allocation2 + $0x41] sm:$0xff]  ;;  %v8430_v12 = vld [vmem:[#allocation2 + $0x39] sm:$0xff] }
 0xa9f   : > { %v7876_v8 = vadd.f32 %v7844_v46, %v15913_v60  ;;  %v16020_v30 = vadd.f32 %v7331_v15, %v15729_v20  ;;  %v17483_v20 = vld [vmem:[#allocation11_spill] sm:$0xff] }
 0xaa0   : > { %v8069_v54 = vpop.f32.mrf.mxu2 }
 0xaa1   : > { %v8128_v15 = vmul.f32 %v8069_v54, %v15390_v55 }
 0xaa2   : > { %v7542_v56 = vpop.f32.mrf.mxu1  ;;  %v8318_v36 = vpop.f32.mrf.mxu3 }
 0xaa3   : > { %v15993_v19 = vadd.f32 %v7542_v56, %v15758_v49  ;;  %v7792_v38 = vpop.f32.mrf.mxu0  ;;  %v15996_v23 = vadd.f32 %v8318_v36, %v15811_v17  ;;  %v17481_v56 = vld [vmem:[#allocation33_spill] sm:$0xff]  ;;  %v16017_v36 = vadd.f32 %v8126_v3, %v7876_v8  ;;  %v7846_v8 = vmul.f32 %v15954_v1, %v17483_v20 }
 0xaa5   : > { %10993 = vmatmul.msk.bf16.vlgmr.msra.gmra.mxu1 %vm658_vm0, %v8460_v35  ;;  %v17482_v35 = vld [vmem:[#allocation32_spill] sm:$0xff] }
 0xaa6   : > { %v8127_v60 = vmul.f32 %v8066_v51, %v17482_v35 }
 0xaa7   : > { %10962 = vmatmul.msk.bf16.gmra.mxu3 %vm658_vm0, %v15771_v14 }
 0xaa8   : > { %v8071_v49 = vpop.f32.mrf.mxu2  ;;  %v16029_v3 = vadd.f32 %v8127_v60, %v15944_v16  ;;  %v17484_v16 = vld [vmem:[#allocation15_spill] sm:$0xff] }
 0xaaa   : > { %v7544_v17 = vpop.f32.mrf.mxu1  ;;  %v8321_v6 = vpop.f32.mrf.mxu3 }
 0xaab   : > { %v7599_v62 = vadd.f32 %v7544_v17, %v15767_v32  ;;  %v7794_v47 = vpop.f32.mrf.mxu0  ;;  %v16014_v34 = vadd.f32 %v8321_v6, %v15828_v33  ;;  %v8461_v6 = vpack.c.bf16 %v8431_v53, %v8430_v12 }
 0xaac   : > { %v7849_v14 = vmul.f32 %v7794_v47, %v17481_v56 }
 0xaae   : > { %v7881_v41 = vadd.f32 %v7849_v14, %v7599_v62 }
 0xab0   : > { %v8074_v39 = vpop.f32.mrf.mxu2 }
 0xab2   : > { %v7547_v46 = vpop.f32.mrf.mxu1  ;;  %v8323_v45 = vpop.f32.mrf.mxu3 }
 0xab3   : > { %v7600_v32 = vadd.f32 %v7547_v46, %v15785_v18  ;;  %v7797_v17 = vpop.f32.mrf.mxu0  ;;  %v16025_v33 = vadd.f32 %v8323_v45, %v15849_v9  ;;  %v7878_v9 = vadd.f32 %v7846_v8, %v15952_v40  ;;  %v17485_v45 = vld [vmem:[#allocation74_spill] sm:$0xff] }
 0xab4   : > { %v8129_v12 = vmul.f32 %v8071_v49, %v17485_v45 }
 0xab5   : > { %10994 = vmatmul.msk.bf16.gmra.mxu1 %vm658_vm0, %v8461_v6  ;;  %v16042_v60 = vadd.f32 %v8128_v15, %v7878_v9  ;;  %v8432_v6 = vld [vmem:[#allocation2 + $0x49] sm:$0xff] }
 0xab6   : > { %v16051_v15 = vadd.f32 %v8129_v12, %v15985_v10  ;;  %v17487_v9 = vld [vmem:[#allocation3_spill] sm:$0xff] }
 0xab7   : > { %10963 = vmatmul.msk.bf16.gmra.mxu3 %vm658_vm0, %v15803_v5  ;;  %v8433_v5 = vld [vmem:[#allocation2 + $0x51] sm:$0xff] }
 0xab8   : > { %v8076_v51 = vpop.f32.mrf.mxu2 }
 0xab9   : > { %v8131_v12 = vmul.f32 %v8076_v51, %v15438_v44  ;;  %v17491_v44 = vld [vmem:[#allocation31_spill] sm:$0xff] }
 0xaba   : > { %v7549_v18 = vpop.f32.mrf.mxu1  ;;  %v8326_v62 = vpop.f32.mrf.mxu3 }
 0xabb   : > { %v7601_v47 = vadd.f32 %v7549_v18, %v15798_v61  ;;  %v7799_v14 = vpop.f32.mrf.mxu0  ;;  %v16039_v53 = vadd.f32 %v8326_v62, %v15864_v25  ;;  %v8462_v25 = vpack.c.bf16 %v8433_v5, %v8432_v6  ;;  %v17486_v18 = vld [vmem:[#allocation8_spill] sm:$0xff] }
 0xabc   : > { %v7851_v35 = vmul.f32 %v7799_v14, %v17484_v16  ;;  %v7848_v62 = vmul.f32 %v7792_v38, %v17486_v18 }
 0xabe   : > { %v7883_v1 = vadd.f32 %v7851_v35, %v7601_v47  ;;  %v8130_v47 = vmul.f32 %v8074_v39, %v17487_v9  ;;  %v17490_v9 = vld [vmem:[#allocation72_spill] sm:$0xff] }
 0xac0   : > { %v8079_v46 = vpop.f32.mrf.mxu2 }
 0xac1   : > { %v8132_v51 = vmul.f32 %v8079_v46, %v17491_v44 }
 0xac2   : > { %v7552_v55 = vpop.f32.mrf.mxu1  ;;  %v8328_v54 = vpop.f32.mrf.mxu3 }
 0xac3   : > { %v7602_v40 = vadd.f32 %v7552_v55, %v15820_v0  ;;  %v7802_v8 = vpop.f32.mrf.mxu0  ;;  %v16047_v61 = vadd.f32 %v8328_v54, %v15885_v52  ;;  %v7880_v52 = vadd.f32 %v7848_v62, %v15993_v19  ;;  %v17488_v54 = vld [vmem:[#allocation71_spill] sm:$0xff]  ;;  %v17489_v62 = vld [vmem:[#allocation38_spill] sm:$0xff] }
 0xac5   : > { %10995 = vmatmul.msk.bf16.gmra.mxu1 %vm658_vm0, %v8462_v25  ;;  %v16067_v38 = vadd.f32 %v8130_v47, %v7880_v52  ;;  %v17492_v52 = vld [vmem:[#allocation56_spill] sm:$0xff] }
 0xac7   : > { %10964 = vmatmul.msk.bf16.gmra.mxu3 %vm658_vm0, %v15842_v11  ;;  %v8435_v11 = vld [vmem:[#allocation2 + $0x61] sm:$0xff] }
 0xac8   : > { %v8081_v49 = vpop.f32.mrf.mxu2 }
 0xac9   : > { %v8133_v0 = vmul.f32 %v8081_v49, %v15466_v37  ;;  %v8434_v37 = vld [vmem:[#allocation2 + $0x59] sm:$0xff]  ;;  %v7850_v49 = vmul.f32 %v7797_v17, %v17489_v62 }
 0xaca   : > { %v7554_v14 = vpop.f32.mrf.mxu1  ;;  %v8331_v35 = vpop.f32.mrf.mxu3  ;;  %v8463_v25 = vpack.c.bf16 %v8435_v11, %v8434_v37  ;;  %v8436_v37 = vld [vmem:[#allocation2 + $0x69] sm:$0xff] }
 0xacb   : > { %v16060_v5 = vadd.f32 %v7554_v14, %v15833_v58  ;;  %v16062_v45 = vpop.f32.mrf.mxu0  ;;  %v16065_v10 = vadd.f32 %v8331_v35, %v15903_v63  ;;  %v16079_v63 = vadd.f32 %v8131_v12, %v7881_v41  ;;  %v7882_v35 = vadd.f32 %v7850_v49, %v7600_v32  ;;  %v8437_v12 = vld [vmem:[#allocation2 + $0x71] sm:$0xff]  ;;  %v17494_v49 = vld [vmem:[#allocation14_spill] sm:$0xff] }
 0xacc   : > { %v8464_v32 = vpack.c.bf16 %v8437_v12, %v8436_v37 }
 0xacd   : > { %v16093_v41 = vadd.f32 %v8132_v51, %v7882_v35 }
 0xad2   : > { %v7557_v39 = vpop.f32.mrf.mxu1  ;;  %v8333_v55 = vpop.f32.mrf.mxu3 }
 0xad3   : > { %v16071_v6 = vadd.f32 %v7557_v39, %v17488_v54  ;;  %v16073_v19 = vpop.f32.mrf.mxu0  ;;  %v16076_v58 = vadd.f32 %v8333_v55, %v15924_v7  ;;  %v17493_v54 = vld [vmem:[#allocation73_spill] sm:$0xff] }
 0xad5   : > { %10996 = vmatmul.msk.bf16.gmra.mxu1 %vm658_vm0, %v8463_v25 }
 0xad7   : > { %10965 = vmatmul.msk.bf16.gmra.mxu3 %vm658_vm0, %v17490_v9 }
 0xada   : > { %v7559_v47 = vpop.f32.mrf.mxu1  ;;  %v8336_v14 = vpop.f32.mrf.mxu3 }
 0xadb   : > { %v16086_v39 = vadd.f32 %v7559_v47, %v17492_v52  ;;  %v16088_v7 = vpop.f32.mrf.mxu0  ;;  %v16091_v11 = vadd.f32 %v8336_v14, %v15942_v2  ;;  %v16101_v47 = vadd.f32 %v8133_v0, %v7883_v1  ;;  %v8084_v2 = vpop.f32.mrf.mxu2  ;;  %v17495_v14 = vld [vmem:[#allocation78_spill] sm:$0xff]  ;;  %v17496_v52 = vld [vmem:[#allocation35_spill] sm:$0xff] }
 0xadc   : > { %v7852_v35 = vmul.f32 %v7802_v8, %v17495_v14  ;;  %v8439_v0 = vld [vmem:[#allocation2 + $0x81] sm:$0xff] }
 0xae2   : > { %v7562_v17 = vpop.f32.mrf.mxu1  ;;  %v8338_v55 = vpop.f32.mrf.mxu3 }
 0xae3   : > { %v7606_v25 = vadd.f32 %v7562_v17, %v17493_v54  ;;  %v7812_v46 = vpop.f32.mrf.mxu0  ;;  %v16097_v9 = vadd.f32 %v8338_v55, %v15963_v57  ;;  %v8134_v17 = vmul.f32 %v8084_v2, %v17496_v52  ;;  %v7884_v55 = vadd.f32 %v7852_v35, %v7602_v40  ;;  %v17497_v40 = vld [vmem:[#allocation62_spill] sm:$0xff]  ;;  %v8441_v52 = vld [vmem:[#allocation2 + $0x91] sm:$0xff] }
 0xae4   : > { %v7856_v44 = vmul.f32 %v7812_v46, %v17494_v49 }
 0xae5   : > { %10997 = vmatmul.msk.bf16.gmra.mxu1 %vm658_vm0, %v8464_v32  ;;  %v8166_v1 = vadd.f32 %v8134_v17, %v7884_v55  ;;  %v8438_v32 = vld [vmem:[#allocation2 + $0x79] sm:$0xff] }
 0xae6   : > { %v16103_v51 = vadd.f32 %v7856_v44, %v7606_v25  ;;  %v8465_v44 = vpack.c.bf16 %v8439_v0, %v8438_v32  ;;  %v8209_v17 = vld [vmem:[#allocation2 + $0x120] sm:$0xff] }
 0xae7   : > { %10966 = vmatmul.msk.bf16.gmra.mxu3 %vm658_vm0, %v15917_v42 }
 0xaea   : > { %v7564_v54 = vpop.f32.mrf.mxu1  ;;  %v8341_v57 = vpop.f32.mrf.mxu3 }
 0xaeb   : > { %v16110_v12 = vadd.f32 %v7564_v54, %v15908_v43  ;;  %v16113_v37 = vadd.f32 %v8341_v57, %v15983_v31  ;;  %v8440_v57 = vld [vmem:[#allocation2 + $0x89] sm:$0xff] }
 0xaf2   : > { %v7567_v25 = vpop.f32.mrf.mxu1  ;;  %v8343_v46 = vpop.f32.mrf.mxu3 }
 0xaf3   : > { %v16116_v8 = vadd.f32 %v7567_v25, %v15933_v50  ;;  %v16119_v42 = vadd.f32 %v8343_v46, %v16000_v28  ;;  %v8208_v50 = vld [vmem:[#allocation2 + $0x118] sm:$0xff] }
 0xaf4   : > { %v8225_v25 = vpack.c.bf16 %v8209_v17, %v8208_v50 }
 0xaf5   : > { %10998 = vmatmul.msk.bf16.gmra.mxu1 %vm658_vm0, %v8465_v44 }
 0xaf7   : > { %10967 = vmatmul.msk.bf16.gmra.mxu3 %vm658_vm0, %v15956_v27  ;;  %v8466_v27 = vpack.c.bf16 %v8441_v52, %v8440_v57 }
 0xafa   : > { %v7569_v43 = vpop.f32.mrf.mxu1  ;;  %v8346_v31 = vpop.f32.mrf.mxu3 }
 0xafb   : > { %v16125_v2 = vadd.f32 %v7569_v43, %v17497_v40  ;;  %v16128_v35 = vadd.f32 %v8346_v31, %v16017_v36  ;;  %v17499_v40 = vld [vmem:[#allocation49_spill] sm:$0xff] }
 0xb02   : > { %v7572_v54 = vpop.f32.mrf.mxu1  ;;  %v8348_v28 = vpop.f32.mrf.mxu3 }
 0xb03   : > { %v16131_v55 = vadd.f32 %v7572_v54, %v15972_v29  ;;  %v16134_v0 = vadd.f32 %v8348_v28, %v16029_v3 }
 0xb05   : > { %10999 = vmatmul.msk.bf16.gmra.mxu1 %vm658_vm0, %v8466_v27  ;;  %v17502_v27 = vld [vmem:[#allocation55_spill] sm:$0xff] }
 0xb07   : > { %10968 = vmatmul.msk.bf16.gmra.mxu3 %vm658_vm0, %v8225_v25 }
 0xb0a   : > { %v7574_v36 = vpop.f32.mrf.mxu1  ;;  %v8351_v46 = vpop.f32.mrf.mxu3 }
 0xb0b   : > { %v16139_v32 = vadd.f32 %v7574_v36, %v15988_v22  ;;  %v16142_v44 = vadd.f32 %v8351_v46, %v16042_v60 }
 0xb12   : > { %v7577_v43 = vpop.f32.mrf.mxu1  ;;  %v8353_v29 = vpop.f32.mrf.mxu3 }
 0xb13   : > { %v16145_v31 = vadd.f32 %v7577_v43, %v16007_v48  ;;  %v16148_v3 = vadd.f32 %v8353_v29, %v16051_v15  ;;  %v17501_v48 = vld [vmem:[#allocation16_spill] sm:$0xff] }
 0xb15   : > { %17498 = vst [vmem:[#allocation75_spill] sm:$0xff] %v16145_v31  ;;  %11000 = vmatmul.msk.bf16.gmra.mxu1 %vm658_vm0, %v17499_v40 }
 0xb1a   : > { %v7579_v52 = vpop.f32.mrf.mxu1  ;;  %v8356_v50 = vpop.f32.mrf.mxu3 }
 0xb1b   : > { %v16153_v17 = vadd.f32 %v7579_v52, %v16020_v30  ;;  %v16156_v22 = vadd.f32 %v8356_v50, %v16067_v38  ;;  %v17503_v38 = vld [vmem:[#allocation6_spill] sm:$0xff] }
 0xb1d   : > { %17500 = vst [vmem:[#allocation76_spill] sm:$0xff] %v16153_v17 }
 0xb22   : > { %v8358_v60 = vpop.f32.mrf.mxu3  ;;  %v8566_v54 = vpop.f32.mrf.mxu1 }
 0xb23   : > { %v16159_v28 = vadd.f32 %v8358_v60, %v16079_v63  ;;  %v8646_v57 = vmul.f32 %v8566_v54, %v17501_v48  ;;  %v17505_v60 = vld [vmem:[#allocation69_spill] sm:$0xff] }
 0xb25   : > { %v16163_v15 = vadd.f32 %v8646_v57, %v15979_v21  ;;  %11001 = vmatmul.msk.bf16.gmra.mxu1 %vm658_vm0, %v17502_v27  ;;  %v17504_v21 = vld [vmem:[#allocation20_spill] sm:$0xff]  ;;  %v17506_v57 = vld [vmem:[#allocation65_spill] sm:$0xff] }
 0xb2a   : > { %v8361_v25 = vpop.f32.mrf.mxu3  ;;  %v8568_v36 = vpop.f32.mrf.mxu1 }
 0xb2b   : > { %v16168_v30 = vadd.f32 %v8361_v25, %v16093_v41  ;;  %v8647_v46 = vmul.f32 %v8568_v36, %v17503_v38 }
 0xb2d   : > { %v16172_v43 = vadd.f32 %v8647_v46, %v15996_v23 }
 0xb32   : > { %v8363_v63 = vpop.f32.mrf.mxu3  ;;  %v8571_v29 = vpop.f32.mrf.mxu1 }
 0xb33   : > { %v16175_v40 = vadd.f32 %v8363_v63, %v16101_v47  ;;  %v8648_v52 = vmul.f32 %v8571_v29, %v17504_v21  ;;  %v17507_v47 = vld [vmem:[#allocation10_spill] sm:$0xff]  ;;  %v17509_v63 = vld [vmem:[#allocation7_spill] sm:$0xff] }
 0xb35   : > { %v16179_v50 = vadd.f32 %v8648_v52, %v16014_v34  ;;  %11002 = vmatmul.msk.bf16.gmra.mxu1 %vm658_vm0, %v17505_v60  ;;  %v17508_v34 = vld [vmem:[#allocation57_spill] sm:$0xff]  ;;  %v17510_v52 = vld [vmem:[#allocation27_spill] sm:$0xff] }
 0xb3a   : > { %v8366_v41 = vpop.f32.mrf.mxu3  ;;  %v8573_v54 = vpop.f32.mrf.mxu1 }
 0xb3b   : > { %v16183_v48 = vadd.f32 %v8366_v41, %v8166_v1  ;;  %v8649_v23 = vmul.f32 %v8573_v54, %v17506_v57  ;;  %v8852_v1 = vld [vmem:[%s16782_s17 + $0x18] sm:$0xff]  ;;  %v17511_v41 = vld [vmem:[#allocation58_spill] sm:$0xff]  ;;  %v17512_v57 = vld [vmem:[#allocation25_spill] sm:$0xff] }
 0xb3c   : > { %8869 = vmatpush.msrb.mxu1 %v8852_v1 }
 0xb3d   : > { %v16187_v27 = vadd.f32 %v8649_v23, %v16025_v33 }
 0xb42   : > { %v8576_v25 = vpop.f32.mrf.mxu1 }
 0xb43   : > { %v8650_v36 = vmul.f32 %v8576_v25, %v17507_v47 }
 0xb45   : > { %v16191_v38 = vadd.f32 %v8650_v36, %v16039_v53  ;;  %11003 = vmatmul.msk.bf16.gmra.mxu1 %vm658_vm0, %v17508_v34  ;;  %v17514_v34 = vld [vmem:[#allocation9_spill] sm:$0xff] }
 0xb4a   : > { %v8578_v46 = vpop.f32.mrf.mxu1 }
 0xb4b   : > { %v8651_v29 = vmul.f32 %v8578_v46, %v17509_v63 }
 0xb4d   : > { %v16200_v21 = vadd.f32 %v8651_v29, %v16047_v61  ;;  %v17513_v61 = vld [vmem:[#allocation59_spill] sm:$0xff]  ;;  %v17515_v29 = vld [vmem:[#allocation61_spill] sm:$0xff] }
 0xb52   : > { %v8581_v33 = vpop.f32.mrf.mxu1 }
 0xb53   : > { %v8652_v60 = vmul.f32 %v8581_v33, %v17510_v52  ;;  %v17516_v52 = vld [vmem:[#allocation63_spill] sm:$0xff] }
 0xb55   : > { %v16204_v53 = vadd.f32 %v8652_v60, %v16065_v10  ;;  %11004 = vmatmul.msk.bf16.gmra.mxu1 %vm658_vm0, %v17511_v41  ;;  %v17517_v60 = vld [vmem:[#allocation28_spill] sm:$0xff] }
 0xb5a   : > { %v8583_v54 = vpop.f32.mrf.mxu1 }
 0xb5b   : > { %v8653_v23 = vmul.f32 %v8583_v54, %v17512_v57 }
 0xb5d   : > { %v16210_v25 = vadd.f32 %v8653_v23, %v16076_v58 }
 0xb62   : > { %v16212_v47 = vpop.f32.mrf.mxu1 }
 0xb65   : > { %11005 = vmatmul.msk.bf16.gmra.mxu1 %vm658_vm0, %v17513_v61  ;;  %v17518_v61 = vld [vmem:[#allocation60_spill] sm:$0xff] }
 0xb6a   : > { %v8588_v36 = vpop.f32.mrf.mxu1 }
 0xb6b   : > { %v8655_v46 = vmul.f32 %v8588_v36, %v17514_v34  ;;  %v17519_v36 = vld [vmem:[#allocation29_spill] sm:$0xff] }
 0xb6d   : > { %v16218_v10 = vadd.f32 %v8655_v46, %v16097_v9  ;;  %v8851_v46 = vld [vmem:[%s16782_s17 + $0x10] sm:$0xff] }
 0xb6e   : > { %8870 = vmatpush.msrb.mxu1 %v8851_v46 }
 0xb72   : > { %v8591_v63 = vpop.f32.mrf.mxu1 }
 0xb73   : > { %v8656_v1 = vmul.f32 %v8591_v63, %v17515_v29  ;;  %v8459_v29 = vld [vmem:[#allocation2 + $0x121] sm:$0xff] }
 0xb75   : > { %v16222_v33 = vadd.f32 %v8656_v1, %v16113_v37  ;;  %11006 = vmatmul.msk.bf16.gmra.mxu1 %vm658_vm0, %v17516_v52 }
 0xb7a   : > { %v8593_v58 = vpop.f32.mrf.mxu1 }
 0xb7b   : > { %v8657_v41 = vmul.f32 %v8593_v58, %v17517_v60 }
 0xb7d   : > { %v16228_v54 = vadd.f32 %v8657_v41, %v16119_v42  ;;  %v8458_v42 = vld [vmem:[#allocation2 + $0x119] sm:$0xff] }
 0xb82   : > { %v8596_v57 = vpop.f32.mrf.mxu1 }
 0xb83   : > { %v8658_v23 = vmul.f32 %v8596_v57, %v17479_v26  ;;  %v8475_v26 = vpack.c.bf16 %v8459_v29, %v8458_v42 }
 0xb85   : > { %v16232_v9 = vadd.f32 %v8658_v23, %v16128_v35  ;;  %11007 = vmatmul.msk.bf16.gmra.mxu1 %vm658_vm0, %v17518_v61  ;;  %v16256_v61 = vpop.f32.mrf.mxu2 }
 0xb8a   : > { %v8598_v37 = vpop.f32.mrf.mxu1 }
 0xb8b   : > { %v8659_v34 = vmul.f32 %v8598_v37, %v17519_v36 }
 0xb8d   : > { %v16241_v63 = vadd.f32 %v8659_v34, %v16134_v0  ;;  %v16262_v34 = vpop.f32.mrf.mxu2 }
 0xb92   : > { %v8601_v1 = vpop.f32.mrf.mxu1 }
 0xb93   : > { %v8660_v35 = vmul.f32 %v8601_v1, %v17483_v20 }
 0xb95   : > { %v16245_v52 = vadd.f32 %v8660_v35, %v16142_v44  ;;  %11008 = vmatmul.msk.bf16.gmra.mxu1 %vm658_vm0, %v8475_v26  ;;  %v16271_v42 = vpop.f32.mrf.mxu2  ;;  %vm8884_vm0 = vcmask 1041408  }
 0xb9a   : > { %v8603_v58 = vpop.f32.mrf.mxu1 }
 0xb9b   : > { %v8661_v60 = vmul.f32 %v8603_v58, %v17476_v24  ;;  %v16292_v58 = vpop.f32.mrf.mxu0 }
 0xb9d   : > { %v16250_v41 = vadd.f32 %v8661_v60, %v16148_v3  ;;  %v16265_v3 = vpop.f32.mrf.mxu3  ;;  %v8094_v1 = vpop.f32.mrf.mxu2 }
 0xba2   : > { %v8606_v0 = vpop.f32.mrf.mxu1 }
 0xba3   : > { %v8662_v57 = vmul.f32 %v8606_v0, %v17486_v18  ;;  %v16298_v0 = vpop.f32.mrf.mxu0 }
 0xba5   : > { %v16254_v23 = vadd.f32 %v8662_v57, %v16156_v22  ;;  %v16303_v57 = vld [vmem:[%s16779_s14] ss:$0 sm:$0xff] }
 0xba6   : > { %v8717_v17 = vadd.f32 %v16303_v57, %v16187_v27 }
 0xba8   : > { %v16338_v27 = vmax.f32 %v8717_v17, 0.0 }
 0xbaa   : > { %v8608_v20 = vpop.f32.mrf.mxu1  ;;  %17526 = vst [vmem:[#allocation18_spill] sm:$0xff] %v16338_v27 }
 0xbab   : > { %v8663_v44 = vmul.f32 %v8608_v20, %v17481_v56 }
 0xbad   : > { %v16260_v37 = vadd.f32 %v8663_v44, %v16159_v28  ;;  %v16276_v28 = vpop.f32.mrf.mxu3 }
 0xbb2   : > { %v8611_v36 = vpop.f32.mrf.mxu1 }
 0xbb3   : > { %v8664_v24 = vmul.f32 %v8611_v36, %v17489_v62 }
 0xbb5   : > { %v16268_v18 = vadd.f32 %v8664_v24, %v16168_v30  ;;  %v16282_v35 = vpop.f32.mrf.mxu3  ;;  %v17521_v24 = vld [vmem:[#allocation41_spill] sm:$0xff] }
 0xbba   : > { %v8613_v22 = vpop.f32.mrf.mxu1 }
 0xbbb   : > { %v8665_v46 = vmul.f32 %v8613_v22, %v17484_v16  ;;  %v8850_v16 = vld [vmem:[%s16782_s17 + $0x8] sm:$0xff]  ;;  %v8138_v22 = vmul.f32 %v8094_v1, %v17521_v24 }
 0xbbc   : > { %8871 = vmatpush.msrb.mxu1 %v8850_v16  ;;  %v16318_v16 = vpop.f32.mrf.mxu0 }
 0xbbd   : > { %v16274_v56 = vadd.f32 %v8665_v46, %v16175_v40  ;;  %v8878_v40 = vld [vmem:[%s16784_s19] sm:$0x3]  ;;  %v8715_v46 = vadd.f32 %v16303_v57, %v16172_v43  ;;  %v8170_v59 = vadd.f32 %v8138_v22, %v16103_v51  ;;  %v8719_v22 = vadd.f32 %v16303_v57, %v16200_v21 }
 0xbbe   : > { %11010 = vmatpush.msk.msra.mxu0 %vm8884_vm0, %v8878_v40  ;;  %v8784_v21 = vsel %vm8778_vm1, %v16338_v27, 0.0 }
 0xbbf   : > { %v16320_v40 = vmax.f32 %v8715_v46, 0.0 }
 0xbc1   : > { %17522 = vst [vmem:[#allocation17_spill] sm:$0xff] %v16320_v40  ;;  %v8780_v51 = vsel %vm8778_vm1, %v16320_v40, 0.0 }
 0xbc2   : > { %v8616_v29 = vpop.f32.mrf.mxu1 }
 0xbc3   : > { %v8666_v26 = vmul.f32 %v8616_v29, %v17495_v14  ;;  %v16294_v14 = vpop.f32.mrf.mxu2  ;;  %v8714_v29 = vadd.f32 %v16303_v57, %v16163_v15  ;;  %v8718_v15 = vadd.f32 %v16303_v57, %v16191_v38 }
 0xbc5   : > { %v16280_v62 = vadd.f32 %v8666_v26, %v16183_v48  ;;  %v8376_v48 = vpop.f32.mrf.mxu3  ;;  %v8716_v26 = vadd.f32 %v16303_v57, %v16179_v50  ;;  %v16325_v31 = vmax.f32 %v8714_v29, 0.0  ;;  %v17525_v50 = vld [vmem:[#allocation12_spill] sm:$0xff] }
 0xbc6   : > { %v8420_v24 = vadd.f32 %v8376_v48, %v8170_v59  ;;  %v8720_v48 = vadd.f32 %v16303_v57, %v16204_v53 }
 0xbc7   : > { %17523 = vst [vmem:[#allocation19_spill] sm:$0xff] %v16325_v31  ;;  %v16327_v1 = vmax.f32 %v8716_v26, 0.0  ;;  %v8779_v59 = vsel %vm8778_vm1, %v16325_v31, 0.0 }
 0xbc8   : > { %v8781_v26 = vadd.f32 %v8780_v51, %v8779_v59  ;;  %v16365_v40 = vmax.f32 %v8720_v48, 0.0  ;;  %v8724_v48 = vadd.f32 %v16303_v57, %v16222_v33 }
 0xbc9   : > { %17524 = vst [vmem:[#allocation39_spill] sm:$0xff] %v16327_v1 }
 0xbca   : > { %v16284_v30 = vpop.f32.mrf.mxu1  ;;  %17530 = vst [vmem:[#allocation24_spill] sm:$0xff] %v16365_v40 }
 0xbcb   : > { %v16307_v44 = vpop.f32.mrf.mxu2 }
 0xbcd   : > { %v16309_v36 = vpop.f32.mrf.mxu3 }
 0xbce   : > { %17520 = vst [vmem:[#allocation4_spill] sm:$0xff] %v16309_v36  ;;  %v8654_v36 = vmul.f32 %v16212_v47, %v17525_v50  ;;  %v16350_v47 = vmax.f32 %v8718_v15, 0.0 }
 0xbd0   : > { %17528 = vst [vmem:[#allocation23_spill] sm:$0xff] %v16350_v47  ;;  %v8686_v17 = vadd.f32 %v8654_v36, %v16091_v11  ;;  %v8786_v15 = vsel %vm8778_vm1, %v16350_v47, 0.0 }
 0xbd2   : > { %v16296_v60 = vpop.f32.mrf.mxu1  ;;  %v8722_v11 = vadd.f32 %v16303_v57, %v8686_v17  ;;  %v17533_v17 = vld [vmem:[#allocation36_spill] sm:$0xff] }
 0xbd3   : > { %v16334_v4 = vpop.f32.mrf.mxu2 }
 0xbd5   : > { %v16346_v38 = vpop.f32.mrf.mxu3 }
 0xbda   : > { %v16305_v20 = vpop.f32.mrf.mxu1 }
 0xbdb   : > { %v16374_v59 = vpop.f32.mrf.mxu2 }
 0xbe2   : > { %v8626_v43 = vpop.f32.mrf.mxu1 }
 0xbe3   : > { %v8670_v46 = vmul.f32 %v8626_v43, %v17494_v49  ;;  %v8782_v49 = vsel %vm8778_vm1, %v16327_v1, 0.0  ;;  %v16357_v43 = vmax.f32 %v8719_v22, 0.0  ;;  %v7822_v1 = vpop.f32.mrf.mxu0 }
 0xbe4   : > { %v8783_v50 = vadd.f32 %v8782_v49, %v8781_v26  ;;  %v8790_v49 = vsel %vm8778_vm1, %v16365_v40, 0.0  ;;  %v16378_v26 = vmax.f32 %v8722_v11, 0.0  ;;  %v17535_v40 = vld [vmem:[#allocation40_spill] sm:$0xff] }
 0xbe5   : > { %v16342_v29 = vadd.f32 %v8670_v46, %v8420_v24  ;;  %17529 = vst [vmem:[#allocation51_spill] sm:$0xff] %v16357_v43  ;;  %v8721_v24 = vadd.f32 %v16303_v57, %v16210_v25  ;;  %v8788_v36 = vsel %vm8778_vm1, %v16357_v43, 0.0  ;;  %v8723_v25 = vadd.f32 %v16303_v57, %v16218_v10  ;;  %v17536_v43 = vld [vmem:[#allocation42_spill] sm:$0xff] }
 0xbe6   : > { %v8785_v53 = vadd.f32 %v8784_v21, %v8783_v50  ;;  %17532 = vst [vmem:[#allocation70_spill] sm:$0xff] %v16378_v26  ;;  %v7853_v21 = vmul.f32 %v16062_v45, %v17533_v17  ;;  %v7854_v11 = vmul.f32 %v16073_v19, %v17535_v40  ;;  %v7855_v33 = vmul.f32 %v16088_v7, %v17536_v43  ;;  %v17539_v19 = vld [vmem:[#allocation50_spill] sm:$0xff] }
 0xbe7   : > { %17527 = vst [vmem:[#allocation43_spill] sm:$0xff] %v16342_v29  ;;  %v16370_v51 = vmax.f32 %v8721_v24, 0.0  ;;  %v16384_v24 = vpop.f32.mrf.mxu3  ;;  %v8794_v45 = vsel %vm8778_vm1, %v16378_v26, 0.0  ;;  %v7857_v31 = vmul.f32 %v16292_v58, %v17539_v19 }
 0xbe8   : > { %v8787_v22 = vadd.f32 %v8786_v15, %v8785_v53  ;;  %v16388_v15 = vmax.f32 %v8723_v25, 0.0  ;;  %v8725_v53 = vadd.f32 %v16303_v57, %v16228_v54  ;;  %v8726_v25 = vadd.f32 %v16303_v57, %v16232_v9  ;;  %v17538_v54 = vld [vmem:[#allocation34_spill] sm:$0xff] }
 0xbe9   : > { %17531 = vst [vmem:[#allocation5_spill] sm:$0xff] %v16370_v51  ;;  %v8792_v10 = vsel %vm8778_vm1, %v16370_v51, 0.0  ;;  %v8135_v51 = vmul.f32 %v16256_v61, %v17538_v54  ;;  %v8727_v9 = vadd.f32 %v16303_v57, %v16241_v63  ;;  %v7887_v61 = vadd.f32 %v7855_v33, %v16086_v39  ;;  %v17543_v63 = vld [vmem:[#allocation79_spill] sm:$0xff] }
 0xbea   : > { %v16361_v46 = vpop.f32.mrf.mxu1  ;;  %v8789_v50 = vadd.f32 %v8788_v36, %v8787_v22  ;;  %17534 = vst [vmem:[#allocation66_spill] sm:$0xff] %v16388_v15  ;;  %v16400_v36 = vmax.f32 %v8724_v48, 0.0  ;;  %v7885_v22 = vadd.f32 %v7853_v21, %v16060_v5  ;;  %v8796_v48 = vsel %vm8778_vm1, %v16388_v15, 0.0  ;;  %v17541_v21 = vld [vmem:[#allocation37_spill] sm:$0xff] }
 0xbeb   : > { %v7824_v29 = vpop.f32.mrf.mxu0  ;;  %v16413_v26 = vmax.f32 %v8725_v53, 0.0  ;;  %v7886_v5 = vadd.f32 %v7854_v11, %v16071_v6  ;;  %v8136_v58 = vmul.f32 %v16262_v34, %v17541_v21  ;;  %v16425_v15 = vmax.f32 %v8726_v25, 0.0  ;;  %v17544_v21 = vld [vmem:[#allocation44_spill] sm:$0xff] }
 0xbec   : > { %v8791_v47 = vadd.f32 %v8790_v49, %v8789_v50  ;;  %17537 = vst [vmem:[#allocation77_spill] sm:$0xff] %v16400_v36  ;;  %v17540_v49 = vld [vmem:[#allocation54_spill] sm:$0xff]  ;;  %v8798_v54 = vsel %vm8778_vm1, %v16400_v36, 0.0  ;;  %v8728_v53 = vadd.f32 %v16303_v57, %v16245_v52  ;;  %v8137_v6 = vmul.f32 %v16271_v42, %v17543_v63  ;;  %v17545_v36 = vld [vmem:[#allocation48_spill] sm:$0xff] }
 0xbed   : > { %v7858_v50 = vmul.f32 %v16298_v0, %v17540_v49  ;;  %v7889_v39 = vadd.f32 %v7857_v31, %v16110_v12  ;;  %v8167_v11 = vadd.f32 %v8135_v51, %v7885_v22  ;;  %v8729_v25 = vadd.f32 %v16303_v57, %v16250_v41 }
 0xbee   : > { %v8793_v7 = vadd.f32 %v8792_v10, %v8791_v47  ;;  %v17542_v10 = vld [vmem:[#allocation80_spill] sm:$0xff]  ;;  %v8139_v52 = vmul.f32 %v16294_v14, %v17544_v21  ;;  %v7860_v42 = vmul.f32 %v7822_v1, %v17545_v36  ;;  %v8168_v63 = vadd.f32 %v8136_v58, %v7886_v5 }
 0xbef   : > { %v7859_v0 = vmul.f32 %v16318_v16, %v17542_v10  ;;  %v7890_v34 = vadd.f32 %v7858_v50, %v16116_v8  ;;  %v8800_v16 = vsel %vm8778_vm1, %v16413_v26, 0.0  ;;  %v16442_v31 = vpop.f32.mrf.mxu3  ;;  %v8802_v22 = vsel %vm8778_vm1, %v16425_v15, 0.0  ;;  %v17547_v1 = vld [vmem:[#allocation52_spill] sm:$0xff] }
 0xbf0   : > { %v8795_v47 = vadd.f32 %v8794_v45, %v8793_v7  ;;  %v8106_v45 = vpop.f32.mrf.mxu2  ;;  %v16435_v7 = vmax.f32 %v8727_v9, 0.0  ;;  %v16449_v50 = vmax.f32 %v8728_v53, 0.0  ;;  %v8730_v41 = vadd.f32 %v16303_v57, %v16254_v23  ;;  %v17548_v53 = vld [vmem:[#allocation46_spill] sm:$0xff] }
 0xbf1   : > { %v7891_v8 = vadd.f32 %v7859_v0, %v16125_v2  ;;  %v7861_v9 = vmul.f32 %v7824_v29, %v17547_v1  ;;  %v8667_v58 = vmul.f32 %v16284_v30, %v17533_v17  ;;  %v16460_v0 = vmax.f32 %v8729_v25, 0.0 }
 0xbf2   : > { %v16396_v27 = vpop.f32.mrf.mxu1  ;;  %v8797_v33 = vadd.f32 %v8796_v48, %v8795_v47  ;;  %v17546_v48 = vld [vmem:[#allocation47_spill] sm:$0xff]  ;;  %v8169_v47 = vadd.f32 %v8137_v6, %v7887_v61  ;;  %v8804_v2 = vsel %vm8778_vm1, %v16435_v7, 0.0  ;;  %v7892_v23 = vadd.f32 %v7860_v42, %v16131_v55  ;;  %v17549_v42 = vld [vmem:[#allocation45_spill] sm:$0xff] }
 0xbf3   : > { %v8140_v14 = vmul.f32 %v16307_v44, %v17546_v48  ;;  %v8141_v44 = vmul.f32 %v16334_v4, %v17548_v53  ;;  %v8417_v29 = vadd.f32 %v16265_v3, %v8167_v11  ;;  %v8806_v30 = vsel %vm8778_vm1, %v16449_v50, 0.0 }
 0xbf4   : > { %v8799_v12 = vadd.f32 %v8798_v54, %v8797_v33  ;;  %v8731_v54 = vadd.f32 %v16303_v57, %v16260_v37  ;;  %v16470_v17 = vmax.f32 %v8730_v41, 0.0  ;;  %v8732_v61 = vadd.f32 %v16303_v57, %v16268_v18 }
 0xbf5   : > { %v8668_v37 = vmul.f32 %v16296_v60, %v17535_v40  ;;  %v7893_v55 = vadd.f32 %v7861_v9, %v16139_v32  ;;  %v8418_v6 = vadd.f32 %v16276_v28, %v8168_v63  ;;  %v8699_v25 = vadd.f32 %v8667_v58, %v8417_v29  ;;  %v17550_v40 = vld [vmem:[#allocation67_spill] sm:$0xff] }
 0xbf6   : > { %v8801_v5 = vadd.f32 %v8800_v16, %v8799_v12  ;;  %v7827_v16 = vpop.f32.mrf.mxu0  ;;  %v8808_v3 = vsel %vm8778_vm1, %v16460_v0, 0.0  ;;  %v16480_v11 = vmax.f32 %v8731_v54, 0.0  ;;  %v8733_v21 = vadd.f32 %v16303_v57, %v16274_v56 }
 0xbf7   : > { %v8669_v18 = vmul.f32 %v16305_v20, %v17536_v43  ;;  %v8142_v60 = vmul.f32 %v16374_v59, %v17549_v42  ;;  %v7862_v32 = vmul.f32 %v7827_v16, %v17550_v40  ;;  %v8734_v28 = vadd.f32 %v16303_v57, %v16280_v62  ;;  %v8388_v59 = vpop.f32.mrf.mxu3 }
 0xbf8   : > { %v8803_v33 = vadd.f32 %v8802_v22, %v8801_v5  ;;  %v8109_v22 = vpop.f32.mrf.mxu2  ;;  %v8419_v41 = vadd.f32 %v16282_v35, %v8169_v47  ;;  %v8810_v48 = vsel %vm8778_vm1, %v16470_v17, 0.0  ;;  %v16494_v56 = vmax.f32 %v8732_v61, 0.0  ;;  %v17551_v47 = vld [vmem:[#allocation81_spill] sm:$0xff] }
 0xbf9   : > { %v8700_v9 = vadd.f32 %v8668_v37, %v8418_v6  ;;  %v8143_v20 = vmul.f32 %v8106_v45, %v17475_v13  ;;  %v8171_v43 = vadd.f32 %v8139_v52, %v7889_v39  ;;  %v8735_v58 = vadd.f32 %v16303_v57, %v8699_v25  ;;  %v17552_v13 = vld [vmem:[#allocation4_spill] sm:$0xff] }
 0xbfa   : > { %v16444_v51 = vpop.f32.mrf.mxu1  ;;  %v8805_v4 = vadd.f32 %v8804_v2, %v8803_v33  ;;  %v8812_v62 = vsel %vm8778_vm1, %v16480_v11, 0.0  ;;  %v16500_v2 = vmax.f32 %v8733_v21, 0.0  ;;  %v8701_v54 = vadd.f32 %v8669_v18, %v8419_v41  ;;  %v17554_v41 = vld [vmem:[#allocation75_spill] sm:$0xff] }
 0xbfb   : > { %v8671_v35 = vmul.f32 %v16361_v46, %v17539_v19  ;;  %v8144_v53 = vmul.f32 %v8109_v22, %v17551_v47  ;;  %v8172_v29 = vadd.f32 %v8140_v14, %v7890_v34  ;;  %v16505_v16 = vmax.f32 %v8734_v28, 0.0 }
 0xbfc   : > { %v8807_v12 = vadd.f32 %v8806_v30, %v8805_v4  ;;  %v8421_v39 = vadd.f32 %v17552_v13, %v8171_v43  ;;  %v8814_v45 = vsel %vm8778_vm1, %v16494_v56, 0.0  ;;  %v8736_v52 = vadd.f32 %v16303_v57, %v8700_v9 }
 0xbfd   : > { %v8672_v30 = vmul.f32 %v16396_v27, %v17540_v49  ;;  %v8422_v61 = vadd.f32 %v16346_v38, %v8172_v29  ;;  %v8173_v37 = vadd.f32 %v8141_v44, %v7891_v8  ;;  %v16514_v19 = vmax.f32 %v8735_v58, 0.0  ;;  %v17553_v8 = vld [vmem:[#allocation43_spill] sm:$0xff]  ;;  %v17555_v29 = vld [vmem:[#allocation68_spill] sm:$0xff] }
 0xbfe   : > { %v8809_v5 = vadd.f32 %v8808_v3, %v8807_v12  ;;  %v8816_v34 = vsel %vm8778_vm1, %v16500_v2, 0.0  ;;  %v8737_v14 = vadd.f32 %v16303_v57, %v8701_v54  ;;  %v8703_v6 = vadd.f32 %v8671_v35, %v8421_v39 }
 0xbff   : > { %v8673_v4 = vmul.f32 %v16444_v51, %v17542_v10  ;;  %v8423_v25 = vadd.f32 %v16384_v24, %v8173_v37  ;;  %v8174_v3 = vadd.f32 %v8142_v60, %v7892_v23  ;;  %v8818_v27 = vsel %vm8778_vm1, %v16505_v16, 0.0  ;;  %v8391_v43 = vpop.f32.mrf.mxu3  ;;  %v17556_v37 = vld [vmem:[#allocation53_spill] sm:$0xff] }
 0xc00   : > { %v8811_v33 = vadd.f32 %v8810_v48, %v8809_v5  ;;  %v16524_v49 = vmax.f32 %v8736_v52, 0.0  ;;  %v8738_v44 = vadd.f32 %v16303_v57, %v17553_v8  ;;  %v8704_v18 = vadd.f32 %v8672_v30, %v8422_v61  ;;  %v8111_v54 = vpop.f32.mrf.mxu2 }
 0xc01   : > { %v8424_v12 = vadd.f32 %v16442_v31, %v8174_v3  ;;  %v8175_v28 = vadd.f32 %v8143_v20, %v7893_v55  ;;  %v8820_v24 = vsel %vm8778_vm1, %v16514_v19, 0.0  ;;  %v16532_v51 = vmax.f32 %v8737_v14, 0.0 }
 0xc02   : > { %v8636_v63 = vpop.f32.mrf.mxu1  ;;  %v8813_v46 = vadd.f32 %v8812_v62, %v8811_v33  ;;  %v8739_v23 = vadd.f32 %v16303_v57, %v8703_v6  ;;  %v8705_v60 = vadd.f32 %v8673_v4, %v8423_v25  ;;  %v7894_v48 = vadd.f32 %v7862_v32, %v17554_v41 }
 0xc03   : > { %v8674_v42 = vmul.f32 %v8636_v63, %v17545_v36  ;;  %v8425_v9 = vadd.f32 %v8388_v59, %v8175_v28  ;;  %v7829_v36 = vpop.f32.mrf.mxu0  ;;  %v8822_v31 = vsel %vm8778_vm1, %v16524_v49, 0.0  ;;  %v16539_v55 = vmax.f32 %v8738_v44, 0.0 }
 0xc04   : > { %v8815_v21 = vadd.f32 %v8814_v45, %v8813_v46  ;;  %v8740_v63 = vadd.f32 %v16303_v57, %v8704_v18  ;;  %v8176_v58 = vadd.f32 %v8144_v53, %v7894_v48  ;;  %v8824_v32 = vsel %vm8778_vm1, %v16532_v51, 0.0 }
 0xc05   : > { %v8706_v20 = vadd.f32 %v8674_v42, %v8424_v12  ;;  %v16547_v59 = vmax.f32 %v8739_v23, 0.0  ;;  %v8741_v35 = vadd.f32 %v16303_v57, %v8705_v60  ;;  %v7863_v33 = vmul.f32 %v7829_v36, %v17555_v29 }
 0xc06   : > { %v8817_v10 = vadd.f32 %v8816_v34, %v8815_v21  ;;  %v8426_v13 = vadd.f32 %v8391_v43, %v8176_v58  ;;  %v8826_v45 = vsel %vm8778_vm1, %v16539_v55, 0.0  ;;  %v16553_v52 = vmax.f32 %v8740_v63, 0.0  ;;  %v17557_v21 = vld [vmem:[#allocation76_spill] sm:$0xff] }
 0xc07   : > { %v8742_v30 = vadd.f32 %v16303_v57, %v8706_v20  ;;  %v8145_v46 = vmul.f32 %v8111_v54, %v17556_v37  ;;  %v8828_v14 = vsel %vm8778_vm1, %v16547_v59, 0.0  ;;  %v16560_v6 = vmax.f32 %v8741_v35, 0.0  ;;  %v8393_v44 = vpop.f32.mrf.mxu3 }
 0xc08   : > { %v8819_v5 = vadd.f32 %v8818_v27, %v8817_v10  ;;  %v7895_v27 = vadd.f32 %v7863_v33, %v17557_v21  ;;  %v17563_v21 = vld [vmem:[#allocation23_spill] sm:$0xff] }
 0xc09   : > { %v16566_v8 = vmax.f32 %v8742_v30, 0.0  ;;  %v8832_v12 = vsel %vm8778_vm1, %v16560_v6, 0.0 }
 0xc0a   : > { %v8638_v38 = vpop.f32.mrf.mxu1  ;;  %v8821_v62 = vadd.f32 %v8820_v24, %v8819_v5  ;;  %v8177_v42 = vadd.f32 %v8145_v46, %v7895_v27  ;;  %v17559_v46 = vld [vmem:[#allocation19_spill] sm:$0xff] }
 0xc0b   : > { %v8675_v22 = vmul.f32 %v8638_v38, %v17547_v1  ;;  %v8849_v1 = vld [vmem:[%s16782_s17] sm:$0xff]  ;;  %v8830_v38 = vsel %vm8778_vm1, %v16553_v52, 0.0  ;;  %v8834_v60 = vsel %vm8778_vm1, %v16566_v8, 0.0  ;;  %v17564_v27 = vld [vmem:[#allocation51_spill] sm:$0xff] }
 0xc0c   : > { %8872 = vmatpush.msrb.mxu1 %v8849_v1  ;;  %v8823_v39 = vadd.f32 %v8822_v31, %v8821_v62  ;;  %v8427_v23 = vadd.f32 %v8393_v44, %v8177_v42  ;;  %v17566_v44 = vld [vmem:[#allocation5_spill] sm:$0xff]  ;;  %v17567_v42 = vld [vmem:[#allocation70_spill] sm:$0xff] }
 0xc0d   : > { %v8707_v47 = vadd.f32 %v8675_v22, %v8425_v9 }
 0xc0e   : > { %v8825_v34 = vadd.f32 %v8824_v32, %v8823_v39 }
 0xc0f   : > { %v8743_v4 = vadd.f32 %v16303_v57, %v8707_v47 }
 0xc10   : > { %v8827_v3 = vadd.f32 %v8826_v45, %v8825_v34  ;;  %v8853_v45 = vld [vmem:[%s16783_s18] sm:$0x1] }
 0xc11   : > { %v16571_v28 = vmax.f32 %v8743_v4, 0.0  ;;  %v17560_v34 = vld [vmem:[#allocation17_spill] sm:$0xff]  ;;  %v17561_v4 = vld [vmem:[#allocation39_spill] sm:$0xff] }
 0xc12   : > { %v8641_v53 = vpop.f32.mrf.mxu1  ;;  %v8829_v18 = vadd.f32 %v8828_v14, %v8827_v3  ;;  %v8927_v14 = vpack.c.bf16 %v17560_v34, %v17559_v46 }
 0xc13   : > { %v8676_v61 = vmul.f32 %v8641_v53, %v17550_v40  ;;  %v8836_v9 = vsel %vm8778_vm1, %v16571_v28, 0.0  ;;  %v11165_v53 = vld [vmem:[%s16780_s15] sm:$0xff] }
 0xc14   : > { %v8831_v10 = vadd.f32 %v8830_v38, %v8829_v18  ;;  %v8929_v38 = vpack.c.bf16 %v17564_v27, %v17563_v21 }
 0xc15   : > { %v8708_v25 = vadd.f32 %v8676_v61, %v8426_v13  ;;  %v17558_v13 = vld [vmem:[#allocation21_spill] sm:$0xff] }
 0xc16   : > { %v8833_v48 = vadd.f32 %v8832_v12, %v8831_v10  ;;  %v17568_v12 = vld [vmem:[#allocation66_spill] sm:$0xff] }
 0xc17   : > { %v8744_v40 = vadd.f32 %v16303_v57, %v8708_v25  ;;  %v17562_v25 = vld [vmem:[#allocation18_spill] sm:$0xff]  ;;  %v8931_v10 = vpack.c.bf16 %v17568_v12, %v17567_v42 }
 0xc18   : > { %v8835_v5 = vadd.f32 %v8834_v60, %v8833_v48  ;;  %v8928_v3 = vpack.c.bf16 %v17562_v25, %v17561_v4  ;;  %v8933_v60 = vpack.c.bf16 %v16435_v7, %v16425_v15  ;;  %v8879_v48 = vld [vmem:[%s16785_s20] sm:$0x1] }
 0xc19   : > { %v16575_v22 = vmax.f32 %v8744_v40, 0.0  ;;  %v17565_v40 = vld [vmem:[#allocation24_spill] sm:$0xff] }
 0xc1a   : > { %v8643_v24 = vpop.f32.mrf.mxu1  ;;  %v8837_v63 = vadd.f32 %v8836_v9, %v8835_v5  ;;  %v8930_v18 = vpack.c.bf16 %v17566_v44, %v17565_v40 }
 0xc1b   : > { %v8677_v41 = vmul.f32 %v8643_v24, %v17555_v29  ;;  %v8838_v36 = vsel %vm8778_vm1, %v16575_v22, 0.0  ;;  %v17569_v24 = vld [vmem:[#allocation77_spill] sm:$0xff] }
 0xc1c   : > { %v8839_v58 = vadd.f32 %v8838_v36, %v8837_v63  ;;  %v16628_v36 = vld [vmem:[%s16781_s16] ss:$0 sm:$0xff] }
 0xc1d   : > { %v8709_v43 = vadd.f32 %v8677_v41, %v8427_v23  ;;  %v8932_v23 = vpack.c.bf16 %v16413_v26, %v17569_v24  ;;  %v8934_v41 = vpack.c.bf16 %v16460_v0, %v16449_v50 }
 0xc1f   : > { %v8745_v31 = vadd.f32 %v16303_v57, %v8709_v43  ;;  %v11166_v57 = vld [vmem:[%s16780_s15 + $0x8] sm:$0xff] }
 0xc20   : > { %9017 = vmatpush.bf16.msrb.mxu0 %v11166_v57 }
 0xc21   : > { %v16583_v20 = vmax.f32 %v8745_v31, 0.0 }
 0xc23   : > { %v8840_v62 = vsel %vm8778_vm1, %v16583_v20, 0.0 }
 0xc24   : > { %v8841_v1 = vadd.f32 %v8840_v62, %v8839_v58  ;;  %9018 = vmatpush.bf16.msrb.mxu0 %v11165_v53  ;;  %v8935_v58 = vpack.c.bf16 %v16480_v11, %v16470_v17 }
 0xc26   : > { %v8842_v54 = vrot.slane %v8841_v1, 4 }
 0xc28   : > { %v8843_v32 = vadd.f32 %v8842_v54, %v8841_v1 }
 0xc2a   : > { %v8844_v35 = vrot.slane %v8843_v32, 2 }
 0xc2c   : > { %v8845_v47 = vadd.f32 %v8844_v35, %v8843_v32 }
 0xc2e   : > { %v8846_v29 = vrot.slane %v8845_v47, 1 }
 0xc30   : > { %v8847_v33 = vadd.f32 %v8846_v29, %v8845_v47 }
 0xc32   : > { %v8848_v39 = vmul.f32 %v8847_v33, %v17558_v13 }
 0xc34   : > { %11009 = vmatmul.msk.f32.vlgmr.msrb.gmra.mxu1 %vm8778_vm1, %v8848_v39 }
 0xcb1   : > { %v8874_v30 = vpop.f32.mrf.mxu1 }
 0xcb2   : > { %v8875_v61 = vadd.f32 %v8874_v30, %v8853_v45 }
 0xcb4   : > { %v8877_v37 = vmax.f32 %v8875_v61, 0.0  ;;  %v8936_v61 = vpack.c.bf16 %v16500_v2, %v16494_v56 }
 0xcb6   : > { %11011 = vmatmul.msk.f32.vlgmr.msra.gmra.mxu0 %vm8880_vm2, %v8877_v37 }
 0xcbe   : > { %11021 = vmatmul.msk.bf16.vlgmr.msrb.gmra.mxu0 %vm8778_vm1, %v8927_v14 }
 0xcce   : > { %11022 = vmatmul.msk.bf16.gmra.mxu0 %vm8778_vm1, %v8928_v3 }
 0xcde   : > { %11023 = vmatmul.msk.bf16.gmra.mxu0 %vm8778_vm1, %v8929_v38 }
 0xcee   : > { %11024 = vmatmul.msk.bf16.gmra.mxu0 %vm8778_vm1, %v8930_v18 }
 0xcfe   : > { %11025 = vmatmul.msk.bf16.gmra.mxu0 %vm8778_vm1, %v8931_v10 }
 0xd0e   : > { %11026 = vmatmul.msk.bf16.gmra.mxu0 %vm8778_vm1, %v8932_v23 }
 0xd1e   : > { %11027 = vmatmul.msk.bf16.gmra.mxu0 %vm8778_vm1, %v8933_v60 }
 0xd2e   : > { %11028 = vmatmul.msk.bf16.gmra.mxu0 %vm8778_vm1, %v8934_v41 }
 0xd33   : > { %v8905_v9 = vpop.f32.mrf.mxu0 }
 0xd34   : > { %v8906_v43 = vadd.f32 %v8905_v9, %v8879_v48 }
 0xd36   : > { %v11012_v5 = vmul.f32 -1.442695, %v8906_v43 }
 0xd38   : > { %11403 = vpow2.f32 %v11012_v5 }
 0xd3b   : > { %v9020_v31 = vpop.f32.mrf.mxu0 }
 0xd3c   : > { %v9021_v63 = vadd.f32 %v16628_v36, %v9020_v31 }
 0xd3e   : > { %v11404_v62 = vpop.eup %11403  ;;  %v11037_v1 = vmul.f32 -1.442695, %v9021_v63  ;;  %11029 = vmatmul.msk.bf16.gmra.mxu0 %vm8778_vm1, %v8935_v58 }
 0xd3f   : > { %v8911_v54 = vadd.f32 1.0, %v11404_v62 }
 0xd40   : > { %11405 = vpow2.f32 %v11037_v1 }
 0xd41   : > { %11407 = vrcp.f32 %v8911_v54  ;;  %v8923_v37 = vand.u32 2147483648, %v8911_v54  ;;  %vm8917_vm4 = vweird.f32 %v8911_v54  ;;  %v8921_v38 = vand.u32 2147483647, %v8911_v54 }
 0xd43   : > { %v9022_v32 = vpop.f32.mrf.mxu0  ;;  %v8924_v48 = vor.u32 1.1754944e-38, %v8923_v37  ;;  %vm8922_vm6 = vcmp.eq.f32.partialorder %v8921_v38, 8.507059e+37 }
 0xd44   : > { %v9023_v35 = vadd.f32 %v16628_v36, %v9022_v32 }
 0xd46   : > { %v11406_v47 = vpop.eup %11405  ;;  %v11038_v29 = vmul.f32 -1.442695, %v9023_v35 }
 0xd47   : > { %v11408_v33 = vpop.eup %11407  ;;  %v9196_v13 = vadd.f32 1.0, %v11406_v47 }
 0xd48   : > { %v8913_v39 = vmul.f32 %v11408_v33, %v8911_v54  ;;  %11409 = vpow2.f32 %v11038_v29  ;;  %vm8918_vm3 = vweird.f32 %v11408_v33 }
 0xd49   : > { %11411 = vrcp.f32 %v9196_v13  ;;  %vm8919_vm5 = vmor %vm8917_vm4, %vm8918_vm3  ;;  %v9237_v58 = vand.u32 2147483647, %v9196_v13  ;;  %v9239_v62 = vand.u32 2147483648, %v9196_v13  ;;  %vm9233_vm8 = vweird.f32 %v9196_v13 }
 0xd4a   : > { %v8914_v57 = vsub.f32 1.0, %v8913_v39 }
 0xd4b   : > { %v9025_v53 = vpop.f32.mrf.mxu0  ;;  %vm9238_vm10 = vcmp.eq.f32.partialorder %v9237_v58, 8.507059e+37 }
 0xd4c   : > { %v8915_v45 = vmul.f32 %v11408_v33, %v8914_v57  ;;  %v9026_v30 = vadd.f32 %v16628_v36, %v9025_v53 }
 0xd4e   : > { %v11410_v14 = vpop.eup %11409  ;;  %v8916_v3 = vadd.f32 %v11408_v33, %v8915_v45  ;;  %v11039_v18 = vmul.f32 -1.442695, %v9026_v30  ;;  %11030 = vmatmul.msk.bf16.gmra.mxu0 %vm8778_vm1, %v8936_v61 }
 0xd4f   : > { %v11412_v10 = vpop.eup %11411  ;;  %v9197_v23 = vadd.f32 1.0, %v11410_v14 }
 0xd50   : > { %v8920_v60 = vsel %vm8919_vm5, %v11408_v33, %v8916_v3  ;;  %v9229_v41 = vmul.f32 %v11412_v10, %v9196_v13  ;;  %11413 = vpow2.f32 %v11039_v18  ;;  %vm9234_vm7 = vweird.f32 %v11412_v10 }
 0xd51   : > { %11415 = vrcp.f32 %v9197_v23  ;;  %v8925_v43 = vsel %vm8922_vm6, %v8924_v48, %v8920_v60  ;;  %vm9235_vm9 = vmor %vm9233_vm8, %vm9234_vm7  ;;  %v9240_v33 = vor.u32 1.1754944e-38, %v9239_v62  ;;  %v8937_v13 = vpack.c.bf16 %v16514_v19, %v16505_v16 }
 0xd52   : > { %v9230_v9 = vsub.f32 1.0, %v9229_v41  ;;  %v16640_v47 = vperm.slane %v8925_v43, 0  ;;  %v9254_v37 = vand.u32 2147483648, %v9197_v23  ;;  %v9252_v18 = vand.u32 2147483647, %v9197_v23 }
 0xd53   : > { %v9027_v5 = vpop.f32.mrf.mxu0  ;;  %vm9248_vm12 = vweird.f32 %v9197_v23 }
 0xd54   : > { %v9231_v31 = vmul.f32 %v11412_v10, %v9230_v9  ;;  %v9028_v63 = vadd.f32 %v16628_v36, %v9027_v5  ;;  %v9255_v43 = vor.u32 1.1754944e-38, %v9254_v37  ;;  %vm9253_vm14 = vcmp.eq.f32.partialorder %v9252_v18, 8.507059e+37 }
 0xd56   : > { %v11414_v1 = vpop.eup %11413  ;;  %v11040_v54 = vmul.f32 -1.442695, %v9028_v63  ;;  %v9232_v32 = vadd.f32 %v11412_v10, %v9231_v31 }
 0xd57   : > { %v11416_v35 = vpop.eup %11415  ;;  %v9198_v29 = vadd.f32 1.0, %v11414_v1 }
 0xd58   : > { %v9244_v39 = vmul.f32 %v11416_v35, %v9197_v23  ;;  %11417 = vpow2.f32 %v11040_v54  ;;  %v9236_v57 = vsel %vm9235_vm9, %v11412_v10, %v9232_v32  ;;  %vm9249_vm11 = vweird.f32 %v11416_v35 }
 0xd59   : > { %11419 = vrcp.f32 %v9198_v29  ;;  %v9241_v53 = vsel %vm9238_vm10, %v9240_v33, %v9236_v57  ;;  %vm9250_vm13 = vmor %vm9248_vm12, %vm9249_vm11  ;;  %v9267_v23 = vand.u32 2147483647, %v9198_v29  ;;  %v9269_v33 = vand.u32 2147483648, %v9198_v29 }
 0xd5a   : > { %v9245_v45 = vsub.f32 1.0, %v9244_v39  ;;  %v9709_v30 = vadd.f32 %v16640_v47, %v9241_v53  ;;  %vm9263_vm0 = vweird.f32 %v9198_v29 }
 0xd5b   : > { %v9030_v61 = vpop.f32.mrf.mxu0  ;;  %vm9268_vm3 = vcmp.eq.f32.partialorder %v9267_v23, 8.507059e+37 }
 0xd5c   : > { %v9031_v14 = vadd.f32 %v16628_v36, %v9030_v61  ;;  %v9741_v3 = vmul.f32 %v9709_v30, %v17559_v46  ;;  %v9246_v38 = vmul.f32 %v11416_v35, %v9245_v45  ;;  %v9270_v30 = vor.u32 1.1754944e-38, %v9269_v33 }
 0xd5e   : > { %v11418_v60 = vpop.eup %11417  ;;  %v11041_v10 = vmul.f32 -1.442695, %v9031_v14  ;;  %11031 = vmatmul.msk.bf16.gmra.mxu0 %vm8778_vm1, %v8937_v13  ;;  %9773 = vxpose.xlu2.b32.start [1/16] (narrow) %v9741_v3, 32  ;;  %v9247_v41 = vadd.f32 %v11416_v35, %v9246_v38 }
 0xd5f   : > { %v11420_v48 = vpop.eup %11419  ;;  %v9199_v9 = vadd.f32 1.0, %v11418_v60 }
 0xd60   : > { %v9259_v5 = vmul.f32 %v11420_v48, %v9198_v29  ;;  %11421 = vpow2.f32 %v11041_v10  ;;  %v9251_v31 = vsel %vm9250_vm13, %v11416_v35, %v9247_v41  ;;  %vm9264_vm15 = vweird.f32 %v11420_v48 }
 0xd61   : > { %11423 = vrcp.f32 %v9199_v9  ;;  %v9256_v63 = vsel %vm9253_vm14, %v9255_v43, %v9251_v31  ;;  %vm9265_vm2 = vmor %vm9263_vm0, %vm9264_vm15  ;;  %v8938_v29 = vpack.c.bf16 %v16532_v51, %v16524_v49  ;;  %v9284_v38 = vand.u32 2147483648, %v9199_v9 }
 0xd62   : > { %v9260_v46 = vsub.f32 1.0, %v9259_v5  ;;  %v9710_v58 = vadd.f32 %v16640_v47, %v9256_v63  ;;  %v9282_v41 = vand.u32 2147483647, %v9199_v9  ;;  %vm9278_vm5 = vweird.f32 %v9199_v9 }
 0xd63   : > { %v9032_v62 = vpop.f32.mrf.mxu0 }
 0xd64   : > { %v9261_v1 = vmul.f32 %v11420_v48, %v9260_v46  ;;  %v9033_v54 = vadd.f32 %v16628_v36, %v9032_v62  ;;  %v9742_v32 = vmul.f32 %v9710_v58, %v17560_v34  ;;  %v9285_v46 = vor.u32 1.1754944e-38, %v9284_v38 }
 0xd65   : > { %vm9283_vm7 = vcmp.eq.f32.partialorder %v9282_v41, 8.507059e+37 }
 0xd66   : > { %v11422_v39 = vpop.eup %11421  ;;  %v11042_v57 = vmul.f32 -1.442695, %v9033_v54  ;;  %9774 = vxpose.xlu2.b32.cont [2/16] (narrow) %v9742_v32, 32  ;;  %v9262_v35 = vadd.f32 %v11420_v48, %v9261_v1 }
 0xd67   : > { %v11424_v53 = vpop.eup %11423  ;;  %v9200_v45 = vadd.f32 1.0, %v11422_v39 }
 0xd68   : > { %v9274_v61 = vmul.f32 %v11424_v53, %v9199_v9  ;;  %11425 = vpow2.f32 %v11042_v57  ;;  %v9266_v13 = vsel %vm9265_vm2, %v11420_v48, %v9262_v35  ;;  %vm9279_vm4 = vweird.f32 %v11424_v53 }
 0xd69   : > { %11427 = vrcp.f32 %v9200_v45  ;;  %v9271_v37 = vsel %vm9268_vm3, %v9270_v30, %v9266_v13  ;;  %vm9280_vm6 = vmor %vm9278_vm5, %vm9279_vm4  ;;  %v9297_v9 = vand.u32 2147483647, %v9200_v45  ;;  %v9299_v57 = vand.u32 2147483648, %v9200_v45 }
 0xd6a   : > { %v9275_v14 = vsub.f32 1.0, %v9274_v61  ;;  %v9711_v34 = vadd.f32 %v16640_v47, %v9271_v37  ;;  %vm9293_vm9 = vweird.f32 %v9200_v45 }
 0xd6b   : > { %v9035_v3 = vpop.f32.mrf.mxu0  ;;  %v9300_v37 = vor.u32 1.1754944e-38, %v9299_v57  ;;  %vm9298_vm11 = vcmp.eq.f32.partialorder %v9297_v9, 8.507059e+37 }
 0xd6c   : > { %v9036_v18 = vadd.f32 %v16628_v36, %v9035_v3  ;;  %v9743_v60 = vmul.f32 %v9711_v34, %v17561_v4  ;;  %v9276_v10 = vmul.f32 %v11424_v53, %v9275_v14 }
 0xd6e   : > { %v11426_v43 = vpop.eup %11425  ;;  %v11043_v48 = vmul.f32 -1.442695, %v9036_v18  ;;  %11032 = vmatmul.msk.bf16.gmra.mxu0 %vm8778_vm1, %v8938_v29  ;;  %9775 = vxpose.xlu2.b32.cont [3/16] (narrow) %v9743_v60, 32  ;;  %v9277_v5 = vadd.f32 %v11424_v53, %v9276_v10 }
 0xd6f   : > { %v11428_v31 = vpop.eup %11427  ;;  %v9201_v63 = vadd.f32 1.0, %v11426_v43 }
 0xd70   : > { %v9289_v58 = vmul.f32 %v11428_v31, %v9200_v45  ;;  %11429 = vpow2.f32 %v11043_v48  ;;  %v9281_v62 = vsel %vm9280_vm6, %v11424_v53, %v9277_v5  ;;  %vm9294_vm8 = vweird.f32 %v11428_v31 }
 0xd71   : > { %11431 = vrcp.f32 %v9201_v63  ;;  %v9286_v1 = vsel %vm9283_vm7, %v9285_v46, %v9281_v62  ;;  %vm9295_vm10 = vmor %vm9293_vm9, %vm9294_vm8  ;;  %v8939_v45 = vpack.c.bf16 %v16547_v59, %v16539_v55  ;;  %v9312_v41 = vand.u32 2147483647, %v9201_v63 }
 0xd72   : > { %v9290_v4 = vsub.f32 1.0, %v9289_v58  ;;  %v9712_v54 = vadd.f32 %v16640_v47, %v9286_v1  ;;  %v9314_v43 = vand.u32 2147483648, %v9201_v63  ;;  %vm9308_vm13 = vweird.f32 %v9201_v63 }
 0xd73   : > { %v9037_v32 = vpop.f32.mrf.mxu0  ;;  %vm9313_vm15 = vcmp.eq.f32.partialorder %v9312_v41, 8.507059e+37 }
 0xd74   : > { %v9291_v23 = vmul.f32 %v11428_v31, %v9290_v4  ;;  %v9038_v33 = vadd.f32 %v16628_v36, %v9037_v32  ;;  %v9744_v39 = vmul.f32 %v9712_v54, %v17562_v25  ;;  %v9315_v62 = vor.u32 1.1754944e-38, %v9314_v43 }
 0xd76   : > { %v11430_v35 = vpop.eup %11429  ;;  %v11044_v30 = vmul.f32 -1.442695, %v9038_v33  ;;  %9776 = vxpose.xlu2.b32.cont [4/16] (narrow) %v9744_v39, 32  ;;  %v9292_v53 = vadd.f32 %v11428_v31, %v9291_v23 }
 0xd77   : > { %v11432_v61 = vpop.eup %11431  ;;  %v9202_v13 = vadd.f32 1.0, %v11430_v35 }
 0xd78   : > { %v9304_v14 = vmul.f32 %v11432_v61, %v9201_v63  ;;  %11433 = vpow2.f32 %v11044_v30  ;;  %v9296_v34 = vsel %vm9295_vm10, %v11428_v31, %v9292_v53  ;;  %vm9309_vm12 = vweird.f32 %v11432_v61 }
 0xd79   : > { %11435 = vrcp.f32 %v9202_v13  ;;  %v9301_v3 = vsel %vm9298_vm11, %v9300_v37, %v9296_v34  ;;  %vm9310_vm14 = vmor %vm9308_vm13, %vm9309_vm12  ;;  %v9327_v63 = vand.u32 2147483647, %v9202_v13  ;;  %v9329_v57 = vand.u32 2147483648, %v9202_v13 }
 0xd7a   : > { %v9305_v29 = vsub.f32 1.0, %v9304_v14  ;;  %v9713_v25 = vadd.f32 %v16640_v47, %v9301_v3  ;;  %vm9323_vm2 = vweird.f32 %v9202_v13 }
 0xd7b   : > { %v9040_v38 = vpop.f32.mrf.mxu0  ;;  %v9330_v14 = vor.u32 1.1754944e-38, %v9329_v57  ;;  %vm9328_vm4 = vcmp.eq.f32.partialorder %v9327_v63, 8.507059e+37 }
 0xd7c   : > { %v9041_v18 = vadd.f32 %v16628_v36, %v9040_v38  ;;  %v9745_v60 = vmul.f32 %v9713_v25, %v17563_v21  ;;  %v9306_v10 = vmul.f32 %v11432_v61, %v9305_v29 }
 0xd7e   : > { %v11434_v48 = vpop.eup %11433  ;;  %v11045_v5 = vmul.f32 -1.442695, %v9041_v18  ;;  %11033 = vmatmul.msk.bf16.gmra.mxu0 %vm8778_vm1, %v8939_v45  ;;  %9777 = vxpose.xlu2.b32.cont [5/16] (narrow) %v9745_v60, 32  ;;  %v9307_v31 = vadd.f32 %v11432_v61, %v9306_v10 }
 0xd7f   : > { %v11436_v46 = vpop.eup %11435  ;;  %v9203_v58 = vadd.f32 1.0, %v11434_v48 }
 0xd80   : > { %v9319_v1 = vmul.f32 %v11436_v46, %v9202_v13  ;;  %11437 = vpow2.f32 %v11045_v5  ;;  %v9311_v4 = vsel %vm9310_vm14, %v11432_v61, %v9307_v31  ;;  %vm9324_vm0 = vweird.f32 %v11436_v46 }
 0xd81   : > { %11439 = vrcp.f32 %v9203_v58  ;;  %v9316_v21 = vsel %vm9313_vm15, %v9315_v62, %v9311_v4  ;;  %vm9325_vm3 = vmor %vm9323_vm2, %vm9324_vm0  ;;  %v8940_v13 = vpack.c.bf16 %v16560_v6, %v16553_v52  ;;  %v9342_v10 = vand.u32 2147483647, %v9203_v58 }
 0xd82   : > { %v9320_v54 = vsub.f32 1.0, %v9319_v1  ;;  %v9714_v32 = vadd.f32 %v16640_v47, %v9316_v21  ;;  %v9344_v41 = vand.u32 2147483648, %v9203_v58  ;;  %vm9338_vm6 = vweird.f32 %v9203_v58 }
 0xd83   : > { %v9042_v23 = vpop.f32.mrf.mxu0  ;;  %vm9343_vm8 = vcmp.eq.f32.partialorder %v9342_v10, 8.507059e+37 }
 0xd84   : > { %v9321_v33 = vmul.f32 %v11436_v46, %v9320_v54  ;;  %v9043_v39 = vadd.f32 %v16628_v36, %v9042_v23  ;;  %v9746_v9 = vmul.f32 %v9714_v32, %v17564_v27  ;;  %v9345_v62 = vor.u32 1.1754944e-38, %v9344_v41 }
 0xd86   : > { %v11438_v35 = vpop.eup %11437  ;;  %v11046_v30 = vmul.f32 -1.442695, %v9043_v39  ;;  %9778 = vxpose.xlu2.b32.cont [6/16] (narrow) %v9746_v9, 32  ;;  %v9322_v53 = vadd.f32 %v11436_v46, %v9321_v33 }
 0xd87   : > { %v11440_v61 = vpop.eup %11439  ;;  %v9204_v37 = vadd.f32 1.0, %v11438_v35 }
 0xd88   : > { %v9334_v34 = vmul.f32 %v11440_v61, %v9203_v58  ;;  %11441 = vpow2.f32 %v11046_v30  ;;  %v9326_v3 = vsel %vm9325_vm3, %v11436_v46, %v9322_v53  ;;  %vm9339_vm5 = vweird.f32 %v11440_v61 }
 0xd89   : > { %11443 = vrcp.f32 %v9204_v37  ;;  %v9331_v29 = vsel %vm9328_vm4, %v9330_v14, %v9326_v3  ;;  %vm9340_vm7 = vmor %vm9338_vm6, %vm9339_vm5  ;;  %v9357_v58 = vand.u32 2147483647, %v9204_v37  ;;  %v9359_v9 = vand.u32 2147483648, %v9204_v37 }
 0xd8a   : > { %v9335_v25 = vsub.f32 1.0, %v9334_v34  ;;  %v9715_v27 = vadd.f32 %v16640_v47, %v9331_v29  ;;  %vm9353_vm10 = vweird.f32 %v9204_v37 }
 0xd8b   : > { %v9045_v38 = vpop.f32.mrf.mxu0  ;;  %vm9358_vm12 = vcmp.eq.f32.partialorder %v9357_v58, 8.507059e+37 }
 0xd8c   : > { %v9046_v18 = vadd.f32 %v16628_v36, %v9045_v38  ;;  %v9747_v45 = vmul.f32 %v9715_v27, %v17565_v40  ;;  %v9336_v60 = vmul.f32 %v11440_v61, %v9335_v25 }
 0xd8e   : > { %v11442_v43 = vpop.eup %11441  ;;  %v11047_v48 = vmul.f32 -1.442695, %v9046_v18  ;;  %11034 = vmatmul.msk.bf16.gmra.mxu0 %vm8778_vm1, %v8940_v13  ;;  %9779 = vxpose.xlu2.b32.cont [7/16] (narrow) %v9747_v45, 32  ;;  %v9337_v5 = vadd.f32 %v11440_v61, %v9336_v60 }
 0xd8f   : > { %v11444_v31 = vpop.eup %11443  ;;  %v9205_v46 = vadd.f32 1.0, %v11442_v43 }
 0xd90   : > { %v9349_v1 = vmul.f32 %v11444_v31, %v9204_v37  ;;  %11445 = vpow2.f32 %v11047_v48  ;;  %v9341_v4 = vsel %vm9340_vm7, %v11440_v61, %v9337_v5  ;;  %vm9354_vm9 = vweird.f32 %v11444_v31 }
 0xd91   : > { %11447 = vrcp.f32 %v9205_v46  ;;  %v9346_v40 = vsel %vm9343_vm8, %v9345_v62, %v9341_v4  ;;  %vm9355_vm11 = vmor %vm9353_vm10, %vm9354_vm9  ;;  %v9360_v61 = vor.u32 1.1754944e-38, %v9359_v9  ;;  %v8941_v37 = vpack.c.bf16 %v16571_v28, %v16566_v8 }
 0xd92   : > { %v9350_v21 = vsub.f32 1.0, %v9349_v1  ;;  %v9716_v54 = vadd.f32 %v16640_v47, %v9346_v40  ;;  %v9372_v13 = vand.u32 2147483647, %v9205_v46  ;;  %v9374_v45 = vand.u32 2147483648, %v9205_v46 }
 0xd93   : > { %v9047_v32 = vpop.f32.mrf.mxu0  ;;  %vm9368_vm14 = vweird.f32 %v9205_v46 }
 0xd94   : > { %v9351_v23 = vmul.f32 %v11444_v31, %v9350_v21  ;;  %v9048_v33 = vadd.f32 %v16628_v36, %v9047_v32  ;;  %v9748_v39 = vmul.f32 %v9716_v54, %v17566_v44  ;;  %v9375_v5 = vor.u32 1.1754944e-38, %v9374_v45 }
 0xd95   : > { %vm9373_vm0 = vcmp.eq.f32.partialorder %v9372_v13, 8.507059e+37 }
 0xd96   : > { %v11446_v63 = vpop.eup %11445  ;;  %v11048_v57 = vmul.f32 -1.442695, %v9048_v33  ;;  %9780 = vxpose.xlu2.b32.cont [8/16] (narrow) %v9748_v39, 32  ;;  %v9352_v35 = vadd.f32 %v11444_v31, %v9351_v23 }
 0xd97   : > { %v11448_v30 = vpop.eup %11447  ;;  %v9206_v53 = vadd.f32 1.0, %v11446_v63 }
 0xd98   : > { %v9364_v14 = vmul.f32 %v11448_v30, %v9205_v46  ;;  %11449 = vpow2.f32 %v11048_v57  ;;  %v9356_v34 = vsel %vm9355_vm11, %v11444_v31, %v9352_v35  ;;  %vm9369_vm13 = vweird.f32 %v11448_v30 }
 0xd99   : > { %11451 = vrcp.f32 %v9206_v53  ;;  %v9361_v3 = vsel %vm9358_vm12, %v9360_v61, %v9356_v34  ;;  %vm9370_vm15 = vmor %vm9368_vm14, %vm9369_vm13  ;;  %v9387_v32 = vand.u32 2147483647, %v9206_v53  ;;  %v9389_v23 = vand.u32 2147483648, %v9206_v53 }
 0xd9a   : > { %v9365_v29 = vsub.f32 1.0, %v9364_v14  ;;  %v9717_v44 = vadd.f32 %v16640_v47, %v9361_v3  ;;  %vm9383_vm3 = vweird.f32 %v9206_v53 }
 0xd9b   : > { %v9050_v25 = vpop.f32.mrf.mxu0  ;;  %v9390_v57 = vor.u32 1.1754944e-38, %v9389_v23  ;;  %vm9388_vm5 = vcmp.eq.f32.partialorder %v9387_v32, 8.507059e+37 }
 0xd9c   : > { %v9366_v27 = vmul.f32 %v11448_v30, %v9365_v29  ;;  %v9051_v38 = vadd.f32 %v16628_v36, %v9050_v25  ;;  %v9749_v18 = vmul.f32 %v9717_v44, %v17567_v42 }
 0xd9e   : > { %v11450_v60 = vpop.eup %11449  ;;  %v11049_v10 = vmul.f32 -1.442695, %v9051_v38  ;;  %11035 = vmatmul.msk.bf16.gmra.mxu0 %vm8778_vm1, %v8941_v37  ;;  %9781 = vxpose.xlu2.b32.cont [9/16] (narrow) %v9749_v18, 32  ;;  %v9367_v41 = vadd.f32 %v11448_v30, %v9366_v27 }
 0xd9f   : > { %v11452_v43 = vpop.eup %11451  ;;  %v9207_v48 = vadd.f32 1.0, %v11450_v60 }
 0xda0   : > { %v9379_v31 = vmul.f32 %v11452_v43, %v9206_v53  ;;  %11453 = vpow2.f32 %v11049_v10  ;;  %v9371_v62 = vsel %vm9370_vm15, %v11448_v30, %v9367_v41  ;;  %vm9384_vm2 = vweird.f32 %v11452_v43 }
 0xda1   : > { %11455 = vrcp.f32 %v9207_v48  ;;  %v9376_v42 = vsel %vm9373_vm0, %v9375_v5, %v9371_v62  ;;  %vm9385_vm4 = vmor %vm9383_vm3, %vm9384_vm2  ;;  %v8942_v53 = vpack.c.bf16 %v16583_v20, %v16575_v22  ;;  %v9402_v25 = vand.u32 2147483647, %v9207_v48 }
 0xda2   : > { %v9380_v1 = vsub.f32 1.0, %v9379_v31  ;;  %v9718_v4 = vadd.f32 %v16640_v47, %v9376_v42  ;;  %v9404_v37 = vand.u32 2147483648, %v9207_v48  ;;  %vm9398_vm7 = vweird.f32 %v9207_v48 }
 0xda3   : > { %v9052_v40 = vpop.f32.mrf.mxu0  ;;  %vm9403_vm9 = vcmp.eq.f32.partialorder %v9402_v25, 8.507059e+37 }
 0xda4   : > { %v9381_v46 = vmul.f32 %v11452_v43, %v9380_v1  ;;  %v9053_v21 = vadd.f32 %v16628_v36, %v9052_v40  ;;  %v9750_v54 = vmul.f32 %v9718_v4, %v17568_v12  ;;  %v9405_v60 = vor.u32 1.1754944e-38, %v9404_v37 }
 0xda6   : > { %v11454_v33 = vpop.eup %11453  ;;  %v11050_v39 = vmul.f32 -1.442695, %v9053_v21  ;;  %9782 = vxpose.xlu2.b32.cont [10/16] (narrow) %v9750_v54, 32  ;;  %v9382_v58 = vadd.f32 %v11452_v43, %v9381_v46 }
 0xda7   : > { %v11456_v9 = vpop.eup %11455  ;;  %v9208_v63 = vadd.f32 1.0, %v11454_v33 }
 0xda8   : > { %v9394_v35 = vmul.f32 %v11456_v9, %v9207_v48  ;;  %11457 = vpow2.f32 %v11050_v39  ;;  %v9386_v30 = vsel %vm9385_vm4, %v11452_v43, %v9382_v58  ;;  %vm9399_vm6 = vweird.f32 %v11456_v9 }
 0xda9   : > { %11459 = vrcp.f32 %v9208_v63  ;;  %v9391_v61 = vsel %vm9388_vm5, %v9390_v57, %v9386_v30  ;;  %vm9400_vm8 = vmor %vm9398_vm7, %vm9399_vm6  ;;  %v9417_v1 = vand.u32 2147483647, %v9208_v63  ;;  %v9419_v4 = vand.u32 2147483648, %v9208_v63 }
 0xdaa   : > { %v9395_v14 = vsub.f32 1.0, %v9394_v35  ;;  %v9719_v12 = vadd.f32 %v16640_v47, %v9391_v61  ;;  %vm9413_vm10 = vweird.f32 %v9208_v63 }
 0xdab   : > { %v9055_v34 = vpop.f32.mrf.mxu0  ;;  %v9420_v23 = vor.u32 1.1754944e-38, %v9419_v4  ;;  %vm9418_vm12 = vcmp.eq.f32.partialorder %v9417_v1, 8.507059e+37 }
 0xdac   : > { %v9396_v3 = vmul.f32 %v11456_v9, %v9395_v14  ;;  %v9056_v29 = vadd.f32 %v16628_v36, %v9055_v34  ;;  %v9751_v44 = vmul.f32 %v9719_v12, %v17569_v24 }
 0xdae   : > { %v11458_v27 = vpop.eup %11457  ;;  %v11051_v38 = vmul.f32 -1.442695, %v9056_v29  ;;  %11036 = vmatmul.msk.bf16.gmra.mxu0 %vm8778_vm1, %v8942_v53  ;;  %9783 = vxpose.xlu2.b32.cont [11/16] (narrow) %v9751_v44, 32  ;;  %v9397_v18 = vadd.f32 %v11456_v9, %v9396_v3 }
 0xdaf   : > { %v11460_v13 = vpop.eup %11459  ;;  %v9209_v45 = vadd.f32 1.0, %v11458_v27 }
 0xdb0   : > { %v9409_v10 = vmul.f32 %v11460_v13, %v9208_v63  ;;  %11461 = vpow2.f32 %v11051_v38  ;;  %v9401_v41 = vsel %vm9400_vm8, %v11456_v9, %v9397_v18  ;;  %vm9414_vm1 = vweird.f32 %v11460_v13 }
 0xdb1   : > { %11463 = vrcp.f32 %v9209_v45  ;;  %v9406_v24 = vsel %vm9403_vm9, %v9405_v60, %v9401_v41  ;;  %vm9415_vm11 = vmor %vm9413_vm10, %vm9414_vm1  ;;  %vm9428_vm13 = vweird.f32 %v9209_v45  ;;  %v9432_v34 = vand.u32 2147483647, %v9209_v45 }
 0xdb2   : > { %v9410_v43 = vsub.f32 1.0, %v9409_v10  ;;  %v9720_v5 = vadd.f32 %v16640_v47, %v9406_v24  ;;  %v9434_v29 = vand.u32 2147483648, %v9209_v45 }
 0xdb3   : > { %v9057_v31 = vpop.f32.mrf.mxu0  ;;  %vm9433_vm0 = vcmp.eq.f32.partialorder %v9432_v34, 8.507059e+37 }
 0xdb4   : > { %v9411_v48 = vmul.f32 %v11460_v13, %v9410_v43  ;;  %v9058_v62 = vadd.f32 %v16628_v36, %v9057_v31  ;;  %v9752_v42 = vmul.f32 %v9720_v5, %v16413_v26  ;;  %v9435_v37 = vor.u32 1.1754944e-38, %v9434_v29 }
 0xdb6   : > { %v11462_v40 = vpop.eup %11461  ;;  %v11052_v46 = vmul.f32 -1.442695, %v9058_v62  ;;  %9784 = vxpose.xlu2.b32.cont [12/16] (narrow) %v9752_v42, 32  ;;  %v9412_v21 = vadd.f32 %v11460_v13, %v9411_v48 }
 0xdb7   : > { %v11464_v54 = vpop.eup %11463  ;;  %v9210_v32 = vadd.f32 1.0, %v11462_v40 }
 0xdb8   : > { %v9424_v33 = vmul.f32 %v11464_v54, %v9209_v45  ;;  %11465 = vpow2.f32 %v11052_v46  ;;  %v9416_v39 = vsel %vm9415_vm11, %v11460_v13, %v9412_v21  ;;  %vm9429_vm14 = vweird.f32 %v11464_v54 }
 0xdb9   : > { %11467 = vrcp.f32 %v9210_v32  ;;  %v9421_v58 = vsel %vm9418_vm12, %v9420_v23, %v9416_v39  ;;  %vm9430_vm15 = vmor %vm9428_vm13, %vm9429_vm14  ;;  %vm9443_vm2 = vweird.f32 %v9210_v32  ;;  %v9447_v31 = vand.u32 2147483647, %v9210_v32 }
 0xdba   : > { %v9425_v9 = vsub.f32 1.0, %v9424_v33  ;;  %v9721_v26 = vadd.f32 %v16640_v47, %v9421_v58  ;;  %v9449_v48 = vand.u32 2147483648, %v9210_v32 }
 0xdbb   : > { %v9060_v57 = vpop.f32.mrf.mxu0  ;;  %vm9448_vm5 = vcmp.eq.f32.partialorder %v9447_v31, 8.507059e+37 }
 0xdbc   : > { %v9426_v35 = vmul.f32 %v11464_v54, %v9425_v9  ;;  %v9061_v63 = vadd.f32 %v16628_v36, %v9060_v57  ;;  %v9753_v30 = vmul.f32 %v9721_v26, %v16425_v15  ;;  %v9450_v1 = vor.u32 1.1754944e-38, %v9449_v48 }
 0xdbe   : > { %v11466_v61 = vpop.eup %11465  ;;  %v11053_v14 = vmul.f32 -1.442695, %v9061_v63  ;;  %9785 = vxpose.xlu2.b32.cont [13/16] (narrow) %v9753_v30, 32  ;;  %v9427_v12 = vadd.f32 %v11464_v54, %v9426_v35 }
 0xdbf   : > { %v11468_v53 = vpop.eup %11467  ;;  %v9211_v3 = vadd.f32 1.0, %v11466_v61 }
 0xdc0   : > { %v9439_v44 = vmul.f32 %v11468_v53, %v9210_v32  ;;  %11469 = vpow2.f32 %v11053_v14  ;;  %v9431_v25 = vsel %vm9430_vm15, %v11464_v54, %v9427_v12  ;;  %vm9444_vm3 = vweird.f32 %v11468_v53 }
 0xdc1   : > { %11471 = vrcp.f32 %v9211_v3  ;;  %v9436_v15 = vsel %vm9433_vm0, %v9435_v37, %v9431_v25  ;;  %vm9445_vm4 = vmor %vm9443_vm2, %vm9444_vm3  ;;  %vm9458_vm7 = vweird.f32 %v9211_v3  ;;  %v9462_v26 = vand.u32 2147483647, %v9211_v3 }
 0xdc2   : > { %v9440_v27 = vsub.f32 1.0, %v9439_v44  ;;  %v9722_v60 = vadd.f32 %v16640_v47, %v9436_v15  ;;  %v9464_v57 = vand.u32 2147483648, %v9211_v3 }
 0xdc3   : > { %v9062_v38 = vpop.f32.mrf.mxu0  ;;  %vm9463_vm9 = vcmp.eq.f32.partialorder %v9462_v26, 8.507059e+37 }
 0xdc4   : > { %v9441_v18 = vmul.f32 %v11468_v53, %v9440_v27  ;;  %v9063_v13 = vadd.f32 %v16628_v36, %v9062_v38  ;;  %v9754_v24 = vmul.f32 %v9722_v60, %v16435_v7  ;;  %v9465_v61 = vor.u32 1.1754944e-38, %v9464_v57 }
 0xdc6   : > { %v11470_v10 = vpop.eup %11469  ;;  %v11054_v41 = vmul.f32 -1.442695, %v9063_v13  ;;  %v9442_v45 = vadd.f32 %v11468_v53, %v9441_v18  ;;  %9786 = vxpose.xlu2.b32.cont [14/16] (narrow) %v9754_v24, 32 }
 0xdc7   : > { %v11472_v43 = vpop.eup %11471  ;;  %v9212_v5 = vadd.f32 1.0, %v11470_v10 }
 0xdc8   : > { %v9454_v62 = vmul.f32 %v11472_v43, %v9211_v3  ;;  %11473 = vpow2.f32 %v11054_v41  ;;  %v9446_v42 = vsel %vm9445_vm4, %v11468_v53, %v9442_v45  ;;  %vm9459_vm6 = vweird.f32 %v11472_v43 }
 0xdc9   : > { %11475 = vrcp.f32 %v9212_v5  ;;  %v9451_v46 = vsel %vm9448_vm5, %v9450_v1, %v9446_v42  ;;  %vm9460_vm8 = vmor %vm9458_vm7, %vm9459_vm6  ;;  %vm9473_vm1 = vweird.f32 %v9212_v5  ;;  %v9477_v38 = vand.u32 2147483647, %v9212_v5 }
 0xdca   : > { %v9455_v4 = vsub.f32 1.0, %v9454_v62  ;;  %v9723_v54 = vadd.f32 %v16640_v47, %v9451_v46  ;;  %v9479_v15 = vand.u32 2147483648, %v9212_v5 }
 0xdcb   : > { %v9065_v40 = vpop.f32.mrf.mxu0  ;;  %vm9478_vm12 = vcmp.eq.f32.partialorder %v9477_v38, 8.507059e+37 }
 0xdcc   : > { %v9456_v21 = vmul.f32 %v11472_v43, %v9455_v4  ;;  %v9066_v7 = vadd.f32 %v16628_v36, %v9065_v40  ;;  %v9755_v39 = vmul.f32 %v9723_v54, %v16449_v50  ;;  %v9480_v10 = vor.u32 1.1754944e-38, %v9479_v15 }
 0xdce   : > { %v11474_v23 = vpop.eup %11473  ;;  %v11055_v33 = vmul.f32 -1.442695, %v9066_v7  ;;  %v9457_v32 = vadd.f32 %v11472_v43, %v9456_v21  ;;  %9787 = vxpose.xlu2.b32.cont [15/16] (narrow) %v9755_v39, 32 }
 0xdcf   : > { %v11476_v58 = vpop.eup %11475  ;;  %v9213_v9 = vadd.f32 1.0, %v11474_v23 }
 0xdd0   : > { %v9469_v35 = vmul.f32 %v11476_v58, %v9212_v5  ;;  %11477 = vpow2.f32 %v11055_v33  ;;  %v9461_v63 = vsel %vm9460_vm8, %v11472_v43, %v9457_v32  ;;  %vm9474_vm10 = vweird.f32 %v11476_v58 }
 0xdd1   : > { %11479 = vrcp.f32 %v9213_v9  ;;  %v9466_v34 = vsel %vm9463_vm9, %v9465_v61, %v9461_v63  ;;  %vm9475_vm11 = vmor %vm9473_vm1, %vm9474_vm10  ;;  %v9494_v41 = vand.u32 2147483648, %v9213_v9  ;;  %v9492_v48 = vand.u32 2147483647, %v9213_v9 }
 0xdd2   : > { %v9470_v30 = vsub.f32 1.0, %v9469_v35  ;;  %v9724_v53 = vadd.f32 %v16640_v47, %v9466_v34  ;;  %vm9488_vm14 = vweird.f32 %v9213_v9 }
 0xdd3   : > { %v9067_v14 = vpop.f32.mrf.mxu0  ;;  %v9495_v46 = vor.u32 1.1754944e-38, %v9494_v41  ;;  %vm9493_vm0 = vcmp.eq.f32.partialorder %v9492_v48, 8.507059e+37 }
 0xdd4   : > { %v9471_v12 = vmul.f32 %v11476_v58, %v9470_v30  ;;  %v9068_v50 = vadd.f32 %v16628_v36, %v9067_v14  ;;  %v9756_v27 = vmul.f32 %v9724_v53, %v16460_v0 }
 0xdd6   : > { %v11478_v29 = vpop.eup %11477  ;;  %v11056_v44 = vmul.f32 -1.442695, %v9068_v50  ;;  %v9472_v3 = vadd.f32 %v11476_v58, %v9471_v12  ;;  %9788 = vxpose.xlu2.b32.end [16/16] (narrow) %v9756_v27, 32 }
 0xdd7   : > { %v11480_v25 = vpop.eup %11479  ;;  %v9214_v37 = vadd.f32 1.0, %v11478_v29 }
 0xdd8   : > { %v9484_v18 = vmul.f32 %v11480_v25, %v9213_v9  ;;  %11481 = vpow2.f32 %v11056_v44  ;;  %v9476_v13 = vsel %vm9475_vm11, %v11476_v58, %v9472_v3  ;;  %vm9489_vm13 = vweird.f32 %v11480_v25  ;;  %v16718_v3 = vld [vmem:[%s16781_s16] ss:$0 sm:$0xff] }
 0xdd9   : > { %11483 = vrcp.f32 %v9214_v37  ;;  %v9481_v31 = vsel %vm9478_vm12, %v9480_v10, %v9476_v13  ;;  %vm9490_vm15 = vmor %vm9488_vm14, %vm9489_vm13  ;;  %v9509_v58 = vand.u32 2147483648, %v9214_v37  ;;  %v9507_v26 = vand.u32 2147483647, %v9214_v37 }
 0xdda   : > { %v9485_v60 = vsub.f32 1.0, %v9484_v18  ;;  %v9725_v0 = vadd.f32 %v16640_v47, %v9481_v31  ;;  %vm9503_vm3 = vweird.f32 %v9214_v37 }
 0xddb   : > { %v9070_v24 = vpop.f32.mrf.mxu0  ;;  %v9510_v14 = vor.u32 1.1754944e-38, %v9509_v58  ;;  %vm9508_vm5 = vcmp.eq.f32.partialorder %v9507_v26, 8.507059e+37 }
 0xddc   : > { %v9486_v45 = vmul.f32 %v11480_v25, %v9485_v60  ;;  %v9071_v43 = vadd.f32 %v16628_v36, %v9070_v24  ;;  %v9757_v40 = vmul.f32 %v9725_v0, %v16470_v17 }
 0xdde   : > { %v11482_v5 = vpop.eup %11481  ;;  %v9487_v62 = vadd.f32 %v11480_v25, %v9486_v45  ;;  %v11057_v42 = vmul.f32 -1.442695, %v9071_v43  ;;  %9805 = vxpose.xlu0.b32.start [1/16] (narrow) %v9757_v40, 32 }
 0xddf   : > { %v11484_v1 = vpop.eup %11483  ;;  %v9215_v4 = vadd.f32 1.0, %v11482_v5 }
 0xde0   : > { %v9499_v21 = vmul.f32 %v11484_v1, %v9214_v37  ;;  %11485 = vpow2.f32 %v11057_v42  ;;  %v9491_v7 = vsel %vm9490_vm15, %v11480_v25, %v9487_v62  ;;  %vm9504_vm2 = vweird.f32 %v11484_v1 }
 0xde1   : > { %11487 = vrcp.f32 %v9215_v4  ;;  %v9496_v23 = vsel %vm9493_vm0, %v9495_v46, %v9491_v7  ;;  %vm9505_vm4 = vmor %vm9503_vm3, %vm9504_vm2  ;;  %v9524_v44 = vand.u32 2147483648, %v9215_v4  ;;  %v9522_v37 = vand.u32 2147483647, %v9215_v4 }
 0xde2   : > { %v9500_v54 = vsub.f32 1.0, %v9499_v21  ;;  %v9726_v39 = vadd.f32 %v16640_v47, %v9496_v23  ;;  %vm9518_vm7 = vweird.f32 %v9215_v4 }
 0xde3   : > { %v9072_v33 = vpop.f32.mrf.mxu0  ;;  %v9525_v10 = vor.u32 1.1754944e-38, %v9524_v44  ;;  %vm9523_vm9 = vcmp.eq.f32.partialorder %v9522_v37, 8.507059e+37 }
 0xde4   : > { %v9501_v32 = vmul.f32 %v11484_v1, %v9500_v54  ;;  %v9073_v9 = vadd.f32 %v16628_v36, %v9072_v33  ;;  %v9758_v17 = vmul.f32 %v9726_v39, %v16480_v11 }
 0xde6   : > { %v11486_v57 = vpop.eup %11485  ;;  %v9502_v35 = vadd.f32 %v11484_v1, %v9501_v32  ;;  %v11058_v63 = vmul.f32 -1.442695, %v9073_v9  ;;  %9806 = vxpose.xlu0.b32.cont [2/16] (narrow) %v9758_v17, 32 }
 0xde7   : > { %v11488_v30 = vpop.eup %11487  ;;  %v9216_v61 = vadd.f32 1.0, %v11486_v57 }
 0xde8   : > { %v9514_v12 = vmul.f32 %v11488_v30, %v9215_v4  ;;  %11489 = vpow2.f32 %v11058_v63  ;;  %v9506_v50 = vsel %vm9505_vm4, %v11484_v1, %v9502_v35  ;;  %vm9519_vm6 = vweird.f32 %v11488_v30 }
 0xde9   : > { %11491 = vrcp.f32 %v9216_v61  ;;  %v9511_v53 = vsel %vm9508_vm5, %v9510_v14, %v9506_v50  ;;  %vm9520_vm8 = vmor %vm9518_vm7, %vm9519_vm6  ;;  %v9539_v0 = vand.u32 2147483648, %v9216_v61  ;;  %v9537_v62 = vand.u32 2147483647, %v9216_v61 }
 0xdea   : > { %v9515_v34 = vsub.f32 1.0, %v9514_v12  ;;  %v9727_v29 = vadd.f32 %v16640_v47, %v9511_v53  ;;  %vm9533_vm10 = vweird.f32 %v9216_v61 }
 0xdeb   : > { %v9075_v36 = vpop.f32.mrf.mxu0  ;;  %v9540_v7 = vor.u32 1.1754944e-38, %v9539_v0  ;;  %vm9538_vm12 = vcmp.eq.f32.partialorder %v9537_v62, 8.507059e+37 }
 0xdec   : > { %v9516_v11 = vmul.f32 %v11488_v30, %v9515_v34  ;;  %v9076_v25 = vadd.f32 %v16718_v3, %v9075_v36  ;;  %v9759_v27 = vmul.f32 %v9727_v29, %v16494_v56 }
 0xdee   : > { %v11490_v38 = vpop.eup %11489  ;;  %v9517_v15 = vadd.f32 %v11488_v30, %v9516_v11  ;;  %v11059_v18 = vmul.f32 -1.442695, %v9076_v25  ;;  %9807 = vxpose.xlu0.b32.cont [3/16] (narrow) %v9759_v27, 32 }
 0xdef   : > { %v11492_v13 = vpop.eup %11491  ;;  %v9217_v60 = vadd.f32 1.0, %v11490_v38 }
 0xdf0   : > { %v9529_v41 = vmul.f32 %v11492_v13, %v9216_v61  ;;  %11493 = vpow2.f32 %v11059_v18  ;;  %v9521_v24 = vsel %vm9520_vm8, %v11488_v30, %v9517_v15  ;;  %vm9534_vm1 = vweird.f32 %v11492_v13 }
 0xdf1   : > { %11495 = vrcp.f32 %v9217_v60  ;;  %v9526_v43 = vsel %vm9523_vm9, %v9525_v10, %v9521_v24  ;;  %vm9535_vm11 = vmor %vm9533_vm10, %vm9534_vm1  ;;  %v9554_v9 = vand.u32 2147483648, %v9217_v60  ;;  %v9552_v17 = vand.u32 2147483647, %v9217_v60 }
 0xdf2   : > { %v9530_v45 = vsub.f32 1.0, %v9529_v41  ;;  %v9728_v48 = vadd.f32 %v16640_v47, %v9526_v43  ;;  %vm9548_vm14 = vweird.f32 %v9217_v60 }
 0xdf3   : > { %v9077_v31 = vpop.f32.mrf.mxu0  ;;  %v9555_v12 = vor.u32 1.1754944e-38, %v9554_v9  ;;  %vm9553_vm0 = vcmp.eq.f32.partialorder %v9552_v17, 8.507059e+37 }
 0xdf4   : > { %v9531_v56 = vmul.f32 %v11492_v13, %v9530_v45  ;;  %v9078_v5 = vadd.f32 %v16718_v3, %v9077_v31  ;;  %v9760_v42 = vmul.f32 %v9728_v48, %v16500_v2 }
 0xdf6   : > { %v11494_v1 = vpop.eup %11493  ;;  %v9532_v4 = vadd.f32 %v11492_v13, %v9531_v56  ;;  %v11060_v40 = vmul.f32 -1.442695, %v9078_v5  ;;  %9808 = vxpose.xlu0.b32.cont [4/16] (narrow) %v9760_v42, 32 }
 0xdf7   : > { %v11496_v46 = vpop.eup %11495  ;;  %v9218_v21 = vadd.f32 1.0, %v11494_v1 }
 0xdf8   : > { %v9544_v54 = vmul.f32 %v11496_v46, %v9217_v60  ;;  %11497 = vpow2.f32 %v11060_v40  ;;  %v9536_v23 = vsel %vm9535_vm11, %v11492_v13, %v9532_v4  ;;  %vm9549_vm13 = vweird.f32 %v11496_v46 }
 0xdf9   : > { %11499 = vrcp.f32 %v9218_v21  ;;  %v9541_v39 = vsel %vm9538_vm12, %v9540_v7, %v9536_v23  ;;  %vm9550_vm15 = vmor %vm9548_vm14, %vm9549_vm13  ;;  %v9569_v44 = vand.u32 2147483648, %v9218_v21  ;;  %v9567_v37 = vand.u32 2147483647, %v9218_v21 }
 0xdfa   : > { %v9545_v33 = vsub.f32 1.0, %v9544_v54  ;;  %v9729_v58 = vadd.f32 %v16640_v47, %v9541_v39  ;;  %vm9563_vm3 = vweird.f32 %v9218_v21 }
 0xdfb   : > { %v9080_v32 = vpop.f32.mrf.mxu0  ;;  %v9570_v10 = vor.u32 1.1754944e-38, %v9569_v44  ;;  %vm9568_vm5 = vcmp.eq.f32.partialorder %v9567_v37, 8.507059e+37 }
 0xdfc   : > { %v9546_v2 = vmul.f32 %v11496_v46, %v9545_v33  ;;  %v9081_v26 = vadd.f32 %v16718_v3, %v9080_v32  ;;  %v9761_v57 = vmul.f32 %v9729_v58, %v16505_v16 }
 0xdfe   : > { %v11498_v35 = vpop.eup %11497  ;;  %v9547_v63 = vadd.f32 %v11496_v46, %v9546_v2  ;;  %v11061_v30 = vmul.f32 -1.442695, %v9081_v26  ;;  %9809 = vxpose.xlu0.b32.cont [5/16] (narrow) %v9761_v57, 32 }
 0xdff   : > { %v11500_v61 = vpop.eup %11499  ;;  %v9219_v14 = vadd.f32 1.0, %v11498_v35 }
 0xe00   : > { %v9559_v50 = vmul.f32 %v11500_v61, %v9218_v21  ;;  %11501 = vpow2.f32 %v11061_v30  ;;  %v9551_v34 = vsel %vm9550_vm15, %v11496_v46, %v9547_v63  ;;  %vm9564_vm2 = vweird.f32 %v11500_v61 }
 0xe01   : > { %11503 = vrcp.f32 %v9219_v14  ;;  %v9556_v36 = vsel %vm9553_vm0, %v9555_v12, %v9551_v34  ;;  %vm9565_vm4 = vmor %vm9563_vm3, %vm9564_vm2  ;;  %v9584_v56 = vand.u32 2147483648, %v9219_v14  ;;  %v9582_v5 = vand.u32 2147483647, %v9219_v14 }
 0xe02   : > { %v9560_v53 = vsub.f32 1.0, %v9559_v50  ;;  %v9730_v11 = vadd.f32 %v16640_v47, %v9556_v36  ;;  %vm9578_vm7 = vweird.f32 %v9219_v14 }
 0xe03   : > { %v9082_v29 = vpop.f32.mrf.mxu0  ;;  %v9585_v21 = vor.u32 1.1754944e-38, %v9584_v56  ;;  %vm9583_vm9 = vcmp.eq.f32.partialorder %v9582_v5, 8.507059e+37 }
 0xe04   : > { %v9561_v16 = vmul.f32 %v11500_v61, %v9560_v53  ;;  %v9083_v25 = vadd.f32 %v16718_v3, %v9082_v29  ;;  %v9762_v27 = vmul.f32 %v9730_v11, %v16514_v19 }
 0xe06   : > { %v11502_v38 = vpop.eup %11501  ;;  %v9562_v15 = vadd.f32 %v11500_v61, %v9561_v16  ;;  %v11062_v18 = vmul.f32 -1.442695, %v9083_v25  ;;  %9810 = vxpose.xlu0.b32.cont [6/16] (narrow) %v9762_v27, 32 }
 0xe07   : > { %v11504_v13 = vpop.eup %11503  ;;  %v9220_v60 = vadd.f32 1.0, %v11502_v38 }
 0xe08   : > { %v9574_v41 = vmul.f32 %v11504_v13, %v9219_v14  ;;  %11505 = vpow2.f32 %v11062_v18  ;;  %v9566_v24 = vsel %vm9565_vm4, %v11500_v61, %v9562_v15  ;;  %vm9579_vm6 = vweird.f32 %v11504_v13 }
 0xe09   : > { %11507 = vrcp.f32 %v9220_v60  ;;  %v9571_v43 = vsel %vm9568_vm5, %v9570_v10, %v9566_v24  ;;  %vm9580_vm8 = vmor %vm9578_vm7, %vm9579_vm6  ;;  %v9599_v58 = vand.u32 2147483648, %v9220_v60  ;;  %v9597_v9 = vand.u32 2147483647, %v9220_v60 }
 0xe0a   : > { %v9575_v45 = vsub.f32 1.0, %v9574_v41  ;;  %v9731_v48 = vadd.f32 %v16640_v47, %v9571_v43  ;;  %vm9593_vm10 = vweird.f32 %v9220_v60 }
 0xe0b   : > { %v9085_v31 = vpop.f32.mrf.mxu0  ;;  %v9600_v61 = vor.u32 1.1754944e-38, %v9599_v58  ;;  %vm9598_vm12 = vcmp.eq.f32.partialorder %v9597_v9, 8.507059e+37 }
 0xe0c   : > { %v9576_v19 = vmul.f32 %v11504_v13, %v9575_v45  ;;  %v9086_v0 = vadd.f32 %v16718_v3, %v9085_v31  ;;  %v9763_v62 = vmul.f32 %v9731_v48, %v16524_v49 }
 0xe0e   : > { %v11506_v42 = vpop.eup %11505  ;;  %v9577_v1 = vadd.f32 %v11504_v13, %v9576_v19  ;;  %v11063_v4 = vmul.f32 -1.442695, %v9086_v0  ;;  %9811 = vxpose.xlu0.b32.cont [7/16] (narrow) %v9763_v62, 32 }
 0xe0f   : > { %v11508_v40 = vpop.eup %11507  ;;  %v9221_v46 = vadd.f32 1.0, %v11506_v42 }
 0xe10   : > { %v9589_v7 = vmul.f32 %v11508_v40, %v9220_v60  ;;  %11509 = vpow2.f32 %v11063_v4  ;;  %v9581_v54 = vsel %vm9580_vm8, %v11504_v13, %v9577_v1  ;;  %vm9594_vm1 = vweird.f32 %v11508_v40 }
 0xe11   : > { %11511 = vrcp.f32 %v9221_v46  ;;  %v9586_v33 = vsel %vm9583_vm9, %v9585_v21, %v9581_v54  ;;  %vm9595_vm11 = vmor %vm9593_vm10, %vm9594_vm1  ;;  %v9614_v29 = vand.u32 2147483648, %v9221_v46  ;;  %v9612_v16 = vand.u32 2147483647, %v9221_v46 }
 0xe12   : > { %v9590_v23 = vsub.f32 1.0, %v9589_v7  ;;  %v9732_v32 = vadd.f32 %v16640_v47, %v9586_v33  ;;  %vm9608_vm14 = vweird.f32 %v9221_v46 }
 0xe13   : > { %v9087_v39 = vpop.f32.mrf.mxu0  ;;  %v9615_v18 = vor.u32 1.1754944e-38, %v9614_v29  ;;  %vm9613_vm0 = vcmp.eq.f32.partialorder %v9612_v16, 8.507059e+37 }
 0xe14   : > { %v9591_v49 = vmul.f32 %v11508_v40, %v9590_v23  ;;  %v9088_v2 = vadd.f32 %v16718_v3, %v9087_v39  ;;  %v9764_v26 = vmul.f32 %v9732_v32, %v16532_v51 }
 0xe16   : > { %v11510_v17 = vpop.eup %11509  ;;  %v9592_v57 = vadd.f32 %v11508_v40, %v9591_v49  ;;  %v11064_v35 = vmul.f32 -1.442695, %v9088_v2  ;;  %9812 = vxpose.xlu0.b32.cont [8/16] (narrow) %v9764_v26, 32 }
 0xe17   : > { %v11512_v63 = vpop.eup %11511  ;;  %v9222_v30 = vadd.f32 1.0, %v11510_v17 }
 0xe18   : > { %v9604_v14 = vmul.f32 %v11512_v63, %v9221_v46  ;;  %11513 = vpow2.f32 %v11064_v35  ;;  %v9596_v12 = vsel %vm9595_vm11, %v11508_v40, %v9592_v57  ;;  %vm9609_vm13 = vweird.f32 %v11512_v63 }
 0xe19   : > { %11515 = vrcp.f32 %v9222_v30  ;;  %v9601_v34 = vsel %vm9598_vm12, %v9600_v61, %v9596_v12  ;;  %vm9610_vm15 = vmor %vm9608_vm14, %vm9609_vm13  ;;  %v9629_v43 = vand.u32 2147483648, %v9222_v30  ;;  %v9627_v48 = vand.u32 2147483647, %v9222_v30 }
 0xe1a   : > { %v9605_v50 = vsub.f32 1.0, %v9604_v14  ;;  %v9733_v36 = vadd.f32 %v16640_v47, %v9601_v34  ;;  %vm9623_vm3 = vweird.f32 %v9222_v30 }
 0xe1b   : > { %v9090_v53 = vpop.f32.mrf.mxu0  ;;  %v9630_v1 = vor.u32 1.1754944e-38, %v9629_v43  ;;  %vm9628_vm5 = vcmp.eq.f32.partialorder %v9627_v48, 8.507059e+37 }
 0xe1c   : > { %v9606_v51 = vmul.f32 %v11512_v63, %v9605_v50  ;;  %v9091_v11 = vadd.f32 %v16718_v3, %v9090_v53  ;;  %v9765_v44 = vmul.f32 %v9733_v36, %v16539_v55 }
 0xe1e   : > { %v11514_v25 = vpop.eup %11513  ;;  %v9607_v37 = vadd.f32 %v11512_v63, %v9606_v51  ;;  %v11065_v27 = vmul.f32 -1.442695, %v9091_v11  ;;  %9813 = vxpose.xlu0.b32.cont [9/16] (narrow) %v9765_v44, 32 }
 0xe1f   : > { %v11516_v38 = vpop.eup %11515  ;;  %v9223_v15 = vadd.f32 1.0, %v11514_v25 }
 0xe20   : > { %v9619_v13 = vmul.f32 %v11516_v38, %v9222_v30  ;;  %11517 = vpow2.f32 %v11065_v27  ;;  %v9611_v60 = vsel %vm9610_vm15, %v11512_v63, %v9607_v37  ;;  %vm9624_vm2 = vweird.f32 %v11516_v38 }
 0xe21   : > { %11519 = vrcp.f32 %v9223_v15  ;;  %v9616_v41 = vsel %vm9613_vm0, %v9615_v18, %v9611_v60  ;;  %vm9625_vm4 = vmor %vm9623_vm3, %vm9624_vm2  ;;  %v9644_v23 = vand.u32 2147483648, %v9223_v15  ;;  %v9642_v39 = vand.u32 2147483647, %v9223_v15 }
 0xe22   : > { %v9620_v10 = vsub.f32 1.0, %v9619_v13  ;;  %v9734_v45 = vadd.f32 %v16640_v47, %v9616_v41  ;;  %vm9638_vm7 = vweird.f32 %v9223_v15 }
 0xe23   : > { %v9092_v24 = vpop.f32.mrf.mxu0  ;;  %v9645_v17 = vor.u32 1.1754944e-38, %v9644_v23  ;;  %vm9643_vm9 = vcmp.eq.f32.partialorder %v9642_v39, 8.507059e+37 }
 0xe24   : > { %v9621_v55 = vmul.f32 %v11516_v38, %v9620_v10  ;;  %v9093_v31 = vadd.f32 %v16718_v3, %v9092_v24  ;;  %v9766_v19 = vmul.f32 %v9734_v45, %v16547_v59 }
 0xe26   : > { %v11518_v56 = vpop.eup %11517  ;;  %v9622_v0 = vadd.f32 %v11516_v38, %v9621_v55  ;;  %v11066_v5 = vmul.f32 -1.442695, %v9093_v31  ;;  %9814 = vxpose.xlu0.b32.cont [10/16] (narrow) %v9766_v19, 32 }
 0xe27   : > { %v11520_v62 = vpop.eup %11519  ;;  %v9224_v42 = vadd.f32 1.0, %v11518_v56 }
 0xe28   : > { %v9634_v4 = vmul.f32 %v11520_v62, %v9223_v15  ;;  %11521 = vpow2.f32 %v11066_v5  ;;  %v9626_v40 = vsel %vm9625_vm4, %v11516_v38, %v9622_v0  ;;  %vm9639_vm6 = vweird.f32 %v11520_v62 }
 0xe29   : > { %11523 = vrcp.f32 %v9224_v42  ;;  %v9631_v21 = vsel %vm9628_vm5, %v9630_v1, %v9626_v40  ;;  %vm9640_vm8 = vmor %vm9638_vm7, %vm9639_vm6  ;;  %v9659_v12 = vand.u32 2147483648, %v9224_v42  ;;  %v9657_v34 = vand.u32 2147483647, %v9224_v42 }
 0xe2a   : > { %v9635_v46 = vsub.f32 1.0, %v9634_v4  ;;  %v9735_v54 = vadd.f32 %v16640_v47, %v9631_v21  ;;  %vm9653_vm10 = vweird.f32 %v9224_v42 }
 0xe2b   : > { %v9095_v7 = vpop.f32.mrf.mxu0  ;;  %v9660_v44 = vor.u32 1.1754944e-38, %v9659_v12  ;;  %vm9658_vm12 = vcmp.eq.f32.partialorder %v9657_v34, 8.507059e+37 }
 0xe2c   : > { %v9636_v59 = vmul.f32 %v11520_v62, %v9635_v46  ;;  %v9096_v33 = vadd.f32 %v16718_v3, %v9095_v7  ;;  %v9767_v32 = vmul.f32 %v9735_v54, %v16553_v52 }
 0xe2e   : > { %v11522_v49 = vpop.eup %11521  ;;  %v9637_v58 = vadd.f32 %v11520_v62, %v9636_v59  ;;  %v11067_v2 = vmul.f32 -1.442695, %v9096_v33  ;;  %9815 = vxpose.xlu0.b32.cont [11/16] (narrow) %v9767_v32, 32 }
 0xe2f   : > { %v11524_v9 = vpop.eup %11523  ;;  %v9225_v26 = vadd.f32 1.0, %v11522_v49 }
 0xe30   : > { %v9649_v57 = vmul.f32 %v11524_v9, %v9224_v42  ;;  %11525 = vpow2.f32 %v11067_v2  ;;  %v9641_v35 = vsel %vm9640_vm8, %v11520_v62, %v9637_v58  ;;  %vm9654_vm1 = vweird.f32 %v11524_v9 }
 0xe31   : > { %11527 = vrcp.f32 %v9225_v26  ;;  %v9646_v30 = vsel %vm9643_vm9, %v9645_v17, %v9641_v35  ;;  %vm9655_vm11 = vmor %vm9653_vm10, %vm9654_vm1  ;;  %v9672_v18 = vand.u32 2147483647, %v9225_v26  ;;  %vm9668_vm14 = vweird.f32 %v9225_v26 }
 0xe32   : > { %v9650_v63 = vsub.f32 1.0, %v9649_v57  ;;  %v9736_v14 = vadd.f32 %v16640_v47, %v9646_v30 }
 0xe33   : > { %v9097_v61 = vpop.f32.mrf.mxu0  ;;  %vm9673_vm0 = vcmp.eq.f32.partialorder %v9672_v18, 8.507059e+37 }
 0xe34   : > { %v9651_v52 = vmul.f32 %v11524_v9, %v9650_v63  ;;  %v9098_v50 = vadd.f32 %v16718_v3, %v9097_v61  ;;  %v9768_v53 = vmul.f32 %v9736_v14, %v16560_v6  ;;  %v9674_v6 = vand.u32 2147483648, %v9225_v26 }
 0xe36   : > { %v11526_v36 = vpop.eup %11525  ;;  %v9652_v51 = vadd.f32 %v11524_v9, %v9651_v52  ;;  %v11068_v29 = vmul.f32 -1.442695, %v9098_v50  ;;  %9816 = vxpose.xlu0.b32.cont [12/16] (narrow) %v9768_v53, 32  ;;  %v9675_v45 = vor.u32 1.1754944e-38, %v9674_v6 }
 0xe37   : > { %v11528_v11 = vpop.eup %11527  ;;  %v9226_v16 = vadd.f32 1.0, %v11526_v36 }
 0xe38   : > { %v9664_v25 = vmul.f32 %v11528_v11, %v9225_v26  ;;  %11529 = vpow2.f32 %v11068_v29  ;;  %v9656_v37 = vsel %vm9655_vm11, %v11524_v9, %v9652_v51  ;;  %vm9669_vm13 = vweird.f32 %v11528_v11  ;;  %v9789_v9 = vpop.trf.xlu2 }
 0xe39   : > { %11531 = vrcp.f32 %v9226_v16  ;;  %v9661_v38 = vsel %vm9658_vm12, %v9660_v44, %v9656_v37  ;;  %vm9670_vm15 = vmor %vm9668_vm14, %vm9669_vm13  ;;  %v9689_v19 = vand.u32 2147483648, %v9226_v16  ;;  %vm9683_vm3 = vweird.f32 %v9226_v16  ;;  %9837 = vst [vmem:[%s656_s23] sm:$0xff] %v9789_v9 }
 0xe3a   : > { %v9665_v27 = vsub.f32 1.0, %v9664_v25  ;;  %v9737_v3 = vadd.f32 %v16640_v47, %v9661_v38 }
 0xe3b   : > { %v9690_v1 = vor.u32 1.1754944e-38, %v9689_v19 }
 0xe3c   : > { %v9666_v15 = vmul.f32 %v11528_v11, %v9665_v27  ;;  %v9769_v13 = vmul.f32 %v9737_v3, %v16566_v8  ;;  %v9687_v8 = vand.u32 2147483647, %v9226_v16 }
 0xe3e   : > { %v11530_v60 = vpop.eup %11529  ;;  %v9667_v10 = vadd.f32 %v11528_v11, %v9666_v15  ;;  %9817 = vxpose.xlu0.b32.cont [13/16] (narrow) %v9769_v13, 32  ;;  %vm9688_vm5 = vcmp.eq.f32.partialorder %v9687_v8, 8.507059e+37 }
 0xe3f   : > { %v11532_v41 = vpop.eup %11531  ;;  %v9227_v24 = vadd.f32 1.0, %v11530_v60 }
 0xe40   : > { %v9679_v55 = vmul.f32 %v11532_v41, %v9226_v16  ;;  %v9671_v43 = vsel %vm9670_vm15, %v11528_v11, %v9667_v10  ;;  %vm9684_vm2 = vweird.f32 %v11532_v41 }
 0xe41   : > { %11533 = vrcp.f32 %v9227_v24  ;;  %v9676_v48 = vsel %vm9673_vm0, %v9675_v45, %v9671_v43  ;;  %vm9685_vm4 = vmor %vm9683_vm3, %vm9684_vm2  ;;  %v9704_v54 = vand.u32 2147483648, %v9227_v24  ;;  %v9702_v23 = vand.u32 2147483647, %v9227_v24 }
 0xe42   : > { %v9680_v31 = vsub.f32 1.0, %v9679_v55  ;;  %v9738_v56 = vadd.f32 %v16640_v47, %v9676_v48  ;;  %vm9698_vm7 = vweird.f32 %v9227_v24 }
 0xe43   : > { %v9705_v39 = vor.u32 1.1754944e-38, %v9704_v54  ;;  %vm9703_vm9 = vcmp.eq.f32.partialorder %v9702_v23, 8.507059e+37 }
 0xe44   : > { %v9681_v0 = vmul.f32 %v11532_v41, %v9680_v31  ;;  %v9770_v5 = vmul.f32 %v9738_v56, %v16571_v28 }
 0xe46   : > { %v9682_v62 = vadd.f32 %v11532_v41, %v9681_v0  ;;  %9818 = vxpose.xlu0.b32.cont [14/16] (narrow) %v9770_v5, 32 }
 0xe47   : > { %v11534_v42 = vpop.eup %11533 }
 0xe48   : > { %v9694_v4 = vmul.f32 %v11534_v42, %v9227_v24  ;;  %v9686_v40 = vsel %vm9685_vm4, %v11532_v41, %v9682_v62  ;;  %vm9699_vm6 = vweird.f32 %v11534_v42 }
 0xe49   : > { %v9691_v46 = vsel %vm9688_vm5, %v9690_v1, %v9686_v40  ;;  %vm9700_vm8 = vmor %vm9698_vm7, %vm9699_vm6 }
 0xe4a   : > { %v9695_v21 = vsub.f32 1.0, %v9694_v4  ;;  %v9739_v7 = vadd.f32 %v16640_v47, %v9691_v46 }
 0xe4c   : > { %v9696_v59 = vmul.f32 %v11534_v42, %v9695_v21  ;;  %v9771_v28 = vmul.f32 %v9739_v7, %v16575_v22  ;;  %v9790_v22 = vpop.trf.xlu2 }
 0xe4d   : > { %9839 = vst [vmem:[%s656_s23 + $0x10] sm:$0xff] %v9790_v22 }
 0xe4e   : > { %v9697_v33 = vadd.f32 %v11534_v42, %v9696_v59  ;;  %9819 = vxpose.xlu0.b32.cont [15/16] (narrow) %v9771_v28, 32 }
 0xe50   : > { %v9701_v32 = vsel %vm9700_vm8, %v11534_v42, %v9697_v33 }
 0xe51   : > { %v9706_v49 = vsel %vm9703_vm9, %v9705_v39, %v9701_v32 }
 0xe52   : > { %v9740_v58 = vadd.f32 %v16640_v47, %v9706_v49 }
 0xe54   : > { %v9772_v2 = vmul.f32 %v9740_v58, %v16583_v20  ;;  %v9791_v26 = vpop.trf.xlu2 }
 0xe55   : > { %9841 = vst [vmem:[%s656_s23 + $0x20] sm:$0xff] %v9791_v26 }
 0xe56   : > { %9820 = vxpose.xlu0.b32.end [16/16] (narrow) %v9772_v2, 32 }
 0xe5c   : > { %v9792_v17 = vpop.trf.xlu2 }
 0xe5d   : > { %9843 = vst [vmem:[%s656_s23 + $0x30] sm:$0xff] %v9792_v17 }
 0xe82   : > { %v9821_v57 = vpop.trf.xlu0 }
 0xe83   : > { %9838 = vst [vmem:[%s656_s23 + $0x8] sm:$0xff] %v9821_v57 }
 0xe8a   : > { %v9822_v35 = vpop.trf.xlu0 }
 0xe8b   : > { %9840 = vst [vmem:[%s656_s23 + $0x18] sm:$0xff] %v9822_v35 }
 0xe92   : > { %v9823_v47 = vpop.trf.xlu0 }
 0xe93   : > { %9842 = vst [vmem:[%s656_s23 + $0x28] sm:$0xff] %v9823_v47 }
 0xe9a   : > { %v9824_v20 = vpop.trf.xlu0 }
 0xe9b   : > { %9844 = vst [vmem:[%s656_s23 + $0x38] sm:$0xff] %v9824_v20 }
 0xe9c PF: > { %s31_s2 = sadd.s32 1, %s11545_s2  }
 0xe9d   : > { %p28_p4 = scmp.ge.s32.totalorder %s31_s2, 4  }
 0xe9f   :  { %30 = sbr.rel (!%p28_p4) target bundleno = 7 (0x7), region = 156 }

</bundles_post_ra>
